<compile_context>
chip_gen: v7x
topology: tpu7x:2x2x1
jax: 0.10.0
libtpu: 0.0.40
codegen_flags: <defaults>
</compile_context>

<pallas_src>
from functools import partial

import jax
import jax.numpy as jnp
from jax.experimental import pallas as pl
from jax.experimental.pallas import tpu as pltpu


def _rup(x, m):
    return ((x + m - 1) // m) * m


# ----------------------------------------------------------------------------
# Pallas kernels (fused per-branch; intermediates never leave VMEM)
# ----------------------------------------------------------------------------
def _fused_mlp_kernel(x_ref, w1_ref, b1_ref, w2_ref, b2_ref, o_ref):
    # hidden = x @ w1 + b1   (bf16 operands, f32 MXU accumulation)
    h = jnp.dot(x_ref[...], w1_ref[...], preferred_element_type=jnp.float32)
    h = (h + b1_ref[...]).astype(w2_ref.dtype)
    # out = hidden @ w2 + b2
    o = jnp.dot(h, w2_ref[...], preferred_element_type=jnp.float32)
    o_ref[...] = (o + b2_ref[...]).astype(o_ref.dtype)


def _text_branch_kernel(emb_ref, w1_ref, b1_ref, w2_ref, b2_ref, o_ref, *,
                        batch, seq):
    # last_hidden_state (pre-bias): [B*S, 768], f32 accumulation.
    h = jnp.dot(emb_ref[...], w1_ref[...], preferred_element_type=jnp.float32)
    # torch.max(hidden, axis=1).values — the per-feature bias is constant over
    # the sequence, so it commutes with the max and is added once afterwards.
    rows = [
        jnp.max(h[b * seq:(b + 1) * seq, :], axis=0, keepdims=True)
        for b in range(batch)
    ]
    m = jnp.concatenate(rows, axis=0) + b1_ref[...]            # [B, 768] f32
    o = jnp.dot(m.astype(w2_ref.dtype), w2_ref[...],
                preferred_element_type=jnp.float32)
    o_ref[...] = (o + b2_ref[...]).astype(o_ref.dtype)


# ----------------------------------------------------------------------------
# Pallas wrappers (full-array blocks: everything here fits VMEM comfortably)
# ----------------------------------------------------------------------------
def pallas_fused_mlp(x, w1, b1, w2, b2):
    """out = (x @ w1 + b1) @ w2 + b2, fused in one kernel. x:[M,K] -> [M,N] f32."""
    M, K = x.shape
    K1, H = w1.shape
    H2, N = w2.shape
    assert K == K1 and H == H2
    b1_2 = b1.reshape(1, H).astype(jnp.float32)
    b2_2 = b2.reshape(1, N).astype(jnp.float32)
    return pl.pallas_call(
        _fused_mlp_kernel,
        out_shape=jax.ShapeDtypeStruct((M, N), jnp.float32),
        grid=(1,),
        in_specs=[
            pl.BlockSpec((M, K), lambda i: (0, 0)),
            pl.BlockSpec((K, H), lambda i: (0, 0)),
            pl.BlockSpec((1, H), lambda i: (0, 0)),
            pl.BlockSpec((H, N), lambda i: (0, 0)),
            pl.BlockSpec((1, N), lambda i: (0, 0)),
        ],
        out_specs=pl.BlockSpec((M, N), lambda i: (0, 0)),
        compiler_params=pltpu.CompilerParams(
            dimension_semantics=("arbitrary",)),
    )(x, w1, b1_2, w2, b2_2)


def pallas_text_branch(emb2d, w1, b1, w2, b2, *, batch, seq):
    """Fused: per-token linear -> max over seq -> projection. emb2d:[B*S,D] -> [B,N]."""
    BS, D = emb2d.shape
    D1, H = w1.shape
    H2, N = w2.shape
    assert D == D1 and H == H2 and BS == batch * seq
    b1_2 = b1.reshape(1, H).astype(jnp.float32)
    b2_2 = b2.reshape(1, N).astype(jnp.float32)
    kern = partial(_text_branch_kernel, batch=batch, seq=seq)
    return pl.pallas_call(
        kern,
        out_shape=jax.ShapeDtypeStruct((batch, N), jnp.float32),
        grid=(1,),
        in_specs=[
            pl.BlockSpec((BS, D), lambda i: (0, 0)),
            pl.BlockSpec((D, H), lambda i: (0, 0)),
            pl.BlockSpec((1, H), lambda i: (0, 0)),
            pl.BlockSpec((H, N), lambda i: (0, 0)),
            pl.BlockSpec((1, N), lambda i: (0, 0)),
        ],
        out_specs=pl.BlockSpec((batch, N), lambda i: (0, 0)),
        compiler_params=pltpu.CompilerParams(
            dimension_semantics=("arbitrary",)),
    )(emb2d, w1, b1_2, w2, b2_2)


# ----------------------------------------------------------------------------
# Parameter initialization (deterministic, synthetic; lane-dense zero padding)
# ----------------------------------------------------------------------------
def init_params(key, *, img_in_dim, vocab_size, tab_in_dim):
    ks = jax.random.split(key, 12)
    s = 0.02

    def nrm(k, shape):
        return (s * jax.random.normal(k, shape)).astype(jnp.float32)

    IMG_FEAT, TAB_FEAT, HID, PROJ = 1000, 2508, 768, 512
    img_in_pad = _rup(img_in_dim, 128)
    img_feat_pad = _rup(IMG_FEAT, 128)   # 1024
    tab_in_pad = _rup(tab_in_dim, 128)   # 128
    tab_feat_pad = _rup(TAB_FEAT, 128)   # 2560

    def pad2(w, rows, cols):
        return jnp.pad(w, ((0, rows - w.shape[0]), (0, cols - w.shape[1])))

    def pad1(b, n):
        return jnp.pad(b, (0, n - b.shape[0]))

    params = {
        # TODO(synk): stand-in for the resnet50 backbone producing [B, 1000]
        # features; real pretrained weights are not reproducible here.
        "img_backbone_w": pad2(nrm(ks[0], (img_in_dim, IMG_FEAT)),
                               img_in_pad, img_feat_pad).astype(jnp.bfloat16),
        "img_backbone_b": pad1(nrm(ks[1], (IMG_FEAT,)), img_feat_pad),
        "image_project_w": pad2(nrm(ks[2], (IMG_FEAT, PROJ)),
                                img_feat_pad, PROJ).astype(jnp.bfloat16),
        "image_project_b": nrm(ks[3], (PROJ,)),
        # TODO(synk): stand-in for Bio_ClinicalBERT: token embedding + one
        # per-token linear layer producing last_hidden_state [B, S, 768].
        "tok_embed": nrm(ks[4], (vocab_size, HID)).astype(jnp.bfloat16),
        "text_backbone_w": nrm(ks[5], (HID, HID)).astype(jnp.bfloat16),
        "text_backbone_b": nrm(ks[6], (HID,)),
        "text_project_w": nrm(ks[7], (HID, PROJ)).astype(jnp.bfloat16),
        "text_project_b": nrm(ks[8], (PROJ,)),
        # TODO(synk): stand-in for TabTransformer producing [B, 2508] features.
        "tab_backbone_w": pad2(nrm(ks[9], (tab_in_dim, TAB_FEAT)),
                               tab_in_pad, tab_feat_pad).astype(jnp.bfloat16),
        "tab_backbone_b": pad1(nrm(ks[10], (TAB_FEAT,)), tab_feat_pad),
        "tab_project_w": pad2(nrm(ks[11], (TAB_FEAT, PROJ)),
                              tab_feat_pad, PROJ).astype(jnp.bfloat16),
        "tab_project_b": jnp.zeros((PROJ,), dtype=jnp.float32),
    }
    return params


# ----------------------------------------------------------------------------
# MIMICModel.forward equivalent (3 fused Pallas calls)
# ----------------------------------------------------------------------------
def mimic_forward(params, image, text, masks, tabular):
    # TODO(synk): `masks` only influences the real BERT's attention; the
    # stand-in backbone (and the max over the sequence) ignores it, matching
    # the original module's torch.max over all positions.
    B = image.shape[0]
    m_pad = _rup(B, 8)  # sublane-multiple batch for dense MXU rows / stores

    # ---- image branch: resnet50(image) -> [B,1000]; image_project -> [B,512]
    img_flat = image.reshape(B, -1).astype(jnp.bfloat16)
    k_img = params["img_backbone_w"].shape[0]
    img_flat = jnp.pad(img_flat,
                       ((0, m_pad - B), (0, k_img - img_flat.shape[1])))
    x_image = pallas_fused_mlp(
        img_flat,
        params["img_backbone_w"], params["img_backbone_b"],
        params["image_project_w"], params["image_project_b"],
    )[:B]

    # ---- text branch: hidden [B,S,768] -> max over seq -> project -> [B,512]
    emb = jnp.take(params["tok_embed"], text, axis=0)   # [B, S, 768] (glue gather)
    S = emb.shape[1]
    emb2d = emb.reshape(B * S, emb.shape[2])
    x_text = pallas_text_branch(
        emb2d,
        params["text_backbone_w"], params["text_backbone_b"],
        params["text_project_w"], params["text_project_b"],
        batch=B, seq=S,
    )

    # ---- tabular branch: TabTransformer(tabular) -> [B,2508]; project -> 512
    k_tab = params["tab_backbone_w"].shape[0]
    tab = tabular.astype(jnp.bfloat16)
    tab = jnp.pad(tab, ((0, m_pad - B), (0, k_tab - tab.shape[1])))
    x_tab = pallas_fused_mlp(
        tab,
        params["tab_backbone_w"], params["tab_backbone_b"],
        params["tab_project_w"], params["tab_project_b"],
    )[:B]

    return x_image, x_text, x_tab


# ----------------------------------------------------------------------------
# Pure-JAX reference (mirrors the kernel's bf16 casts; f32 accumulation)
# ----------------------------------------------------------------------------
def reference_forward(params, image, text, masks, tabular):
    B = image.shape[0]
    f32 = lambda a: a.astype(jnp.float32)

    img_flat = f32(image.reshape(B, -1).astype(jnp.bfloat16))
    feat = img_flat @ f32(params["img_backbone_w"]) + params["img_backbone_b"]
    feat = f32(feat.astype(jnp.bfloat16))
    x_image = feat @ f32(params["image_project_w"]) + params["image_project_b"]

    emb = f32(jnp.take(params["tok_embed"], text, axis=0))
    hid = (jnp.einsum("bsd,dh->bsh", emb, f32(params["text_backbone_w"]))
           + params["text_backbone_b"])
    m = f32(jnp.max(hid, axis=1).astype(jnp.bfloat16))
    x_text = m @ f32(params["text_project_w"]) + params["text_project_b"]

    k_tab = params["tab_backbone_w"].shape[0]
    tab = f32(tabular.astype(jnp.bfloat16))
    tab = jnp.pad(tab, ((0, 0), (0, k_tab - tab.shape[1])))
    feat_t = tab @ f32(params["tab_backbone_w"]) + params["tab_backbone_b"]
    feat_t = f32(feat_t.astype(jnp.bfloat16))
    x_tab = feat_t @ f32(params["tab_project_w"]) + params["tab_project_b"]
    return x_image, x_text, x_tab


# ----------------------------------------------------------------------------
# main
# ----------------------------------------------------------------------------
if __name__ == "__main__":
    key = jax.random.PRNGKey(0)
    k_img, k_txt, k_tab, k_par = jax.random.split(key, 4)

    B, H, W = 2, 16, 16          # small image, 1 channel (train_ver==1 conv1 takes 1 ch)
    S = 8                        # sequence length
    VOCAB = 64
    TAB = 12                     # number of tabular features

    image = jax.random.normal(k_img, (B, 1, H, W), dtype=jnp.float32)   # NCHW
    text = jax.random.randint(k_txt, (B, S), 0, VOCAB, dtype=jnp.int32)
    masks = jnp.ones((B, S), dtype=jnp.int32)
    tabular = jax.random.normal(k_tab, (B, TAB), dtype=jnp.float32)

    params = init_params(k_par, img_in_dim=1 * H * W, vocab_size=VOCAB,
                         tab_in_dim=TAB)

    fwd = jax.jit(mimic_forward)
    x_image, x_text, x_tab = fwd(params, image, text, masks, tabular)
    jax.block_until_ready((x_image, x_text, x_tab))

    assert x_image.shape == (B, 512) and x_image.dtype == jnp.float32
    assert x_text.shape == (B, 512)
    assert x_tab.shape == (B, 512)

    # Numerical sanity check against the pure-JAX reference.
    r_img, r_txt, r_tab = reference_forward(params, image, text, masks, tabular)
    assert jnp.allclose(x_image, r_img, rtol=2e-2, atol=2e-2)
    assert jnp.allclose(x_text, r_txt, rtol=2e-2, atol=2e-2)
    assert jnp.allclose(x_tab, r_tab, rtol=2e-2, atol=2e-2)

    print("KERNEL_OK")
</pallas_src>

<mosaic_0001>
module attributes {stable_mosaic.version = 11 : i64} {
  func.func @_text_branch_kernel(%arg0: i32, %arg1: memref<16x768xbf16, #tpu.memory_space<vmem>>, %arg2: memref<768x768xbf16, #tpu.memory_space<vmem>>, %arg3: memref<1x768xf32, #tpu.memory_space<vmem>>, %arg4: memref<768x512xbf16, #tpu.memory_space<vmem>>, %arg5: memref<1x512xf32, #tpu.memory_space<vmem>>, %arg6: memref<2x512xf32, #tpu.memory_space<vmem>>) attributes {dimension_semantics = [#tpu.dimension_semantics<arbitrary>], iteration_bounds = array<i64: 1>, scalar_prefetch = 0 : i64, scratch_operands = 0 : i64, tpu.core_type = #tpu.core_type<tc>, window_params = [{pipeline_mode = #tpu.pipeline_mode<synchronous>, transform_indices = @transform_0, window_bounds = array<i64: 16, 768>}, {pipeline_mode = #tpu.pipeline_mode<synchronous>, transform_indices = @transform_1, window_bounds = array<i64: 768, 768>}, {pipeline_mode = #tpu.pipeline_mode<synchronous>, transform_indices = @transform_2, window_bounds = array<i64: 1, 768>}, {pipeline_mode = #tpu.pipeline_mode<synchronous>, transform_indices = @transform_3, window_bounds = array<i64: 768, 512>}, {pipeline_mode = #tpu.pipeline_mode<synchronous>, transform_indices = @transform_4, window_bounds = array<i64: 1, 512>}, {pipeline_mode = #tpu.pipeline_mode<synchronous>, transform_indices = @transform_5, window_bounds = array<i64: 2, 512>}]} {
    %c0 = arith.constant 0 : index
    %c0_0 = arith.constant 0 : index
    %0 = vector.load %arg1[%c0, %c0_0] : memref<16x768xbf16, #tpu.memory_space<vmem>>, vector<16x768xbf16>
    %c0_1 = arith.constant 0 : index
    %c0_2 = arith.constant 0 : index
    %1 = vector.load %arg2[%c0_1, %c0_2] : memref<768x768xbf16, #tpu.memory_space<vmem>>, vector<768x768xbf16>
    %cst = arith.constant dense<0.000000e+00> : vector<16x768xf32>
    %2 = tpu.matmul %0, %1, %cst {dimension_numbers = #tpu.dot_dimension_numbers<[1], [0], [0], [1], [0, 0, 1, 1], [], []>} : vector<16x768xbf16>, vector<768x768xbf16>, vector<16x768xf32> -> vector<16x768xf32>
    %3 = vector.extract_strided_slice %2 {offsets = [0, 0], sizes = [8, 768], strides = [1, 1]} : vector<16x768xf32> to vector<8x768xf32>
    %cst_3 = arith.constant dense<0xFF800000> : vector<768xf32>
    %4 = vector.multi_reduction <maximumf>, %3, %cst_3 [0] : vector<8x768xf32> to vector<768xf32>
    %5 = vector.shape_cast %4 : vector<768xf32> to vector<1x768xf32>
    %6 = vector.extract_strided_slice %2 {offsets = [8, 0], sizes = [8, 768], strides = [1, 1]} : vector<16x768xf32> to vector<8x768xf32>
    %cst_4 = arith.constant dense<0xFF800000> : vector<768xf32>
    %7 = vector.multi_reduction <maximumf>, %6, %cst_4 [0] : vector<8x768xf32> to vector<768xf32>
    %8 = vector.shape_cast %7 : vector<768xf32> to vector<1x768xf32>
    %9 = tpu.concatenate %5, %8 in 0 : vector<1x768xf32>, vector<1x768xf32> -> vector<2x768xf32>
    %c0_5 = arith.constant 0 : index
    %c0_6 = arith.constant 0 : index
    %10 = vector.load %arg3[%c0_5, %c0_6] : memref<1x768xf32, #tpu.memory_space<vmem>>, vector<1x768xf32>
    %11 = vector.broadcast %10 : vector<1x768xf32> to vector<2x768xf32>
    %12 = arith.addf %9, %11 : vector<2x768xf32>
    %13 = arith.truncf %12 : vector<2x768xf32> to vector<2x768xbf16>
    %c0_7 = arith.constant 0 : index
    %c0_8 = arith.constant 0 : index
    %14 = vector.load %arg4[%c0_7, %c0_8] : memref<768x512xbf16, #tpu.memory_space<vmem>>, vector<768x512xbf16>
    %cst_9 = arith.constant dense<0.000000e+00> : vector<2x512xf32>
    %15 = tpu.matmul %13, %14, %cst_9 {dimension_numbers = #tpu.dot_dimension_numbers<[1], [0], [0], [1], [0, 0, 1, 1], [], []>} : vector<2x768xbf16>, vector<768x512xbf16>, vector<2x512xf32> -> vector<2x512xf32>
    %c0_10 = arith.constant 0 : index
    %c0_11 = arith.constant 0 : index
    %16 = vector.load %arg5[%c0_10, %c0_11] : memref<1x512xf32, #tpu.memory_space<vmem>>, vector<1x512xf32>
    %17 = vector.broadcast %16 : vector<1x512xf32> to vector<2x512xf32>
    %18 = arith.addf %15, %17 : vector<2x512xf32>
    %c0_12 = arith.constant 0 : index
    %c0_13 = arith.constant 0 : index
    %19 = vector.load %arg6[%c0_12, %c0_13] : memref<2x512xf32, #tpu.memory_space<vmem>>, vector<2x512xf32>
    tpu.vector_store %arg6[%c0_12, %c0_13], %18 {strides = array<i32>} : memref<2x512xf32, #tpu.memory_space<vmem>>, vector<2x512xf32>,
    return
  }
  func.func @transform_0(%arg0: i32) -> (i32, i32) {
    %c0_i32 = arith.constant 0 : i32
    %c0_i32_0 = arith.constant 0 : i32
    %c0_i32_1 = arith.constant 0 : i32
    return %c0_i32, %c0_i32_0 : i32, i32
  }
  func.func @transform_1(%arg0: i32) -> (i32, i32) {
    %c0_i32 = arith.constant 0 : i32
    %c0_i32_0 = arith.constant 0 : i32
    %c0_i32_1 = arith.constant 0 : i32
    return %c0_i32, %c0_i32_0 : i32, i32
  }
  func.func @transform_2(%arg0: i32) -> (i32, i32) {
    %c0_i32 = arith.constant 0 : i32
    %c0_i32_0 = arith.constant 0 : i32
    %c0_i32_1 = arith.constant 0 : i32
    return %c0_i32, %c0_i32_0 : i32, i32
  }
  func.func @transform_3(%arg0: i32) -> (i32, i32) {
    %c0_i32 = arith.constant 0 : i32
    %c0_i32_0 = arith.constant 0 : i32
    %c0_i32_1 = arith.constant 0 : i32
    return %c0_i32, %c0_i32_0 : i32, i32
  }
  func.func @transform_4(%arg0: i32) -> (i32, i32) {
    %c0_i32 = arith.constant 0 : i32
    %c0_i32_0 = arith.constant 0 : i32
    %c0_i32_1 = arith.constant 0 : i32
    return %c0_i32, %c0_i32_0 : i32, i32
  }
  func.func @transform_5(%arg0: i32) -> (i32, i32) {
    %c0_i32 = arith.constant 0 : i32
    %c0_i32_0 = arith.constant 0 : i32
    %c0_i32_1 = arith.constant 0 : i32
    return %c0_i32, %c0_i32_0 : i32, i32
  }
}

module attributes {stable_mosaic.version = 11 : i64} {
  func.func @_fused_mlp_kernel(%arg0: i32, %arg1: memref<8x128xbf16, #tpu.memory_space<vmem>>, %arg2: memref<128x2560xbf16, #tpu.memory_space<vmem>>, %arg3: memref<1x2560xf32, #tpu.memory_space<vmem>>, %arg4: memref<2560x512xbf16, #tpu.memory_space<vmem>>, %arg5: memref<1x512xf32, #tpu.memory_space<vmem>>, %arg6: memref<8x512xf32, #tpu.memory_space<vmem>>) attributes {dimension_semantics = [#tpu.dimension_semantics<arbitrary>], iteration_bounds = array<i64: 1>, scalar_prefetch = 0 : i64, scratch_operands = 0 : i64, tpu.core_type = #tpu.core_type<tc>, window_params = [{pipeline_mode = #tpu.pipeline_mode<synchronous>, transform_indices = @transform_0, window_bounds = array<i64: 8, 128>}, {pipeline_mode = #tpu.pipeline_mode<synchronous>, transform_indices = @transform_1, window_bounds = array<i64: 128, 2560>}, {pipeline_mode = #tpu.pipeline_mode<synchronous>, transform_indices = @transform_2, window_bounds = array<i64: 1, 2560>}, {pipeline_mode = #tpu.pipeline_mode<synchronous>, transform_indices = @transform_3, window_bounds = array<i64: 2560, 512>}, {pipeline_mode = #tpu.pipeline_mode<synchronous>, transform_indices = @transform_4, window_bounds = array<i64: 1, 512>}, {pipeline_mode = #tpu.pipeline_mode<synchronous>, transform_indices = @transform_5, window_bounds = array<i64: 8, 512>}]} {
    %c0 = arith.constant 0 : index
    %c0_0 = arith.constant 0 : index
    %0 = vector.load %arg1[%c0, %c0_0] : memref<8x128xbf16, #tpu.memory_space<vmem>>, vector<8x128xbf16>
    %c0_1 = arith.constant 0 : index
    %c0_2 = arith.constant 0 : index
    %1 = vector.load %arg2[%c0_1, %c0_2] : memref<128x2560xbf16, #tpu.memory_space<vmem>>, vector<128x2560xbf16>
    %cst = arith.constant dense<0.000000e+00> : vector<8x2560xf32>
    %2 = tpu.matmul %0, %1, %cst {dimension_numbers = #tpu.dot_dimension_numbers<[1], [0], [0], [1], [0, 0, 1, 1], [], []>} : vector<8x128xbf16>, vector<128x2560xbf16>, vector<8x2560xf32> -> vector<8x2560xf32>
    %c0_3 = arith.constant 0 : index
    %c0_4 = arith.constant 0 : index
    %3 = vector.load %arg3[%c0_3, %c0_4] : memref<1x2560xf32, #tpu.memory_space<vmem>>, vector<1x2560xf32>
    %4 = vector.broadcast %3 : vector<1x2560xf32> to vector<8x2560xf32>
    %5 = arith.addf %2, %4 : vector<8x2560xf32>
    %6 = arith.truncf %5 : vector<8x2560xf32> to vector<8x2560xbf16>
    %c0_5 = arith.constant 0 : index
    %c0_6 = arith.constant 0 : index
    %7 = vector.load %arg4[%c0_5, %c0_6] : memref<2560x512xbf16, #tpu.memory_space<vmem>>, vector<2560x512xbf16>
    %cst_7 = arith.constant dense<0.000000e+00> : vector<8x512xf32>
    %8 = tpu.matmul %6, %7, %cst_7 {dimension_numbers = #tpu.dot_dimension_numbers<[1], [0], [0], [1], [0, 0, 1, 1], [], []>} : vector<8x2560xbf16>, vector<2560x512xbf16>, vector<8x512xf32> -> vector<8x512xf32>
    %c0_8 = arith.constant 0 : index
    %c0_9 = arith.constant 0 : index
    %9 = vector.load %arg5[%c0_8, %c0_9] : memref<1x512xf32, #tpu.memory_space<vmem>>, vector<1x512xf32>
    %10 = vector.broadcast %9 : vector<1x512xf32> to vector<8x512xf32>
    %11 = arith.addf %8, %10 : vector<8x512xf32>
    %c0_10 = arith.constant 0 : index
    %c0_11 = arith.constant 0 : index
    %12 = vector.load %arg6[%c0_10, %c0_11] : memref<8x512xf32, #tpu.memory_space<vmem>>, vector<8x512xf32>
    tpu.vector_store %arg6[%c0_10, %c0_11], %11 {strides = array<i32>} : memref<8x512xf32, #tpu.memory_space<vmem>>, vector<8x512xf32>,
    return
  }
  func.func @transform_0(%arg0: i32) -> (i32, i32) {
    %c0_i32 = arith.constant 0 : i32
    %c0_i32_0 = arith.constant 0 : i32
    %c0_i32_1 = arith.constant 0 : i32
    return %c0_i32, %c0_i32_0 : i32, i32
  }
  func.func @transform_1(%arg0: i32) -> (i32, i32) {
    %c0_i32 = arith.constant 0 : i32
    %c0_i32_0 = arith.constant 0 : i32
    %c0_i32_1 = arith.constant 0 : i32
    return %c0_i32, %c0_i32_0 : i32, i32
  }
  func.func @transform_2(%arg0: i32) -> (i32, i32) {
    %c0_i32 = arith.constant 0 : i32
    %c0_i32_0 = arith.constant 0 : i32
    %c0_i32_1 = arith.constant 0 : i32
    return %c0_i32, %c0_i32_0 : i32, i32
  }
  func.func @transform_3(%arg0: i32) -> (i32, i32) {
    %c0_i32 = arith.constant 0 : i32
    %c0_i32_0 = arith.constant 0 : i32
    %c0_i32_1 = arith.constant 0 : i32
    return %c0_i32, %c0_i32_0 : i32, i32
  }
  func.func @transform_4(%arg0: i32) -> (i32, i32) {
    %c0_i32 = arith.constant 0 : i32
    %c0_i32_0 = arith.constant 0 : i32
    %c0_i32_1 = arith.constant 0 : i32
    return %c0_i32, %c0_i32_0 : i32, i32
  }
  func.func @transform_5(%arg0: i32) -> (i32, i32) {
    %c0_i32 = arith.constant 0 : i32
    %c0_i32_0 = arith.constant 0 : i32
    %c0_i32_1 = arith.constant 0 : i32
    return %c0_i32, %c0_i32_0 : i32, i32
  }
}

module attributes {stable_mosaic.version = 11 : i64} {
  func.func @_fused_mlp_kernel(%arg0: i32, %arg1: memref<8x256xbf16, #tpu.memory_space<vmem>>, %arg2: memref<256x1024xbf16, #tpu.memory_space<vmem>>, %arg3: memref<1x1024xf32, #tpu.memory_space<vmem>>, %arg4: memref<1024x512xbf16, #tpu.memory_space<vmem>>, %arg5: memref<1x512xf32, #tpu.memory_space<vmem>>, %arg6: memref<8x512xf32, #tpu.memory_space<vmem>>) attributes {dimension_semantics = [#tpu.dimension_semantics<arbitrary>], iteration_bounds = array<i64: 1>, scalar_prefetch = 0 : i64, scratch_operands = 0 : i64, tpu.core_type = #tpu.core_type<tc>, window_params = [{pipeline_mode = #tpu.pipeline_mode<synchronous>, transform_indices = @transform_0, window_bounds = array<i64: 8, 256>}, {pipeline_mode = #tpu.pipeline_mode<synchronous>, transform_indices = @transform_1, window_bounds = array<i64: 256, 1024>}, {pipeline_mode = #tpu.pipeline_mode<synchronous>, transform_indices = @transform_2, window_bounds = array<i64: 1, 1024>}, {pipeline_mode = #tpu.pipeline_mode<synchronous>, transform_indices = @transform_3, window_bounds = array<i64: 1024, 512>}, {pipeline_mode = #tpu.pipeline_mode<synchronous>, transform_indices = @transform_4, window_bounds = array<i64: 1, 512>}, {pipeline_mode = #tpu.pipeline_mode<synchronous>, transform_indices = @transform_5, window_bounds = array<i64: 8, 512>}]} {
    %c0 = arith.constant 0 : index
    %c0_0 = arith.constant 0 : index
    %0 = vector.load %arg1[%c0, %c0_0] : memref<8x256xbf16, #tpu.memory_space<vmem>>, vector<8x256xbf16>
    %c0_1 = arith.constant 0 : index
    %c0_2 = arith.constant 0 : index
    %1 = vector.load %arg2[%c0_1, %c0_2] : memref<256x1024xbf16, #tpu.memory_space<vmem>>, vector<256x1024xbf16>
    %cst = arith.constant dense<0.000000e+00> : vector<8x1024xf32>
    %2 = tpu.matmul %0, %1, %cst {dimension_numbers = #tpu.dot_dimension_numbers<[1], [0], [0], [1], [0, 0, 1, 1], [], []>} : vector<8x256xbf16>, vector<256x1024xbf16>, vector<8x1024xf32> -> vector<8x1024xf32>
    %c0_3 = arith.constant 0 : index
    %c0_4 = arith.constant 0 : index
    %3 = vector.load %arg3[%c0_3, %c0_4] : memref<1x1024xf32, #tpu.memory_space<vmem>>, vector<1x1024xf32>
    %4 = vector.broadcast %3 : vector<1x1024xf32> to vector<8x1024xf32>
    %5 = arith.addf %2, %4 : vector<8x1024xf32>
    %6 = arith.truncf %5 : vector<8x1024xf32> to vector<8x1024xbf16>
    %c0_5 = arith.constant 0 : index
    %c0_6 = arith.constant 0 : index
    %7 = vector.load %arg4[%c0_5, %c0_6] : memref<1024x512xbf16, #tpu.memory_space<vmem>>, vector<1024x512xbf16>
    %cst_7 = arith.constant dense<0.000000e+00> : vector<8x512xf32>
    %8 = tpu.matmul %6, %7, %cst_7 {dimension_numbers = #tpu.dot_dimension_numbers<[1], [0], [0], [1], [0, 0, 1, 1], [], []>} : vector<8x1024xbf16>, vector<1024x512xbf16>, vector<8x512xf32> -> vector<8x512xf32>
    %c0_8 = arith.constant 0 : index
    %c0_9 = arith.constant 0 : index
    %9 = vector.load %arg5[%c0_8, %c0_9] : memref<1x512xf32, #tpu.memory_space<vmem>>, vector<1x512xf32>
    %10 = vector.broadcast %9 : vector<1x512xf32> to vector<8x512xf32>
    %11 = arith.addf %8, %10 : vector<8x512xf32>
    %c0_10 = arith.constant 0 : index
    %c0_11 = arith.constant 0 : index
    %12 = vector.load %arg6[%c0_10, %c0_11] : memref<8x512xf32, #tpu.memory_space<vmem>>, vector<8x512xf32>
    tpu.vector_store %arg6[%c0_10, %c0_11], %11 {strides = array<i32>} : memref<8x512xf32, #tpu.memory_space<vmem>>, vector<8x512xf32>,
    return
  }
  func.func @transform_0(%arg0: i32) -> (i32, i32) {
    %c0_i32 = arith.constant 0 : i32
    %c0_i32_0 = arith.constant 0 : i32
    %c0_i32_1 = arith.constant 0 : i32
    return %c0_i32, %c0_i32_0 : i32, i32
  }
  func.func @transform_1(%arg0: i32) -> (i32, i32) {
    %c0_i32 = arith.constant 0 : i32
    %c0_i32_0 = arith.constant 0 : i32
    %c0_i32_1 = arith.constant 0 : i32
    return %c0_i32, %c0_i32_0 : i32, i32
  }
  func.func @transform_2(%arg0: i32) -> (i32, i32) {
    %c0_i32 = arith.constant 0 : i32
    %c0_i32_0 = arith.constant 0 : i32
    %c0_i32_1 = arith.constant 0 : i32
    return %c0_i32, %c0_i32_0 : i32, i32
  }
  func.func @transform_3(%arg0: i32) -> (i32, i32) {
    %c0_i32 = arith.constant 0 : i32
    %c0_i32_0 = arith.constant 0 : i32
    %c0_i32_1 = arith.constant 0 : i32
    return %c0_i32, %c0_i32_0 : i32, i32
  }
  func.func @transform_4(%arg0: i32) -> (i32, i32) {
    %c0_i32 = arith.constant 0 : i32
    %c0_i32_0 = arith.constant 0 : i32
    %c0_i32_1 = arith.constant 0 : i32
    return %c0_i32, %c0_i32_0 : i32, i32
  }
  func.func @transform_5(%arg0: i32) -> (i32, i32) {
    %c0_i32 = arith.constant 0 : i32
    %c0_i32_0 = arith.constant 0 : i32
    %c0_i32_1 = arith.constant 0 : i32
    return %c0_i32, %c0_i32_0 : i32, i32
  }
}

</mosaic_0001>

<bundles_post_ra>
// kernel: mimic_forward.3
= control target key start
LH: loop header
LB: loop body
LE: loop exit
PB: predicated region body
PF: predicated region fallthrough
CT: control target
= control target key end

     0   :  { %10 = vsyncpa [#allocation3], 0  ;;  %s4745_s0 = inlined_call_operand.vmem [shape: bf16[8,256], index: 0, kind: input, shape index: {}]   ;;  %s4746_s1 = inlined_call_operand.hbm [shape: bf16[256,1024], index: 1, kind: input, shape index: {}]   ;;  %s4747_s2 = inlined_call_operand.hbm [shape: f32[1,1024], index: 2, kind: input, shape index: {}]   ;;  %s4748_s3 = inlined_call_operand.vmem [shape: bf16[1024,512], index: 3, kind: input, shape index: {}]   ;;  %s4749_s4 = inlined_call_operand.hbm [shape: f32[1,512], index: 4, kind: input, shape index: {}]   ;;  %s4750_s5 = inlined_call_operand.vmem [shape: f32[8,512], index: 5, kind: output, shape index: {}]  }
   0x1   :  { %11 = vsyncpa [#allocation5], 0  ;;  %s3818_s18 = smov [#allocation4]   ;;  %s3819_s20 = smov [#allocation2]  }
   0x2   :  { %s32_s19 = sshll.u32 %s3818_s18, 4  ;;  %s19_s21 = sshll.u32 %s3819_s20, 4  ;;  %s33_s19 = int_to_ptr.vmem [resolvable:$true] %s32_s19  ;;  %s3853_s21 = int_to_ptr.vmem [resolvable:$true] %s19_s21 }
   0x3   :  { %s3748_s24 = scalar_lea.hbm %s4747_s2, 128 }
   0x4   :  { %p3749_p0 = scmp.ne.s32.totalorder %s4747_s2, %s3748_s24  ;;  %p3752_p1 = scmp.lt.u32.totalorder %s3748_s24, %s4747_s2 }
   0x6   :  { %p3754_p2 = pnand %p3752_p1, %p3749_p0 }
   0x8   :  { %3757 = shalt.err (!%p3754_p2)
}
   0x9   :  { %s3758_s29 = scalar_lea.vmem %s33_s19, 128  ;;  %p3763_p4 = scmp.lt.s32.totalorder %s33_s19, %s33_s19 }
   0xa   :  { %p3759_p3 = scmp.ne.s32.totalorder %s33_s19, %s3758_s29  ;;  %p3764_p5 = scmp.lt.s32.totalorder %s3758_s29, %s3758_s29 }
   0xc   :  { %p3765_p6 = por %p3764_p5, %p3763_p4 }
   0xe   :  { %p3766_p7 = pnand %p3765_p6, %p3759_p3 }
  0x10   :  { %3769 = shalt.err (!%p3766_p7)
}
  0x11   :  { %35 = dma.hbm_to_vmem [thread:$0]  %s4747_s2, 128, %s33_s19, [#allocation5]  }
  0x12   :  { %s3770_s9 = scalar_lea.hbm %s4746_s1, 16384 }
  0x13   :  { %p3771_p8 = scmp.ne.s32.totalorder %s4746_s1, %s3770_s9  ;;  %p3774_p9 = scmp.lt.u32.totalorder %s3770_s9, %s4746_s1 }
  0x15   :  { %p3776_p10 = pnand %p3774_p9, %p3771_p8 }
  0x17   :  { %3779 = shalt.err (!%p3776_p10)
}
  0x18   :  { %s3780_s14 = scalar_lea.vmem %s3853_s21, 16384  ;;  %p3785_p12 = scmp.lt.s32.totalorder %s3853_s21, %s3853_s21 }
  0x19   :  { %p3781_p11 = scmp.ne.s32.totalorder %s3853_s21, %s3780_s14  ;;  %p3786_p13 = scmp.lt.s32.totalorder %s3780_s14, %s3780_s14 }
  0x1b   :  { %p3787_p0 = por %p3786_p13, %p3785_p12 }
  0x1d   :  { %p3788_p1 = pnand %p3787_p0, %p3781_p11 }
  0x1f   :  { %3791 = shalt.err (!%p3788_p1)
}
  0x20   :  { %s3820_s2 = smov 512   ;;  %s3821_s15 = smov 32  }
  0x21   :  { %25 = dma.hbm_to_vmem [thread:$0]  %s4746_s1, 16384, %s3853_s21, [#allocation3], %s3820_s2, %s3820_s2, %s3821_s15  }
  0x22   :  { %s3822_s18 = smov [#allocation6]   ;;  %s3792_s23 = scalar_lea.hbm %s4749_s4, 64 }
  0x23   :  { %s44_s19 = sshll.u32 %s3822_s18, 4  ;;  %p3793_p2 = scmp.ne.s32.totalorder %s4749_s4, %s3792_s23  ;;  %s45_s19 = int_to_ptr.vmem [resolvable:$true] %s44_s19 }
  0x24   :  { %p3796_p3 = scmp.lt.u32.totalorder %s3792_s23, %s4749_s4 }
  0x26   :  { %p3798_p4 = pnand %p3796_p3, %p3793_p2 }
  0x28   :  { %3801 = shalt.err (!%p3798_p4)
}
  0x29   :  { %s3802_s28 = scalar_lea.vmem %s45_s19, 64  ;;  %p3807_p6 = scmp.lt.s32.totalorder %s45_s19, %s45_s19 }
  0x2a   :  { %p3803_p5 = scmp.ne.s32.totalorder %s45_s19, %s3802_s28  ;;  %p3808_p7 = scmp.lt.s32.totalorder %s3802_s28, %s3802_s28 }
  0x2c   :  { %p3809_p8 = por %p3808_p7, %p3807_p6 }
  0x2e   :  { %p3810_p9 = pnand %p3809_p8, %p3803_p5 }
  0x30   :  { %3813 = shalt.err (!%p3810_p9)
}
  0x31   :  { %47 = dma.hbm_to_vmem [thread:$0]  %s4749_s4, 64, %s45_s19, [#allocation5]  }
  0x32   :  { %3814 = dma.done.wait [#allocation3], 16384  }
  0x33   :  { %3815 = vsyncadd [#allocation3], 4294950912 }
  0x34   :  { %3816 = dma.done.wait [#allocation5], 192  }
  0x35   :  { %3817 = vsyncadd [#allocation5], 4294967104  ;;  %v58_v0 = vld [vmem:[#allocation2] sm:$0xff]  ;;  %v59_v17 = vld [vmem:[#allocation2 + $0x8] sm:$0xff] }
  0x36   :  { %v62_v1 = vld [vmem:[#allocation2 + $0x20] sm:$0xff]  ;;  %v63_v18 = vld [vmem:[#allocation2 + $0x28] sm:$0xff] }
  0x37   :  { %v66_v2 = vld [vmem:[#allocation2 + $0x40] sm:$0xff]  ;;  %v2946_v3 = vcombine.high %v58_v0, %v62_v1  ;;  %v2945_v4 = vcombine.low %v58_v0, %v62_v1  ;;  %v67_v20 = vld [vmem:[#allocation2 + $0x48] sm:$0xff]  ;;  %v2948_v22 = vcombine.high %v59_v17, %v63_v18  ;;  %v2947_v23 = vcombine.low %v59_v17, %v63_v18 }
  0x38   :  { %v70_v5 = vld [vmem:[#allocation2 + $0x60] sm:$0xff]  ;;  %v71_v25 = vld [vmem:[#allocation2 + $0x68] sm:$0xff] }
  0x39   :  { %v2954_v6 = vcombine.high %v66_v2, %v70_v5  ;;  %v74_v7 = vld [vmem:[#allocation2 + $0x80] sm:$0xff]  ;;  %875 = vmatprep.subr.bf16.mxu0 %v2946_v3  ;;  %v2953_v9 = vcombine.low %v66_v2, %v70_v5  ;;  %v2956_v27 = vcombine.high %v67_v20, %v71_v25  ;;  %v75_v28 = vld [vmem:[#allocation2 + $0x88] sm:$0xff]  ;;  %916 = vmatprep.subr.bf16.mxu1 %v2948_v22 }
  0x3a   :  { %v78_v8 = vld [vmem:[#allocation2 + $0xa0] sm:$0xff]  ;;  %876 = vmatpush1.bf16.msra.mxu0 %v2945_v4  ;;  %v79_v29 = vld [vmem:[#allocation2 + $0xa8] sm:$0xff]  ;;  %917 = vmatpush1.bf16.msra.mxu1 %v2947_v23  ;;  %v2955_v32 = vcombine.low %v67_v20, %v71_v25 }
  0x3b   :  { %877 = vmatprep.subr.bf16.mxu0 %v2954_v6  ;;  %v2962_v10 = vcombine.high %v74_v7, %v78_v8  ;;  %v82_v11 = vld [vmem:[#allocation2 + $0xc0] sm:$0xff]  ;;  %v2961_v13 = vcombine.low %v74_v7, %v78_v8  ;;  %918 = vmatprep.subr.bf16.mxu1 %v2956_v27  ;;  %v2964_v34 = vcombine.high %v75_v28, %v79_v29  ;;  %v83_v36 = vld [vmem:[#allocation2 + $0xc8] sm:$0xff] }
  0x3c   :  { %v86_v12 = vld [vmem:[#allocation2 + $0xe0] sm:$0xff]  ;;  %v87_v37 = vld [vmem:[#allocation2 + $0xe8] sm:$0xff]  ;;  %v2963_v40 = vcombine.low %v75_v28, %v79_v29 }
  0x3d   :  { %v2970_v14 = vcombine.high %v82_v11, %v86_v12  ;;  %v90_v15 = vld [vmem:[#allocation2 + $0x100] sm:$0xff]  ;;  %v2969_v21 = vcombine.low %v82_v11, %v86_v12  ;;  %v2972_v42 = vcombine.high %v83_v36, %v87_v37  ;;  %v91_v44 = vld [vmem:[#allocation2 + $0x108] sm:$0xff]  ;;  %v2971_v48 = vcombine.low %v83_v36, %v87_v37 }
  0x3e   :  { %878 = vmatpush1.bf16.msra.mxu0 %v2953_v9  ;;  %v94_v16 = vld [vmem:[#allocation2 + $0x120] sm:$0xff]  ;;  %919 = vmatpush1.bf16.msra.mxu1 %v2955_v32  ;;  %v95_v45 = vld [vmem:[#allocation2 + $0x128] sm:$0xff] }
  0x3f   :  { %879 = vmatprep.subr.bf16.mxu0 %v2962_v10  ;;  %v3899_v19 = vld [vmem:[%s4745_s0] sm:$0xff]  ;;  %v2978_v26 = vcombine.high %v90_v15, %v94_v16  ;;  %v2977_v33 = vcombine.low %v90_v15, %v94_v16  ;;  %920 = vmatprep.subr.bf16.mxu1 %v2964_v34  ;;  %v2980_v50 = vcombine.high %v91_v44, %v95_v45  ;;  %v99_v52 = vld [vmem:[#allocation2 + $0x148] sm:$0xff] }
  0x40   :  { %v3903_v24 = vcombine.high %v3899_v19, %v3899_v19  ;;  %v98_v30 = vld [vmem:[#allocation2 + $0x140] sm:$0xff]  ;;  %v103_v53 = vld [vmem:[#allocation2 + $0x168] sm:$0xff]  ;;  %v2979_v56 = vcombine.low %v91_v44, %v95_v45 }
  0x41   :  { %v102_v31 = vld [vmem:[#allocation2 + $0x160] sm:$0xff]  ;;  %v2988_v58 = vcombine.high %v99_v52, %v103_v53  ;;  %v107_v60 = vld [vmem:[#allocation2 + $0x188] sm:$0xff]  ;;  %v2987_v0 = vcombine.low %v99_v52, %v103_v53 }
  0x42   :  { %880 = vmatpush1.bf16.msra.mxu0 %v2961_v13  ;;  %907 = vmatprep.mubr.bf16.mxu0 %v3903_v24  ;;  %v2986_v35 = vcombine.high %v98_v30, %v102_v31  ;;  %v106_v38 = vld [vmem:[#allocation2 + $0x180] sm:$0xff]  ;;  %v2985_v41 = vcombine.low %v98_v30, %v102_v31  ;;  %v111_v61 = vld [vmem:[#allocation2 + $0x1a8] sm:$0xff] }
  0x43   :  { %881 = vmatprep.subr.bf16.mxu0 %v2970_v14  ;;  %v110_v39 = vld [vmem:[#allocation2 + $0x1a0] sm:$0xff]  ;;  %948 = vmatprep.mubr.bf16.mxu1 %v3903_v24  ;;  %v2996_v2 = vcombine.high %v107_v60, %v111_v61  ;;  %v115_v4 = vld [vmem:[#allocation2 + $0x1c8] sm:$0xff]  ;;  %v2995_v8 = vcombine.low %v107_v60, %v111_v61 }
  0x44   :  { %v2994_v43 = vcombine.high %v106_v38, %v110_v39  ;;  %v114_v46 = vld [vmem:[#allocation2 + $0x1c0] sm:$0xff]  ;;  %921 = vmatpush1.bf16.msra.mxu1 %v2963_v40  ;;  %v2993_v49 = vcombine.low %v106_v38, %v110_v39  ;;  %v119_v5 = vld [vmem:[#allocation2 + $0x1e8] sm:$0xff] }
  0x45   :  { %v118_v47 = vld [vmem:[#allocation2 + $0x1e0] sm:$0xff]  ;;  %922 = vmatprep.subr.bf16.mxu1 %v2972_v42  ;;  %v3004_v10 = vcombine.high %v115_v4, %v119_v5  ;;  %v123_v12 = vld [vmem:[#allocation2 + $0x208] sm:$0xff]  ;;  %v3003_v16 = vcombine.low %v115_v4, %v119_v5 }
  0x46   :  { %882 = vmatpush1.bf16.msra.mxu0 %v2969_v21  ;;  %v3002_v51 = vcombine.high %v114_v46, %v118_v47  ;;  %v122_v54 = vld [vmem:[#allocation2 + $0x200] sm:$0xff]  ;;  %v3001_v57 = vcombine.low %v114_v46, %v118_v47  ;;  %v127_v13 = vld [vmem:[#allocation2 + $0x228] sm:$0xff] }
  0x47   :  { %883 = vmatprep.subr.bf16.mxu0 %v2978_v26  ;;  %v126_v55 = vld [vmem:[#allocation2 + $0x220] sm:$0xff]  ;;  %v3012_v18 = vcombine.high %v123_v12, %v127_v13  ;;  %v131_v21 = vld [vmem:[#allocation2 + $0x248] sm:$0xff]  ;;  %v3011_v26 = vcombine.low %v123_v12, %v127_v13 }
  0x48   :  { %923 = vmatpush1.bf16.msra.mxu1 %v2971_v48  ;;  %v3010_v59 = vcombine.high %v122_v54, %v126_v55  ;;  %v130_v62 = vld [vmem:[#allocation2 + $0x240] sm:$0xff]  ;;  %v3009_v1 = vcombine.low %v122_v54, %v126_v55  ;;  %v135_v22 = vld [vmem:[#allocation2 + $0x268] sm:$0xff] }
  0x49   :  { %924 = vmatprep.subr.bf16.mxu1 %v2980_v50  ;;  %v134_v63 = vld [vmem:[#allocation2 + $0x260] sm:$0xff]  ;;  %v3020_v28 = vcombine.high %v131_v21, %v135_v22  ;;  %v139_v30 = vld [vmem:[#allocation2 + $0x288] sm:$0xff]  ;;  %v3019_v34 = vcombine.low %v131_v21, %v135_v22 }
  0x4a   :  { %884 = vmatpush1.bf16.msra.mxu0 %v2977_v33  ;;  %v3018_v3 = vcombine.high %v130_v62, %v134_v63  ;;  %v138_v6 = vld [vmem:[#allocation2 + $0x280] sm:$0xff]  ;;  %v3017_v9 = vcombine.low %v130_v62, %v134_v63  ;;  %v143_v31 = vld [vmem:[#allocation2 + $0x2a8] sm:$0xff] }
  0x4b   :  { %885 = vmatprep.subr.bf16.mxu0 %v2986_v35  ;;  %v142_v7 = vld [vmem:[#allocation2 + $0x2a0] sm:$0xff]  ;;  %v3028_v36 = vcombine.high %v139_v30, %v143_v31  ;;  %v147_v38 = vld [vmem:[#allocation2 + $0x2c8] sm:$0xff]  ;;  %v3027_v42 = vcombine.low %v139_v30, %v143_v31 }
  0x4c   :  { %925 = vmatpush1.bf16.msra.mxu1 %v2979_v56  ;;  %v3026_v11 = vcombine.high %v138_v6, %v142_v7  ;;  %v146_v14 = vld [vmem:[#allocation2 + $0x2c0] sm:$0xff]  ;;  %v3025_v17 = vcombine.low %v138_v6, %v142_v7  ;;  %v151_v39 = vld [vmem:[#allocation2 + $0x2e8] sm:$0xff]  ;;  %v60_v56 = vld [vmem:[#allocation2 + $0x10] sm:$0xff] }
  0x4d   :  { %926 = vmatprep.subr.bf16.mxu1 %v2988_v58  ;;  %v150_v15 = vld [vmem:[#allocation2 + $0x2e0] sm:$0xff]  ;;  %v3036_v44 = vcombine.high %v147_v38, %v151_v39  ;;  %v155_v46 = vld [vmem:[#allocation2 + $0x308] sm:$0xff]  ;;  %v3035_v50 = vcombine.low %v147_v38, %v151_v39 }
  0x4e   :  { %886 = vmatpush1.bf16.msra.mxu0 %v2985_v41  ;;  %v3034_v20 = vcombine.high %v146_v14, %v150_v15  ;;  %v154_v23 = vld [vmem:[#allocation2 + $0x300] sm:$0xff]  ;;  %v3033_v27 = vcombine.low %v146_v14, %v150_v15  ;;  %v159_v47 = vld [vmem:[#allocation2 + $0x328] sm:$0xff]  ;;  %v61_v14 = vld [vmem:[#allocation2 + $0x18] sm:$0xff] }
  0x4f   :  { %887 = vmatprep.subr.bf16.mxu0 %v2994_v43  ;;  %v158_v25 = vld [vmem:[#allocation2 + $0x320] sm:$0xff]  ;;  %v3044_v52 = vcombine.high %v155_v46, %v159_v47  ;;  %v163_v54 = vld [vmem:[#allocation2 + $0x348] sm:$0xff]  ;;  %v3043_v58 = vcombine.low %v155_v46, %v159_v47  ;;  %v65_v15 = vld [vmem:[#allocation2 + $0x38] sm:$0xff] }
  0x50   :  { %927 = vmatpush1.bf16.msra.mxu1 %v2987_v0  ;;  %v3042_v29 = vcombine.high %v154_v23, %v158_v25  ;;  %v162_v32 = vld [vmem:[#allocation2 + $0x340] sm:$0xff]  ;;  %v3041_v35 = vcombine.low %v154_v23, %v158_v25  ;;  %v167_v55 = vld [vmem:[#allocation2 + $0x368] sm:$0xff]  ;;  %v68_v0 = vld [vmem:[#allocation2 + $0x50] sm:$0xff]  ;;  %v2952_v21 = vcombine.high %v61_v14, %v65_v15 }
  0x51   :  { %928 = vmatprep.subr.bf16.mxu1 %v2996_v2  ;;  %v166_v33 = vld [vmem:[#allocation2 + $0x360] sm:$0xff]  ;;  %v3052_v60 = vcombine.high %v163_v54, %v167_v55  ;;  %v171_v61 = vld [vmem:[#allocation2 + $0x388] sm:$0xff]  ;;  %v3909_v2 = vcombine.low %v3899_v19, %v3899_v19  ;;  %v69_v23 = vld [vmem:[#allocation2 + $0x58] sm:$0xff] }
  0x52   :  { %888 = vmatpush1.bf16.msra.mxu0 %v2993_v49  ;;  %v3050_v37 = vcombine.high %v162_v32, %v166_v33  ;;  %v170_v40 = vld [vmem:[#allocation2 + $0x380] sm:$0xff]  ;;  %v3049_v43 = vcombine.low %v162_v32, %v166_v33  ;;  %v175_v62 = vld [vmem:[#allocation2 + $0x3a8] sm:$0xff]  ;;  %v73_v25 = vld [vmem:[#allocation2 + $0x78] sm:$0xff] }
  0x53   :  { %889 = vmatprep.subr.bf16.mxu0 %v3002_v51  ;;  %v174_v41 = vld [vmem:[#allocation2 + $0x3a0] sm:$0xff]  ;;  %v3060_v4 = vcombine.high %v171_v61, %v175_v62  ;;  %v179_v6 = vld [vmem:[#allocation2 + $0x3c8] sm:$0xff]  ;;  %v2960_v30 = vcombine.high %v69_v23, %v73_v25  ;;  %v77_v32 = vld [vmem:[#allocation2 + $0x98] sm:$0xff] }
  0x54   :  { %929 = vmatpush1.bf16.msra.mxu1 %v2995_v8  ;;  %v3058_v45 = vcombine.high %v170_v40, %v174_v41  ;;  %v178_v48 = vld [vmem:[#allocation2 + $0x3c0] sm:$0xff]  ;;  %v3057_v51 = vcombine.low %v170_v40, %v174_v41  ;;  %v183_v7 = vld [vmem:[#allocation2 + $0x3e8] sm:$0xff]  ;;  %v81_v33 = vld [vmem:[#allocation2 + $0xb8] sm:$0xff] }
  0x55   :  { %930 = vmatprep.subr.bf16.mxu1 %v3004_v10  ;;  %v182_v49 = vld [vmem:[#allocation2 + $0x3e0] sm:$0xff]  ;;  %v80_v10 = vld [vmem:[#allocation2 + $0xb0] sm:$0xff]  ;;  %v3068_v12 = vcombine.high %v179_v6, %v183_v7  ;;  %v2968_v38 = vcombine.high %v77_v32, %v81_v33  ;;  %v85_v40 = vld [vmem:[#allocation2 + $0xd8] sm:$0xff] }
  0x56   :  { %890 = vmatpush1.bf16.msra.mxu0 %v3001_v57  ;;  %v3066_v53 = vcombine.high %v178_v48, %v182_v49  ;;  %v64_v57 = vld [vmem:[#allocation2 + $0x30] sm:$0xff]  ;;  %v89_v41 = vld [vmem:[#allocation2 + $0xf8] sm:$0xff] }
  0x57   :  { %891 = vmatprep.subr.bf16.mxu0 %v3010_v59  ;;  %v3065_v59 = vcombine.low %v178_v48, %v182_v49  ;;  %v2950_v63 = vcombine.high %v60_v56, %v64_v57  ;;  %v2949_v5 = vcombine.low %v60_v56, %v64_v57  ;;  %v97_v46 = vld [vmem:[#allocation2 + $0x138] sm:$0xff]  ;;  %v116_v48 = vld [vmem:[#allocation2 + $0x1d0] sm:$0xff] }
  0x58   :  { %931 = vmatpush1.bf16.msra.mxu1 %v3003_v16  ;;  %v84_v16 = vld [vmem:[#allocation2 + $0xd0] sm:$0xff] }
  0x59   :  { %932 = vmatprep.subr.bf16.mxu1 %v3012_v18  ;;  %v3067_v18 = vcombine.low %v179_v6, %v183_v7  ;;  %v120_v49 = vld [vmem:[#allocation2 + $0x1f0] sm:$0xff]  ;;  %v121_v6 = vld [vmem:[#allocation2 + $0x1f8] sm:$0xff] }
  0x5a   :  { %892 = vmatpush1.bf16.msra.mxu0 %v3009_v1  ;;  %v72_v1 = vld [vmem:[#allocation2 + $0x70] sm:$0xff] }
  0x5b   :  { %893 = vmatprep.subr.bf16.mxu0 %v3018_v3  ;;  %v3051_v3 = vcombine.low %v163_v54, %v167_v55  ;;  %v2958_v8 = vcombine.high %v68_v0, %v72_v1  ;;  %v2957_v19 = vcombine.low %v68_v0, %v72_v1  ;;  %v124_v55 = vld [vmem:[#allocation2 + $0x210] sm:$0xff] }
  0x5c   :  { %933 = vmatpush1.bf16.msra.mxu1 %v3011_v26  ;;  %v92_v26 = vld [vmem:[#allocation2 + $0x110] sm:$0xff] }
  0x5d   :  { %934 = vmatprep.subr.bf16.mxu1 %v3020_v28  ;;  %v2951_v28 = vcombine.low %v61_v14, %v65_v15  ;;  %v128_v56 = vld [vmem:[#allocation2 + $0x230] sm:$0xff] }
  0x5e   :  { %894 = vmatpush1.bf16.msra.mxu0 %v3017_v9  ;;  %v76_v9 = vld [vmem:[#allocation2 + $0x90] sm:$0xff]  ;;  %v3013_v7 = vcombine.low %v124_v55, %v128_v56 }
  0x5f   :  { %895 = vmatprep.subr.bf16.mxu0 %v3026_v11  ;;  %v3059_v11 = vcombine.low %v171_v61, %v175_v62  ;;  %v2966_v13 = vcombine.high %v76_v9, %v80_v10  ;;  %v113_v61 = vld [vmem:[#allocation2 + $0x1b8] sm:$0xff]  ;;  %v3005_v62 = vcombine.low %v116_v48, %v120_v49  ;;  %v136_v0 = vld [vmem:[#allocation2 + $0x270] sm:$0xff] }
  0x60   :  { %935 = vmatpush1.bf16.msra.mxu1 %v3019_v34  ;;  %v100_v34 = vld [vmem:[#allocation2 + $0x150] sm:$0xff] }
  0x61   :  { %936 = vmatprep.subr.bf16.mxu1 %v3028_v36  ;;  %v2959_v36 = vcombine.low %v69_v23, %v73_v25  ;;  %v148_v15 = vld [vmem:[#allocation2 + $0x2d0] sm:$0xff] }
  0x62   :  { %896 = vmatpush1.bf16.msra.mxu0 %v3025_v17  ;;  %v88_v17 = vld [vmem:[#allocation2 + $0xf0] sm:$0xff] }
  0x63   :  { %897 = vmatprep.subr.bf16.mxu0 %v3034_v20  ;;  %v2965_v20 = vcombine.low %v76_v9, %v80_v10  ;;  %v2974_v22 = vcombine.high %v84_v16, %v88_v17  ;;  %v144_v9 = vld [vmem:[#allocation2 + $0x2b0] sm:$0xff] }
  0x64   :  { %937 = vmatpush1.bf16.msra.mxu1 %v3027_v42  ;;  %v108_v42 = vld [vmem:[#allocation2 + $0x190] sm:$0xff] }
  0x65   :  { %938 = vmatprep.subr.bf16.mxu1 %v3036_v44  ;;  %v2967_v44 = vcombine.low %v77_v32, %v81_v33  ;;  %v156_v25 = vld [vmem:[#allocation2 + $0x310] sm:$0xff] }
  0x66   :  { %898 = vmatpush1.bf16.msra.mxu0 %v3033_v27  ;;  %v96_v27 = vld [vmem:[#allocation2 + $0x130] sm:$0xff] }
  0x67   :  { %899 = vmatprep.subr.bf16.mxu0 %v3042_v29  ;;  %v2973_v29 = vcombine.low %v84_v16, %v88_v17  ;;  %v2982_v31 = vcombine.high %v92_v26, %v96_v27  ;;  %v152_v16 = vld [vmem:[#allocation2 + $0x2f0] sm:$0xff] }
  0x68   :  { %939 = vmatpush1.bf16.msra.mxu1 %v3035_v50  ;;  %v3037_v32 = vcombine.low %v148_v15, %v152_v16  ;;  %v164_v33 = vld [vmem:[#allocation2 + $0x350] sm:$0xff] }
  0x69   :  { %940 = vmatprep.subr.bf16.mxu1 %v3044_v52  ;;  %v101_v52 = vld [vmem:[#allocation2 + $0x158] sm:$0xff] }
  0x6a   :  { %900 = vmatpush1.bf16.msra.mxu0 %v3041_v35  ;;  %v104_v35 = vld [vmem:[#allocation2 + $0x170] sm:$0xff] }
  0x6b   :  { %901 = vmatprep.subr.bf16.mxu0 %v3050_v37  ;;  %v2981_v37 = vcombine.low %v92_v26, %v96_v27  ;;  %v2990_v39 = vcombine.high %v100_v34, %v104_v35  ;;  %v2989_v47 = vcombine.low %v100_v34, %v104_v35  ;;  %v160_v26 = vld [vmem:[#allocation2 + $0x330] sm:$0xff] }
  0x6c   :  { %941 = vmatpush1.bf16.msra.mxu1 %v3043_v58  ;;  %v3006_v58 = vcombine.high %v116_v48, %v120_v49  ;;  %v168_v34 = vld [vmem:[#allocation2 + $0x370] sm:$0xff] }
  0x6d   :  { %942 = vmatprep.subr.bf16.mxu1 %v3052_v60  ;;  %v109_v60 = vld [vmem:[#allocation2 + $0x198] sm:$0xff]  ;;  %v3053_v48 = vcombine.low %v164_v33, %v168_v34  ;;  %v180_v49 = vld [vmem:[#allocation2 + $0x3d0] sm:$0xff] }
  0x6e   :  { %902 = vmatpush1.bf16.msra.mxu0 %v3049_v43  ;;  %v112_v43 = vld [vmem:[#allocation2 + $0x1b0] sm:$0xff]  ;;  %v3000_v10 = vcombine.high %v109_v60, %v113_v61 }
  0x6f   :  { %903 = vmatprep.subr.bf16.mxu0 %v3058_v45  ;;  %v93_v45 = vld [vmem:[#allocation2 + $0x118] sm:$0xff]  ;;  %v2998_v50 = vcombine.high %v108_v42, %v112_v43  ;;  %v2997_v54 = vcombine.low %v108_v42, %v112_v43  ;;  %v176_v42 = vld [vmem:[#allocation2 + $0x3b0] sm:$0xff] }
  0x70   :  { %943 = vmatpush1.bf16.msra.mxu1 %v3051_v3  ;;  %v2984_v57 = vcombine.high %v93_v45, %v97_v46  ;;  %v3014_v3 = vcombine.high %v124_v55, %v128_v56 }
  0x71   :  { %944 = vmatprep.subr.bf16.mxu1 %v3060_v4 }
  0x72   :  { %904 = vmatpush1.bf16.msra.mxu0 %v3057_v51  ;;  %v2975_v51 = vcombine.low %v85_v40, %v89_v41 }
  0x73   :  { %905 = vmatprep.subr.bf16.mxu0 %v3066_v53  ;;  %v105_v53 = vld [vmem:[#allocation2 + $0x178] sm:$0xff] }
  0x74   :  { %945 = vmatpush1.bf16.msra.mxu1 %v3059_v11  ;;  %v2992_v1 = vcombine.high %v101_v52, %v105_v53  ;;  %v2991_v4 = vcombine.low %v101_v52, %v105_v53  ;;  %v165_v53 = vld [vmem:[#allocation2 + $0x358] sm:$0xff] }
  0x75   :  { %946 = vmatprep.subr.bf16.mxu1 %v3068_v12  ;;  %v2999_v12 = vcombine.low %v109_v60, %v113_v61  ;;  %v177_v60 = vld [vmem:[#allocation2 + $0x3b8] sm:$0xff]  ;;  %v3366_v61 = vld [vmem:[%s4748_s3 + $0x4] ss:$16 sps:$4 sm:$0xff]  }
  0x76   :  { %906 = vmatpush1.bf16.msra.mxu0 %v3065_v59  ;;  %v2983_v59 = vcombine.low %v93_v45, %v97_v46  ;;  %v157_v46 = vld [vmem:[#allocation2 + $0x318] sm:$0xff] }
  0x77   :  { %957 = vmatprep.subr.bf16.mxu0 %v2950_v63  ;;  %v132_v63 = vld [vmem:[#allocation2 + $0x250] sm:$0xff] }
  0x78   :  { %947 = vmatpush1.bf16.msra.mxu1 %v3067_v18  ;;  %v3022_v11 = vcombine.high %v132_v63, %v136_v0  ;;  %v3021_v14 = vcombine.low %v132_v63, %v136_v0  ;;  %v3364_v0 = vld [vmem:[%s4748_s3] ss:$16 sps:$4 sm:$0xff]  }
  0x79   :  { %908 = vmatmul.mubr.bf16.vlgmr.msra.gmra.mrb[0].mxu0 %v3909_v2  ;;  %998 = vmatprep.subr.bf16.mxu1 %v2952_v21  ;;  %v133_v21 = vld [vmem:[#allocation2 + $0x258] sm:$0xff] }
  0x7a   :  { %958 = vmatpush1.bf16.msra.mxu0 %v2949_v5  ;;  %989 = vmatprep.mubr.bf16.mxu0 %v3903_v24  ;;  %v117_v5 = vld [vmem:[#allocation2 + $0x1d8] sm:$0xff] }
  0x7b   :  { %959 = vmatprep.subr.bf16.mxu0 %v2958_v8  ;;  %949 = vmatmul.mubr.bf16.vlgmr.msra.gmra.mrb[0].mxu1 %v3909_v2  ;;  %v140_v8 = vld [vmem:[#allocation2 + $0x290] sm:$0xff]  ;;  %v3008_v17 = vcombine.high %v117_v5, %v121_v6 }
  0x7c   :  { %999 = vmatpush1.bf16.msra.mxu1 %v2951_v28  ;;  %1030 = vmatprep.mubr.bf16.mxu1 %v3903_v24  ;;  %v2976_v24 = vcombine.high %v85_v40, %v89_v41  ;;  %v3030_v18 = vcombine.high %v140_v8, %v144_v9  ;;  %v3029_v23 = vcombine.low %v140_v8, %v144_v9  ;;  %v172_v41 = vld [vmem:[#allocation2 + $0x390] sm:$0xff] }
  0x7d   :  { %1000 = vmatprep.subr.bf16.mxu1 %v2960_v30  ;;  %v3038_v28 = vcombine.high %v148_v15, %v152_v16  ;;  %v141_v30 = vld [vmem:[#allocation2 + $0x298] sm:$0xff]  ;;  %v3045_v40 = vcombine.low %v156_v25, %v160_v26  ;;  %v3061_v55 = vcombine.low %v172_v41, %v176_v42  ;;  %v3378_v9 = vld [vmem:[%s4748_s3 + $0x44] ss:$16 sps:$4 sm:$0xff]   ;;  %v3382_v16 = vld [vmem:[%s4748_s3 + $0x60] ss:$16 sps:$4 sm:$0xff]  }
  0x7e   :  { %960 = vmatpush1.bf16.msra.mxu0 %v2957_v19  ;;  %v125_v19 = vld [vmem:[#allocation2 + $0x218] sm:$0xff] }
  0x7f   :  { %961 = vmatprep.subr.bf16.mxu0 %v2966_v13  ;;  %v129_v13 = vld [vmem:[#allocation2 + $0x238] sm:$0xff] }
  0x80   :  { %1001 = vmatpush1.bf16.msra.mxu1 %v2959_v36  ;;  %v3016_v27 = vcombine.high %v125_v19, %v129_v13  ;;  %v3046_v36 = vcombine.high %v156_v25, %v160_v26  ;;  %v3375_v15 = vld [vmem:[%s4748_s3 + $0x2c] ss:$16 sps:$4 sm:$0xff]   ;;  %v3394_v25 = vld [vmem:[%s4748_s3 + $0xa0] ss:$16 sps:$4 sm:$0xff]   ;;  %v3402_v26 = vld [vmem:[%s4748_s3 + $0xc4] ss:$16 sps:$4 sm:$0xff]  }
  0x81   :  { %1002 = vmatprep.subr.bf16.mxu1 %v2968_v38  ;;  %v149_v38 = vld [vmem:[#allocation2 + $0x2d8] sm:$0xff] }
  0x82   :  { %962 = vmatpush1.bf16.msra.mxu0 %v2965_v20  ;;  %v3007_v20 = vcombine.low %v117_v5, %v121_v6  ;;  %v3372_v5 = vld [vmem:[%s4748_s3 + $0x24] ss:$16 sps:$4 sm:$0xff]  }
  0x83   :  { %963 = vmatprep.subr.bf16.mxu0 %v2974_v22  ;;  %v137_v22 = vld [vmem:[#allocation2 + $0x278] sm:$0xff] }
  0x84   :  { %1003 = vmatpush1.bf16.msra.mxu1 %v2967_v44  ;;  %v3024_v35 = vcombine.high %v133_v21, %v137_v22  ;;  %v3054_v44 = vcombine.high %v164_v33, %v168_v34  ;;  %v3406_v33 = vld [vmem:[%s4748_s3 + $0xe0] ss:$16 sps:$4 sm:$0xff]   ;;  %v3414_v34 = vld [vmem:[%s4748_s3 + $0x104] ss:$16 sps:$4 sm:$0xff]  }
  0x85   :  { %1004 = vmatprep.subr.bf16.mxu1 %v2976_v24  ;;  %v184_v24 = vld [vmem:[#allocation2 + $0x3f0] sm:$0xff] }
  0x86   :  { %964 = vmatpush1.bf16.msra.mxu0 %v2973_v29  ;;  %v3015_v29 = vcombine.low %v125_v19, %v129_v13  ;;  %v3384_v13 = vld [vmem:[%s4748_s3 + $0x64] ss:$16 sps:$4 sm:$0xff]  }
  0x87   :  { %965 = vmatprep.subr.bf16.mxu0 %v2982_v31  ;;  %v145_v31 = vld [vmem:[#allocation2 + $0x2b8] sm:$0xff] }
  0x88   :  { %1005 = vmatpush1.bf16.msra.mxu1 %v2975_v51  ;;  %v3032_v43 = vcombine.high %v141_v30, %v145_v31  ;;  %v3031_v45 = vcombine.low %v141_v30, %v145_v31  ;;  %v3062_v51 = vcombine.high %v172_v41, %v176_v42  ;;  %v3408_v30 = vld [vmem:[%s4748_s3 + $0xe4] ss:$16 sps:$4 sm:$0xff]   ;;  %v3391_v31 = vld [vmem:[%s4748_s3 + $0x88] ss:$16 sps:$4 sm:$0xff]   ;;  %v3418_v41 = vld [vmem:[%s4748_s3 + $0x120] ss:$16 sps:$4 sm:$0xff]  }
  0x89   :  { %1006 = vmatprep.subr.bf16.mxu1 %v2984_v57  ;;  %v3070_v57 = vcombine.high %v180_v49, %v184_v24  ;;  %v3426_v42 = vld [vmem:[%s4748_s3 + $0x144] ss:$16 sps:$4 sm:$0xff]  }
  0x8a   :  { %966 = vmatpush1.bf16.msra.mxu0 %v2981_v37  ;;  %v3023_v37 = vcombine.low %v133_v21, %v137_v22  ;;  %v3388_v21 = vld [vmem:[%s4748_s3 + $0x80] ss:$16 sps:$4 sm:$0xff]   ;;  %v3396_v22 = vld [vmem:[%s4748_s3 + $0xa4] ss:$16 sps:$4 sm:$0xff]  }
  0x8b   :  { %967 = vmatprep.subr.bf16.mxu0 %v2990_v39  ;;  %v153_v39 = vld [vmem:[#allocation2 + $0x2f8] sm:$0xff] }
  0x8c   :  { %1007 = vmatpush1.bf16.msra.mxu1 %v2983_v59  ;;  %v3039_v52 = vcombine.low %v149_v38, %v153_v39  ;;  %v173_v59 = vld [vmem:[#allocation2 + $0x398] sm:$0xff] }
  0x8d   :  { %1008 = vmatprep.subr.bf16.mxu1 %v2992_v1  ;;  %v3064_v6 = vcombine.high %v173_v59, %v177_v60  ;;  %v3063_v8 = vcombine.low %v173_v59, %v177_v60  ;;  %v3441_v59 = vld [vmem:[%s4748_s3 + $0x18c] ss:$16 sps:$4 sm:$0xff]   ;;  %v3448_v60 = vld [vmem:[%s4748_s3 + $0x1c0] ss:$16 sps:$4 sm:$0xff]  }
  0x8e   :  { %968 = vmatpush1.bf16.msra.mxu0 %v2989_v47  ;;  %v161_v47 = vld [vmem:[#allocation2 + $0x338] sm:$0xff] }
  0x8f   :  { %969 = vmatprep.subr.bf16.mxu0 %v2998_v50  ;;  %v3040_v50 = vcombine.high %v149_v38, %v153_v39  ;;  %v3048_v56 = vcombine.high %v157_v46, %v161_v47  ;;  %v3420_v38 = vld [vmem:[%s4748_s3 + $0x124] ss:$16 sps:$4 sm:$0xff]   ;;  %v3403_v39 = vld [vmem:[%s4748_s3 + $0xc8] ss:$16 sps:$4 sm:$0xff]  }
  0x90   :  { %1009 = vmatpush1.bf16.msra.mxu1 %v2991_v4  ;;  %v185_v4 = vld [vmem:[#allocation2 + $0x3f8] sm:$0xff] }
  0x91   :  { %1010 = vmatprep.subr.bf16.mxu1 %v3000_v10 }
  0x92   :  { %970 = vmatpush1.bf16.msra.mxu0 %v2997_v54  ;;  %v169_v54 = vld [vmem:[#allocation2 + $0x378] sm:$0xff] }
  0x93   :  { %971 = vmatprep.subr.bf16.mxu0 %v3006_v58  ;;  %v3047_v58 = vcombine.low %v157_v46, %v161_v47  ;;  %v3056_v63 = vcombine.high %v165_v53, %v169_v54  ;;  %v3055_v1 = vcombine.low %v165_v53, %v169_v54  ;;  %v3432_v46 = vld [vmem:[%s4748_s3 + $0x164] ss:$16 sps:$4 sm:$0xff]   ;;  %v3415_v47 = vld [vmem:[%s4748_s3 + $0x108] ss:$16 sps:$4 sm:$0xff]  }
  0x94   :  { %1011 = vmatpush1.bf16.msra.mxu1 %v2999_v12  ;;  %v3376_v12 = vld [vmem:[%s4748_s3 + $0x40] ss:$16 sps:$4 sm:$0xff]   ;;  %v3444_v53 = vld [vmem:[%s4748_s3 + $0x1a4] ss:$16 sps:$4 sm:$0xff]   ;;  %v3427_v54 = vld [vmem:[%s4748_s3 + $0x148] ss:$16 sps:$4 sm:$0xff]  }
  0x95   :  { %1012 = vmatprep.subr.bf16.mxu1 %v3008_v17  ;;  %v3390_v17 = vld [vmem:[%s4748_s3 + $0x84] ss:$16 sps:$4 sm:$0xff]  }
  0x96   :  { %972 = vmatpush1.bf16.msra.mxu0 %v3005_v62  ;;  %v3069_v62 = vcombine.low %v180_v49, %v184_v24  ;;  %v3430_v49 = vld [vmem:[%s4748_s3 + $0x160] ss:$16 sps:$4 sm:$0xff]   ;;  %v3438_v24 = vld [vmem:[%s4748_s3 + $0x184] ss:$16 sps:$4 sm:$0xff]  }
  0x97   :  { %973 = vmatprep.subr.bf16.mxu0 %v3014_v3  ;;  %v181_v3 = vld [vmem:[#allocation2 + $0x3d8] sm:$0xff] }
  0x98   :  { %1013 = vmatpush1.bf16.msra.mxu1 %v3007_v20  ;;  %v3072_v10 = vcombine.high %v181_v3, %v185_v4  ;;  %v3071_v19 = vcombine.low %v181_v3, %v185_v4  ;;  %v3381_v20 = vld [vmem:[%s4748_s3 + $0x4c] ss:$16 sps:$4 sm:$0xff]   ;;  %v3445_v3 = vld [vmem:[%s4748_s3 + $0x1a8] ss:$16 sps:$4 sm:$0xff]  }
  0x99   :  { %1014 = vmatprep.subr.bf16.mxu1 %v3016_v27  ;;  %v3385_v27 = vld [vmem:[%s4748_s3 + $0x68] ss:$16 sps:$4 sm:$0xff]   ;;  %v3453_v4 = vld [vmem:[%s4748_s3 + $0x1cc] ss:$16 sps:$4 sm:$0xff]  }
  0x9a   :  { %974 = vmatpush1.bf16.msra.mxu0 %v3013_v7  ;;  %v3370_v7 = vld [vmem:[%s4748_s3 + $0x20] ss:$16 sps:$4 sm:$0xff]  }
  0x9b   :  { %975 = vmatprep.subr.bf16.mxu0 %v3022_v11  ;;  %v3369_v11 = vld [vmem:[%s4748_s3 + $0xc] ss:$16 sps:$4 sm:$0xff]  }
  0x9c   :  { %1015 = vmatpush1.bf16.msra.mxu1 %v3015_v29  ;;  %v3400_v29 = vld [vmem:[%s4748_s3 + $0xc0] ss:$16 sps:$4 sm:$0xff]  }
  0x9d   :  { %1016 = vmatprep.subr.bf16.mxu1 %v3024_v35  ;;  %v3397_v35 = vld [vmem:[%s4748_s3 + $0xa8] ss:$16 sps:$4 sm:$0xff]  }
  0x9e   :  { %976 = vmatpush1.bf16.msra.mxu0 %v3021_v14  ;;  %v3367_v14 = vld [vmem:[%s4748_s3 + $0x8] ss:$16 sps:$4 sm:$0xff]  }
  0x9f   :  { %977 = vmatprep.subr.bf16.mxu0 %v3030_v18  ;;  %v3373_v18 = vld [vmem:[%s4748_s3 + $0x28] ss:$16 sps:$4 sm:$0xff]  }
  0xa0   :  { %1017 = vmatpush1.bf16.msra.mxu1 %v3023_v37  ;;  %v3412_v37 = vld [vmem:[%s4748_s3 + $0x100] ss:$16 sps:$4 sm:$0xff]  }
  0xa1   :  { %1018 = vmatprep.subr.bf16.mxu1 %v3032_v43  ;;  %v3409_v43 = vld [vmem:[%s4748_s3 + $0xe8] ss:$16 sps:$4 sm:$0xff]  }
  0xa2   :  { %978 = vmatpush1.bf16.msra.mxu0 %v3029_v23  ;;  %v3379_v23 = vld [vmem:[%s4748_s3 + $0x48] ss:$16 sps:$4 sm:$0xff]  }
  0xa3   :  { %979 = vmatprep.subr.bf16.mxu0 %v3038_v28  ;;  %v3393_v28 = vld [vmem:[%s4748_s3 + $0x8c] ss:$16 sps:$4 sm:$0xff]  }
  0xa4   :  { %1019 = vmatpush1.bf16.msra.mxu1 %v3031_v45  ;;  %v3424_v45 = vld [vmem:[%s4748_s3 + $0x140] ss:$16 sps:$4 sm:$0xff]  }
  0xa5   :  { %1020 = vmatprep.subr.bf16.mxu1 %v3040_v50  ;;  %v3421_v50 = vld [vmem:[%s4748_s3 + $0x128] ss:$16 sps:$4 sm:$0xff]  }
  0xa6   :  { %980 = vmatpush1.bf16.msra.mxu0 %v3037_v32  ;;  %v3399_v32 = vld [vmem:[%s4748_s3 + $0xac] ss:$16 sps:$4 sm:$0xff]  }
  0xa7   :  { %981 = vmatprep.subr.bf16.mxu0 %v3046_v36  ;;  %v3405_v36 = vld [vmem:[%s4748_s3 + $0xcc] ss:$16 sps:$4 sm:$0xff]  }
  0xa8   :  { %1021 = vmatpush1.bf16.msra.mxu1 %v3039_v52  ;;  %v3436_v52 = vld [vmem:[%s4748_s3 + $0x180] ss:$16 sps:$4 sm:$0xff]  }
  0xa9   :  { %1022 = vmatprep.subr.bf16.mxu1 %v3048_v56  ;;  %v3442_v56 = vld [vmem:[%s4748_s3 + $0x1a0] ss:$16 sps:$4 sm:$0xff]  }
  0xaa   :  { %982 = vmatpush1.bf16.msra.mxu0 %v3045_v40  ;;  %v3411_v40 = vld [vmem:[%s4748_s3 + $0xec] ss:$16 sps:$4 sm:$0xff]  }
  0xab   :  { %983 = vmatprep.subr.bf16.mxu0 %v3054_v44  ;;  %v3417_v44 = vld [vmem:[%s4748_s3 + $0x10c] ss:$16 sps:$4 sm:$0xff]  }
  0xac   :  { %1023 = vmatpush1.bf16.msra.mxu1 %v3047_v58  ;;  %v3433_v58 = vld [vmem:[%s4748_s3 + $0x168] ss:$16 sps:$4 sm:$0xff]  }
  0xad   :  { %1024 = vmatprep.subr.bf16.mxu1 %v3056_v63  ;;  %v3447_v63 = vld [vmem:[%s4748_s3 + $0x1ac] ss:$16 sps:$4 sm:$0xff]  }
  0xae   :  { %984 = vmatpush1.bf16.msra.mxu0 %v3053_v48  ;;  %v3423_v48 = vld [vmem:[%s4748_s3 + $0x12c] ss:$16 sps:$4 sm:$0xff]  }
  0xaf   :  { %985 = vmatprep.subr.bf16.mxu0 %v3062_v51  ;;  %v3429_v51 = vld [vmem:[%s4748_s3 + $0x14c] ss:$16 sps:$4 sm:$0xff]  }
  0xb0   :  { %1025 = vmatpush1.bf16.msra.mxu1 %v3055_v1  ;;  %v3462_v1 = vld [vmem:[%s4748_s3 + $0x204] ss:$16 sps:$4 sm:$0xff]  }
  0xb1   :  { %1026 = vmatprep.subr.bf16.mxu1 %v3064_v6  ;;  %v3459_v6 = vld [vmem:[%s4748_s3 + $0x1ec] ss:$16 sps:$4 sm:$0xff]  }
  0xb2   :  { %986 = vmatpush1.bf16.msra.mxu0 %v3061_v55  ;;  %v3435_v55 = vld [vmem:[%s4748_s3 + $0x16c] ss:$16 sps:$4 sm:$0xff]  }
  0xb3   :  { %987 = vmatprep.subr.bf16.mxu0 %v3070_v57  ;;  %v3450_v57 = vld [vmem:[%s4748_s3 + $0x1c4] ss:$16 sps:$4 sm:$0xff]  }
  0xb4   :  { %1027 = vmatpush1.bf16.msra.mxu1 %v3063_v8  ;;  %v3465_v8 = vld [vmem:[%s4748_s3 + $0x20c] ss:$16 sps:$4 sm:$0xff]  }
  0xb5   :  { %1028 = vmatprep.subr.bf16.mxu1 %v3072_v10 }
  0xb6   :  { %988 = vmatpush1.bf16.msra.mxu0 %v3069_v62  ;;  %v3439_v62 = vld [vmem:[%s4748_s3 + $0x188] ss:$16 sps:$4 sm:$0xff]  }
  0xb7   :  { %2605 = vmatprep.subr.bf16.mxu0 %v3366_v61  ;;  %v3456_v61 = vld [vmem:[%s4748_s3 + $0x1e4] ss:$16 sps:$4 sm:$0xff]  }
  0xb8   :  { %1029 = vmatpush1.bf16.msra.mxu1 %v3071_v19 }
  0xb9   :  { %990 = vmatmul.mubr.bf16.vlgmr.msra.gmra.mrb[4].mxu0 %v3909_v2  ;;  %2769 = vmatprep.subr.bf16.mxu1 %v3369_v11 }
  0xba   :  { %2606 = vmatpush1.bf16.msra.mxu0 %v3364_v0  ;;  %v3454_v0 = vld [vmem:[%s4748_s3 + $0x1e0] ss:$16 sps:$4 sm:$0xff]  }
  0xbb   :  { %2607 = vmatprep.subr.bf16.mxu0 %v3372_v5  ;;  %1031 = vmatmul.mubr.bf16.vlgmr.msra.gmra.mrb[4].mxu1 %v3909_v2  ;;  %v3387_v2 = vld [vmem:[%s4748_s3 + $0x6c] ss:$16 sps:$4 sm:$0xff]   ;;  %v3451_v5 = vld [vmem:[%s4748_s3 + $0x1c8] ss:$16 sps:$4 sm:$0xff]  }
  0xbc   :  { %2770 = vmatpush1.bf16.msra.mxu1 %v3367_v14 }
  0xbd   :  { %2771 = vmatprep.subr.bf16.mxu1 %v3375_v15 }
  0xbe   :  { %2608 = vmatpush1.bf16.msra.mxu0 %v3370_v7  ;;  %v3457_v7 = vld [vmem:[%s4748_s3 + $0x1e8] ss:$16 sps:$4 sm:$0xff]  }
  0xbf   :  { %2609 = vmatprep.subr.bf16.mxu0 %v3378_v9  ;;  %v188_v9 = vlaneseq }
  0xc0   :  { %2772 = vmatpush1.bf16.msra.mxu1 %v3373_v18 }
  0xc1   :  { %2773 = vmatprep.subr.bf16.mxu1 %v3381_v20  ;;  %v4115_v10 = vshrl.u32 %v188_v9, 7  ;;  %v3523_v9 = vld [vmem:[%s4748_s3 + $0x348] ss:$16 sps:$4 sm:$0xff]  }
  0xc2   :  { %2610 = vmatpush1.bf16.msra.mxu0 %v3376_v12  ;;  %v4118_v12 = vld [vmem:[#allocation4] sm:$0xff] }
  0xc3   :  { %2611 = vmatprep.subr.bf16.mxu0 %v3384_v13  ;;  %v190_v11 = vsub.s32 0, %v4115_v10  ;;  %v194_v19 = vsub.s32 1, %v4115_v10 }
  0xc4   :  { %2774 = vmatpush1.bf16.msra.mxu1 %v3379_v23  ;;  %v3460_v23 = vld [vmem:[%s4748_s3 + $0x200] ss:$16 sps:$4 sm:$0xff]  }
  0xc5   :  { %2775 = vmatprep.subr.bf16.mxu1 %v3387_v2  ;;  %v191_v13 = vrot.slane %v4118_v12, %v190_v11  ;;  %v195_v14 = vrot.slane %v4118_v12, %v194_v19  ;;  %v3463_v2 = vld [vmem:[%s4748_s3 + $0x208] ss:$16 sps:$4 sm:$0xff]  }
  0xc6   :  { %2612 = vmatpush1.bf16.msra.mxu0 %v3382_v16 }
  0xc7   :  { %2613 = vmatprep.subr.bf16.mxu0 %v3390_v17 }
  0xc8   :  { %2776 = vmatpush1.bf16.msra.mxu1 %v3385_v27  ;;  %v3471_v27 = vld [vmem:[%s4748_s3 + $0x22c] ss:$16 sps:$4 sm:$0xff]  }
  0xc9   :  { %2777 = vmatprep.subr.bf16.mxu1 %v3393_v28  ;;  %v202_v28 = vsub.s32 3, %v4115_v10 }
  0xca   :  { %2614 = vmatpush1.bf16.msra.mxu0 %v3388_v21 }
  0xcb   :  { %2615 = vmatprep.subr.bf16.mxu0 %v3396_v22 }
  0xcc   :  { %2778 = vmatpush1.bf16.msra.mxu1 %v3391_v31  ;;  %v3474_v31 = vld [vmem:[%s4748_s3 + $0x244] ss:$16 sps:$4 sm:$0xff]  }
  0xcd   :  { %2779 = vmatprep.subr.bf16.mxu1 %v3399_v32  ;;  %v3477_v32 = vld [vmem:[%s4748_s3 + $0x24c] ss:$16 sps:$4 sm:$0xff]  }
  0xce   :  { %2616 = vmatpush1.bf16.msra.mxu0 %v3394_v25 }
  0xcf   :  { %2617 = vmatprep.subr.bf16.mxu0 %v3402_v26  ;;  %v3468_v26 = vld [vmem:[%s4748_s3 + $0x224] ss:$16 sps:$4 sm:$0xff]  }
  0xd0   :  { %2780 = vmatpush1.bf16.msra.mxu1 %v3397_v35  ;;  %v3472_v35 = vld [vmem:[%s4748_s3 + $0x240] ss:$16 sps:$4 sm:$0xff]  }
  0xd1   :  { %2781 = vmatprep.subr.bf16.mxu1 %v3405_v36  ;;  %v3475_v36 = vld [vmem:[%s4748_s3 + $0x248] ss:$16 sps:$4 sm:$0xff]  }
  0xd2   :  { %2618 = vmatpush1.bf16.msra.mxu0 %v3400_v29  ;;  %v3466_v29 = vld [vmem:[%s4748_s3 + $0x220] ss:$16 sps:$4 sm:$0xff]  }
  0xd3   :  { %2619 = vmatprep.subr.bf16.mxu0 %v3408_v30  ;;  %v3469_v30 = vld [vmem:[%s4748_s3 + $0x228] ss:$16 sps:$4 sm:$0xff]  }
  0xd4   :  { %2782 = vmatpush1.bf16.msra.mxu1 %v3403_v39  ;;  %v3483_v39 = vld [vmem:[%s4748_s3 + $0x26c] ss:$16 sps:$4 sm:$0xff]  }
  0xd5   :  { %2783 = vmatprep.subr.bf16.mxu1 %v3411_v40 }
  0xd6   :  { %2620 = vmatpush1.bf16.msra.mxu0 %v3406_v33  ;;  %v203_v33 = vrot.slane %v4118_v12, %v202_v28 }
  0xd7   :  { %2621 = vmatprep.subr.bf16.mxu0 %v3414_v34 }
  0xd8   :  { %2784 = vmatpush1.bf16.msra.mxu1 %v3409_v43 }
  0xd9   :  { %2785 = vmatprep.subr.bf16.mxu1 %v3417_v44  ;;  %v3478_v44 = vld [vmem:[%s4748_s3 + $0x260] ss:$16 sps:$4 sm:$0xff]  }
  0xda   :  { %2622 = vmatpush1.bf16.msra.mxu0 %v3412_v37 }
  0xdb   :  { %2623 = vmatprep.subr.bf16.mxu0 %v3420_v38  ;;  %v3480_v38 = vld [vmem:[%s4748_s3 + $0x264] ss:$16 sps:$4 sm:$0xff]  }
  0xdc   :  { %2786 = vmatpush1.bf16.msra.mxu1 %v3415_v47  ;;  %v3489_v47 = vld [vmem:[%s4748_s3 + $0x28c] ss:$16 sps:$4 sm:$0xff]  }
  0xdd   :  { %2787 = vmatprep.subr.bf16.mxu1 %v3423_v48  ;;  %v3484_v48 = vld [vmem:[%s4748_s3 + $0x280] ss:$16 sps:$4 sm:$0xff]  }
  0xde   :  { %2624 = vmatpush1.bf16.msra.mxu0 %v3418_v41 }
  0xdf   :  { %2625 = vmatprep.subr.bf16.mxu0 %v3426_v42 }
  0xe0   :  { %2788 = vmatpush1.bf16.msra.mxu1 %v3421_v50  ;;  %v3495_v50 = vld [vmem:[%s4748_s3 + $0x2ac] ss:$16 sps:$4 sm:$0xff]  }
  0xe1   :  { %2789 = vmatprep.subr.bf16.mxu1 %v3429_v51  ;;  %v3490_v51 = vld [vmem:[%s4748_s3 + $0x2a0] ss:$16 sps:$4 sm:$0xff]  }
  0xe2   :  { %2626 = vmatpush1.bf16.msra.mxu0 %v3424_v45  ;;  %v3481_v45 = vld [vmem:[%s4748_s3 + $0x268] ss:$16 sps:$4 sm:$0xff]  }
  0xe3   :  { %2627 = vmatprep.subr.bf16.mxu0 %v3432_v46  ;;  %v3486_v46 = vld [vmem:[%s4748_s3 + $0x284] ss:$16 sps:$4 sm:$0xff]  }
  0xe4   :  { %2790 = vmatpush1.bf16.msra.mxu1 %v3427_v54  ;;  %v3501_v54 = vld [vmem:[%s4748_s3 + $0x2cc] ss:$16 sps:$4 sm:$0xff]  }
  0xe5   :  { %2791 = vmatprep.subr.bf16.mxu1 %v3435_v55  ;;  %v3496_v55 = vld [vmem:[%s4748_s3 + $0x2c0] ss:$16 sps:$4 sm:$0xff]  }
  0xe6   :  { %2628 = vmatpush1.bf16.msra.mxu0 %v3430_v49  ;;  %v3487_v49 = vld [vmem:[%s4748_s3 + $0x288] ss:$16 sps:$4 sm:$0xff]  }
  0xe7   :  { %2629 = vmatprep.subr.bf16.mxu0 %v3438_v24  ;;  %v3492_v24 = vld [vmem:[%s4748_s3 + $0x2a4] ss:$16 sps:$4 sm:$0xff]  }
  0xe8   :  { %2792 = vmatpush1.bf16.msra.mxu1 %v3433_v58  ;;  %v3507_v58 = vld [vmem:[%s4748_s3 + $0x2ec] ss:$16 sps:$4 sm:$0xff]  }
  0xe9   :  { %2793 = vmatprep.subr.bf16.mxu1 %v3441_v59  ;;  %v3502_v59 = vld [vmem:[%s4748_s3 + $0x2e0] ss:$16 sps:$4 sm:$0xff]  }
  0xea   :  { %2630 = vmatpush1.bf16.msra.mxu0 %v3436_v52  ;;  %v3493_v52 = vld [vmem:[%s4748_s3 + $0x2a8] ss:$16 sps:$4 sm:$0xff]  }
  0xeb   :  { %2631 = vmatprep.subr.bf16.mxu0 %v3444_v53  ;;  %v3498_v53 = vld [vmem:[%s4748_s3 + $0x2c4] ss:$16 sps:$4 sm:$0xff]  }
  0xec   :  { %2794 = vmatpush1.bf16.msra.mxu1 %v3439_v62  ;;  %v3513_v62 = vld [vmem:[%s4748_s3 + $0x30c] ss:$16 sps:$4 sm:$0xff]  }
  0xed   :  { %2795 = vmatprep.subr.bf16.mxu1 %v3447_v63  ;;  %v3508_v63 = vld [vmem:[%s4748_s3 + $0x300] ss:$16 sps:$4 sm:$0xff]  }
  0xee   :  { %2632 = vmatpush1.bf16.msra.mxu0 %v3442_v56  ;;  %v3499_v56 = vld [vmem:[%s4748_s3 + $0x2c8] ss:$16 sps:$4 sm:$0xff]  }
  0xef   :  { %2633 = vmatprep.subr.bf16.mxu0 %v3450_v57  ;;  %v3504_v57 = vld [vmem:[%s4748_s3 + $0x2e4] ss:$16 sps:$4 sm:$0xff]  }
  0xf0   :  { %2796 = vmatpush1.bf16.msra.mxu1 %v3445_v3  ;;  %v3519_v3 = vld [vmem:[%s4748_s3 + $0x32c] ss:$16 sps:$4 sm:$0xff]  }
  0xf1   :  { %2797 = vmatprep.subr.bf16.mxu1 %v3453_v4  ;;  %v3514_v4 = vld [vmem:[%s4748_s3 + $0x320] ss:$16 sps:$4 sm:$0xff]  }
  0xf2   :  { %2634 = vmatpush1.bf16.msra.mxu0 %v3448_v60  ;;  %v3505_v60 = vld [vmem:[%s4748_s3 + $0x2e8] ss:$16 sps:$4 sm:$0xff]  }
  0xf3   :  { %2635 = vmatprep.subr.bf16.mxu0 %v3456_v61  ;;  %v3510_v61 = vld [vmem:[%s4748_s3 + $0x304] ss:$16 sps:$4 sm:$0xff]  }
  0xf4   :  { %2798 = vmatpush1.bf16.msra.mxu1 %v3451_v5  ;;  %v3517_v5 = vld [vmem:[%s4748_s3 + $0x328] ss:$16 sps:$4 sm:$0xff]  }
  0xf5   :  { %2799 = vmatprep.subr.bf16.mxu1 %v3459_v6  ;;  %v3522_v6 = vld [vmem:[%s4748_s3 + $0x344] ss:$16 sps:$4 sm:$0xff]  }
  0xf6   :  { %2636 = vmatpush1.bf16.msra.mxu0 %v3454_v0  ;;  %v3511_v0 = vld [vmem:[%s4748_s3 + $0x308] ss:$16 sps:$4 sm:$0xff]  }
  0xf7   :  { %2646 = vmatprep.subr.bf16.mxu0 %v3462_v1  ;;  %v3516_v1 = vld [vmem:[%s4748_s3 + $0x324] ss:$16 sps:$4 sm:$0xff]  }
  0xf8   :  { %2800 = vmatpush1.bf16.msra.mxu1 %v3457_v7  ;;  %v3525_v7 = vld [vmem:[%s4748_s3 + $0x34c] ss:$16 sps:$4 sm:$0xff]  }
  0xf9   :  { %2810 = vmatprep.subr.bf16.mxu1 %v3465_v8  ;;  %v3520_v8 = vld [vmem:[%s4748_s3 + $0x340] ss:$16 sps:$4 sm:$0xff]  }
 0x14c   :  { %v909_v15 = vpop.f32.mrb[0].mxu0 }
 0x14d   :  { %v910_v16 = vadd.f32 %v909_v15, %v191_v13  ;;  %v911_v17 = vpop.f32.mrb[1].mxu0  ;;  %v3528_v13 = vld [vmem:[%s4748_s3 + $0x364] ss:$16 sps:$4 sm:$0xff]   ;;  %v3526_v15 = vld [vmem:[%s4748_s3 + $0x360] ss:$16 sps:$4 sm:$0xff]  }
 0x14e   :  { %v912_v18 = vadd.f32 %v911_v17, %v195_v14  ;;  %v913_v20 = vpop.f32.mrb[2].mxu0  ;;  %v4155_v34 = vpop.f32.mrb[0].mxu1  ;;  %v3531_v14 = vld [vmem:[%s4748_s3 + $0x36c] ss:$16 sps:$4 sm:$0xff]   ;;  %v3534_v17 = vld [vmem:[%s4748_s3 + $0x384] ss:$16 sps:$4 sm:$0xff]  }
 0x14f   :  { %v914_v21 = vpop.f32.mrb[3].mxu0  ;;  %v1039_v25 = vpack.c.bf16 %v910_v16, %v910_v16  ;;  %v952_v37 = vpop.f32.mrb[1].mxu1  ;;  %v3529_v16 = vld [vmem:[%s4748_s3 + $0x368] ss:$16 sps:$4 sm:$0xff]   ;;  %v3532_v20 = vld [vmem:[%s4748_s3 + $0x380] ss:$16 sps:$4 sm:$0xff]  }
 0x150   :  { %v1040_v22 = vpack.c.bf16 %v912_v18, %v912_v18  ;;  %v953_v40 = vadd.f32 %v952_v37, %v203_v33  ;;  %v954_v41 = vpop.f32.mrb[2].mxu1  ;;  %v3537_v18 = vld [vmem:[%s4748_s3 + $0x38c] ss:$16 sps:$4 sm:$0xff]   ;;  %v3535_v21 = vld [vmem:[%s4748_s3 + $0x388] ss:$16 sps:$4 sm:$0xff]  }
 0x151   :  { %v955_v42 = vpop.f32.mrb[3].mxu1  ;;  %v3547_v33 = vld [vmem:[%s4748_s3 + $0x3c8] ss:$16 sps:$4 sm:$0xff]  }
 0x152   :  { %2637 = vmatprep.mubr.bf16.mxu0 %v1040_v22  ;;  %2801 = vmatprep.mubr.bf16.mxu1 %v1040_v22  ;;  %v1042_v43 = vpack.c.bf16 %v953_v40, %v953_v40  ;;  %v3540_v22 = vld [vmem:[%s4748_s3 + $0x3a4] ss:$16 sps:$4 sm:$0xff]   ;;  %v3553_v40 = vld [vmem:[%s4748_s3 + $0x3e8] ss:$16 sps:$4 sm:$0xff]  }
 0x153   :  { %2638 = vmatmul.mubr.bf16.vlgmr.msra.gmra.mrb[8].mxu0 %v1039_v25  ;;  %2802 = vmatmul.mubr.bf16.vlgmr.msra.gmra.mrb[8].mxu1 %v1039_v25  ;;  %v3538_v25 = vld [vmem:[%s4748_s3 + $0x3a0] ss:$16 sps:$4 sm:$0xff]   ;;  %v3558_v42 = vld [vmem:[%s4748_s3 + $0x404] ss:$16 sps:$4 sm:$0xff]  }
 0x154   :  { %2647 = vmatpush1.bf16.msra.mxu0 %v3460_v23  ;;  %2811 = vmatpush1.bf16.msra.mxu1 %v3463_v2  ;;  %v3543_v23 = vld [vmem:[%s4748_s3 + $0x3ac] ss:$16 sps:$4 sm:$0xff]   ;;  %v198_v2 = vsub.s32 2, %v4115_v10 }
 0x155   :  { %2648 = vmatprep.subr.bf16.mxu0 %v3468_v26  ;;  %2812 = vmatprep.subr.bf16.mxu1 %v3471_v27  ;;  %v3541_v26 = vld [vmem:[%s4748_s3 + $0x3a8] ss:$16 sps:$4 sm:$0xff]   ;;  %v3546_v27 = vld [vmem:[%s4748_s3 + $0x3c4] ss:$16 sps:$4 sm:$0xff]  }
 0x156   :  { %2678 = vmatprep.mubr.bf16.mxu0 %v1042_v43  ;;  %2842 = vmatprep.mubr.bf16.mxu1 %v1042_v43 }
 0x158   :  { %2649 = vmatpush1.bf16.msra.mxu0 %v3466_v29  ;;  %2813 = vmatpush1.bf16.msra.mxu1 %v3469_v30  ;;  %v3549_v29 = vld [vmem:[%s4748_s3 + $0x3cc] ss:$16 sps:$4 sm:$0xff]   ;;  %v210_v30 = vsub.s32 5, %v4115_v10 }
 0x159   :  { %2650 = vmatprep.subr.bf16.mxu0 %v3474_v31  ;;  %2814 = vmatprep.subr.bf16.mxu1 %v3477_v32  ;;  %v199_v31 = vrot.slane %v4118_v12, %v198_v2  ;;  %v3544_v32 = vld [vmem:[%s4748_s3 + $0x3c0] ss:$16 sps:$4 sm:$0xff]  }
 0x15a   :  { %v211_v37 = vrot.slane %v4118_v12, %v210_v30  ;;  %v3615_v30 = vld [vmem:[%s4748_s3 + $0x52c] ss:$16 sps:$4 sm:$0xff]  }
 0x15c   :  { %2651 = vmatpush1.bf16.msra.mxu0 %v3472_v35  ;;  %2815 = vmatpush1.bf16.msra.mxu1 %v3475_v36  ;;  %v3552_v35 = vld [vmem:[%s4748_s3 + $0x3e4] ss:$16 sps:$4 sm:$0xff]   ;;  %v3555_v36 = vld [vmem:[%s4748_s3 + $0x3ec] ss:$16 sps:$4 sm:$0xff]  }
 0x15d   :  { %2652 = vmatprep.subr.bf16.mxu0 %v3480_v38  ;;  %2816 = vmatprep.subr.bf16.mxu1 %v3483_v39  ;;  %v951_v38 = vadd.f32 %v4155_v34, %v199_v31  ;;  %v3550_v39 = vld [vmem:[%s4748_s3 + $0x3e0] ss:$16 sps:$4 sm:$0xff]   ;;  %v3561_v34 = vld [vmem:[%s4748_s3 + $0x40c] ss:$16 sps:$4 sm:$0xff]  }
 0x15e   :  { %v3610_v31 = vld [vmem:[%s4748_s3 + $0x520] ss:$16 sps:$4 sm:$0xff]  }
 0x160   :  { %2653 = vmatpush1.bf16.msra.mxu0 %v3478_v44  ;;  %2817 = vmatpush1.bf16.msra.mxu1 %v3481_v45 }
 0x161   :  { %2654 = vmatprep.subr.bf16.mxu0 %v3486_v46  ;;  %2818 = vmatprep.subr.bf16.mxu1 %v3489_v47  ;;  %v1041_v46 = vpack.c.bf16 %v951_v38, %v951_v38  ;;  %v3624_v38 = vld [vmem:[%s4748_s3 + $0x564] ss:$16 sps:$4 sm:$0xff]  }
 0x164   :  { %2655 = vmatpush1.bf16.msra.mxu0 %v3484_v48  ;;  %2819 = vmatpush1.bf16.msra.mxu1 %v3487_v49  ;;  %v3556_v48 = vld [vmem:[%s4748_s3 + $0x400] ss:$16 sps:$4 sm:$0xff]   ;;  %v3559_v49 = vld [vmem:[%s4748_s3 + $0x408] ss:$16 sps:$4 sm:$0xff]  }
 0x165   :  { %2656 = vmatprep.subr.bf16.mxu0 %v3492_v24  ;;  %2820 = vmatprep.subr.bf16.mxu1 %v3495_v50  ;;  %v3564_v24 = vld [vmem:[%s4748_s3 + $0x424] ss:$16 sps:$4 sm:$0xff]   ;;  %v3567_v50 = vld [vmem:[%s4748_s3 + $0x42c] ss:$16 sps:$4 sm:$0xff]  }
 0x168   :  { %2657 = vmatpush1.bf16.msra.mxu0 %v3490_v51  ;;  %2821 = vmatpush1.bf16.msra.mxu1 %v3493_v52  ;;  %v3562_v52 = vld [vmem:[%s4748_s3 + $0x420] ss:$16 sps:$4 sm:$0xff]  }
 0x169   :  { %2658 = vmatprep.subr.bf16.mxu0 %v3498_v53  ;;  %2822 = vmatprep.subr.bf16.mxu1 %v3501_v54  ;;  %v3565_v53 = vld [vmem:[%s4748_s3 + $0x428] ss:$16 sps:$4 sm:$0xff]   ;;  %v3570_v54 = vld [vmem:[%s4748_s3 + $0x444] ss:$16 sps:$4 sm:$0xff]  }
 0x16c   :  { %2659 = vmatpush1.bf16.msra.mxu0 %v3496_v55  ;;  %2823 = vmatpush1.bf16.msra.mxu1 %v3499_v56  ;;  %v3573_v55 = vld [vmem:[%s4748_s3 + $0x44c] ss:$16 sps:$4 sm:$0xff]  }
 0x16d   :  { %2660 = vmatprep.subr.bf16.mxu0 %v3504_v57  ;;  %2824 = vmatprep.subr.bf16.mxu1 %v3507_v58  ;;  %v3568_v57 = vld [vmem:[%s4748_s3 + $0x440] ss:$16 sps:$4 sm:$0xff]   ;;  %v3571_v58 = vld [vmem:[%s4748_s3 + $0x448] ss:$16 sps:$4 sm:$0xff]  }
 0x170   :  { %2661 = vmatpush1.bf16.msra.mxu0 %v3502_v59  ;;  %2825 = vmatpush1.bf16.msra.mxu1 %v3505_v60  ;;  %v3576_v60 = vld [vmem:[%s4748_s3 + $0x464] ss:$16 sps:$4 sm:$0xff]  }
 0x171   :  { %2662 = vmatprep.subr.bf16.mxu0 %v3510_v61  ;;  %2826 = vmatprep.subr.bf16.mxu1 %v3513_v62  ;;  %v3579_v61 = vld [vmem:[%s4748_s3 + $0x46c] ss:$16 sps:$4 sm:$0xff]  }
 0x174   :  { %2663 = vmatpush1.bf16.msra.mxu0 %v3508_v63  ;;  %2827 = vmatpush1.bf16.msra.mxu1 %v3511_v0  ;;  %v3574_v0 = vld [vmem:[%s4748_s3 + $0x460] ss:$16 sps:$4 sm:$0xff]  }
 0x175   :  { %2664 = vmatprep.subr.bf16.mxu0 %v3516_v1  ;;  %2828 = vmatprep.subr.bf16.mxu1 %v3519_v3  ;;  %v3577_v1 = vld [vmem:[%s4748_s3 + $0x468] ss:$16 sps:$4 sm:$0xff]   ;;  %v3582_v3 = vld [vmem:[%s4748_s3 + $0x484] ss:$16 sps:$4 sm:$0xff]  }
 0x178   :  { %2665 = vmatpush1.bf16.msra.mxu0 %v3514_v4  ;;  %2829 = vmatpush1.bf16.msra.mxu1 %v3517_v5  ;;  %v3585_v4 = vld [vmem:[%s4748_s3 + $0x48c] ss:$16 sps:$4 sm:$0xff]   ;;  %v3580_v5 = vld [vmem:[%s4748_s3 + $0x480] ss:$16 sps:$4 sm:$0xff]  }
 0x179   :  { %2666 = vmatprep.subr.bf16.mxu0 %v3522_v6  ;;  %2830 = vmatprep.subr.bf16.mxu1 %v3525_v7  ;;  %v3583_v6 = vld [vmem:[%s4748_s3 + $0x488] ss:$16 sps:$4 sm:$0xff]   ;;  %v3588_v7 = vld [vmem:[%s4748_s3 + $0x4a4] ss:$16 sps:$4 sm:$0xff]  }
 0x17c   :  { %2667 = vmatpush1.bf16.msra.mxu0 %v3520_v8  ;;  %2831 = vmatpush1.bf16.msra.mxu1 %v3523_v9  ;;  %v3591_v8 = vld [vmem:[%s4748_s3 + $0x4ac] ss:$16 sps:$4 sm:$0xff]   ;;  %v3586_v9 = vld [vmem:[%s4748_s3 + $0x4a0] ss:$16 sps:$4 sm:$0xff]  }
 0x17d   :  { %2668 = vmatprep.subr.bf16.mxu0 %v3528_v13  ;;  %2832 = vmatprep.subr.bf16.mxu1 %v3531_v14  ;;  %v3589_v13 = vld [vmem:[%s4748_s3 + $0x4a8] ss:$16 sps:$4 sm:$0xff]   ;;  %v3594_v14 = vld [vmem:[%s4748_s3 + $0x4c4] ss:$16 sps:$4 sm:$0xff]  }
 0x180   :  { %2669 = vmatpush1.bf16.msra.mxu0 %v3526_v15  ;;  %2833 = vmatpush1.bf16.msra.mxu1 %v3529_v16  ;;  %v3597_v15 = vld [vmem:[%s4748_s3 + $0x4cc] ss:$16 sps:$4 sm:$0xff]   ;;  %v3592_v16 = vld [vmem:[%s4748_s3 + $0x4c0] ss:$16 sps:$4 sm:$0xff]  }
 0x181   :  { %2670 = vmatprep.subr.bf16.mxu0 %v3534_v17  ;;  %2834 = vmatprep.subr.bf16.mxu1 %v3537_v18  ;;  %v3595_v17 = vld [vmem:[%s4748_s3 + $0x4c8] ss:$16 sps:$4 sm:$0xff]   ;;  %v3600_v18 = vld [vmem:[%s4748_s3 + $0x4e4] ss:$16 sps:$4 sm:$0xff]  }
 0x184   :  { %2671 = vmatpush1.bf16.msra.mxu0 %v3532_v20  ;;  %2835 = vmatpush1.bf16.msra.mxu1 %v3535_v21  ;;  %v3603_v20 = vld [vmem:[%s4748_s3 + $0x4ec] ss:$16 sps:$4 sm:$0xff]   ;;  %v3598_v21 = vld [vmem:[%s4748_s3 + $0x4e0] ss:$16 sps:$4 sm:$0xff]  }
 0x185   :  { %2672 = vmatprep.subr.bf16.mxu0 %v3540_v22  ;;  %2836 = vmatprep.subr.bf16.mxu1 %v3543_v23  ;;  %v3601_v22 = vld [vmem:[%s4748_s3 + $0x4e8] ss:$16 sps:$4 sm:$0xff]   ;;  %v3606_v23 = vld [vmem:[%s4748_s3 + $0x504] ss:$16 sps:$4 sm:$0xff]  }
 0x188   :  { %2673 = vmatpush1.bf16.msra.mxu0 %v3538_v25  ;;  %2837 = vmatpush1.bf16.msra.mxu1 %v3541_v26  ;;  %v3609_v25 = vld [vmem:[%s4748_s3 + $0x50c] ss:$16 sps:$4 sm:$0xff]   ;;  %v3604_v26 = vld [vmem:[%s4748_s3 + $0x500] ss:$16 sps:$4 sm:$0xff]  }
 0x189   :  { %2674 = vmatprep.subr.bf16.mxu0 %v3546_v27  ;;  %2838 = vmatprep.subr.bf16.mxu1 %v3549_v29  ;;  %v3607_v27 = vld [vmem:[%s4748_s3 + $0x508] ss:$16 sps:$4 sm:$0xff]   ;;  %v3612_v29 = vld [vmem:[%s4748_s3 + $0x524] ss:$16 sps:$4 sm:$0xff]  }
 0x18c   :  { %2675 = vmatpush1.bf16.msra.mxu0 %v3544_v32  ;;  %2839 = vmatpush1.bf16.msra.mxu1 %v3547_v33  ;;  %v4326_v41 = vpop.f32.mrb[4].mxu0  ;;  %v3613_v32 = vld [vmem:[%s4748_s3 + $0x528] ss:$16 sps:$4 sm:$0xff]   ;;  %v3618_v33 = vld [vmem:[%s4748_s3 + $0x544] ss:$16 sps:$4 sm:$0xff]  }
 0x18d   :  { %2676 = vmatprep.subr.bf16.mxu0 %v3552_v35  ;;  %2840 = vmatprep.subr.bf16.mxu1 %v3555_v36  ;;  %v993_v43 = vpop.f32.mrb[5].mxu0  ;;  %v3621_v35 = vld [vmem:[%s4748_s3 + $0x54c] ss:$16 sps:$4 sm:$0xff]   ;;  %v3616_v36 = vld [vmem:[%s4748_s3 + $0x540] ss:$16 sps:$4 sm:$0xff]  }
 0x18e   :  { %v994_v44 = vadd.f32 %v993_v43, %v211_v37  ;;  %v995_v45 = vpop.f32.mrb[6].mxu0  ;;  %v4358_v56 = vpop.f32.mrb[4].mxu1  ;;  %v3619_v37 = vld [vmem:[%s4748_s3 + $0x548] ss:$16 sps:$4 sm:$0xff]   ;;  %v3633_v43 = vld [vmem:[%s4748_s3 + $0x58c] ss:$16 sps:$4 sm:$0xff]  }
 0x18f   :  { %v996_v47 = vpop.f32.mrb[7].mxu0  ;;  %v4366_v59 = vpop.f32.mrb[5].mxu1  ;;  %v3631_v45 = vld [vmem:[%s4748_s3 + $0x588] ss:$16 sps:$4 sm:$0xff]  }
 0x190   :  { %2677 = vmatpush1.bf16.msra.mxu0 %v3550_v39  ;;  %2841 = vmatpush1.bf16.msra.mxu1 %v3553_v40  ;;  %v1044_v51 = vpack.c.bf16 %v994_v44, %v994_v44  ;;  %v1036_v62 = vpop.f32.mrb[6].mxu1  ;;  %v3627_v39 = vld [vmem:[%s4748_s3 + $0x56c] ss:$16 sps:$4 sm:$0xff]   ;;  %v3622_v40 = vld [vmem:[%s4748_s3 + $0x560] ss:$16 sps:$4 sm:$0xff]  }
 0x191   :  { %2687 = vmatprep.subr.bf16.mxu0 %v3558_v42  ;;  %2851 = vmatprep.subr.bf16.mxu1 %v3561_v34  ;;  %v1037_v63 = vpop.f32.mrb[7].mxu1  ;;  %v3625_v42 = vld [vmem:[%s4748_s3 + $0x568] ss:$16 sps:$4 sm:$0xff]   ;;  %v3630_v34 = vld [vmem:[%s4748_s3 + $0x584] ss:$16 sps:$4 sm:$0xff]  }
 0x192   :  { %v3628_v44 = vld [vmem:[%s4748_s3 + $0x580] ss:$16 sps:$4 sm:$0xff]   ;;  %v3639_v47 = vld [vmem:[%s4748_s3 + $0x5ac] ss:$16 sps:$4 sm:$0xff]   ;;  %v3649_v63 = vld [vmem:[%s4748_s3 + $0x5e8] ss:$16 sps:$4 sm:$0xff]  }
 0x193   :  { %2679 = vmatmul.mubr.bf16.vlgmr.msra.gmra.mrb[8].mxu0 %v1041_v46  ;;  %2843 = vmatmul.mubr.bf16.vlgmr.msra.gmra.mrb[8].mxu1 %v1041_v46  ;;  %v3636_v46 = vld [vmem:[%s4748_s3 + $0x5a4] ss:$16 sps:$4 sm:$0xff]   ;;  %v3646_v62 = vld [vmem:[%s4748_s3 + $0x5e0] ss:$16 sps:$4 sm:$0xff]  }
 0x194   :  { %2688 = vmatpush1.bf16.msra.mxu0 %v3556_v48  ;;  %2852 = vmatpush1.bf16.msra.mxu1 %v3559_v49  ;;  %v206_v48 = vsub.s32 4, %v4115_v10  ;;  %v3634_v49 = vld [vmem:[%s4748_s3 + $0x5a0] ss:$16 sps:$4 sm:$0xff]  }
 0x195   :  { %2689 = vmatprep.subr.bf16.mxu0 %v3564_v24  ;;  %2853 = vmatprep.subr.bf16.mxu1 %v3567_v50  ;;  %v3637_v24 = vld [vmem:[%s4748_s3 + $0x5a8] ss:$16 sps:$4 sm:$0xff]   ;;  %v3642_v50 = vld [vmem:[%s4748_s3 + $0x5c4] ss:$16 sps:$4 sm:$0xff]  }
 0x196   :  { %2719 = vmatprep.mubr.bf16.mxu0 %v1044_v51  ;;  %2883 = vmatprep.mubr.bf16.mxu1 %v1044_v51  ;;  %v3645_v51 = vld [vmem:[%s4748_s3 + $0x5cc] ss:$16 sps:$4 sm:$0xff]  }
 0x198   :  { %2690 = vmatpush1.bf16.msra.mxu0 %v3562_v52  ;;  %2854 = vmatpush1.bf16.msra.mxu1 %v3565_v53  ;;  %v218_v52 = vsub.s32 7, %v4115_v10  ;;  %v207_v53 = vrot.slane %v4118_v12, %v206_v48  ;;  %v3709_v48 = vld [vmem:[%s4748_s3 + $0x728] ss:$16 sps:$4 sm:$0xff]  }
 0x199   :  { %2691 = vmatprep.subr.bf16.mxu0 %v3570_v54  ;;  %2855 = vmatprep.subr.bf16.mxu1 %v3573_v55  ;;  %v3640_v54 = vld [vmem:[%s4748_s3 + $0x5c0] ss:$16 sps:$4 sm:$0xff]   ;;  %v3643_v55 = vld [vmem:[%s4748_s3 + $0x5c8] ss:$16 sps:$4 sm:$0xff]  }
 0x19c   :  { %2692 = vmatpush1.bf16.msra.mxu0 %v3568_v57  ;;  %2856 = vmatpush1.bf16.msra.mxu1 %v3571_v58  ;;  %v3648_v57 = vld [vmem:[%s4748_s3 + $0x5e4] ss:$16 sps:$4 sm:$0xff]   ;;  %v3651_v58 = vld [vmem:[%s4748_s3 + $0x5ec] ss:$16 sps:$4 sm:$0xff]  }
 0x19d   :  { %2693 = vmatprep.subr.bf16.mxu0 %v3576_v60  ;;  %2857 = vmatprep.subr.bf16.mxu1 %v3579_v61  ;;  %v219_v60 = vrot.slane %v4118_v12, %v218_v52  ;;  %v992_v61 = vadd.f32 %v4326_v41, %v207_v53  ;;  %v3657_v41 = vld [vmem:[%s4748_s3 + $0x60c] ss:$16 sps:$4 sm:$0xff]   ;;  %v3720_v52 = vld [vmem:[%s4748_s3 + $0x764] ss:$16 sps:$4 sm:$0xff]  }
 0x19e   :  { %v3723_v53 = vld [vmem:[%s4748_s3 + $0x76c] ss:$16 sps:$4 sm:$0xff]  }
 0x1a0   :  { %2694 = vmatpush1.bf16.msra.mxu0 %v3574_v0  ;;  %2858 = vmatpush1.bf16.msra.mxu1 %v3577_v1  ;;  %v3654_v0 = vld [vmem:[%s4748_s3 + $0x604] ss:$16 sps:$4 sm:$0xff]   ;;  %v1035_v1 = vadd.f32 %v4366_v59, %v219_v60  ;;  %v3663_v59 = vld [vmem:[%s4748_s3 + $0x62c] ss:$16 sps:$4 sm:$0xff]   ;;  %v3724_v60 = vld [vmem:[%s4748_s3 + $0x780] ss:$16 sps:$4 sm:$0xff]  }
 0x1a1   :  { %2695 = vmatprep.subr.bf16.mxu0 %v3582_v3  ;;  %2859 = vmatprep.subr.bf16.mxu1 %v3585_v4  ;;  %v1043_v3 = vpack.c.bf16 %v992_v61, %v992_v61  ;;  %v3652_v4 = vld [vmem:[%s4748_s3 + $0x600] ss:$16 sps:$4 sm:$0xff]   ;;  %v3727_v61 = vld [vmem:[%s4748_s3 + $0x788] ss:$16 sps:$4 sm:$0xff]  }
 0x1a4   :  { %2696 = vmatpush1.bf16.msra.mxu0 %v3580_v5  ;;  %2860 = vmatpush1.bf16.msra.mxu1 %v3583_v6  ;;  %v3655_v5 = vld [vmem:[%s4748_s3 + $0x608] ss:$16 sps:$4 sm:$0xff]   ;;  %v3660_v6 = vld [vmem:[%s4748_s3 + $0x624] ss:$16 sps:$4 sm:$0xff]  }
 0x1a5   :  { %2697 = vmatprep.subr.bf16.mxu0 %v3588_v7  ;;  %2861 = vmatprep.subr.bf16.mxu1 %v3591_v8  ;;  %v1046_v7 = vpack.c.bf16 %v1035_v1, %v1035_v1  ;;  %v3658_v8 = vld [vmem:[%s4748_s3 + $0x620] ss:$16 sps:$4 sm:$0xff]   ;;  %v214_v1 = vsub.s32 6, %v4115_v10 }
 0x1a8   :  { %2698 = vmatpush1.bf16.msra.mxu0 %v3586_v9  ;;  %2862 = vmatpush1.bf16.msra.mxu1 %v3589_v13  ;;  %v3661_v9 = vld [vmem:[%s4748_s3 + $0x628] ss:$16 sps:$4 sm:$0xff]   ;;  %v3666_v13 = vld [vmem:[%s4748_s3 + $0x644] ss:$16 sps:$4 sm:$0xff]  }
 0x1a9   :  { %2699 = vmatprep.subr.bf16.mxu0 %v3594_v14  ;;  %2863 = vmatprep.subr.bf16.mxu1 %v3597_v15  ;;  %v3669_v14 = vld [vmem:[%s4748_s3 + $0x64c] ss:$16 sps:$4 sm:$0xff]   ;;  %v3664_v15 = vld [vmem:[%s4748_s3 + $0x640] ss:$16 sps:$4 sm:$0xff]  }
 0x1ac   :  { %2700 = vmatpush1.bf16.msra.mxu0 %v3592_v16  ;;  %2864 = vmatpush1.bf16.msra.mxu1 %v3595_v17  ;;  %v3667_v16 = vld [vmem:[%s4748_s3 + $0x648] ss:$16 sps:$4 sm:$0xff]   ;;  %v3672_v17 = vld [vmem:[%s4748_s3 + $0x664] ss:$16 sps:$4 sm:$0xff]  }
 0x1ad   :  { %2701 = vmatprep.subr.bf16.mxu0 %v3600_v18  ;;  %2865 = vmatprep.subr.bf16.mxu1 %v3603_v20  ;;  %v3675_v18 = vld [vmem:[%s4748_s3 + $0x66c] ss:$16 sps:$4 sm:$0xff]   ;;  %v3670_v20 = vld [vmem:[%s4748_s3 + $0x660] ss:$16 sps:$4 sm:$0xff]  }
 0x1b0   :  { %2702 = vmatpush1.bf16.msra.mxu0 %v3598_v21  ;;  %2866 = vmatpush1.bf16.msra.mxu1 %v3601_v22  ;;  %v3673_v21 = vld [vmem:[%s4748_s3 + $0x668] ss:$16 sps:$4 sm:$0xff]   ;;  %v3678_v22 = vld [vmem:[%s4748_s3 + $0x684] ss:$16 sps:$4 sm:$0xff]  }
 0x1b1   :  { %2703 = vmatprep.subr.bf16.mxu0 %v3606_v23  ;;  %2867 = vmatprep.subr.bf16.mxu1 %v3609_v25  ;;  %v3681_v23 = vld [vmem:[%s4748_s3 + $0x68c] ss:$16 sps:$4 sm:$0xff]   ;;  %v3676_v25 = vld [vmem:[%s4748_s3 + $0x680] ss:$16 sps:$4 sm:$0xff]  }
 0x1b4   :  { %2704 = vmatpush1.bf16.msra.mxu0 %v3604_v26  ;;  %2868 = vmatpush1.bf16.msra.mxu1 %v3607_v27  ;;  %v3679_v26 = vld [vmem:[%s4748_s3 + $0x688] ss:$16 sps:$4 sm:$0xff]   ;;  %v3684_v27 = vld [vmem:[%s4748_s3 + $0x6a4] ss:$16 sps:$4 sm:$0xff]  }
 0x1b5   :  { %2705 = vmatprep.subr.bf16.mxu0 %v3612_v29  ;;  %2869 = vmatprep.subr.bf16.mxu1 %v3615_v30  ;;  %v3687_v29 = vld [vmem:[%s4748_s3 + $0x6ac] ss:$16 sps:$4 sm:$0xff]   ;;  %v3682_v30 = vld [vmem:[%s4748_s3 + $0x6a0] ss:$16 sps:$4 sm:$0xff]  }
 0x1b8   :  { %2706 = vmatpush1.bf16.msra.mxu0 %v3610_v31  ;;  %2870 = vmatpush1.bf16.msra.mxu1 %v3613_v32  ;;  %v3685_v31 = vld [vmem:[%s4748_s3 + $0x6a8] ss:$16 sps:$4 sm:$0xff]   ;;  %v3690_v32 = vld [vmem:[%s4748_s3 + $0x6c4] ss:$16 sps:$4 sm:$0xff]  }
 0x1b9   :  { %2707 = vmatprep.subr.bf16.mxu0 %v3618_v33  ;;  %2871 = vmatprep.subr.bf16.mxu1 %v3621_v35  ;;  %v3693_v33 = vld [vmem:[%s4748_s3 + $0x6cc] ss:$16 sps:$4 sm:$0xff]   ;;  %v3688_v35 = vld [vmem:[%s4748_s3 + $0x6c0] ss:$16 sps:$4 sm:$0xff]  }
 0x1bc   :  { %2708 = vmatpush1.bf16.msra.mxu0 %v3616_v36  ;;  %2872 = vmatpush1.bf16.msra.mxu1 %v3619_v37  ;;  %v3691_v36 = vld [vmem:[%s4748_s3 + $0x6c8] ss:$16 sps:$4 sm:$0xff]   ;;  %v3696_v37 = vld [vmem:[%s4748_s3 + $0x6e4] ss:$16 sps:$4 sm:$0xff]  }
 0x1bd   :  { %2709 = vmatprep.subr.bf16.mxu0 %v3624_v38  ;;  %2873 = vmatprep.subr.bf16.mxu1 %v3627_v39  ;;  %v3699_v38 = vld [vmem:[%s4748_s3 + $0x6ec] ss:$16 sps:$4 sm:$0xff]   ;;  %v3694_v39 = vld [vmem:[%s4748_s3 + $0x6e0] ss:$16 sps:$4 sm:$0xff]  }
 0x1c0   :  { %2710 = vmatpush1.bf16.msra.mxu0 %v3622_v40  ;;  %2874 = vmatpush1.bf16.msra.mxu1 %v3625_v42  ;;  %v3697_v40 = vld [vmem:[%s4748_s3 + $0x6e8] ss:$16 sps:$4 sm:$0xff]   ;;  %v3702_v42 = vld [vmem:[%s4748_s3 + $0x704] ss:$16 sps:$4 sm:$0xff]  }
 0x1c1   :  { %2711 = vmatprep.subr.bf16.mxu0 %v3630_v34  ;;  %2875 = vmatprep.subr.bf16.mxu1 %v3633_v43  ;;  %v3705_v34 = vld [vmem:[%s4748_s3 + $0x70c] ss:$16 sps:$4 sm:$0xff]   ;;  %v3700_v43 = vld [vmem:[%s4748_s3 + $0x700] ss:$16 sps:$4 sm:$0xff]  }
 0x1c4   :  { %2712 = vmatpush1.bf16.msra.mxu0 %v3628_v44  ;;  %2876 = vmatpush1.bf16.msra.mxu1 %v3631_v45  ;;  %v3703_v44 = vld [vmem:[%s4748_s3 + $0x708] ss:$16 sps:$4 sm:$0xff]   ;;  %v3708_v45 = vld [vmem:[%s4748_s3 + $0x724] ss:$16 sps:$4 sm:$0xff]  }
 0x1c5   :  { %2713 = vmatprep.subr.bf16.mxu0 %v3636_v46  ;;  %2877 = vmatprep.subr.bf16.mxu1 %v3639_v47  ;;  %v3711_v46 = vld [vmem:[%s4748_s3 + $0x72c] ss:$16 sps:$4 sm:$0xff]   ;;  %v3706_v47 = vld [vmem:[%s4748_s3 + $0x720] ss:$16 sps:$4 sm:$0xff]  }
 0x1c8   :  { %2714 = vmatpush1.bf16.msra.mxu0 %v3634_v49  ;;  %2878 = vmatpush1.bf16.msra.mxu1 %v3637_v24  ;;  %v3714_v49 = vld [vmem:[%s4748_s3 + $0x744] ss:$16 sps:$4 sm:$0xff]   ;;  %v3717_v24 = vld [vmem:[%s4748_s3 + $0x74c] ss:$16 sps:$4 sm:$0xff]  }
 0x1c9   :  { %2715 = vmatprep.subr.bf16.mxu0 %v3642_v50  ;;  %2879 = vmatprep.subr.bf16.mxu1 %v3645_v51  ;;  %v3712_v50 = vld [vmem:[%s4748_s3 + $0x740] ss:$16 sps:$4 sm:$0xff]   ;;  %v3715_v51 = vld [vmem:[%s4748_s3 + $0x748] ss:$16 sps:$4 sm:$0xff]  }
 0x1cc   :  { %2716 = vmatpush1.bf16.msra.mxu0 %v3640_v54  ;;  %2880 = vmatpush1.bf16.msra.mxu1 %v3643_v55  ;;  %v3718_v54 = vld [vmem:[%s4748_s3 + $0x760] ss:$16 sps:$4 sm:$0xff]   ;;  %v3721_v55 = vld [vmem:[%s4748_s3 + $0x768] ss:$16 sps:$4 sm:$0xff]  }
 0x1cd   :  { %2717 = vmatprep.subr.bf16.mxu0 %v3648_v57  ;;  %2881 = vmatprep.subr.bf16.mxu1 %v3651_v58  ;;  %v3726_v57 = vld [vmem:[%s4748_s3 + $0x784] ss:$16 sps:$4 sm:$0xff]   ;;  %v3729_v58 = vld [vmem:[%s4748_s3 + $0x78c] ss:$16 sps:$4 sm:$0xff]  }
 0x1d0   :  { %2718 = vmatpush1.bf16.msra.mxu0 %v3646_v62  ;;  %2882 = vmatpush1.bf16.msra.mxu1 %v3649_v63  ;;  %v3732_v62 = vld [vmem:[%s4748_s3 + $0x7a4] ss:$16 sps:$4 sm:$0xff]   ;;  %v3735_v63 = vld [vmem:[%s4748_s3 + $0x7ac] ss:$16 sps:$4 sm:$0xff]  }
 0x1d1   :  { %2728 = vmatprep.subr.bf16.mxu0 %v3654_v0  ;;  %2892 = vmatprep.subr.bf16.mxu1 %v3657_v41  ;;  %v3730_v0 = vld [vmem:[%s4748_s3 + $0x7a0] ss:$16 sps:$4 sm:$0xff]   ;;  %v3733_v41 = vld [vmem:[%s4748_s3 + $0x7a8] ss:$16 sps:$4 sm:$0xff]  }
 0x1d3   :  { %2720 = vmatmul.mubr.bf16.vlgmr.msra.gmra.mrb[8].mxu0 %v1043_v3  ;;  %2884 = vmatmul.mubr.bf16.vlgmr.msra.gmra.mrb[8].mxu1 %v1043_v3  ;;  %v3738_v3 = vld [vmem:[%s4748_s3 + $0x7c4] ss:$16 sps:$4 sm:$0xff]  }
 0x1d4   :  { %2729 = vmatpush1.bf16.msra.mxu0 %v3652_v4  ;;  %2893 = vmatpush1.bf16.msra.mxu1 %v3655_v5  ;;  %v3741_v4 = vld [vmem:[%s4748_s3 + $0x7cc] ss:$16 sps:$4 sm:$0xff]   ;;  %v3736_v5 = vld [vmem:[%s4748_s3 + $0x7c0] ss:$16 sps:$4 sm:$0xff]  }
 0x1d5   :  { %2730 = vmatprep.subr.bf16.mxu0 %v3660_v6  ;;  %2894 = vmatprep.subr.bf16.mxu1 %v3663_v59  ;;  %v3739_v6 = vld [vmem:[%s4748_s3 + $0x7c8] ss:$16 sps:$4 sm:$0xff]   ;;  %v215_v59 = vrot.slane %v4118_v12, %v214_v1 }
 0x1d6   :  { %2760 = vmatprep.mubr.bf16.mxu0 %v1046_v7  ;;  %2924 = vmatprep.mubr.bf16.mxu1 %v1046_v7  ;;  %v3744_v7 = vld [vmem:[%s4748_s3 + $0x7e4] ss:$16 sps:$4 sm:$0xff]   ;;  %v3745_v12 = vld [vmem:[%s4748_s3 + $0x7e8] ss:$16 sps:$4 sm:$0xff]  }
 0x1d8   :  { %2731 = vmatpush1.bf16.msra.mxu0 %v3658_v8  ;;  %2895 = vmatpush1.bf16.msra.mxu1 %v3661_v9  ;;  %v3747_v8 = vld [vmem:[%s4748_s3 + $0x7ec] ss:$16 sps:$4 sm:$0xff]   ;;  %v3742_v9 = vld [vmem:[%s4748_s3 + $0x7e0] ss:$16 sps:$4 sm:$0xff]  }
 0x1d9   :  { %2732 = vmatprep.subr.bf16.mxu0 %v3666_v13  ;;  %2896 = vmatprep.subr.bf16.mxu1 %v3669_v14  ;;  %v1033_v13 = vadd.f32 %v4358_v56, %v215_v59 }
 0x1db   :  { %v1045_v14 = vpack.c.bf16 %v1033_v13, %v1033_v13 }
 0x1dc   :  { %2733 = vmatpush1.bf16.msra.mxu0 %v3664_v15  ;;  %2897 = vmatpush1.bf16.msra.mxu1 %v3667_v16  ;;  %v1303_v15 = vld [vmem:[#allocation6] sm:$0xf] }
 0x1dd   :  { %2734 = vmatprep.subr.bf16.mxu0 %v3672_v17  ;;  %2898 = vmatprep.subr.bf16.mxu1 %v3675_v18  ;;  %v1308_v16 = vrot.slane %v1303_v15, %v190_v11  ;;  %v1316_v17 = vrot.slane %v1303_v15, %v198_v2  ;;  %v1312_v18 = vrot.slane %v1303_v15, %v194_v19 }
 0x1de   :  { %v1320_v56 = vrot.slane %v1303_v15, %v202_v28 }
 0x1e0   :  { %2735 = vmatpush1.bf16.msra.mxu0 %v3670_v20  ;;  %2899 = vmatpush1.bf16.msra.mxu1 %v3673_v21 }
 0x1e1   :  { %2736 = vmatprep.subr.bf16.mxu0 %v3678_v22  ;;  %2900 = vmatprep.subr.bf16.mxu1 %v3681_v23 }
 0x1e4   :  { %2737 = vmatpush1.bf16.msra.mxu0 %v3676_v25  ;;  %2901 = vmatpush1.bf16.msra.mxu1 %v3679_v26 }
 0x1e5   :  { %2738 = vmatprep.subr.bf16.mxu0 %v3684_v27  ;;  %2902 = vmatprep.subr.bf16.mxu1 %v3687_v29 }
 0x1e8   :  { %2739 = vmatpush1.bf16.msra.mxu0 %v3682_v30  ;;  %2903 = vmatpush1.bf16.msra.mxu1 %v3685_v31 }
 0x1e9   :  { %2740 = vmatprep.subr.bf16.mxu0 %v3690_v32  ;;  %2904 = vmatprep.subr.bf16.mxu1 %v3693_v33 }
 0x1ec   :  { %2741 = vmatpush1.bf16.msra.mxu0 %v3688_v35  ;;  %2905 = vmatpush1.bf16.msra.mxu1 %v3691_v36 }
 0x1ed   :  { %2742 = vmatprep.subr.bf16.mxu0 %v3696_v37  ;;  %2906 = vmatprep.subr.bf16.mxu1 %v3699_v38 }
 0x1f0   :  { %2743 = vmatpush1.bf16.msra.mxu0 %v3694_v39  ;;  %2907 = vmatpush1.bf16.msra.mxu1 %v3697_v40 }
 0x1f1   :  { %2744 = vmatprep.subr.bf16.mxu0 %v3702_v42  ;;  %2908 = vmatprep.subr.bf16.mxu1 %v3705_v34 }
 0x1f4   :  { %2745 = vmatpush1.bf16.msra.mxu0 %v3700_v43  ;;  %2909 = vmatpush1.bf16.msra.mxu1 %v3703_v44 }
 0x1f5   :  { %2746 = vmatprep.subr.bf16.mxu0 %v3708_v45  ;;  %2910 = vmatprep.subr.bf16.mxu1 %v3711_v46 }
 0x1f8   :  { %2747 = vmatpush1.bf16.msra.mxu0 %v3706_v47  ;;  %2911 = vmatpush1.bf16.msra.mxu1 %v3709_v48 }
 0x1f9   :  { %2748 = vmatprep.subr.bf16.mxu0 %v3714_v49  ;;  %2912 = vmatprep.subr.bf16.mxu1 %v3717_v24 }
 0x1fc   :  { %2749 = vmatpush1.bf16.msra.mxu0 %v3712_v50  ;;  %2913 = vmatpush1.bf16.msra.mxu1 %v3715_v51 }
 0x1fd   :  { %2750 = vmatprep.subr.bf16.mxu0 %v3720_v52  ;;  %2914 = vmatprep.subr.bf16.mxu1 %v3723_v53 }
 0x200   :  { %2751 = vmatpush1.bf16.msra.mxu0 %v3718_v54  ;;  %2915 = vmatpush1.bf16.msra.mxu1 %v3721_v55 }
 0x201   :  { %2752 = vmatprep.subr.bf16.mxu0 %v3726_v57  ;;  %2916 = vmatprep.subr.bf16.mxu1 %v3729_v58 }
 0x204   :  { %2753 = vmatpush1.bf16.msra.mxu0 %v3724_v60  ;;  %2917 = vmatpush1.bf16.msra.mxu1 %v3727_v61 }
 0x205   :  { %2754 = vmatprep.subr.bf16.mxu0 %v3732_v62  ;;  %2918 = vmatprep.subr.bf16.mxu1 %v3735_v63 }
 0x208   :  { %2755 = vmatpush1.bf16.msra.mxu0 %v3730_v0  ;;  %2919 = vmatpush1.bf16.msra.mxu1 %v3733_v41 }
 0x209   :  { %2756 = vmatprep.subr.bf16.mxu0 %v3738_v3  ;;  %2920 = vmatprep.subr.bf16.mxu1 %v3741_v4 }
 0x20c   :  { %2757 = vmatpush1.bf16.msra.mxu0 %v3736_v5  ;;  %2921 = vmatpush1.bf16.msra.mxu1 %v3739_v6 }
 0x20d   :  { %2758 = vmatprep.subr.bf16.mxu0 %v3744_v7  ;;  %2922 = vmatprep.subr.bf16.mxu1 %v3747_v8 }
 0x210   :  { %2759 = vmatpush1.bf16.msra.mxu0 %v3742_v9  ;;  %2923 = vmatpush1.bf16.msra.mxu1 %v3745_v12 }
 0x213   :  { %2761 = vmatmul.mubr.bf16.vlgmr.msra.gmra.mrb[8].mxu0 %v1045_v14  ;;  %2925 = vmatmul.mubr.bf16.vlgmr.msra.gmra.mrb[8].mxu1 %v1045_v14 }
 0x2e6   :  { %v2762_v20 = vpop.f32.mrb[8].mxu0  ;;  %v2926_v21 = vpop.f32.mrb[8].mxu1 }
 0x2e7   :  { %v3329_v22 = vadd.f32 %v2762_v20, %v1308_v16  ;;  %v3331_v23 = vadd.f32 %v2926_v21, %v1316_v17  ;;  %v2764_v25 = vpop.f32.mrb[9].mxu0  ;;  %v2928_v26 = vpop.f32.mrb[9].mxu1 }
 0x2e8   :  { %v3330_v27 = vadd.f32 %v2764_v25, %v1312_v18  ;;  %v3332_v29 = vadd.f32 %v2928_v26, %v1320_v56  ;;  %v2766_v30 = vpop.f32.mrb[10].mxu0  ;;  %v2930_v31 = vpop.f32.mrb[10].mxu1 }
 0x2e9   :  { %2933 = vst [vmem:[%s4750_s5] sm:$0xff] %v3329_v22  ;;  %2935 = vst [vmem:[%s4750_s5 + $0x10] sm:$0xff] %v3331_v23  ;;  %v2767_v10 = vpop.f32.mrb[11].mxu0  ;;  %v2931_v11 = vpop.f32.mrb[11].mxu1 }
 0x2ea   :  { %2934 = vst [vmem:[%s4750_s5 + $0x8] sm:$0xff] %v3330_v27  ;;  %2936 = vst [vmem:[%s4750_s5 + $0x18] sm:$0xff] %v3332_v29 }
 0x2eb   :  { %2941 = vsyncpa [#allocation3], 1 }
 0x2ec   :  { %2942 = vsyncpa [#allocation5], 1 }

// kernel: mimic_forward.4
= control target key start
LH: loop header
LB: loop body
LE: loop exit
PB: predicated region body
PF: predicated region fallthrough
CT: control target
= control target key end

     0   :  { %10 = vsyncpa [#allocation3], 0  ;;  %s5356_s0 = inlined_call_operand.vmem [shape: bf16[16,768], index: 0, kind: input, shape index: {}]   ;;  %s5357_s1 = inlined_call_operand.hbm [shape: bf16[768,768], index: 1, kind: input, shape index: {}]   ;;  %s5358_s2 = inlined_call_operand.vmem [shape: f32[1,768], index: 2, kind: input, shape index: {}]   ;;  %s5359_s3 = inlined_call_operand.hbm [shape: bf16[768,512], index: 3, kind: input, shape index: {}]   ;;  %s5360_s4 = inlined_call_operand.hbm [shape: f32[1,512], index: 4, kind: input, shape index: {}]   ;;  %s5361_s5 = inlined_call_operand.hbm [shape: f32[2,512], index: 5, kind: output, shape index: {}]  }
   0x1   :  { %11 = vsyncpa [#allocation6], 0 }
   0x2   :  { %12 = vsyncpa [#allocation4], 0  ;;  %s5159_s18 = smov [#allocation5]   ;;  %s5065_s22 = scalar_lea.hbm %s5359_s3, 24576 }
   0x3   :  { %s34_s19 = sshll.u32 %s5159_s18, 4  ;;  %p5066_p0 = scmp.ne.s32.totalorder %s5359_s3, %s5065_s22  ;;  %s35_s19 = int_to_ptr.vmem [resolvable:$true] %s34_s19 }
   0x4   :  { %p5069_p1 = scmp.lt.u32.totalorder %s5065_s22, %s5359_s3 }
   0x6   :  { %p5071_p2 = pnand %p5069_p1, %p5066_p0 }
   0x8   :  { %5074 = shalt.err (!%p5071_p2)
}
   0x9   :  { %s5075_s27 = scalar_lea.vmem %s35_s19, 24576  ;;  %p5080_p4 = scmp.lt.s32.totalorder %s35_s19, %s35_s19 }
   0xa   :  { %p5076_p3 = scmp.ne.s32.totalorder %s35_s19, %s5075_s27  ;;  %p5081_p5 = scmp.lt.s32.totalorder %s5075_s27, %s5075_s27 }
   0xc   :  { %p5082_p6 = por %p5081_p5, %p5080_p4 }
   0xe   :  { %p5083_p7 = pnand %p5082_p6, %p5076_p3 }
  0x10   :  { %5086 = shalt.err (!%p5083_p7)
}
  0x11   :  { %s5160_s28 = smov 256   ;;  %s5161_s29 = smov 16  }
  0x12   :  { %40 = dma.hbm_to_vmem [thread:$0]  %s5359_s3, 24576, %s35_s19, [#allocation6], %s5160_s28, %s5160_s28, %s5161_s29  }
  0x13   :  { %s5162_s7 = smov [#allocation2]   ;;  %s5087_s11 = scalar_lea.hbm %s5357_s1, 36864 }
  0x14   :  { %s20_s8 = sshll.u32 %s5162_s7, 4  ;;  %p5088_p8 = scmp.ne.s32.totalorder %s5357_s1, %s5087_s11  ;;  %s21_s8 = int_to_ptr.vmem [resolvable:$true] %s20_s8 }
  0x15   :  { %p5091_p9 = scmp.lt.u32.totalorder %s5087_s11, %s5357_s1 }
  0x17   :  { %p5093_p10 = pnand %p5091_p9, %p5088_p8 }
  0x19   :  { %5096 = shalt.err (!%p5093_p10)
}
  0x1a   :  { %s5097_s16 = scalar_lea.vmem %s21_s8, 36864  ;;  %p5102_p12 = scmp.lt.s32.totalorder %s21_s8, %s21_s8 }
  0x1b   :  { %p5098_p11 = scmp.ne.s32.totalorder %s21_s8, %s5097_s16  ;;  %p5103_p13 = scmp.lt.s32.totalorder %s5097_s16, %s5097_s16 }
  0x1d   :  { %p5104_p0 = por %p5103_p13, %p5102_p12 }
  0x1f   :  { %p5105_p1 = pnand %p5104_p0, %p5098_p11 }
  0x21   :  { %5108 = shalt.err (!%p5105_p1)
}
  0x22   :  { %s5163_s3 = smov 384   ;;  %s5164_s17 = smov 24  }
  0x23   :  { %26 = dma.hbm_to_vmem [thread:$0]  %s5357_s1, 36864, %s21_s8, [#allocation3], %s5163_s3, %s5163_s3, %s5164_s17  }
  0x24   :  { %s5165_s20 = smov [#allocation7]   ;;  %s5109_s24 = scalar_lea.hbm %s5360_s4, 64 }
  0x25   :  { %s47_s21 = sshll.u32 %s5165_s20, 4  ;;  %p5110_p2 = scmp.ne.s32.totalorder %s5360_s4, %s5109_s24  ;;  %s48_s21 = int_to_ptr.vmem [resolvable:$true] %s47_s21 }
  0x26   :  { %p5113_p3 = scmp.lt.u32.totalorder %s5109_s24, %s5360_s4 }
  0x28   :  { %p5115_p4 = pnand %p5113_p3, %p5110_p2 }
  0x2a   :  { %5118 = shalt.err (!%p5115_p4)
}
  0x2b   :  { %s5119_s29 = scalar_lea.vmem %s48_s21, 64  ;;  %p5124_p6 = scmp.lt.s32.totalorder %s48_s21, %s48_s21 }
  0x2c   :  { %p5120_p5 = scmp.ne.s32.totalorder %s48_s21, %s5119_s29  ;;  %p5125_p7 = scmp.lt.s32.totalorder %s5119_s29, %s5119_s29 }
  0x2e   :  { %p5126_p8 = por %p5125_p7, %p5124_p6 }
  0x30   :  { %p5127_p9 = pnand %p5126_p8, %p5120_p5 }
  0x32   :  { %5130 = shalt.err (!%p5127_p9)
}
  0x33   :  { %50 = dma.hbm_to_vmem [thread:$0]  %s5360_s4, 64, %s48_s21, [#allocation6]  }
  0x34   :  { %5153 = dma.done.wait [#allocation3], 36864  }
  0x35   :  { %5154 = vsyncadd [#allocation3], 4294930432 }
  0x36   :  { %5155 = dma.done.wait [#allocation6], 24640  }
  0x37   :  { %5156 = vsyncadd [#allocation6], 4294942656  ;;  %v4332_v0 = vld [vmem:[#allocation2 + $0x4] ss:$24 sps:$4 sm:$0xff]   ;;  %v4336_v2 = vld [vmem:[#allocation2] ss:$24 sps:$4 sm:$0xff]  }
  0x38   :  { %v4334_v1 = vld [vmem:[#allocation2 + $0x304] ss:$24 sps:$4 sm:$0xff]   ;;  %1824 = vmatprep.subr.bf16.mxu1 %v4332_v0  ;;  %v4337_v3 = vld [vmem:[#allocation2 + $0x300] ss:$24 sps:$4 sm:$0xff]   ;;  %v4338_v4 = vld [vmem:[#allocation2 + $0x34] ss:$24 sps:$4 sm:$0xff]  }
  0x39   :  { %1867 = vmatprep.subr.bf16.mxu0 %v4334_v1  ;;  %1825 = vmatpush1.bf16.msra.mxu1 %v4336_v2  ;;  %v4340_v5 = vld [vmem:[#allocation2 + $0x334] ss:$24 sps:$4 sm:$0xff]   ;;  %v4342_v6 = vld [vmem:[#allocation2 + $0x30] ss:$24 sps:$4 sm:$0xff]   ;;  %v4344_v8 = vld [vmem:[#allocation2 + $0x64] ss:$24 sps:$4 sm:$0xff]  }
  0x3a   :  { %1868 = vmatpush1.bf16.msra.mxu0 %v4337_v3  ;;  %1826 = vmatprep.subr.bf16.mxu1 %v4338_v4  ;;  %v4343_v7 = vld [vmem:[#allocation2 + $0x330] ss:$24 sps:$4 sm:$0xff]   ;;  %v4346_v9 = vld [vmem:[#allocation2 + $0x364] ss:$24 sps:$4 sm:$0xff]   ;;  %v4348_v10 = vld [vmem:[#allocation2 + $0x60] ss:$24 sps:$4 sm:$0xff]  }
  0x3b   :  { %1869 = vmatprep.subr.bf16.mxu0 %v4340_v5  ;;  %v4349_v11 = vld [vmem:[#allocation2 + $0x360] ss:$24 sps:$4 sm:$0xff]   ;;  %v4350_v12 = vld [vmem:[#allocation2 + $0x94] ss:$24 sps:$4 sm:$0xff]   ;;  %v4354_v14 = vld [vmem:[#allocation2 + $0x90] ss:$24 sps:$4 sm:$0xff]  }
  0x3c   :  { %v4352_v13 = vld [vmem:[#allocation2 + $0x394] ss:$24 sps:$4 sm:$0xff]   ;;  %v4355_v15 = vld [vmem:[#allocation2 + $0x390] ss:$24 sps:$4 sm:$0xff]   ;;  %v4356_v16 = vld [vmem:[#allocation2 + $0xc4] ss:$24 sps:$4 sm:$0xff]  }
  0x3d   :  { %1827 = vmatpush1.bf16.msra.mxu1 %v4342_v6  ;;  %v4358_v17 = vld [vmem:[#allocation2 + $0x3c4] ss:$24 sps:$4 sm:$0xff]   ;;  %v4360_v18 = vld [vmem:[#allocation2 + $0xc0] ss:$24 sps:$4 sm:$0xff]   ;;  %v4362_v20 = vld [vmem:[#allocation2 + $0xf4] ss:$24 sps:$4 sm:$0xff]  }
  0x3e   :  { %1870 = vmatpush1.bf16.msra.mxu0 %v4343_v7  ;;  %1828 = vmatprep.subr.bf16.mxu1 %v4344_v8  ;;  %v4361_v19 = vld [vmem:[#allocation2 + $0x3c0] ss:$24 sps:$4 sm:$0xff]   ;;  %v4364_v21 = vld [vmem:[#allocation2 + $0x3f4] ss:$24 sps:$4 sm:$0xff]   ;;  %v4366_v22 = vld [vmem:[#allocation2 + $0xf0] ss:$24 sps:$4 sm:$0xff]  }
  0x3f   :  { %1871 = vmatprep.subr.bf16.mxu0 %v4346_v9  ;;  %v4367_v23 = vld [vmem:[#allocation2 + $0x3f0] ss:$24 sps:$4 sm:$0xff]   ;;  %v4368_v24 = vld [vmem:[#allocation2 + $0x124] ss:$24 sps:$4 sm:$0xff]   ;;  %v4372_v26 = vld [vmem:[#allocation2 + $0x120] ss:$24 sps:$4 sm:$0xff]  }
  0x40   :  { %v4370_v25 = vld [vmem:[#allocation2 + $0x424] ss:$24 sps:$4 sm:$0xff]   ;;  %v4373_v27 = vld [vmem:[#allocation2 + $0x420] ss:$24 sps:$4 sm:$0xff]   ;;  %v4374_v28 = vld [vmem:[#allocation2 + $0x154] ss:$24 sps:$4 sm:$0xff]  }
  0x41   :  { %1829 = vmatpush1.bf16.msra.mxu1 %v4348_v10  ;;  %v4376_v29 = vld [vmem:[#allocation2 + $0x454] ss:$24 sps:$4 sm:$0xff]   ;;  %v4378_v30 = vld [vmem:[#allocation2 + $0x150] ss:$24 sps:$4 sm:$0xff]   ;;  %v4380_v32 = vld [vmem:[#allocation2 + $0x184] ss:$24 sps:$4 sm:$0xff]  }
  0x42   :  { %1872 = vmatpush1.bf16.msra.mxu0 %v4349_v11  ;;  %1830 = vmatprep.subr.bf16.mxu1 %v4350_v12  ;;  %v4379_v31 = vld [vmem:[#allocation2 + $0x450] ss:$24 sps:$4 sm:$0xff]   ;;  %v4382_v33 = vld [vmem:[#allocation2 + $0x484] ss:$24 sps:$4 sm:$0xff]   ;;  %v4384_v34 = vld [vmem:[#allocation2 + $0x180] ss:$24 sps:$4 sm:$0xff]  }
  0x43   :  { %1873 = vmatprep.subr.bf16.mxu0 %v4352_v13  ;;  %v4385_v35 = vld [vmem:[#allocation2 + $0x480] ss:$24 sps:$4 sm:$0xff]   ;;  %v4386_v36 = vld [vmem:[#allocation2 + $0x1b4] ss:$24 sps:$4 sm:$0xff]   ;;  %v4390_v38 = vld [vmem:[#allocation2 + $0x1b0] ss:$24 sps:$4 sm:$0xff]  }
  0x44   :  { %v4388_v37 = vld [vmem:[#allocation2 + $0x4b4] ss:$24 sps:$4 sm:$0xff]   ;;  %v4391_v39 = vld [vmem:[#allocation2 + $0x4b0] ss:$24 sps:$4 sm:$0xff]   ;;  %v4392_v40 = vld [vmem:[#allocation2 + $0x1e4] ss:$24 sps:$4 sm:$0xff]  }
  0x45   :  { %1831 = vmatpush1.bf16.msra.mxu1 %v4354_v14  ;;  %v4394_v41 = vld [vmem:[#allocation2 + $0x4e4] ss:$24 sps:$4 sm:$0xff]   ;;  %v4396_v42 = vld [vmem:[#allocation2 + $0x1e0] ss:$24 sps:$4 sm:$0xff]   ;;  %v4398_v44 = vld [vmem:[#allocation2 + $0x214] ss:$24 sps:$4 sm:$0xff]  }
  0x46   :  { %1874 = vmatpush1.bf16.msra.mxu0 %v4355_v15  ;;  %1832 = vmatprep.subr.bf16.mxu1 %v4356_v16  ;;  %v4397_v43 = vld [vmem:[#allocation2 + $0x4e0] ss:$24 sps:$4 sm:$0xff]   ;;  %v4400_v45 = vld [vmem:[#allocation2 + $0x514] ss:$24 sps:$4 sm:$0xff]   ;;  %v4402_v46 = vld [vmem:[#allocation2 + $0x210] ss:$24 sps:$4 sm:$0xff]  }
  0x47   :  { %1875 = vmatprep.subr.bf16.mxu0 %v4358_v17  ;;  %v4403_v47 = vld [vmem:[#allocation2 + $0x510] ss:$24 sps:$4 sm:$0xff]   ;;  %v4404_v48 = vld [vmem:[#allocation2 + $0x244] ss:$24 sps:$4 sm:$0xff]   ;;  %v4408_v52 = vld [vmem:[#allocation2 + $0x240] ss:$24 sps:$4 sm:$0xff]  }
  0x48   :  { %v5237_v49 = vld [vmem:[%s5356_s0 + $0x4] ss:$24 sps:$4 sm:$0xff]   ;;  %v4409_v53 = vld [vmem:[#allocation2 + $0x540] ss:$24 sps:$4 sm:$0xff]   ;;  %v4410_v54 = vld [vmem:[#allocation2 + $0x274] ss:$24 sps:$4 sm:$0xff]  }
  0x49   :  { %1833 = vmatpush1.bf16.msra.mxu1 %v4360_v18  ;;  %v5242_v50 = vld [vmem:[%s5356_s0 + $0xc] ss:$24 sps:$4 sm:$0xff]   ;;  %1856 = vmatprep.mubr.bf16.mxu1 %v5237_v49  ;;  %v4414_v56 = vld [vmem:[#allocation2 + $0x270] ss:$24 sps:$4 sm:$0xff]   ;;  %v4420_v60 = vld [vmem:[#allocation2 + $0x2a0] ss:$24 sps:$4 sm:$0xff]  }
  0x4a   :  { %1876 = vmatpush1.bf16.msra.mxu0 %v4361_v19  ;;  %1834 = vmatprep.subr.bf16.mxu1 %v4362_v20  ;;  %v4406_v51 = vld [vmem:[#allocation2 + $0x544] ss:$24 sps:$4 sm:$0xff]   ;;  %v4412_v55 = vld [vmem:[#allocation2 + $0x574] ss:$24 sps:$4 sm:$0xff]   ;;  %v4415_v57 = vld [vmem:[#allocation2 + $0x570] ss:$24 sps:$4 sm:$0xff]  }
  0x4b   :  { %1877 = vmatprep.subr.bf16.mxu0 %v4364_v21  ;;  %1899 = vmatprep.mubr.bf16.mxu0 %v5242_v50  ;;  %v4416_v58 = vld [vmem:[#allocation2 + $0x2a4] ss:$24 sps:$4 sm:$0xff]   ;;  %v4421_v61 = vld [vmem:[#allocation2 + $0x5a0] ss:$24 sps:$4 sm:$0xff]   ;;  %v4422_v62 = vld [vmem:[#allocation2 + $0x2d4] ss:$24 sps:$4 sm:$0xff]  }
  0x4c   :  { %v4418_v59 = vld [vmem:[#allocation2 + $0x5a4] ss:$24 sps:$4 sm:$0xff]   ;;  %v4424_v63 = vld [vmem:[#allocation2 + $0x5d4] ss:$24 sps:$4 sm:$0xff]   ;;  %v4426_v0 = vld [vmem:[#allocation2 + $0x2d0] ss:$24 sps:$4 sm:$0xff]  }
  0x4d   :  { %1835 = vmatpush1.bf16.msra.mxu1 %v4366_v22  ;;  %v4427_v1 = vld [vmem:[#allocation2 + $0x5d0] ss:$24 sps:$4 sm:$0xff]   ;;  %v4435_v2 = vld [vmem:[#allocation2 + $0x604] ss:$24 sps:$4 sm:$0xff]   ;;  %v5249_v4 = vld [vmem:[%s5356_s0] ss:$24 sps:$4 sm:$0xff]  }
  0x4e   :  { %1878 = vmatpush1.bf16.msra.mxu0 %v4367_v23  ;;  %1836 = vmatprep.subr.bf16.mxu1 %v4368_v24  ;;  %v4438_v3 = vld [vmem:[#allocation2 + $0xc] ss:$24 sps:$4 sm:$0xff]   ;;  %v4433_v5 = vld [vmem:[#allocation2 + $0x600] ss:$24 sps:$4 sm:$0xff]   ;;  %v4445_v9 = vld [vmem:[#allocation2 + $0x3c] ss:$24 sps:$4 sm:$0xff]  }
  0x4f   :  { %1879 = vmatprep.subr.bf16.mxu0 %v4370_v25  ;;  %v4436_v6 = vld [vmem:[#allocation2 + $0x8] ss:$24 sps:$4 sm:$0xff]   ;;  %v4442_v8 = vld [vmem:[#allocation2 + $0x634] ss:$24 sps:$4 sm:$0xff]   ;;  %v4443_v11 = vld [vmem:[#allocation2 + $0x38] ss:$24 sps:$4 sm:$0xff]  }
  0x50   :  { %v5254_v7 = vld [vmem:[%s5356_s0 + $0x8] ss:$24 sps:$4 sm:$0xff]   ;;  %v4448_v12 = vld [vmem:[#allocation2 + $0x664] ss:$24 sps:$4 sm:$0xff]   ;;  %v4454_v16 = vld [vmem:[#allocation2 + $0x694] ss:$24 sps:$4 sm:$0xff]  }
  0x51   :  { %1837 = vmatpush1.bf16.msra.mxu1 %v4372_v26  ;;  %v4440_v10 = vld [vmem:[#allocation2 + $0x630] ss:$24 sps:$4 sm:$0xff]   ;;  %v4451_v13 = vld [vmem:[#allocation2 + $0x6c] ss:$24 sps:$4 sm:$0xff]   ;;  %v4446_v14 = vld [vmem:[#allocation2 + $0x660] ss:$24 sps:$4 sm:$0xff]  }
  0x52   :  { %1880 = vmatpush1.bf16.msra.mxu0 %v4373_v27  ;;  %1838 = vmatprep.subr.bf16.mxu1 %v4374_v28  ;;  %v4449_v15 = vld [vmem:[#allocation2 + $0x68] ss:$24 sps:$4 sm:$0xff]   ;;  %v4457_v17 = vld [vmem:[#allocation2 + $0x9c] ss:$24 sps:$4 sm:$0xff]   ;;  %v4455_v19 = vld [vmem:[#allocation2 + $0x98] ss:$24 sps:$4 sm:$0xff]  }
  0x53   :  { %1881 = vmatprep.subr.bf16.mxu0 %v4376_v29  ;;  %v4452_v18 = vld [vmem:[#allocation2 + $0x690] ss:$24 sps:$4 sm:$0xff]   ;;  %v4460_v20 = vld [vmem:[#allocation2 + $0x6c4] ss:$24 sps:$4 sm:$0xff]   ;;  %v4458_v22 = vld [vmem:[#allocation2 + $0x6c0] ss:$24 sps:$4 sm:$0xff]  }
  0x54   :  { %v4463_v21 = vld [vmem:[#allocation2 + $0xcc] ss:$24 sps:$4 sm:$0xff]   ;;  %v4461_v23 = vld [vmem:[#allocation2 + $0xc8] ss:$24 sps:$4 sm:$0xff]   ;;  %v4469_v25 = vld [vmem:[#allocation2 + $0xfc] ss:$24 sps:$4 sm:$0xff]  }
  0x55   :  { %1839 = vmatpush1.bf16.msra.mxu1 %v4378_v30  ;;  %v4466_v24 = vld [vmem:[#allocation2 + $0x6f4] ss:$24 sps:$4 sm:$0xff]   ;;  %v4464_v26 = vld [vmem:[#allocation2 + $0x6f0] ss:$24 sps:$4 sm:$0xff]   ;;  %v4472_v28 = vld [vmem:[#allocation2 + $0x724] ss:$24 sps:$4 sm:$0xff]  }
  0x56   :  { %1882 = vmatpush1.bf16.msra.mxu0 %v4379_v31  ;;  %1840 = vmatprep.subr.bf16.mxu1 %v4380_v32  ;;  %v4467_v27 = vld [vmem:[#allocation2 + $0xf8] ss:$24 sps:$4 sm:$0xff]   ;;  %v4475_v29 = vld [vmem:[#allocation2 + $0x12c] ss:$24 sps:$4 sm:$0xff]   ;;  %v4473_v31 = vld [vmem:[#allocation2 + $0x128] ss:$24 sps:$4 sm:$0xff]  }
  0x57   :  { %1883 = vmatprep.subr.bf16.mxu0 %v4382_v33  ;;  %v4470_v30 = vld [vmem:[#allocation2 + $0x720] ss:$24 sps:$4 sm:$0xff]   ;;  %v4478_v32 = vld [vmem:[#allocation2 + $0x754] ss:$24 sps:$4 sm:$0xff]   ;;  %vm2283_vm0 = vcmask 1040384  }
  0x58   :  { %v4481_v33 = vld [vmem:[#allocation2 + $0x15c] ss:$24 sps:$4 sm:$0xff]  }
  0x59   :  { %1841 = vmatpush1.bf16.msra.mxu1 %v4384_v34  ;;  %v5262_v34 = vld [vmem:[%s5356_s0 + $0x14] ss:$24 sps:$4 sm:$0xff]  }
  0x5a   :  { %1884 = vmatpush1.bf16.msra.mxu0 %v4385_v35  ;;  %1842 = vmatprep.subr.bf16.mxu1 %v4386_v36  ;;  %v4476_v35 = vld [vmem:[#allocation2 + $0x750] ss:$24 sps:$4 sm:$0xff]  }
  0x5b   :  { %1885 = vmatprep.subr.bf16.mxu0 %v4388_v37  ;;  %v4479_v36 = vld [vmem:[#allocation2 + $0x158] ss:$24 sps:$4 sm:$0xff]   ;;  %v4484_v37 = vld [vmem:[#allocation2 + $0x784] ss:$24 sps:$4 sm:$0xff]  }
  0x5d   :  { %1843 = vmatpush1.bf16.msra.mxu1 %v4390_v38  ;;  %v4487_v38 = vld [vmem:[#allocation2 + $0x18c] ss:$24 sps:$4 sm:$0xff]  }
  0x5e   :  { %1886 = vmatpush1.bf16.msra.mxu0 %v4391_v39  ;;  %1844 = vmatprep.subr.bf16.mxu1 %v4392_v40  ;;  %v4482_v39 = vld [vmem:[#allocation2 + $0x780] ss:$24 sps:$4 sm:$0xff]  }
  0x5f   :  { %1887 = vmatprep.subr.bf16.mxu0 %v4394_v41  ;;  %v4485_v40 = vld [vmem:[#allocation2 + $0x188] ss:$24 sps:$4 sm:$0xff]   ;;  %v4490_v41 = vld [vmem:[#allocation2 + $0x7b4] ss:$24 sps:$4 sm:$0xff]  }
  0x61   :  { %1845 = vmatpush1.bf16.msra.mxu1 %v4396_v42  ;;  %v4493_v42 = vld [vmem:[#allocation2 + $0x1bc] ss:$24 sps:$4 sm:$0xff]  }
  0x62   :  { %1888 = vmatpush1.bf16.msra.mxu0 %v4397_v43  ;;  %1846 = vmatprep.subr.bf16.mxu1 %v4398_v44  ;;  %v4488_v43 = vld [vmem:[#allocation2 + $0x7b0] ss:$24 sps:$4 sm:$0xff]  }
  0x63   :  { %1889 = vmatprep.subr.bf16.mxu0 %v4400_v45  ;;  %v4491_v44 = vld [vmem:[#allocation2 + $0x1b8] ss:$24 sps:$4 sm:$0xff]   ;;  %v4496_v45 = vld [vmem:[#allocation2 + $0x7e4] ss:$24 sps:$4 sm:$0xff]  }
  0x65   :  { %1847 = vmatpush1.bf16.msra.mxu1 %v4402_v46  ;;  %v4499_v46 = vld [vmem:[#allocation2 + $0x1ec] ss:$24 sps:$4 sm:$0xff]  }
  0x66   :  { %1890 = vmatpush1.bf16.msra.mxu0 %v4403_v47  ;;  %1848 = vmatprep.subr.bf16.mxu1 %v4404_v48  ;;  %v4494_v47 = vld [vmem:[#allocation2 + $0x7e0] ss:$24 sps:$4 sm:$0xff]  }
  0x67   :  { %1891 = vmatprep.subr.bf16.mxu0 %v4406_v51  ;;  %v4497_v48 = vld [vmem:[#allocation2 + $0x1e8] ss:$24 sps:$4 sm:$0xff]   ;;  %v4502_v51 = vld [vmem:[#allocation2 + $0x814] ss:$24 sps:$4 sm:$0xff]  }
  0x69   :  { %1849 = vmatpush1.bf16.msra.mxu1 %v4408_v52  ;;  %v4505_v52 = vld [vmem:[#allocation2 + $0x21c] ss:$24 sps:$4 sm:$0xff]  }
  0x6a   :  { %1892 = vmatpush1.bf16.msra.mxu0 %v4409_v53  ;;  %1850 = vmatprep.subr.bf16.mxu1 %v4410_v54  ;;  %v4500_v53 = vld [vmem:[#allocation2 + $0x810] ss:$24 sps:$4 sm:$0xff]  }
  0x6b   :  { %1893 = vmatprep.subr.bf16.mxu0 %v4412_v55  ;;  %v4503_v54 = vld [vmem:[#allocation2 + $0x218] ss:$24 sps:$4 sm:$0xff]   ;;  %v4508_v55 = vld [vmem:[#allocation2 + $0x844] ss:$24 sps:$4 sm:$0xff]  }
  0x6d   :  { %1851 = vmatpush1.bf16.msra.mxu1 %v4414_v56  ;;  %v4511_v56 = vld [vmem:[#allocation2 + $0x24c] ss:$24 sps:$4 sm:$0xff]  }
  0x6e   :  { %1894 = vmatpush1.bf16.msra.mxu0 %v4415_v57  ;;  %1852 = vmatprep.subr.bf16.mxu1 %v4416_v58  ;;  %v4506_v57 = vld [vmem:[#allocation2 + $0x840] ss:$24 sps:$4 sm:$0xff]  }
  0x6f   :  { %1895 = vmatprep.subr.bf16.mxu0 %v4418_v59  ;;  %v4509_v58 = vld [vmem:[#allocation2 + $0x248] ss:$24 sps:$4 sm:$0xff]   ;;  %v4514_v59 = vld [vmem:[#allocation2 + $0x874] ss:$24 sps:$4 sm:$0xff]  }
  0x71   :  { %1853 = vmatpush1.bf16.msra.mxu1 %v4420_v60  ;;  %v4517_v60 = vld [vmem:[#allocation2 + $0x27c] ss:$24 sps:$4 sm:$0xff]  }
  0x72   :  { %1896 = vmatpush1.bf16.msra.mxu0 %v4421_v61  ;;  %1854 = vmatprep.subr.bf16.mxu1 %v4422_v62  ;;  %v4512_v61 = vld [vmem:[#allocation2 + $0x870] ss:$24 sps:$4 sm:$0xff]  }
  0x73   :  { %1897 = vmatprep.subr.bf16.mxu0 %v4424_v63  ;;  %v4515_v62 = vld [vmem:[#allocation2 + $0x278] ss:$24 sps:$4 sm:$0xff]   ;;  %v4520_v63 = vld [vmem:[#allocation2 + $0x8a4] ss:$24 sps:$4 sm:$0xff]  }
  0x75   :  { %1855 = vmatpush1.bf16.msra.mxu1 %v4426_v0  ;;  %v4523_v0 = vld [vmem:[#allocation2 + $0x2ac] ss:$24 sps:$4 sm:$0xff]  }
  0x76   :  { %1898 = vmatpush1.bf16.msra.mxu0 %v4427_v1  ;;  %1953 = vmatprep.subr.bf16.mxu1 %v4438_v3  ;;  %v4518_v1 = vld [vmem:[#allocation2 + $0x8a0] ss:$24 sps:$4 sm:$0xff]   ;;  %v4526_v3 = vld [vmem:[#allocation2 + $0x8d4] ss:$24 sps:$4 sm:$0xff]  }
  0x77   :  { %1910 = vmatprep.subr.bf16.mxu0 %v4435_v2  ;;  %v4521_v2 = vld [vmem:[#allocation2 + $0x2a8] ss:$24 sps:$4 sm:$0xff]  }
  0x78   :  { %1857 = vmatmul.mubr.bf16.vlgmr.msra.gmra.mrb[0].mxu1 %v5249_v4 }
  0x79   :  { %1900 = vmatmul.mubr.bf16.vlgmr.msra.gmra.mrb[0].mxu0 %v5254_v7  ;;  %1954 = vmatpush1.bf16.msra.mxu1 %v4436_v6  ;;  %v4524_v6 = vld [vmem:[#allocation2 + $0x8d0] ss:$24 sps:$4 sm:$0xff]  }
  0x7a   :  { %1911 = vmatpush1.bf16.msra.mxu0 %v4433_v5  ;;  %1955 = vmatprep.subr.bf16.mxu1 %v4445_v9  ;;  %v4529_v5 = vld [vmem:[#allocation2 + $0x2dc] ss:$24 sps:$4 sm:$0xff]   ;;  %v4535_v9 = vld [vmem:[#allocation2 + $0x30c] ss:$24 sps:$4 sm:$0xff]  }
  0x7b   :  { %1912 = vmatprep.subr.bf16.mxu0 %v4442_v8  ;;  %1985 = vmatprep.mubr.bf16.mxu1 %v5237_v49  ;;  %v4527_v8 = vld [vmem:[#allocation2 + $0x2d8] ss:$24 sps:$4 sm:$0xff]  }
  0x7c   :  { %1942 = vmatprep.mubr.bf16.mxu0 %v5262_v34 }
  0x7d   :  { %1956 = vmatpush1.bf16.msra.mxu1 %v4443_v11  ;;  %v5268_v11 = vld [vmem:[%s5356_s0 + $0x10] ss:$24 sps:$4 sm:$0xff]  }
  0x7e   :  { %1913 = vmatpush1.bf16.msra.mxu0 %v4440_v10  ;;  %1957 = vmatprep.subr.bf16.mxu1 %v4451_v13  ;;  %v4538_v10 = vld [vmem:[#allocation2 + $0x14] ss:$24 sps:$4 sm:$0xff]   ;;  %v4536_v13 = vld [vmem:[#allocation2 + $0x10] ss:$24 sps:$4 sm:$0xff]  }
  0x7f   :  { %1914 = vmatprep.subr.bf16.mxu0 %v4448_v12  ;;  %v4533_v12 = vld [vmem:[#allocation2 + $0x308] ss:$24 sps:$4 sm:$0xff]  }
  0x81   :  { %1958 = vmatpush1.bf16.msra.mxu1 %v4449_v15  ;;  %v4544_v15 = vld [vmem:[#allocation2 + $0x44] ss:$24 sps:$4 sm:$0xff]  }
  0x82   :  { %1915 = vmatpush1.bf16.msra.mxu0 %v4446_v14  ;;  %1959 = vmatprep.subr.bf16.mxu1 %v4457_v17  ;;  %v4541_v14 = vld [vmem:[#allocation2 + $0x33c] ss:$24 sps:$4 sm:$0xff]   ;;  %v4542_v17 = vld [vmem:[#allocation2 + $0x40] ss:$24 sps:$4 sm:$0xff]  }
  0x83   :  { %1916 = vmatprep.subr.bf16.mxu0 %v4454_v16  ;;  %v4539_v16 = vld [vmem:[#allocation2 + $0x338] ss:$24 sps:$4 sm:$0xff]  }
  0x85   :  { %1960 = vmatpush1.bf16.msra.mxu1 %v4455_v19  ;;  %v4550_v19 = vld [vmem:[#allocation2 + $0x74] ss:$24 sps:$4 sm:$0xff]  }
  0x86   :  { %1917 = vmatpush1.bf16.msra.mxu0 %v4452_v18  ;;  %1961 = vmatprep.subr.bf16.mxu1 %v4463_v21  ;;  %v4547_v18 = vld [vmem:[#allocation2 + $0x36c] ss:$24 sps:$4 sm:$0xff]   ;;  %v4548_v21 = vld [vmem:[#allocation2 + $0x70] ss:$24 sps:$4 sm:$0xff]  }
  0x87   :  { %1918 = vmatprep.subr.bf16.mxu0 %v4460_v20  ;;  %v4545_v20 = vld [vmem:[#allocation2 + $0x368] ss:$24 sps:$4 sm:$0xff]  }
  0x89   :  { %1962 = vmatpush1.bf16.msra.mxu1 %v4461_v23  ;;  %v4556_v23 = vld [vmem:[#allocation2 + $0xa4] ss:$24 sps:$4 sm:$0xff]  }
  0x8a   :  { %1919 = vmatpush1.bf16.msra.mxu0 %v4458_v22  ;;  %1963 = vmatprep.subr.bf16.mxu1 %v4469_v25  ;;  %v4553_v22 = vld [vmem:[#allocation2 + $0x39c] ss:$24 sps:$4 sm:$0xff]   ;;  %v4554_v25 = vld [vmem:[#allocation2 + $0xa0] ss:$24 sps:$4 sm:$0xff]  }
  0x8b   :  { %1920 = vmatprep.subr.bf16.mxu0 %v4466_v24  ;;  %v4551_v24 = vld [vmem:[#allocation2 + $0x398] ss:$24 sps:$4 sm:$0xff]  }
  0x8d   :  { %1964 = vmatpush1.bf16.msra.mxu1 %v4467_v27  ;;  %v4562_v27 = vld [vmem:[#allocation2 + $0xd4] ss:$24 sps:$4 sm:$0xff]  }
  0x8e   :  { %1921 = vmatpush1.bf16.msra.mxu0 %v4464_v26  ;;  %1965 = vmatprep.subr.bf16.mxu1 %v4475_v29  ;;  %v4559_v26 = vld [vmem:[#allocation2 + $0x3cc] ss:$24 sps:$4 sm:$0xff]  }
  0x8f   :  { %1922 = vmatprep.subr.bf16.mxu0 %v4472_v28  ;;  %v4557_v28 = vld [vmem:[#allocation2 + $0x3c8] ss:$24 sps:$4 sm:$0xff]   ;;  %v4568_v29 = vld [vmem:[#allocation2 + $0x104] ss:$24 sps:$4 sm:$0xff]  }
  0x91   :  { %1966 = vmatpush1.bf16.msra.mxu1 %v4473_v31  ;;  %v4566_v31 = vld [vmem:[#allocation2 + $0x100] ss:$24 sps:$4 sm:$0xff]  }
  0x92   :  { %1923 = vmatpush1.bf16.msra.mxu0 %v4470_v30  ;;  %1967 = vmatprep.subr.bf16.mxu1 %v4481_v33  ;;  %v4563_v30 = vld [vmem:[#allocation2 + $0x3f8] ss:$24 sps:$4 sm:$0xff]   ;;  %v4574_v33 = vld [vmem:[#allocation2 + $0x134] ss:$24 sps:$4 sm:$0xff]  }
  0x93   :  { %1924 = vmatprep.subr.bf16.mxu0 %v4478_v32  ;;  %v4571_v32 = vld [vmem:[#allocation2 + $0x42c] ss:$24 sps:$4 sm:$0xff]  }
  0x95   :  { %1968 = vmatpush1.bf16.msra.mxu1 %v4479_v36  ;;  %v4572_v36 = vld [vmem:[#allocation2 + $0x130] ss:$24 sps:$4 sm:$0xff]  }
  0x96   :  { %1925 = vmatpush1.bf16.msra.mxu0 %v4476_v35  ;;  %1969 = vmatprep.subr.bf16.mxu1 %v4487_v38  ;;  %v4569_v35 = vld [vmem:[#allocation2 + $0x428] ss:$24 sps:$4 sm:$0xff]   ;;  %v4580_v38 = vld [vmem:[#allocation2 + $0x164] ss:$24 sps:$4 sm:$0xff]  }
  0x97   :  { %1926 = vmatprep.subr.bf16.mxu0 %v4484_v37  ;;  %v4577_v37 = vld [vmem:[#allocation2 + $0x45c] ss:$24 sps:$4 sm:$0xff]  }
  0x99   :  { %1970 = vmatpush1.bf16.msra.mxu1 %v4485_v40  ;;  %v4578_v40 = vld [vmem:[#allocation2 + $0x160] ss:$24 sps:$4 sm:$0xff]  }
  0x9a   :  { %1927 = vmatpush1.bf16.msra.mxu0 %v4482_v39  ;;  %1971 = vmatprep.subr.bf16.mxu1 %v4493_v42  ;;  %v4575_v39 = vld [vmem:[#allocation2 + $0x458] ss:$24 sps:$4 sm:$0xff]   ;;  %v4586_v42 = vld [vmem:[#allocation2 + $0x194] ss:$24 sps:$4 sm:$0xff]  }
  0x9b   :  { %1928 = vmatprep.subr.bf16.mxu0 %v4490_v41  ;;  %v4583_v41 = vld [vmem:[#allocation2 + $0x48c] ss:$24 sps:$4 sm:$0xff]  }
  0x9d   :  { %1972 = vmatpush1.bf16.msra.mxu1 %v4491_v44  ;;  %v4584_v44 = vld [vmem:[#allocation2 + $0x190] ss:$24 sps:$4 sm:$0xff]  }
  0x9e   :  { %1929 = vmatpush1.bf16.msra.mxu0 %v4488_v43  ;;  %1973 = vmatprep.subr.bf16.mxu1 %v4499_v46  ;;  %v4581_v43 = vld [vmem:[#allocation2 + $0x488] ss:$24 sps:$4 sm:$0xff]   ;;  %v4592_v46 = vld [vmem:[#allocation2 + $0x1c4] ss:$24 sps:$4 sm:$0xff]  }
  0x9f   :  { %1930 = vmatprep.subr.bf16.mxu0 %v4496_v45  ;;  %v4589_v45 = vld [vmem:[#allocation2 + $0x4bc] ss:$24 sps:$4 sm:$0xff]  }
  0xa1   :  { %1974 = vmatpush1.bf16.msra.mxu1 %v4497_v48  ;;  %v4590_v48 = vld [vmem:[#allocation2 + $0x1c0] ss:$24 sps:$4 sm:$0xff]  }
  0xa2   :  { %1931 = vmatpush1.bf16.msra.mxu0 %v4494_v47  ;;  %1975 = vmatprep.subr.bf16.mxu1 %v4505_v52  ;;  %v4587_v47 = vld [vmem:[#allocation2 + $0x4b8] ss:$24 sps:$4 sm:$0xff]   ;;  %v4598_v52 = vld [vmem:[#allocation2 + $0x1f4] ss:$24 sps:$4 sm:$0xff]  }
  0xa3   :  { %1932 = vmatprep.subr.bf16.mxu0 %v4502_v51  ;;  %v4595_v51 = vld [vmem:[#allocation2 + $0x4ec] ss:$24 sps:$4 sm:$0xff]  }
  0xa5   :  { %1976 = vmatpush1.bf16.msra.mxu1 %v4503_v54  ;;  %v4596_v54 = vld [vmem:[#allocation2 + $0x1f0] ss:$24 sps:$4 sm:$0xff]  }
  0xa6   :  { %1933 = vmatpush1.bf16.msra.mxu0 %v4500_v53  ;;  %1977 = vmatprep.subr.bf16.mxu1 %v4511_v56  ;;  %v4593_v53 = vld [vmem:[#allocation2 + $0x4e8] ss:$24 sps:$4 sm:$0xff]   ;;  %v4604_v56 = vld [vmem:[#allocation2 + $0x224] ss:$24 sps:$4 sm:$0xff]  }
  0xa7   :  { %1934 = vmatprep.subr.bf16.mxu0 %v4508_v55  ;;  %v4601_v55 = vld [vmem:[#allocation2 + $0x51c] ss:$24 sps:$4 sm:$0xff]  }
  0xa9   :  { %1978 = vmatpush1.bf16.msra.mxu1 %v4509_v58  ;;  %v4602_v58 = vld [vmem:[#allocation2 + $0x220] ss:$24 sps:$4 sm:$0xff]  }
  0xaa   :  { %1935 = vmatpush1.bf16.msra.mxu0 %v4506_v57  ;;  %1979 = vmatprep.subr.bf16.mxu1 %v4517_v60  ;;  %v4599_v57 = vld [vmem:[#allocation2 + $0x518] ss:$24 sps:$4 sm:$0xff]   ;;  %v4610_v60 = vld [vmem:[#allocation2 + $0x254] ss:$24 sps:$4 sm:$0xff]  }
  0xab   :  { %1936 = vmatprep.subr.bf16.mxu0 %v4514_v59  ;;  %v4607_v59 = vld [vmem:[#allocation2 + $0x54c] ss:$24 sps:$4 sm:$0xff]  }
  0xad   :  { %1980 = vmatpush1.bf16.msra.mxu1 %v4515_v62  ;;  %v4608_v62 = vld [vmem:[#allocation2 + $0x250] ss:$24 sps:$4 sm:$0xff]  }
  0xae   :  { %1937 = vmatpush1.bf16.msra.mxu0 %v4512_v61  ;;  %1981 = vmatprep.subr.bf16.mxu1 %v4523_v0  ;;  %v4605_v61 = vld [vmem:[#allocation2 + $0x548] ss:$24 sps:$4 sm:$0xff]   ;;  %v4616_v0 = vld [vmem:[#allocation2 + $0x284] ss:$24 sps:$4 sm:$0xff]  }
  0xaf   :  { %1938 = vmatprep.subr.bf16.mxu0 %v4520_v63  ;;  %v4613_v63 = vld [vmem:[#allocation2 + $0x57c] ss:$24 sps:$4 sm:$0xff]  }
  0xb1   :  { %1982 = vmatpush1.bf16.msra.mxu1 %v4521_v2  ;;  %v4614_v2 = vld [vmem:[#allocation2 + $0x280] ss:$24 sps:$4 sm:$0xff]  }
  0xb2   :  { %1939 = vmatpush1.bf16.msra.mxu0 %v4518_v1  ;;  %1983 = vmatprep.subr.bf16.mxu1 %v4529_v5  ;;  %v4611_v1 = vld [vmem:[#allocation2 + $0x578] ss:$24 sps:$4 sm:$0xff]   ;;  %v4622_v5 = vld [vmem:[#allocation2 + $0x2b4] ss:$24 sps:$4 sm:$0xff]  }
  0xb3   :  { %1940 = vmatprep.subr.bf16.mxu0 %v4526_v3  ;;  %v4619_v3 = vld [vmem:[#allocation2 + $0x5ac] ss:$24 sps:$4 sm:$0xff]  }
  0xb5   :  { %1984 = vmatpush1.bf16.msra.mxu1 %v4527_v8  ;;  %v4620_v8 = vld [vmem:[#allocation2 + $0x2b0] ss:$24 sps:$4 sm:$0xff]  }
  0xb6   :  { %1941 = vmatpush1.bf16.msra.mxu0 %v4524_v6  ;;  %1996 = vmatprep.subr.bf16.mxu1 %v4535_v9  ;;  %v4617_v6 = vld [vmem:[#allocation2 + $0x5a8] ss:$24 sps:$4 sm:$0xff]   ;;  %v4625_v9 = vld [vmem:[#allocation2 + $0x5dc] ss:$24 sps:$4 sm:$0xff]  }
  0xb7   :  { %2082 = vmatprep.subr.bf16.mxu0 %v4538_v10  ;;  %v4628_v10 = vld [vmem:[#allocation2 + $0x2e4] ss:$24 sps:$4 sm:$0xff]  }
  0xb8   :  { %1986 = vmatmul.mubr.bf16.vlgmr.msra.gmra.mrb[4].mxu1 %v5249_v4 }
  0xb9   :  { %1943 = vmatmul.mubr.bf16.vlgmr.msra.gmra.mrb[0].mxu0 %v5268_v11  ;;  %1997 = vmatpush1.bf16.msra.mxu1 %v4533_v12  ;;  %v4623_v12 = vld [vmem:[#allocation2 + $0x5d8] ss:$24 sps:$4 sm:$0xff]  }
  0xba   :  { %2083 = vmatpush1.bf16.msra.mxu0 %v4536_v13  ;;  %1998 = vmatprep.subr.bf16.mxu1 %v4541_v14  ;;  %v4626_v13 = vld [vmem:[#allocation2 + $0x2e0] ss:$24 sps:$4 sm:$0xff]   ;;  %v4631_v14 = vld [vmem:[#allocation2 + $0x60c] ss:$24 sps:$4 sm:$0xff]  }
  0xbb   :  { %2084 = vmatprep.subr.bf16.mxu0 %v4544_v15  ;;  %2028 = vmatprep.mubr.bf16.mxu1 %v5242_v50  ;;  %v4560_v50 = vld [vmem:[#allocation2 + $0xd0] ss:$24 sps:$4 sm:$0xff]   ;;  %v4634_v15 = vld [vmem:[#allocation2 + $0x314] ss:$24 sps:$4 sm:$0xff]  }
  0xbc   :  { %2114 = vmatprep.mubr.bf16.mxu0 %v5237_v49  ;;  %v4565_v49 = vld [vmem:[#allocation2 + $0x3fc] ss:$24 sps:$4 sm:$0xff]  }
  0xbd   :  { %1999 = vmatpush1.bf16.msra.mxu1 %v4539_v16  ;;  %v4629_v16 = vld [vmem:[#allocation2 + $0x608] ss:$24 sps:$4 sm:$0xff]  }
  0xbe   :  { %2085 = vmatpush1.bf16.msra.mxu0 %v4542_v17  ;;  %2000 = vmatprep.subr.bf16.mxu1 %v4547_v18  ;;  %v4632_v17 = vld [vmem:[#allocation2 + $0x310] ss:$24 sps:$4 sm:$0xff]   ;;  %v4637_v18 = vld [vmem:[#allocation2 + $0x63c] ss:$24 sps:$4 sm:$0xff]  }
  0xbf   :  { %2086 = vmatprep.subr.bf16.mxu0 %v4550_v19  ;;  %v4640_v19 = vld [vmem:[#allocation2 + $0x344] ss:$24 sps:$4 sm:$0xff]  }
  0xc1   :  { %2001 = vmatpush1.bf16.msra.mxu1 %v4545_v20  ;;  %v4635_v20 = vld [vmem:[#allocation2 + $0x638] ss:$24 sps:$4 sm:$0xff]  }
  0xc2   :  { %2087 = vmatpush1.bf16.msra.mxu0 %v4548_v21  ;;  %2002 = vmatprep.subr.bf16.mxu1 %v4553_v22  ;;  %v4638_v21 = vld [vmem:[#allocation2 + $0x340] ss:$24 sps:$4 sm:$0xff]   ;;  %v4643_v22 = vld [vmem:[#allocation2 + $0x66c] ss:$24 sps:$4 sm:$0xff]  }
  0xc3   :  { %2088 = vmatprep.subr.bf16.mxu0 %v4556_v23  ;;  %v4646_v23 = vld [vmem:[#allocation2 + $0x374] ss:$24 sps:$4 sm:$0xff]  }
  0xc5   :  { %2003 = vmatpush1.bf16.msra.mxu1 %v4551_v24  ;;  %v5061_v24 = vld [vmem:[%s5356_s0 + $0xc] ss:$24 sps:$4 sm:$0xff]  }
  0xc6   :  { %2089 = vmatpush1.bf16.msra.mxu0 %v4554_v25  ;;  %2004 = vmatprep.subr.bf16.mxu1 %v4559_v26  ;;  %v4641_v25 = vld [vmem:[#allocation2 + $0x668] ss:$24 sps:$4 sm:$0xff]  }
  0xc7   :  { %2090 = vmatprep.subr.bf16.mxu0 %v4562_v27  ;;  %v4644_v26 = vld [vmem:[#allocation2 + $0x370] ss:$24 sps:$4 sm:$0xff]  }
  0xc8   :  { %v4647_v27 = vld [vmem:[#allocation2 + $0x698] ss:$24 sps:$4 sm:$0xff]  }
  0xc9   :  { %2005 = vmatpush1.bf16.msra.mxu1 %v4557_v28  ;;  %v4650_v28 = vld [vmem:[#allocation2 + $0x3a0] ss:$24 sps:$4 sm:$0xff]  }
  0xca   :  { %2091 = vmatpush1.bf16.msra.mxu0 %v4560_v50  ;;  %2006 = vmatprep.subr.bf16.mxu1 %v4565_v49  ;;  %v4655_v50 = vld [vmem:[#allocation2 + $0x6cc] ss:$24 sps:$4 sm:$0xff]   ;;  %v4653_v49 = vld [vmem:[#allocation2 + $0x6c8] ss:$24 sps:$4 sm:$0xff]  }
  0xcb   :  { %2092 = vmatprep.subr.bf16.mxu0 %v4568_v29  ;;  %v4656_v29 = vld [vmem:[#allocation2 + $0x3d0] ss:$24 sps:$4 sm:$0xff]  }
  0xcd   :  { %2007 = vmatpush1.bf16.msra.mxu1 %v4563_v30  ;;  %v4661_v30 = vld [vmem:[#allocation2 + $0x6fc] ss:$24 sps:$4 sm:$0xff]  }
  0xce   :  { %2093 = vmatpush1.bf16.msra.mxu0 %v4566_v31  ;;  %2008 = vmatprep.subr.bf16.mxu1 %v4571_v32  ;;  %v4664_v31 = vld [vmem:[#allocation2 + $0x404] ss:$24 sps:$4 sm:$0xff]   ;;  %v4659_v32 = vld [vmem:[#allocation2 + $0x6f8] ss:$24 sps:$4 sm:$0xff]  }
  0xcf   :  { %2094 = vmatprep.subr.bf16.mxu0 %v4574_v33  ;;  %v4662_v33 = vld [vmem:[#allocation2 + $0x400] ss:$24 sps:$4 sm:$0xff]  }
  0xd1   :  { %2009 = vmatpush1.bf16.msra.mxu1 %v4569_v35  ;;  %v4667_v35 = vld [vmem:[#allocation2 + $0x72c] ss:$24 sps:$4 sm:$0xff]  }
  0xd2   :  { %2095 = vmatpush1.bf16.msra.mxu0 %v4572_v36  ;;  %2010 = vmatprep.subr.bf16.mxu1 %v4577_v37  ;;  %v4670_v36 = vld [vmem:[#allocation2 + $0x434] ss:$24 sps:$4 sm:$0xff]   ;;  %v4665_v37 = vld [vmem:[#allocation2 + $0x728] ss:$24 sps:$4 sm:$0xff]  }
  0xd3   :  { %2096 = vmatprep.subr.bf16.mxu0 %v4580_v38  ;;  %v4668_v38 = vld [vmem:[#allocation2 + $0x430] ss:$24 sps:$4 sm:$0xff]  }
  0xd5   :  { %2011 = vmatpush1.bf16.msra.mxu1 %v4575_v39  ;;  %v4673_v39 = vld [vmem:[#allocation2 + $0x75c] ss:$24 sps:$4 sm:$0xff]  }
  0xd6   :  { %2097 = vmatpush1.bf16.msra.mxu0 %v4578_v40  ;;  %2012 = vmatprep.subr.bf16.mxu1 %v4583_v41  ;;  %v4676_v40 = vld [vmem:[#allocation2 + $0x464] ss:$24 sps:$4 sm:$0xff]   ;;  %v4671_v41 = vld [vmem:[#allocation2 + $0x758] ss:$24 sps:$4 sm:$0xff]  }
  0xd7   :  { %2098 = vmatprep.subr.bf16.mxu0 %v4586_v42  ;;  %v4674_v42 = vld [vmem:[#allocation2 + $0x460] ss:$24 sps:$4 sm:$0xff]  }
  0xd9   :  { %2013 = vmatpush1.bf16.msra.mxu1 %v4581_v43  ;;  %v4679_v43 = vld [vmem:[#allocation2 + $0x78c] ss:$24 sps:$4 sm:$0xff]  }
  0xda   :  { %2099 = vmatpush1.bf16.msra.mxu0 %v4584_v44  ;;  %2014 = vmatprep.subr.bf16.mxu1 %v4589_v45  ;;  %v4682_v44 = vld [vmem:[#allocation2 + $0x494] ss:$24 sps:$4 sm:$0xff]   ;;  %v4677_v45 = vld [vmem:[#allocation2 + $0x788] ss:$24 sps:$4 sm:$0xff]  }
  0xdb   :  { %2100 = vmatprep.subr.bf16.mxu0 %v4592_v46  ;;  %v4680_v46 = vld [vmem:[#allocation2 + $0x490] ss:$24 sps:$4 sm:$0xff]  }
  0xdd   :  { %2015 = vmatpush1.bf16.msra.mxu1 %v4587_v47  ;;  %v4685_v47 = vld [vmem:[#allocation2 + $0x7bc] ss:$24 sps:$4 sm:$0xff]  }
  0xde   :  { %2101 = vmatpush1.bf16.msra.mxu0 %v4590_v48  ;;  %2016 = vmatprep.subr.bf16.mxu1 %v4595_v51  ;;  %v4688_v48 = vld [vmem:[#allocation2 + $0x4c4] ss:$24 sps:$4 sm:$0xff]   ;;  %v4683_v51 = vld [vmem:[#allocation2 + $0x7b8] ss:$24 sps:$4 sm:$0xff]  }
  0xdf   :  { %2102 = vmatprep.subr.bf16.mxu0 %v4598_v52  ;;  %v4686_v52 = vld [vmem:[#allocation2 + $0x4c0] ss:$24 sps:$4 sm:$0xff]  }
  0xe1   :  { %2017 = vmatpush1.bf16.msra.mxu1 %v4593_v53  ;;  %v4691_v53 = vld [vmem:[#allocation2 + $0x7ec] ss:$24 sps:$4 sm:$0xff]  }
  0xe2   :  { %2103 = vmatpush1.bf16.msra.mxu0 %v4596_v54  ;;  %2018 = vmatprep.subr.bf16.mxu1 %v4601_v55  ;;  %v4694_v54 = vld [vmem:[#allocation2 + $0x4f4] ss:$24 sps:$4 sm:$0xff]   ;;  %v4689_v55 = vld [vmem:[#allocation2 + $0x7e8] ss:$24 sps:$4 sm:$0xff]  }
  0xe3   :  { %2104 = vmatprep.subr.bf16.mxu0 %v4604_v56  ;;  %v4692_v56 = vld [vmem:[#allocation2 + $0x4f0] ss:$24 sps:$4 sm:$0xff]  }
  0xe5   :  { %2019 = vmatpush1.bf16.msra.mxu1 %v4599_v57  ;;  %v4697_v57 = vld [vmem:[#allocation2 + $0x81c] ss:$24 sps:$4 sm:$0xff]  }
  0xe6   :  { %2105 = vmatpush1.bf16.msra.mxu0 %v4602_v58  ;;  %2020 = vmatprep.subr.bf16.mxu1 %v4607_v59  ;;  %v4700_v58 = vld [vmem:[#allocation2 + $0x524] ss:$24 sps:$4 sm:$0xff]   ;;  %v4695_v59 = vld [vmem:[#allocation2 + $0x818] ss:$24 sps:$4 sm:$0xff]  }
  0xe7   :  { %2106 = vmatprep.subr.bf16.mxu0 %v4610_v60  ;;  %v4698_v60 = vld [vmem:[#allocation2 + $0x520] ss:$24 sps:$4 sm:$0xff]  }
  0xe9   :  { %2021 = vmatpush1.bf16.msra.mxu1 %v4605_v61  ;;  %v4703_v61 = vld [vmem:[#allocation2 + $0x84c] ss:$24 sps:$4 sm:$0xff]  }
  0xea   :  { %2107 = vmatpush1.bf16.msra.mxu0 %v4608_v62  ;;  %2022 = vmatprep.subr.bf16.mxu1 %v4613_v63  ;;  %v4706_v62 = vld [vmem:[#allocation2 + $0x554] ss:$24 sps:$4 sm:$0xff]   ;;  %v4701_v63 = vld [vmem:[#allocation2 + $0x848] ss:$24 sps:$4 sm:$0xff]  }
  0xeb   :  { %2108 = vmatprep.subr.bf16.mxu0 %v4616_v0  ;;  %v4704_v0 = vld [vmem:[#allocation2 + $0x550] ss:$24 sps:$4 sm:$0xff]  }
  0xed   :  { %2023 = vmatpush1.bf16.msra.mxu1 %v4611_v1  ;;  %v4709_v1 = vld [vmem:[#allocation2 + $0x87c] ss:$24 sps:$4 sm:$0xff]  }
  0xee   :  { %2109 = vmatpush1.bf16.msra.mxu0 %v4614_v2  ;;  %2024 = vmatprep.subr.bf16.mxu1 %v4619_v3  ;;  %v4712_v2 = vld [vmem:[#allocation2 + $0x584] ss:$24 sps:$4 sm:$0xff]   ;;  %v4707_v3 = vld [vmem:[#allocation2 + $0x878] ss:$24 sps:$4 sm:$0xff]  }
  0xef   :  { %2110 = vmatprep.subr.bf16.mxu0 %v4622_v5  ;;  %v4710_v5 = vld [vmem:[#allocation2 + $0x580] ss:$24 sps:$4 sm:$0xff]  }
  0xf1   :  { %2025 = vmatpush1.bf16.msra.mxu1 %v4617_v6  ;;  %v4715_v6 = vld [vmem:[#allocation2 + $0x8ac] ss:$24 sps:$4 sm:$0xff]  }
  0xf2   :  { %2111 = vmatpush1.bf16.msra.mxu0 %v4620_v8  ;;  %2026 = vmatprep.subr.bf16.mxu1 %v4625_v9  ;;  %v4718_v8 = vld [vmem:[#allocation2 + $0x5b4] ss:$24 sps:$4 sm:$0xff]   ;;  %v4713_v9 = vld [vmem:[#allocation2 + $0x8a8] ss:$24 sps:$4 sm:$0xff]  }
  0xf3   :  { %2112 = vmatprep.subr.bf16.mxu0 %v4628_v10  ;;  %v4716_v10 = vld [vmem:[#allocation2 + $0x5b0] ss:$24 sps:$4 sm:$0xff]  }
  0xf5   :  { %2027 = vmatpush1.bf16.msra.mxu1 %v4623_v12  ;;  %v4721_v12 = vld [vmem:[#allocation2 + $0x8dc] ss:$24 sps:$4 sm:$0xff]  }
  0xf6   :  { %2113 = vmatpush1.bf16.msra.mxu0 %v4626_v13  ;;  %2039 = vmatprep.subr.bf16.mxu1 %v4631_v14  ;;  %v4724_v13 = vld [vmem:[#allocation2 + $0x5e4] ss:$24 sps:$4 sm:$0xff]   ;;  %v4719_v14 = vld [vmem:[#allocation2 + $0x8d8] ss:$24 sps:$4 sm:$0xff]  }
  0xf7   :  { %2125 = vmatprep.subr.bf16.mxu0 %v4634_v15  ;;  %v4722_v15 = vld [vmem:[#allocation2 + $0x5e0] ss:$24 sps:$4 sm:$0xff]  }
  0xf8   :  { %2029 = vmatmul.mubr.bf16.vlgmr.msra.gmra.mrb[4].mxu1 %v5254_v7  ;;  %v4652_v7 = vld [vmem:[#allocation2 + $0x3a4] ss:$24 sps:$4 sm:$0xff]  }
  0xf9   :  { %2115 = vmatmul.mubr.bf16.vlgmr.msra.gmra.mrb[4].mxu0 %v5249_v4  ;;  %2040 = vmatpush1.bf16.msra.mxu1 %v4629_v16  ;;  %v4649_v4 = vld [vmem:[#allocation2 + $0x69c] ss:$24 sps:$4 sm:$0xff]  }
  0xfa   :  { %2126 = vmatpush1.bf16.msra.mxu0 %v4632_v17  ;;  %2041 = vmatprep.subr.bf16.mxu1 %v4637_v18  ;;  %v4727_v16 = vld [vmem:[#allocation2 + $0x614] ss:$24 sps:$4 sm:$0xff]   ;;  %v4725_v18 = vld [vmem:[#allocation2 + $0x610] ss:$24 sps:$4 sm:$0xff]  }
  0xfb   :  { %2127 = vmatprep.subr.bf16.mxu0 %v4640_v19  ;;  %2071 = vmatprep.mubr.bf16.mxu1 %v5262_v34  ;;  %v4658_v34 = vld [vmem:[#allocation2 + $0x3d4] ss:$24 sps:$4 sm:$0xff]   ;;  %v4758_v19 = vld [vmem:[#allocation5] ss:$16 sps:$4 sm:$0xff]  }
  0xfc   :  { %2157 = vmatprep.mubr.bf16.mxu0 %v5061_v24  ;;  %v4760_v17 = vld [vmem:[#allocation5 + $0x4] ss:$16 sps:$4 sm:$0xff]   ;;  %v4764_v24 = vld [vmem:[#allocation5 + $0x20] ss:$16 sps:$4 sm:$0xff]  }
  0xfd   :  { %2042 = vmatpush1.bf16.msra.mxu1 %v4635_v20  ;;  %v4730_v20 = vld [vmem:[#allocation2 + $0x644] ss:$24 sps:$4 sm:$0xff]  }
  0xfe   :  { %2128 = vmatpush1.bf16.msra.mxu0 %v4638_v21  ;;  %2043 = vmatprep.subr.bf16.mxu1 %v4643_v22  ;;  %v4766_v21 = vld [vmem:[#allocation5 + $0x24] ss:$16 sps:$4 sm:$0xff]   ;;  %v5062_v22 = vld [vmem:[%s5356_s0 + $0x8] ss:$24 sps:$4 sm:$0xff]  }
  0xff   :  { %2129 = vmatprep.subr.bf16.mxu0 %v4646_v23  ;;  %v4728_v23 = vld [vmem:[#allocation2 + $0x640] ss:$24 sps:$4 sm:$0xff]  }
 0x101   :  { %2044 = vmatpush1.bf16.msra.mxu1 %v4641_v25  ;;  %v4733_v25 = vld [vmem:[#allocation2 + $0x674] ss:$24 sps:$4 sm:$0xff]  }
 0x102   :  { %2130 = vmatpush1.bf16.msra.mxu0 %v4644_v26  ;;  %2045 = vmatprep.subr.bf16.mxu1 %v4649_v4  ;;  %v4772_v26 = vld [vmem:[#allocation5 + $0x44] ss:$16 sps:$4 sm:$0xff]  }
 0x103   :  { %2131 = vmatprep.subr.bf16.mxu0 %v4652_v7  ;;  %v5063_v4 = vld [vmem:[%s5356_s0 + $0x14] ss:$24 sps:$4 sm:$0xff]   ;;  %v4736_v7 = vld [vmem:[#allocation2 + $0x6a4] ss:$24 sps:$4 sm:$0xff]  }
 0x105   :  { %2046 = vmatpush1.bf16.msra.mxu1 %v4647_v27  ;;  %v4770_v27 = vld [vmem:[#allocation5 + $0x40] ss:$16 sps:$4 sm:$0xff]  }
 0x106   :  { %2132 = vmatpush1.bf16.msra.mxu0 %v4650_v28  ;;  %2047 = vmatprep.subr.bf16.mxu1 %v4655_v50  ;;  %v4778_v28 = vld [vmem:[#allocation5 + $0x64] ss:$16 sps:$4 sm:$0xff]   ;;  %v4734_v50 = vld [vmem:[#allocation2 + $0x6a0] ss:$24 sps:$4 sm:$0xff]  }
 0x107   :  { %2133 = vmatprep.subr.bf16.mxu0 %v4658_v34  ;;  %v4739_v34 = vld [vmem:[#allocation2 + $0x6d4] ss:$24 sps:$4 sm:$0xff]  }
 0x109   :  { %2048 = vmatpush1.bf16.msra.mxu1 %v4653_v49  ;;  %v4776_v49 = vld [vmem:[#allocation5 + $0x60] ss:$16 sps:$4 sm:$0xff]  }
 0x10a   :  { %2134 = vmatpush1.bf16.msra.mxu0 %v4656_v29  ;;  %2049 = vmatprep.subr.bf16.mxu1 %v4661_v30  ;;  %v4784_v29 = vld [vmem:[#allocation5 + $0x84] ss:$16 sps:$4 sm:$0xff]   ;;  %v4737_v30 = vld [vmem:[#allocation2 + $0x6d0] ss:$24 sps:$4 sm:$0xff]  }
 0x10b   :  { %2135 = vmatprep.subr.bf16.mxu0 %v4664_v31  ;;  %v4742_v31 = vld [vmem:[#allocation2 + $0x704] ss:$24 sps:$4 sm:$0xff]  }
 0x10d   :  { %2050 = vmatpush1.bf16.msra.mxu1 %v4659_v32  ;;  %v4782_v32 = vld [vmem:[#allocation5 + $0x80] ss:$16 sps:$4 sm:$0xff]  }
 0x10e   :  { %2136 = vmatpush1.bf16.msra.mxu0 %v4662_v33  ;;  %2051 = vmatprep.subr.bf16.mxu1 %v4667_v35  ;;  %v4790_v33 = vld [vmem:[#allocation5 + $0xa4] ss:$16 sps:$4 sm:$0xff]   ;;  %v4740_v35 = vld [vmem:[#allocation2 + $0x700] ss:$24 sps:$4 sm:$0xff]  }
 0x10f   :  { %2137 = vmatprep.subr.bf16.mxu0 %v4670_v36  ;;  %v4745_v36 = vld [vmem:[#allocation2 + $0x734] ss:$24 sps:$4 sm:$0xff]  }
 0x111   :  { %2052 = vmatpush1.bf16.msra.mxu1 %v4665_v37  ;;  %v4788_v37 = vld [vmem:[#allocation5 + $0xa0] ss:$16 sps:$4 sm:$0xff]  }
 0x112   :  { %2138 = vmatpush1.bf16.msra.mxu0 %v4668_v38  ;;  %2053 = vmatprep.subr.bf16.mxu1 %v4673_v39  ;;  %v4796_v38 = vld [vmem:[#allocation5 + $0xc4] ss:$16 sps:$4 sm:$0xff]  }
 0x113   :  { %2139 = vmatprep.subr.bf16.mxu0 %v4676_v40 }
 0x115   :  { %2054 = vmatpush1.bf16.msra.mxu1 %v4671_v41 }
 0x116   :  { %2140 = vmatpush1.bf16.msra.mxu0 %v4674_v42  ;;  %2055 = vmatprep.subr.bf16.mxu1 %v4679_v43  ;;  %v4743_v42 = vld [vmem:[#allocation2 + $0x730] ss:$24 sps:$4 sm:$0xff]  }
 0x117   :  { %2141 = vmatprep.subr.bf16.mxu0 %v4682_v44  ;;  %v4794_v43 = vld [vmem:[#allocation5 + $0xc0] ss:$16 sps:$4 sm:$0xff]  }
 0x119   :  { %2056 = vmatpush1.bf16.msra.mxu1 %v4677_v45  ;;  %v4748_v45 = vld [vmem:[#allocation2 + $0x764] ss:$24 sps:$4 sm:$0xff]  }
 0x11a   :  { %2142 = vmatpush1.bf16.msra.mxu0 %v4680_v46  ;;  %2057 = vmatprep.subr.bf16.mxu1 %v4685_v47  ;;  %v4802_v46 = vld [vmem:[#allocation5 + $0xe4] ss:$16 sps:$4 sm:$0xff]   ;;  %v4746_v47 = vld [vmem:[#allocation2 + $0x760] ss:$24 sps:$4 sm:$0xff]  }
 0x11b   :  { %2143 = vmatprep.subr.bf16.mxu0 %v4688_v48  ;;  %v4751_v48 = vld [vmem:[#allocation2 + $0x794] ss:$24 sps:$4 sm:$0xff]  }
 0x11d   :  { %2058 = vmatpush1.bf16.msra.mxu1 %v4683_v51  ;;  %v4800_v51 = vld [vmem:[#allocation5 + $0xe0] ss:$16 sps:$4 sm:$0xff]  }
 0x11e   :  { %2144 = vmatpush1.bf16.msra.mxu0 %v4686_v52  ;;  %2059 = vmatprep.subr.bf16.mxu1 %v4691_v53  ;;  %v4808_v52 = vld [vmem:[#allocation5 + $0x104] ss:$16 sps:$4 sm:$0xff]   ;;  %v4749_v53 = vld [vmem:[#allocation2 + $0x790] ss:$24 sps:$4 sm:$0xff]  }
 0x11f   :  { %2145 = vmatprep.subr.bf16.mxu0 %v4694_v54  ;;  %v4754_v54 = vld [vmem:[#allocation2 + $0x7c4] ss:$24 sps:$4 sm:$0xff]  }
 0x121   :  { %2060 = vmatpush1.bf16.msra.mxu1 %v4689_v55  ;;  %v4806_v55 = vld [vmem:[#allocation5 + $0x100] ss:$16 sps:$4 sm:$0xff]  }
 0x122   :  { %2146 = vmatpush1.bf16.msra.mxu0 %v4692_v56  ;;  %2061 = vmatprep.subr.bf16.mxu1 %v4697_v57  ;;  %v4814_v56 = vld [vmem:[#allocation5 + $0x124] ss:$16 sps:$4 sm:$0xff]   ;;  %v4752_v57 = vld [vmem:[#allocation2 + $0x7c0] ss:$24 sps:$4 sm:$0xff]  }
 0x123   :  { %2147 = vmatprep.subr.bf16.mxu0 %v4700_v58  ;;  %v4757_v58 = vld [vmem:[#allocation2 + $0x7f4] ss:$24 sps:$4 sm:$0xff]  }
 0x125   :  { %2062 = vmatpush1.bf16.msra.mxu1 %v4695_v59  ;;  %v4812_v59 = vld [vmem:[#allocation5 + $0x120] ss:$16 sps:$4 sm:$0xff]  }
 0x126   :  { %2148 = vmatpush1.bf16.msra.mxu0 %v4698_v60  ;;  %2063 = vmatprep.subr.bf16.mxu1 %v4703_v61  ;;  %v4820_v60 = vld [vmem:[#allocation5 + $0x144] ss:$16 sps:$4 sm:$0xff]   ;;  %v4755_v61 = vld [vmem:[#allocation2 + $0x7f0] ss:$24 sps:$4 sm:$0xff]  }
 0x127   :  { %2149 = vmatprep.subr.bf16.mxu0 %v4706_v62  ;;  %v4818_v62 = vld [vmem:[#allocation5 + $0x140] ss:$16 sps:$4 sm:$0xff]  }
 0x129   :  { %2064 = vmatpush1.bf16.msra.mxu1 %v4701_v63  ;;  %v4763_v63 = vld [vmem:[#allocation2 + $0x824] ss:$24 sps:$4 sm:$0xff]  }
 0x12a   :  { %2150 = vmatpush1.bf16.msra.mxu0 %v4704_v0  ;;  %2065 = vmatprep.subr.bf16.mxu1 %v4709_v1  ;;  %v4826_v0 = vld [vmem:[#allocation5 + $0x164] ss:$16 sps:$4 sm:$0xff]   ;;  %v4761_v1 = vld [vmem:[#allocation2 + $0x820] ss:$24 sps:$4 sm:$0xff]  }
 0x12b   :  { %2151 = vmatprep.subr.bf16.mxu0 %v4712_v2  ;;  %v4824_v2 = vld [vmem:[#allocation5 + $0x160] ss:$16 sps:$4 sm:$0xff]  }
 0x12d   :  { %2066 = vmatpush1.bf16.msra.mxu1 %v4707_v3  ;;  %v4769_v3 = vld [vmem:[#allocation2 + $0x854] ss:$24 sps:$4 sm:$0xff]  }
 0x12e   :  { %2152 = vmatpush1.bf16.msra.mxu0 %v4710_v5  ;;  %2067 = vmatprep.subr.bf16.mxu1 %v4715_v6  ;;  %v4832_v5 = vld [vmem:[#allocation5 + $0x184] ss:$16 sps:$4 sm:$0xff]   ;;  %v4767_v6 = vld [vmem:[#allocation2 + $0x850] ss:$24 sps:$4 sm:$0xff]  }
 0x12f   :  { %2153 = vmatprep.subr.bf16.mxu0 %v4718_v8  ;;  %v4830_v8 = vld [vmem:[#allocation5 + $0x180] ss:$16 sps:$4 sm:$0xff]  }
 0x131   :  { %2068 = vmatpush1.bf16.msra.mxu1 %v4713_v9  ;;  %v4775_v9 = vld [vmem:[#allocation2 + $0x884] ss:$24 sps:$4 sm:$0xff]  }
 0x132   :  { %2154 = vmatpush1.bf16.msra.mxu0 %v4716_v10  ;;  %2069 = vmatprep.subr.bf16.mxu1 %v4721_v12  ;;  %v4838_v10 = vld [vmem:[#allocation5 + $0x1a4] ss:$16 sps:$4 sm:$0xff]   ;;  %v4773_v12 = vld [vmem:[#allocation2 + $0x880] ss:$24 sps:$4 sm:$0xff]  }
 0x133   :  { %2155 = vmatprep.subr.bf16.mxu0 %v4724_v13  ;;  %v4836_v13 = vld [vmem:[#allocation5 + $0x1a0] ss:$16 sps:$4 sm:$0xff]  }
 0x135   :  { %2070 = vmatpush1.bf16.msra.mxu1 %v4719_v14  ;;  %v4781_v14 = vld [vmem:[#allocation2 + $0x8b4] ss:$24 sps:$4 sm:$0xff]  }
 0x136   :  { %2156 = vmatpush1.bf16.msra.mxu0 %v4722_v15  ;;  %3508 = vmatprep.subr.bf16.mxu1 %v4760_v17  ;;  %v4844_v15 = vld [vmem:[#allocation5 + $0x1c4] ss:$16 sps:$4 sm:$0xff]   ;;  %v4842_v17 = vld [vmem:[#allocation5 + $0x1c0] ss:$16 sps:$4 sm:$0xff]  }
 0x137   :  { %2168 = vmatprep.subr.bf16.mxu0 %v4727_v16  ;;  %v4779_v16 = vld [vmem:[#allocation2 + $0x8b0] ss:$24 sps:$4 sm:$0xff]  }
 0x138   :  { %2072 = vmatmul.mubr.bf16.vlgmr.msra.gmra.mrb[4].mxu1 %v5268_v11  ;;  %v4731_v11 = vld [vmem:[#allocation2 + $0x670] ss:$24 sps:$4 sm:$0xff]  }
 0x139   :  { %2158 = vmatmul.mubr.bf16.vlgmr.msra.gmra.mrb[4].mxu0 %v5062_v22  ;;  %3509 = vmatpush1.bf16.msra.mxu1 %v4758_v19  ;;  %v4850_v19 = vld [vmem:[#allocation5 + $0x1e4] ss:$16 sps:$4 sm:$0xff]   ;;  %v4793_v22 = vld [vmem:[#allocation5 + $0xc] ss:$16 sps:$4 sm:$0xff]  }
 0x13a   :  { %2169 = vmatpush1.bf16.msra.mxu0 %v4725_v18  ;;  %3510 = vmatprep.subr.bf16.mxu1 %v4766_v21  ;;  %v4787_v18 = vld [vmem:[#allocation2 + $0x8e4] ss:$24 sps:$4 sm:$0xff]   ;;  %v4848_v21 = vld [vmem:[#allocation5 + $0x1e0] ss:$16 sps:$4 sm:$0xff]  }
 0x13b   :  { %2170 = vmatprep.subr.bf16.mxu0 %v4730_v20  ;;  %2200 = vmatprep.mubr.bf16.mxu0 %v5063_v4  ;;  %v4785_v20 = vld [vmem:[#allocation2 + $0x8e0] ss:$24 sps:$4 sm:$0xff]  }
 0x13c   :  { %v4797_v4 = vld [vmem:[#allocation5 + $0x28] ss:$16 sps:$4 sm:$0xff]  }
 0x13d   :  { %3511 = vmatpush1.bf16.msra.mxu1 %v4764_v24  ;;  %v4791_v24 = vld [vmem:[#allocation5 + $0x8] ss:$16 sps:$4 sm:$0xff]  }
 0x13e   :  { %2171 = vmatpush1.bf16.msra.mxu0 %v4728_v23  ;;  %3512 = vmatprep.subr.bf16.mxu1 %v4772_v26  ;;  %v4871_v23 = vld [vmem:[#allocation5 + $0x204] ss:$16 sps:$4 sm:$0xff]   ;;  %v5064_v26 = vld [vmem:[%s5356_s0 + $0x10] ss:$24 sps:$4 sm:$0xff]  }
 0x13f   :  { %2172 = vmatprep.subr.bf16.mxu0 %v4733_v25  ;;  %v4799_v25 = vld [vmem:[#allocation5 + $0x2c] ss:$16 sps:$4 sm:$0xff]  }
 0x141   :  { %3513 = vmatpush1.bf16.msra.mxu1 %v4770_v27  ;;  %v4811_v27 = vld [vmem:[#allocation5 + $0x6c] ss:$16 sps:$4 sm:$0xff]  }
 0x142   :  { %2173 = vmatpush1.bf16.msra.mxu0 %v4731_v11  ;;  %3514 = vmatprep.subr.bf16.mxu1 %v4778_v28  ;;  %v4805_v11 = vld [vmem:[#allocation5 + $0x4c] ss:$16 sps:$4 sm:$0xff]   ;;  %v4809_v28 = vld [vmem:[#allocation5 + $0x68] ss:$16 sps:$4 sm:$0xff]  }
 0x143   :  { %2174 = vmatprep.subr.bf16.mxu0 %v4736_v7  ;;  %v4803_v7 = vld [vmem:[#allocation5 + $0x48] ss:$16 sps:$4 sm:$0xff]  }
 0x145   :  { %3515 = vmatpush1.bf16.msra.mxu1 %v4776_v49  ;;  %v4823_v49 = vld [vmem:[#allocation5 + $0xac] ss:$16 sps:$4 sm:$0xff]  }
 0x146   :  { %2175 = vmatpush1.bf16.msra.mxu0 %v4734_v50  ;;  %3516 = vmatprep.subr.bf16.mxu1 %v4784_v29  ;;  %v4817_v50 = vld [vmem:[#allocation5 + $0x8c] ss:$16 sps:$4 sm:$0xff]   ;;  %v4821_v29 = vld [vmem:[#allocation5 + $0xa8] ss:$16 sps:$4 sm:$0xff]  }
 0x147   :  { %2176 = vmatprep.subr.bf16.mxu0 %v4739_v34  ;;  %v4815_v34 = vld [vmem:[#allocation5 + $0x88] ss:$16 sps:$4 sm:$0xff]  }
 0x149   :  { %3517 = vmatpush1.bf16.msra.mxu1 %v4782_v32 }
 0x14a   :  { %2177 = vmatpush1.bf16.msra.mxu0 %v4737_v30  ;;  %3518 = vmatprep.subr.bf16.mxu1 %v4790_v33  ;;  %v4829_v30 = vld [vmem:[#allocation5 + $0xcc] ss:$16 sps:$4 sm:$0xff]  }
 0x14b   :  { %2178 = vmatprep.subr.bf16.mxu0 %v4742_v31  ;;  %v5287_v39 = vpop.f32.mrb[0].mxu1 }
 0x14c   :  { %v5289_v40 = vpop.f32.mrb[1].mxu1 }
 0x14d   :  { %v5291_v41 = vpop.f32.mrb[2].mxu1  ;;  %3519 = vmatpush1.bf16.msra.mxu1 %v4788_v37  ;;  %v4827_v37 = vld [vmem:[#allocation5 + $0xc8] ss:$16 sps:$4 sm:$0xff]  }
 0x14e   :  { %2179 = vmatpush1.bf16.msra.mxu0 %v4740_v35  ;;  %v5293_v44 = vpop.f32.mrb[3].mxu1  ;;  %3520 = vmatprep.subr.bf16.mxu1 %v4796_v38  ;;  %v2292_v38 = vlaneseq }
 0x14f   :  { %2180 = vmatprep.subr.bf16.mxu0 %v4745_v36 }
 0x151   :  { %3521 = vmatpush1.bf16.msra.mxu1 %v4794_v43 }
 0x152   :  { %2181 = vmatpush1.bf16.msra.mxu0 %v4743_v42  ;;  %3522 = vmatprep.subr.bf16.mxu1 %v4802_v46  ;;  %v4835_v46 = vld [vmem:[#allocation5 + $0xec] ss:$16 sps:$4 sm:$0xff]  }
 0x153   :  { %2182 = vmatprep.subr.bf16.mxu0 %v4748_v45 }
 0x155   :  { %3523 = vmatpush1.bf16.msra.mxu1 %v4800_v51 }
 0x156   :  { %2183 = vmatpush1.bf16.msra.mxu0 %v4746_v47  ;;  %3524 = vmatprep.subr.bf16.mxu1 %v4808_v52 }
 0x157   :  { %2184 = vmatprep.subr.bf16.mxu0 %v4751_v48 }
 0x159   :  { %3525 = vmatpush1.bf16.msra.mxu1 %v4806_v55 }
 0x15a   :  { %2185 = vmatpush1.bf16.msra.mxu0 %v4749_v53  ;;  %3526 = vmatprep.subr.bf16.mxu1 %v4814_v56 }
 0x15b   :  { %2186 = vmatprep.subr.bf16.mxu0 %v4754_v54  ;;  %v4833_v54 = vld [vmem:[#allocation5 + $0xe8] ss:$16 sps:$4 sm:$0xff]  }
 0x15d   :  { %3527 = vmatpush1.bf16.msra.mxu1 %v4812_v59 }
 0x15e   :  { %2187 = vmatpush1.bf16.msra.mxu0 %v4752_v57  ;;  %3528 = vmatprep.subr.bf16.mxu1 %v4820_v60  ;;  %v4841_v57 = vld [vmem:[#allocation5 + $0x10c] ss:$16 sps:$4 sm:$0xff]  }
 0x15f   :  { %2188 = vmatprep.subr.bf16.mxu0 %v4757_v58 }
 0x161   :  { %3529 = vmatpush1.bf16.msra.mxu1 %v4818_v62 }
 0x162   :  { %2189 = vmatpush1.bf16.msra.mxu0 %v4755_v61  ;;  %3530 = vmatprep.subr.bf16.mxu1 %v4826_v0 }
 0x163   :  { %2190 = vmatprep.subr.bf16.mxu0 %v4763_v63 }
 0x165   :  { %3531 = vmatpush1.bf16.msra.mxu1 %v4824_v2  ;;  %v4847_v2 = vld [vmem:[#allocation5 + $0x12c] ss:$16 sps:$4 sm:$0xff]  }
 0x166   :  { %2191 = vmatpush1.bf16.msra.mxu0 %v4761_v1  ;;  %3532 = vmatprep.subr.bf16.mxu1 %v4832_v5 }
 0x167   :  { %2192 = vmatprep.subr.bf16.mxu0 %v4769_v3  ;;  %v5308_v3 = vld [vmem:[%s5358_s2] sm:$0x3f]  ;;  %s5167_s2 = smov [#allocation8]  }
 0x168   :  { %s3783_s25 = sshll.u32 %s5167_s2, 4  ;;  %s3784_s25 = int_to_ptr.vmem [resolvable:$true] %s3783_s25 }
 0x169   :  { %3533 = vmatpush1.bf16.msra.mxu1 %v4830_v8  ;;  %s5131_s26 = scalar_lea.vmem %s3784_s25, 128  ;;  %p5136_p11 = scmp.lt.s32.totalorder %s3784_s25, %s3784_s25 }
 0x16a   :  { %2193 = vmatpush1.bf16.msra.mxu0 %v4767_v6  ;;  %3534 = vmatprep.subr.bf16.mxu1 %v4838_v10  ;;  %p5132_p10 = scmp.ne.s32.totalorder %s3784_s25, %s5131_s26  ;;  %p5137_p12 = scmp.lt.s32.totalorder %s5131_s26, %s5131_s26 }
 0x16b   :  { %2194 = vmatprep.subr.bf16.mxu0 %v4775_v9 }
 0x16c   :  { %p5138_p13 = por %p5137_p12, %p5136_p11 }
 0x16d   :  { %3535 = vmatpush1.bf16.msra.mxu1 %v4836_v13 }
 0x16e   :  { %2195 = vmatpush1.bf16.msra.mxu0 %v4773_v12  ;;  %3536 = vmatprep.subr.bf16.mxu1 %v4844_v15  ;;  %v4845_v12 = vld [vmem:[#allocation5 + $0x128] ss:$16 sps:$4 sm:$0xff]   ;;  %p5139_p0 = pnand %p5138_p13, %p5132_p10 }
 0x16f   :  { %2196 = vmatprep.subr.bf16.mxu0 %v4781_v14 }
 0x171   :  { %3537 = vmatpush1.bf16.msra.mxu1 %v4842_v17 }
 0x172   :  { %2197 = vmatpush1.bf16.msra.mxu0 %v4779_v16  ;;  %3538 = vmatprep.subr.bf16.mxu1 %v4850_v19  ;;  %v4853_v16 = vld [vmem:[#allocation5 + $0x14c] ss:$16 sps:$4 sm:$0xff]  }
 0x173   :  { %2198 = vmatprep.subr.bf16.mxu0 %v4787_v18 }
 0x175   :  { %3539 = vmatpush1.bf16.msra.mxu1 %v4848_v21  ;;  %v4851_v21 = vld [vmem:[#allocation5 + $0x148] ss:$16 sps:$4 sm:$0xff]  }
 0x176   :  { %2199 = vmatpush1.bf16.msra.mxu0 %v4785_v20  ;;  %3549 = vmatprep.subr.bf16.mxu1 %v4871_v23 }
 0x177   :  { %3631 = vmatprep.subr.bf16.mxu0 %v4793_v22 }
 0x179   :  { %2201 = vmatmul.mubr.bf16.vlgmr.msra.gmra.mrb[4].mxu0 %v5064_v26 }
 0x17a   :  { %3632 = vmatpush1.bf16.msra.mxu0 %v4791_v24 }
 0x17b   :  { %3633 = vmatprep.subr.bf16.mxu0 %v4799_v25  ;;  %v4856_v25 = vld [vmem:[#allocation5 + $0x16c] ss:$16 sps:$4 sm:$0xff]  }
 0x17e   :  { %3634 = vmatpush1.bf16.msra.mxu0 %v4797_v4  ;;  %v4869_v4 = vld [vmem:[#allocation5 + $0x200] ss:$16 sps:$4 sm:$0xff]  }
 0x17f   :  { %3635 = vmatprep.subr.bf16.mxu0 %v4805_v11 }
 0x182   :  { %3636 = vmatpush1.bf16.msra.mxu0 %v4803_v7  ;;  %v4854_v7 = vld [vmem:[#allocation5 + $0x168] ss:$16 sps:$4 sm:$0xff]  }
 0x183   :  { %3637 = vmatprep.subr.bf16.mxu0 %v4811_v27  ;;  %v4877_v27 = vld [vmem:[#allocation5 + $0x224] ss:$16 sps:$4 sm:$0xff]  }
 0x186   :  { %3638 = vmatpush1.bf16.msra.mxu0 %v4809_v28  ;;  %v4859_v28 = vld [vmem:[#allocation5 + $0x18c] ss:$16 sps:$4 sm:$0xff]  }
 0x187   :  { %3639 = vmatprep.subr.bf16.mxu0 %v4817_v50  ;;  %v4875_v50 = vld [vmem:[#allocation5 + $0x220] ss:$16 sps:$4 sm:$0xff]  }
 0x18a   :  { %3640 = vmatpush1.bf16.msra.mxu0 %v4815_v34  ;;  %v4857_v34 = vld [vmem:[#allocation5 + $0x188] ss:$16 sps:$4 sm:$0xff]  }
 0x18b   :  { %3641 = vmatprep.subr.bf16.mxu0 %v4823_v49  ;;  %v4883_v49 = vld [vmem:[#allocation5 + $0x244] ss:$16 sps:$4 sm:$0xff]  }
 0x18c   :  { %v1944_v31 = vpop.f32.mrb[0].mxu0 }
 0x18d   :  { %v4279_v32 = vadd.f32 %v1944_v31, %v5287_v39  ;;  %v1946_v33 = vpop.f32.mrb[1].mxu0  ;;  %v4860_v31 = vld [vmem:[#allocation5 + $0x1a8] ss:$16 sps:$4 sm:$0xff]  }
 0x18e   :  { %v4280_v35 = vadd.f32 %v1946_v33, %v5289_v40  ;;  %v1948_v36 = vpop.f32.mrb[2].mxu0  ;;  %3642 = vmatpush1.bf16.msra.mxu0 %v4821_v29  ;;  %v5302_v40 = vshrl.u32 %v2292_v38, 7  ;;  %v4862_v29 = vld [vmem:[#allocation5 + $0x1ac] ss:$16 sps:$4 sm:$0xff]  }
 0x18f   :  { %v2211_v42 = vrot.slane %v4279_v32, 4  ;;  %v4281_v43 = vadd.f32 %v1948_v36, %v5291_v41  ;;  %v1950_v45 = vpop.f32.mrb[3].mxu0  ;;  %3643 = vmatprep.subr.bf16.mxu0 %v4829_v30  ;;  %v4881_v30 = vld [vmem:[#allocation5 + $0x240] ss:$16 sps:$4 sm:$0xff]   ;;  %v4865_v33 = vld [vmem:[#allocation5 + $0x1cc] ss:$16 sps:$4 sm:$0xff]  }
 0x190   :  { %v2217_v47 = vrot.slane %v4280_v35, 4  ;;  %v4282_v48 = vadd.f32 %v1950_v45, %v5293_v44  ;;  %v4839_v44 = vld [vmem:[#allocation5 + $0x108] ss:$16 sps:$4 sm:$0xff]   ;;  %v2294_v63 = vsub.s32 0, %v5302_v40  ;;  %v2298_v5 = vsub.s32 1, %v5302_v40 }
 0x191   :  { %v2212_v51 = vmax.f32 %v4279_v32, %v2211_v42  ;;  %v2247_v52 = vrot.slane %v4281_v43, 4  ;;  %v4889_v32 = vld [vmem:[#allocation5 + $0x264] ss:$16 sps:$4 sm:$0xff]   ;;  %v4863_v36 = vld [vmem:[#allocation5 + $0x1c8] ss:$16 sps:$4 sm:$0xff]  }
 0x192   :  { %v2218_v53 = vmax.f32 %v4280_v35, %v2217_v47  ;;  %v2253_v39 = vrot.slane %v4282_v48, 4  ;;  %3644 = vmatpush1.bf16.msra.mxu0 %v4827_v37  ;;  %v2295_v13 = vrot.slane %v5308_v3, %v2294_v63  ;;  %v2299_v17 = vrot.slane %v5308_v3, %v2298_v5  ;;  %v4887_v35 = vld [vmem:[#allocation5 + $0x260] ss:$16 sps:$4 sm:$0xff]   ;;  %v4895_v37 = vld [vmem:[#allocation5 + $0x284] ss:$16 sps:$4 sm:$0xff]  }
 0x193   :  { %v2213_v55 = vrot.slane %v2212_v51, 2  ;;  %v2248_v56 = vmax.f32 %v4281_v43, %v2247_v52  ;;  %3645 = vmatprep.subr.bf16.mxu0 %v4835_v46  ;;  %v4868_v38 = vld [vmem:[#allocation5 + $0x1ec] ss:$16 sps:$4 sm:$0xff]   ;;  %v4893_v42 = vld [vmem:[#allocation5 + $0x280] ss:$16 sps:$4 sm:$0xff]  }
 0x194   :  { %v2219_v58 = vrot.slane %v2218_v53, 2  ;;  %v2254_v41 = vmax.f32 %v4282_v48, %v2253_v39  ;;  %v4866_v43 = vld [vmem:[#allocation5 + $0x1e8] ss:$16 sps:$4 sm:$0xff]   ;;  %v4901_v45 = vld [vmem:[#allocation5 + $0x2a4] ss:$16 sps:$4 sm:$0xff]  }
 0x195   :  { %v2214_v59 = vmax.f32 %v2212_v51, %v2213_v55  ;;  %v2249_v60 = vrot.slane %v2248_v56, 2  ;;  %v4874_v46 = vld [vmem:[#allocation5 + $0x20c] ss:$16 sps:$4 sm:$0xff]   ;;  %v4899_v47 = vld [vmem:[#allocation5 + $0x2a0] ss:$16 sps:$4 sm:$0xff]  }
 0x196   :  { %v2220_v61 = vmax.f32 %v2218_v53, %v2219_v58  ;;  %v2255_v62 = vrot.slane %v2254_v41, 2  ;;  %3646 = vmatpush1.bf16.msra.mxu0 %v4833_v54  ;;  %v4872_v48 = vld [vmem:[#allocation5 + $0x208] ss:$16 sps:$4 sm:$0xff]   ;;  %v4907_v51 = vld [vmem:[#allocation5 + $0x2c4] ss:$16 sps:$4 sm:$0xff]  }
 0x197   :  { %v2215_v0 = vrot.slane %v2214_v59, 1  ;;  %v2250_v1 = vmax.f32 %v2248_v56, %v2249_v60  ;;  %3647 = vmatprep.subr.bf16.mxu0 %v4841_v57  ;;  %v4880_v52 = vld [vmem:[#allocation5 + $0x22c] ss:$16 sps:$4 sm:$0xff]   ;;  %v4905_v53 = vld [vmem:[#allocation5 + $0x2c0] ss:$16 sps:$4 sm:$0xff]  }
 0x198   :  { %v2221_v6 = vrot.slane %v2220_v61, 1  ;;  %v2256_v8 = vmax.f32 %v2254_v41, %v2255_v62  ;;  %v4878_v39 = vld [vmem:[#allocation5 + $0x228] ss:$16 sps:$4 sm:$0xff]   ;;  %v4913_v54 = vld [vmem:[#allocation5 + $0x2e4] ss:$16 sps:$4 sm:$0xff]  }
 0x199   :  { %v2251_v9 = vrot.slane %v2250_v1, 1  ;;  %v2216_v14 = vmax.f32 %v2214_v59, %v2215_v0  ;;  %v4886_v55 = vld [vmem:[#allocation5 + $0x24c] ss:$16 sps:$4 sm:$0xff]   ;;  %v4911_v56 = vld [vmem:[#allocation5 + $0x2e0] ss:$16 sps:$4 sm:$0xff]  }
 0x19a   :  { %v2257_v10 = vrot.slane %v2256_v8, 1  ;;  %3648 = vmatpush1.bf16.msra.mxu0 %v4839_v44  ;;  %v2222_v18 = vmax.f32 %v2220_v61, %v2221_v6  ;;  %v4884_v57 = vld [vmem:[#allocation5 + $0x248] ss:$16 sps:$4 sm:$0xff]   ;;  %v4919_v58 = vld [vmem:[#allocation5 + $0x304] ss:$16 sps:$4 sm:$0xff]  }
 0x19b   :  { %v2252_v15 = vmax.f32 %v2250_v1, %v2251_v9  ;;  %3649 = vmatprep.subr.bf16.mxu0 %v4847_v2  ;;  %v4892_v41 = vld [vmem:[#allocation5 + $0x26c] ss:$16 sps:$4 sm:$0xff]   ;;  %v4917_v59 = vld [vmem:[#allocation5 + $0x300] ss:$16 sps:$4 sm:$0xff]   ;;  %v4890_v60 = vld [vmem:[#allocation5 + $0x268] ss:$16 sps:$4 sm:$0xff]  }
 0x19c   :  { %v2258_v19 = vmax.f32 %v2256_v8, %v2257_v10  ;;  %v4925_v61 = vld [vmem:[#allocation5 + $0x324] ss:$16 sps:$4 sm:$0xff]   ;;  %v4898_v62 = vld [vmem:[#allocation5 + $0x28c] ss:$16 sps:$4 sm:$0xff]   ;;  %v4923_v44 = vld [vmem:[#allocation5 + $0x320] ss:$16 sps:$4 sm:$0xff]  }
 0x19d   :  { %v2284_v20 = vsel %vm2283_vm0, %v2216_v14, %v2252_v15  ;;  %v4896_v0 = vld [vmem:[#allocation5 + $0x288] ss:$16 sps:$4 sm:$0xff]   ;;  %v4931_v1 = vld [vmem:[#allocation5 + $0x344] ss:$16 sps:$4 sm:$0xff]   ;;  %v4904_v2 = vld [vmem:[#allocation5 + $0x2ac] ss:$16 sps:$4 sm:$0xff]  }
 0x19e   :  { %3650 = vmatpush1.bf16.msra.mxu0 %v4845_v12  ;;  %v2285_v22 = vsel %vm2283_vm0, %v2222_v18, %v2258_v19  ;;  %v2322_v23 = vadd.f32 %v2295_v13, %v2284_v20  ;;  %v4929_v6 = vld [vmem:[#allocation5 + $0x340] ss:$16 sps:$4 sm:$0xff]   ;;  %v4902_v8 = vld [vmem:[#allocation5 + $0x2a8] ss:$16 sps:$4 sm:$0xff]   ;;  %v4937_v9 = vld [vmem:[#allocation5 + $0x364] ss:$16 sps:$4 sm:$0xff]  }
 0x19f   :  { %3651 = vmatprep.subr.bf16.mxu0 %v4853_v16  ;;  %v2323_v24 = vadd.f32 %v2299_v17, %v2285_v22  ;;  %v4910_v10 = vld [vmem:[#allocation5 + $0x2cc] ss:$16 sps:$4 sm:$0xff]   ;;  %v4935_v12 = vld [vmem:[#allocation5 + $0x360] ss:$16 sps:$4 sm:$0xff]   ;;  %v4908_v13 = vld [vmem:[#allocation5 + $0x2c8] ss:$16 sps:$4 sm:$0xff]  }
 0x1a0   :  { %v2328_v11 = vpack.c.bf16 %v2322_v23, %v2322_v23  ;;  %v4943_v14 = vld [vmem:[#allocation5 + $0x384] ss:$16 sps:$4 sm:$0xff]   ;;  %v4916_v15 = vld [vmem:[#allocation5 + $0x2ec] ss:$16 sps:$4 sm:$0xff]   ;;  %v4941_v16 = vld [vmem:[#allocation5 + $0x380] ss:$16 sps:$4 sm:$0xff]  }
 0x1a1   :  { %v2329_v26 = vpack.c.bf16 %v2323_v24, %v2323_v24  ;;  %v4914_v17 = vld [vmem:[#allocation5 + $0x2e8] ss:$16 sps:$4 sm:$0xff]   ;;  %v4949_v18 = vld [vmem:[#allocation5 + $0x3a4] ss:$16 sps:$4 sm:$0xff]   ;;  %v4922_v19 = vld [vmem:[#allocation5 + $0x30c] ss:$16 sps:$4 sm:$0xff]  }
 0x1a2   :  { %3652 = vmatpush1.bf16.msra.mxu0 %v4851_v21  ;;  %v4947_v20 = vld [vmem:[#allocation5 + $0x3a0] ss:$16 sps:$4 sm:$0xff]   ;;  %v4920_v21 = vld [vmem:[#allocation5 + $0x308] ss:$16 sps:$4 sm:$0xff]   ;;  %v4955_v22 = vld [vmem:[#allocation5 + $0x3c4] ss:$16 sps:$4 sm:$0xff]  }
 0x1a3   :  { %3540 = vmatprep.mubr.bf16.mxu1 %v2329_v26  ;;  %3663 = vmatprep.mubr.bf16.mxu0 %v2329_v26  ;;  %v4928_v23 = vld [vmem:[#allocation5 + $0x32c] ss:$16 sps:$4 sm:$0xff]   ;;  %v4953_v24 = vld [vmem:[#allocation5 + $0x3c0] ss:$16 sps:$4 sm:$0xff]   ;;  %v4961_v26 = vld [vmem:[#allocation5 + $0x3e4] ss:$16 sps:$4 sm:$0xff]  }
 0x1a4   :  { %3541 = vmatmul.mubr.bf16.vlgmr.msra.gmra.mrb[8].mxu1 %v2328_v11  ;;  %3653 = vmatprep.subr.bf16.mxu0 %v4856_v25  ;;  %v4926_v25 = vld [vmem:[#allocation5 + $0x328] ss:$16 sps:$4 sm:$0xff]  }
 0x1a5   :  { %3550 = vmatpush1.bf16.msra.mxu1 %v4869_v4  ;;  %v4934_v4 = vld [vmem:[#allocation5 + $0x34c] ss:$16 sps:$4 sm:$0xff]  }
 0x1a6   :  { %3654 = vmatpush1.bf16.msra.mxu0 %v4854_v7  ;;  %3551 = vmatprep.subr.bf16.mxu1 %v4877_v27  ;;  %v4932_v7 = vld [vmem:[#allocation5 + $0x348] ss:$16 sps:$4 sm:$0xff]   ;;  %v4967_v27 = vld [vmem:[#allocation5 + $0x404] ss:$16 sps:$4 sm:$0xff]  }
 0x1a7   :  { %3655 = vmatprep.subr.bf16.mxu0 %v4859_v28  ;;  %v4940_v28 = vld [vmem:[#allocation5 + $0x36c] ss:$16 sps:$4 sm:$0xff]  }
 0x1a9   :  { %3552 = vmatpush1.bf16.msra.mxu1 %v4875_v50  ;;  %v4938_v50 = vld [vmem:[#allocation5 + $0x368] ss:$16 sps:$4 sm:$0xff]  }
 0x1aa   :  { %3656 = vmatpush1.bf16.msra.mxu0 %v4857_v34  ;;  %3553 = vmatprep.subr.bf16.mxu1 %v4883_v49  ;;  %v4946_v34 = vld [vmem:[#allocation5 + $0x38c] ss:$16 sps:$4 sm:$0xff]   ;;  %v4944_v49 = vld [vmem:[#allocation5 + $0x388] ss:$16 sps:$4 sm:$0xff]  }
 0x1ab   :  { %3657 = vmatprep.subr.bf16.mxu0 %v4862_v29  ;;  %v4952_v29 = vld [vmem:[#allocation5 + $0x3ac] ss:$16 sps:$4 sm:$0xff]  }
 0x1ad   :  { %3554 = vmatpush1.bf16.msra.mxu1 %v4881_v30  ;;  %v4950_v30 = vld [vmem:[#allocation5 + $0x3a8] ss:$16 sps:$4 sm:$0xff]  }
 0x1ae   :  { %3658 = vmatpush1.bf16.msra.mxu0 %v4860_v31  ;;  %3555 = vmatprep.subr.bf16.mxu1 %v4889_v32  ;;  %v4958_v31 = vld [vmem:[#allocation5 + $0x3cc] ss:$16 sps:$4 sm:$0xff]   ;;  %v4956_v32 = vld [vmem:[#allocation5 + $0x3c8] ss:$16 sps:$4 sm:$0xff]  }
 0x1af   :  { %3659 = vmatprep.subr.bf16.mxu0 %v4865_v33  ;;  %v4964_v33 = vld [vmem:[#allocation5 + $0x3ec] ss:$16 sps:$4 sm:$0xff]  }
 0x1b1   :  { %3556 = vmatpush1.bf16.msra.mxu1 %v4887_v35  ;;  %v4962_v35 = vld [vmem:[#allocation5 + $0x3e8] ss:$16 sps:$4 sm:$0xff]  }
 0x1b2   :  { %3660 = vmatpush1.bf16.msra.mxu0 %v4863_v36  ;;  %3557 = vmatprep.subr.bf16.mxu1 %v4895_v37  ;;  %v4970_v36 = vld [vmem:[#allocation5 + $0x40c] ss:$16 sps:$4 sm:$0xff]  }
 0x1b3   :  { %3661 = vmatprep.subr.bf16.mxu0 %v4868_v38 }
 0x1b5   :  { %3558 = vmatpush1.bf16.msra.mxu1 %v4893_v42 }
 0x1b6   :  { %3662 = vmatpush1.bf16.msra.mxu0 %v4866_v43  ;;  %3559 = vmatprep.subr.bf16.mxu1 %v4901_v45 }
 0x1b7   :  { %3672 = vmatprep.subr.bf16.mxu0 %v4874_v46 }
 0x1b9   :  { %3664 = vmatmul.mubr.bf16.vlgmr.msra.gmra.mrb[8].mxu0 %v2328_v11  ;;  %3560 = vmatpush1.bf16.msra.mxu1 %v4899_v47  ;;  %v4959_v11 = vld [vmem:[#allocation5 + $0x3e0] ss:$16 sps:$4 sm:$0xff]  }
 0x1ba   :  { %3673 = vmatpush1.bf16.msra.mxu0 %v4872_v48  ;;  %3561 = vmatprep.subr.bf16.mxu1 %v4907_v51 }
 0x1bb   :  { %3674 = vmatprep.subr.bf16.mxu0 %v4880_v52 }
 0x1bd   :  { %3562 = vmatpush1.bf16.msra.mxu1 %v4905_v53 }
 0x1be   :  { %3675 = vmatpush1.bf16.msra.mxu0 %v4878_v39  ;;  %3563 = vmatprep.subr.bf16.mxu1 %v4913_v54 }
 0x1bf   :  { %3676 = vmatprep.subr.bf16.mxu0 %v4886_v55 }
 0x1c1   :  { %3564 = vmatpush1.bf16.msra.mxu1 %v4911_v56 }
 0x1c2   :  { %3677 = vmatpush1.bf16.msra.mxu0 %v4884_v57  ;;  %3565 = vmatprep.subr.bf16.mxu1 %v4919_v58 }
 0x1c3   :  { %3678 = vmatprep.subr.bf16.mxu0 %v4892_v41 }
 0x1c5   :  { %3566 = vmatpush1.bf16.msra.mxu1 %v4917_v59  ;;  %v2302_v59 = vsub.s32 2, %v5302_v40 }
 0x1c6   :  { %3679 = vmatpush1.bf16.msra.mxu0 %v4890_v60  ;;  %3567 = vmatprep.subr.bf16.mxu1 %v4925_v61 }
 0x1c7   :  { %3680 = vmatprep.subr.bf16.mxu0 %v4898_v62  ;;  %v2306_v62 = vsub.s32 3, %v5302_v40 }
 0x1c9   :  { %3568 = vmatpush1.bf16.msra.mxu1 %v4923_v44 }
 0x1ca   :  { %3681 = vmatpush1.bf16.msra.mxu0 %v4896_v0  ;;  %3569 = vmatprep.subr.bf16.mxu1 %v4931_v1 }
 0x1cb   :  { %3682 = vmatprep.subr.bf16.mxu0 %v4904_v2 }
 0x1cd   :  { %3570 = vmatpush1.bf16.msra.mxu1 %v4929_v6  ;;  %v2303_v6 = vrot.slane %v5308_v3, %v2302_v59 }
 0x1ce   :  { %3683 = vmatpush1.bf16.msra.mxu0 %v4902_v8  ;;  %3571 = vmatprep.subr.bf16.mxu1 %v4937_v9 }
 0x1cf   :  { %3684 = vmatprep.subr.bf16.mxu0 %v4910_v10  ;;  %v2307_v10 = vrot.slane %v5308_v3, %v2306_v62 }
 0x1d1   :  { %3572 = vmatpush1.bf16.msra.mxu1 %v4935_v12 }
 0x1d2   :  { %3685 = vmatpush1.bf16.msra.mxu0 %v4908_v13  ;;  %3573 = vmatprep.subr.bf16.mxu1 %v4943_v14 }
 0x1d3   :  { %3686 = vmatprep.subr.bf16.mxu0 %v4916_v15 }
 0x1d5   :  { %3574 = vmatpush1.bf16.msra.mxu1 %v4941_v16 }
 0x1d6   :  { %3687 = vmatpush1.bf16.msra.mxu0 %v4914_v17  ;;  %3575 = vmatprep.subr.bf16.mxu1 %v4949_v18 }
 0x1d7   :  { %3688 = vmatprep.subr.bf16.mxu0 %v4922_v19  ;;  %v4965_v19 = vld [vmem:[#allocation5 + $0x400] ss:$16 sps:$4 sm:$0xff]  }
 0x1d9   :  { %3576 = vmatpush1.bf16.msra.mxu1 %v4947_v20  ;;  %v4968_v20 = vld [vmem:[#allocation5 + $0x408] ss:$16 sps:$4 sm:$0xff]  }
 0x1da   :  { %3689 = vmatpush1.bf16.msra.mxu0 %v4920_v21  ;;  %3577 = vmatprep.subr.bf16.mxu1 %v4955_v22  ;;  %v4973_v22 = vld [vmem:[#allocation5 + $0x424] ss:$16 sps:$4 sm:$0xff]  }
 0x1db   :  { %3690 = vmatprep.subr.bf16.mxu0 %v4928_v23  ;;  %v4976_v23 = vld [vmem:[#allocation5 + $0x42c] ss:$16 sps:$4 sm:$0xff]  }
 0x1dd   :  { %3578 = vmatpush1.bf16.msra.mxu1 %v4953_v24  ;;  %v4971_v24 = vld [vmem:[#allocation5 + $0x420] ss:$16 sps:$4 sm:$0xff]  }
 0x1de   :  { %3691 = vmatpush1.bf16.msra.mxu0 %v4926_v25  ;;  %3579 = vmatprep.subr.bf16.mxu1 %v4961_v26  ;;  %v4974_v25 = vld [vmem:[#allocation5 + $0x428] ss:$16 sps:$4 sm:$0xff]   ;;  %v4979_v26 = vld [vmem:[#allocation5 + $0x444] ss:$16 sps:$4 sm:$0xff]  }
 0x1df   :  { %3692 = vmatprep.subr.bf16.mxu0 %v4934_v4  ;;  %v4982_v4 = vld [vmem:[#allocation5 + $0x44c] ss:$16 sps:$4 sm:$0xff]  }
 0x1e1   :  { %3580 = vmatpush1.bf16.msra.mxu1 %v4959_v11  ;;  %v4977_v11 = vld [vmem:[#allocation5 + $0x440] ss:$16 sps:$4 sm:$0xff]  }
 0x1e2   :  { %3693 = vmatpush1.bf16.msra.mxu0 %v4932_v7  ;;  %3590 = vmatprep.subr.bf16.mxu1 %v4967_v27  ;;  %v4980_v7 = vld [vmem:[#allocation5 + $0x448] ss:$16 sps:$4 sm:$0xff]   ;;  %v4985_v27 = vld [vmem:[#allocation5 + $0x464] ss:$16 sps:$4 sm:$0xff]  }
 0x1e3   :  { %3694 = vmatprep.subr.bf16.mxu0 %v4940_v28  ;;  %v4988_v28 = vld [vmem:[#allocation5 + $0x46c] ss:$16 sps:$4 sm:$0xff]  }
 0x1e6   :  { %3695 = vmatpush1.bf16.msra.mxu0 %v4938_v50  ;;  %v4983_v50 = vld [vmem:[#allocation5 + $0x460] ss:$16 sps:$4 sm:$0xff]  }
 0x1e7   :  { %3696 = vmatprep.subr.bf16.mxu0 %v4946_v34  ;;  %v4986_v34 = vld [vmem:[#allocation5 + $0x468] ss:$16 sps:$4 sm:$0xff]  }
 0x1ea   :  { %3697 = vmatpush1.bf16.msra.mxu0 %v4944_v49  ;;  %v4991_v49 = vld [vmem:[#allocation5 + $0x484] ss:$16 sps:$4 sm:$0xff]  }
 0x1eb   :  { %3698 = vmatprep.subr.bf16.mxu0 %v4952_v29  ;;  %v4994_v29 = vld [vmem:[#allocation5 + $0x48c] ss:$16 sps:$4 sm:$0xff]  }
 0x1ee   :  { %3699 = vmatpush1.bf16.msra.mxu0 %v4950_v30  ;;  %v4989_v30 = vld [vmem:[#allocation5 + $0x480] ss:$16 sps:$4 sm:$0xff]  }
 0x1ef   :  { %3700 = vmatprep.subr.bf16.mxu0 %v4958_v31  ;;  %v4992_v31 = vld [vmem:[#allocation5 + $0x488] ss:$16 sps:$4 sm:$0xff]  }
 0x1f2   :  { %3701 = vmatpush1.bf16.msra.mxu0 %v4956_v32  ;;  %v4997_v32 = vld [vmem:[#allocation5 + $0x4a4] ss:$16 sps:$4 sm:$0xff]  }
 0x1f3   :  { %3702 = vmatprep.subr.bf16.mxu0 %v4964_v33  ;;  %v5000_v33 = vld [vmem:[#allocation5 + $0x4ac] ss:$16 sps:$4 sm:$0xff]  }
 0x1f6   :  { %3703 = vmatpush1.bf16.msra.mxu0 %v4962_v35  ;;  %v4995_v35 = vld [vmem:[#allocation5 + $0x4a0] ss:$16 sps:$4 sm:$0xff]  }
 0x1f7   :  { %3713 = vmatprep.subr.bf16.mxu0 %v4970_v36  ;;  %v4998_v36 = vld [vmem:[#allocation5 + $0x4a8] ss:$16 sps:$4 sm:$0xff]  }
 0x20b   :  { %v2073_v37 = vpop.f32.mrb[4].mxu1 }
 0x20c   :  { %v2223_v38 = vrot.slane %v2073_v37, 4  ;;  %v2075_v42 = vpop.f32.mrb[5].mxu1 }
 0x20d   :  { %v2229_v43 = vrot.slane %v2075_v42, 4  ;;  %v2077_v45 = vpop.f32.mrb[6].mxu1 }
 0x20e   :  { %v2224_v46 = vmax.f32 %v2073_v37, %v2223_v38  ;;  %v2259_v47 = vrot.slane %v2077_v45, 4  ;;  %v2079_v48 = vpop.f32.mrb[7].mxu1  ;;  %v5003_v37 = vld [vmem:[#allocation5 + $0x4c4] ss:$16 sps:$4 sm:$0xff]   ;;  %v5006_v38 = vld [vmem:[#allocation5 + $0x4cc] ss:$16 sps:$4 sm:$0xff]  }
 0x20f   :  { %v2230_v51 = vmax.f32 %v2075_v42, %v2229_v43  ;;  %v2265_v52 = vrot.slane %v2079_v48, 4  ;;  %v5001_v42 = vld [vmem:[#allocation5 + $0x4c0] ss:$16 sps:$4 sm:$0xff]   ;;  %v5004_v43 = vld [vmem:[#allocation5 + $0x4c8] ss:$16 sps:$4 sm:$0xff]  }
 0x210   :  { %v2225_v53 = vrot.slane %v2224_v46, 2  ;;  %v2260_v39 = vmax.f32 %v2077_v45, %v2259_v47  ;;  %v5009_v45 = vld [vmem:[#allocation5 + $0x4e4] ss:$16 sps:$4 sm:$0xff]   ;;  %v5007_v47 = vld [vmem:[#allocation5 + $0x4e0] ss:$16 sps:$4 sm:$0xff]  }
 0x211   :  { %v2231_v54 = vrot.slane %v2230_v51, 2  ;;  %v2266_v55 = vmax.f32 %v2079_v48, %v2265_v52  ;;  %v5010_v48 = vld [vmem:[#allocation5 + $0x4e8] ss:$16 sps:$4 sm:$0xff]   ;;  %v5018_v52 = vld [vmem:[#allocation5 + $0x50c] ss:$16 sps:$4 sm:$0xff]  }
 0x212   :  { %v2226_v56 = vmax.f32 %v2224_v46, %v2225_v53  ;;  %v2261_v57 = vrot.slane %v2260_v39, 2  ;;  %v5012_v46 = vld [vmem:[#allocation5 + $0x4ec] ss:$16 sps:$4 sm:$0xff]   ;;  %v5013_v53 = vld [vmem:[#allocation5 + $0x500] ss:$16 sps:$4 sm:$0xff]  }
 0x213   :  { %v2232_v58 = vmax.f32 %v2230_v51, %v2231_v54  ;;  %v2267_v41 = vrot.slane %v2266_v55, 2  ;;  %v5015_v51 = vld [vmem:[#allocation5 + $0x504] ss:$16 sps:$4 sm:$0xff]  }
 0x214   :  { %v2227_v60 = vrot.slane %v2226_v56, 1  ;;  %v2262_v61 = vmax.f32 %v2260_v39, %v2261_v57  ;;  %v5016_v39 = vld [vmem:[#allocation5 + $0x508] ss:$16 sps:$4 sm:$0xff]   ;;  %v5021_v54 = vld [vmem:[#allocation5 + $0x524] ss:$16 sps:$4 sm:$0xff]  }
 0x215   :  { %v2233_v44 = vrot.slane %v2232_v58, 1  ;;  %v2268_v0 = vmax.f32 %v2266_v55, %v2267_v41  ;;  %v5024_v55 = vld [vmem:[#allocation5 + $0x52c] ss:$16 sps:$4 sm:$0xff]   ;;  %v5022_v57 = vld [vmem:[#allocation5 + $0x528] ss:$16 sps:$4 sm:$0xff]  }
 0x216   :  { %v2263_v1 = vrot.slane %v2262_v61, 1  ;;  %v2228_v8 = vmax.f32 %v2226_v56, %v2227_v60  ;;  %v5019_v56 = vld [vmem:[#allocation5 + $0x520] ss:$16 sps:$4 sm:$0xff]   ;;  %v5030_v41 = vld [vmem:[#allocation5 + $0x54c] ss:$16 sps:$4 sm:$0xff]  }
 0x217   :  { %v2269_v2 = vrot.slane %v2268_v0, 1  ;;  %v2234_v12 = vmax.f32 %v2232_v58, %v2233_v44  ;;  %v5027_v58 = vld [vmem:[#allocation5 + $0x544] ss:$16 sps:$4 sm:$0xff]   ;;  %v5025_v60 = vld [vmem:[#allocation5 + $0x540] ss:$16 sps:$4 sm:$0xff]  }
 0x218   :  { %v2264_v9 = vmax.f32 %v2262_v61, %v2263_v1  ;;  %v5028_v61 = vld [vmem:[#allocation5 + $0x548] ss:$16 sps:$4 sm:$0xff]   ;;  %v5033_v44 = vld [vmem:[#allocation5 + $0x564] ss:$16 sps:$4 sm:$0xff]   ;;  %v5031_v1 = vld [vmem:[#allocation5 + $0x560] ss:$16 sps:$4 sm:$0xff]  }
 0x219   :  { %v2270_v13 = vmax.f32 %v2268_v0, %v2269_v2  ;;  %v5036_v0 = vld [vmem:[#allocation5 + $0x56c] ss:$16 sps:$4 sm:$0xff]   ;;  %v5034_v2 = vld [vmem:[#allocation5 + $0x568] ss:$16 sps:$4 sm:$0xff]  }
 0x21a   :  { %v2286_v14 = vsel %vm2283_vm0, %v2228_v8, %v2264_v9  ;;  %v5039_v8 = vld [vmem:[#allocation5 + $0x584] ss:$16 sps:$4 sm:$0xff]   ;;  %v5042_v9 = vld [vmem:[#allocation5 + $0x58c] ss:$16 sps:$4 sm:$0xff]  }
 0x21b   :  { %v2287_v15 = vsel %vm2283_vm0, %v2234_v12, %v2270_v13  ;;  %v2324_v16 = vadd.f32 %v2303_v6, %v2286_v14 }
 0x21c   :  { %v2325_v17 = vadd.f32 %v2307_v10, %v2287_v15 }
 0x21d   :  { %v2330_v21 = vpack.c.bf16 %v2324_v16, %v2324_v16 }
 0x21e   :  { %v2331_v18 = vpack.c.bf16 %v2325_v17, %v2325_v17 }
 0x220   :  { %3581 = vmatprep.mubr.bf16.mxu1 %v2331_v18  ;;  %3704 = vmatprep.mubr.bf16.mxu0 %v2331_v18  ;;  %v5037_v18 = vld [vmem:[#allocation5 + $0x580] ss:$16 sps:$4 sm:$0xff]  }
 0x221   :  { %3582 = vmatmul.mubr.bf16.vlgmr.msra.gmra.mrb[8].mxu1 %v2330_v21  ;;  %3705 = vmatmul.mubr.bf16.vlgmr.msra.gmra.mrb[8].mxu0 %v2330_v21 }
 0x222   :  { %3591 = vmatpush1.bf16.msra.mxu1 %v4965_v19  ;;  %3714 = vmatpush1.bf16.msra.mxu0 %v4968_v20  ;;  %v5040_v19 = vld [vmem:[#allocation5 + $0x588] ss:$16 sps:$4 sm:$0xff]  }
 0x223   :  { %3592 = vmatprep.subr.bf16.mxu1 %v4973_v22  ;;  %3715 = vmatprep.subr.bf16.mxu0 %v4976_v23  ;;  %v5045_v22 = vld [vmem:[#allocation5 + $0x5a4] ss:$16 sps:$4 sm:$0xff]   ;;  %v5048_v23 = vld [vmem:[#allocation5 + $0x5ac] ss:$16 sps:$4 sm:$0xff]  }
 0x226   :  { %3593 = vmatpush1.bf16.msra.mxu1 %v4971_v24  ;;  %3716 = vmatpush1.bf16.msra.mxu0 %v4974_v25 }
 0x227   :  { %3594 = vmatprep.subr.bf16.mxu1 %v4979_v26  ;;  %3717 = vmatprep.subr.bf16.mxu0 %v4982_v4 }
 0x22a   :  { %3595 = vmatpush1.bf16.msra.mxu1 %v4977_v11  ;;  %3718 = vmatpush1.bf16.msra.mxu0 %v4980_v7 }
 0x22b   :  { %3596 = vmatprep.subr.bf16.mxu1 %v4985_v27  ;;  %3719 = vmatprep.subr.bf16.mxu0 %v4988_v28  ;;  %v5043_v27 = vld [vmem:[#allocation5 + $0x5a0] ss:$16 sps:$4 sm:$0xff]   ;;  %v5046_v28 = vld [vmem:[#allocation5 + $0x5a8] ss:$16 sps:$4 sm:$0xff]  }
 0x22e   :  { %3597 = vmatpush1.bf16.msra.mxu1 %v4983_v50  ;;  %3720 = vmatpush1.bf16.msra.mxu0 %v4986_v34 }
 0x22f   :  { %3598 = vmatprep.subr.bf16.mxu1 %v4991_v49  ;;  %3721 = vmatprep.subr.bf16.mxu0 %v4994_v29  ;;  %v5051_v49 = vld [vmem:[#allocation5 + $0x5c4] ss:$16 sps:$4 sm:$0xff]   ;;  %v5054_v29 = vld [vmem:[#allocation5 + $0x5cc] ss:$16 sps:$4 sm:$0xff]  }
 0x232   :  { %3599 = vmatpush1.bf16.msra.mxu1 %v4989_v30  ;;  %3722 = vmatpush1.bf16.msra.mxu0 %v4992_v31  ;;  %v2310_v30 = vsub.s32 4, %v5302_v40 }
 0x233   :  { %3600 = vmatprep.subr.bf16.mxu1 %v4997_v32  ;;  %3723 = vmatprep.subr.bf16.mxu0 %v5000_v33  ;;  %v2314_v33 = vsub.s32 5, %v5302_v40 }
 0x236   :  { %3601 = vmatpush1.bf16.msra.mxu1 %v4995_v35  ;;  %3724 = vmatpush1.bf16.msra.mxu0 %v4998_v36 }
 0x237   :  { %3602 = vmatprep.subr.bf16.mxu1 %v5003_v37  ;;  %3725 = vmatprep.subr.bf16.mxu0 %v5006_v38  ;;  %v5049_v38 = vld [vmem:[#allocation5 + $0x5c0] ss:$16 sps:$4 sm:$0xff]  }
 0x23a   :  { %3603 = vmatpush1.bf16.msra.mxu1 %v5001_v42  ;;  %3726 = vmatpush1.bf16.msra.mxu0 %v5004_v43  ;;  %v5052_v42 = vld [vmem:[#allocation5 + $0x5c8] ss:$16 sps:$4 sm:$0xff]  }
 0x23b   :  { %3604 = vmatprep.subr.bf16.mxu1 %v5009_v45  ;;  %3727 = vmatprep.subr.bf16.mxu0 %v5012_v46  ;;  %v5057_v45 = vld [vmem:[#allocation5 + $0x5e4] ss:$16 sps:$4 sm:$0xff]   ;;  %v5060_v46 = vld [vmem:[#allocation5 + $0x5ec] ss:$16 sps:$4 sm:$0xff]  }
 0x23e   :  { %3605 = vmatpush1.bf16.msra.mxu1 %v5007_v47  ;;  %3728 = vmatpush1.bf16.msra.mxu0 %v5010_v48  ;;  %v2311_v47 = vrot.slane %v5308_v3, %v2310_v30 }
 0x23f   :  { %3606 = vmatprep.subr.bf16.mxu1 %v5015_v51  ;;  %3729 = vmatprep.subr.bf16.mxu0 %v5018_v52  ;;  %v2315_v52 = vrot.slane %v5308_v3, %v2314_v33  ;;  %v2526_v3 = vld [vmem:[#allocation7] sm:$0xf] }
 0x242   :  { %3607 = vmatpush1.bf16.msra.mxu1 %v5013_v53  ;;  %3730 = vmatpush1.bf16.msra.mxu0 %v5016_v39 }
 0x243   :  { %3608 = vmatprep.subr.bf16.mxu1 %v5021_v54  ;;  %3731 = vmatprep.subr.bf16.mxu0 %v5024_v55  ;;  %v5055_v54 = vld [vmem:[#allocation5 + $0x5e0] ss:$16 sps:$4 sm:$0xff]   ;;  %v5058_v55 = vld [vmem:[#allocation5 + $0x5e8] ss:$16 sps:$4 sm:$0xff]  }
 0x246   :  { %3609 = vmatpush1.bf16.msra.mxu1 %v5019_v56  ;;  %3732 = vmatpush1.bf16.msra.mxu0 %v5022_v57 }
 0x247   :  { %3610 = vmatprep.subr.bf16.mxu1 %v5027_v58  ;;  %3733 = vmatprep.subr.bf16.mxu0 %v5030_v41 }
 0x24a   :  { %3611 = vmatpush1.bf16.msra.mxu1 %v5025_v60  ;;  %3734 = vmatpush1.bf16.msra.mxu0 %v5028_v61 }
 0x24b   :  { %3612 = vmatprep.subr.bf16.mxu1 %v5033_v44  ;;  %3735 = vmatprep.subr.bf16.mxu0 %v5036_v0  ;;  %v5166_v44 = vmov 1983009808  }
 0x24c   :  { %v2202_v6 = vpop.f32.mrb[4].mxu0  ;;  %v3761_v0 = vunpack.c.l.s4 %v5166_v44 }
 0x24d   :  { %v2235_v10 = vrot.slane %v2202_v6, 4  ;;  %v2204_v12 = vpop.f32.mrb[5].mxu0 }
 0x24e   :  { %v2241_v13 = vrot.slane %v2204_v12, 4  ;;  %v2206_v14 = vpop.f32.mrb[6].mxu0  ;;  %3613 = vmatpush1.bf16.msra.mxu1 %v5031_v1  ;;  %3736 = vmatpush1.bf16.msra.mxu0 %v5034_v2  ;;  %v2531_v1 = vrot.slane %v2526_v3, %v2294_v63  ;;  %v2539_v2 = vrot.slane %v2526_v3, %v2302_v59 }
 0x24f   :  { %v2236_v15 = vmax.f32 %v2202_v6, %v2235_v10  ;;  %v2271_v16 = vrot.slane %v2206_v14, 4  ;;  %v2208_v17 = vpop.f32.mrb[7].mxu0  ;;  %3614 = vmatprep.subr.bf16.mxu1 %v5039_v8  ;;  %3737 = vmatprep.subr.bf16.mxu0 %v5042_v9  ;;  %v2535_v6 = vrot.slane %v2526_v3, %v2298_v5  ;;  %v3762_v8 = vunpack.c.0.s8 %v3761_v0 }
 0x250   :  { %v2242_v20 = vmax.f32 %v2204_v12, %v2241_v13  ;;  %v2277_v21 = vrot.slane %v2208_v17, 4  ;;  %v2543_v9 = vrot.slane %v2526_v3, %v2306_v62 }
 0x251   :  { %v2237_v24 = vrot.slane %v2236_v15, 2  ;;  %v2272_v25 = vmax.f32 %v2206_v14, %v2271_v16 }
 0x252   :  { %v2243_v26 = vrot.slane %v2242_v20, 2  ;;  %v2278_v4 = vmax.f32 %v2208_v17, %v2277_v21  ;;  %3615 = vmatpush1.bf16.msra.mxu1 %v5037_v18  ;;  %3738 = vmatpush1.bf16.msra.mxu0 %v5040_v19  ;;  %v3765_v18 = vsub.s32 %v3762_v8, %v5302_v40 }
 0x253   :  { %v2238_v11 = vmax.f32 %v2236_v15, %v2237_v24  ;;  %v2273_v7 = vrot.slane %v2272_v25, 2  ;;  %3616 = vmatprep.subr.bf16.mxu1 %v5045_v22  ;;  %3739 = vmatprep.subr.bf16.mxu0 %v5048_v23 }
 0x254   :  { %v2244_v50 = vmax.f32 %v2242_v20, %v2243_v26  ;;  %v2279_v34 = vrot.slane %v2278_v4, 2 }
 0x255   :  { %v2239_v31 = vrot.slane %v2238_v11, 1  ;;  %v2274_v32 = vmax.f32 %v2272_v25, %v2273_v7 }
 0x256   :  { %v2245_v35 = vrot.slane %v2244_v50, 1  ;;  %v2280_v36 = vmax.f32 %v2278_v4, %v2279_v34  ;;  %3617 = vmatpush1.bf16.msra.mxu1 %v5043_v27  ;;  %3740 = vmatpush1.bf16.msra.mxu0 %v5046_v28 }
 0x257   :  { %v2275_v37 = vrot.slane %v2274_v32, 1  ;;  %3618 = vmatprep.subr.bf16.mxu1 %v5051_v49  ;;  %3741 = vmatprep.subr.bf16.mxu0 %v5054_v29  ;;  %v2240_v48 = vmax.f32 %v2238_v11, %v2239_v31 }
 0x258   :  { %v2281_v43 = vrot.slane %v2280_v36, 1  ;;  %v2246_v53 = vmax.f32 %v2244_v50, %v2245_v35 }
 0x259   :  { %v2276_v51 = vmax.f32 %v2274_v32, %v2275_v37 }
 0x25a   :  { %v2282_v39 = vmax.f32 %v2280_v36, %v2281_v43  ;;  %3619 = vmatpush1.bf16.msra.mxu1 %v5049_v38  ;;  %3742 = vmatpush1.bf16.msra.mxu0 %v5052_v42 }
 0x25b   :  { %v2288_v56 = vsel %vm2283_vm0, %v2240_v48, %v2276_v51  ;;  %3620 = vmatprep.subr.bf16.mxu1 %v5057_v45  ;;  %3743 = vmatprep.subr.bf16.mxu0 %v5060_v46 }
 0x25c   :  { %v2289_v57 = vsel %vm2283_vm0, %v2246_v53, %v2282_v39  ;;  %v2326_v58 = vadd.f32 %v2311_v47, %v2288_v56 }
 0x25d   :  { %v2327_v41 = vadd.f32 %v2315_v52, %v2289_v57 }
 0x25e   :  { %3621 = vmatpush1.bf16.msra.mxu1 %v5055_v54  ;;  %3744 = vmatpush1.bf16.msra.mxu0 %v5058_v55  ;;  %v2332_v61 = vpack.c.bf16 %v2326_v58, %v2326_v58 }
 0x25f   :  { %v2333_v60 = vpack.c.bf16 %v2327_v41, %v2327_v41 }
 0x261   :  { %3622 = vmatprep.mubr.bf16.mxu1 %v2333_v60  ;;  %3745 = vmatprep.mubr.bf16.mxu0 %v2333_v60 }
 0x262   :  { %3623 = vmatmul.mubr.bf16.vlgmr.msra.gmra.mrb[8].mxu1 %v2332_v61  ;;  %3746 = vmatmul.mubr.bf16.vlgmr.msra.gmra.mrb[8].mxu0 %v2332_v61 }
 0x335   :  { %v3624_v10 = vpop.f32.mrb[8].mxu1  ;;  %v3747_v12 = vpop.f32.mrb[8].mxu0 }
 0x336   :  { %v4283_v13 = vadd.f32 %v3624_v10, %v2531_v1  ;;  %v4285_v14 = vadd.f32 %v3747_v12, %v2539_v2  ;;  %v3626_v15 = vpop.f32.mrb[9].mxu1  ;;  %v3749_v16 = vpop.f32.mrb[9].mxu0 }
 0x337   :  { %v4284_v17 = vadd.f32 %v3626_v15, %v2535_v6  ;;  %v4286_v63 = vadd.f32 %v3749_v16, %v2543_v9  ;;  %v3628_v19 = vpop.f32.mrb[10].mxu1  ;;  %v3751_v20 = vpop.f32.mrb[10].mxu0 }
 0x338   :  { %v3629_v59 = vpop.f32.mrb[11].mxu1  ;;  %v3752_v21 = vpop.f32.mrb[11].mxu0 }
 0x339   :  { %v3758_v22 = vcombine.low %v4283_v13, %v4284_v17  ;;  %v3759_v5 = vcombine.low %v4285_v14, %v4286_v63 }
 0x33b   :  { %v3766_v23 = vrot.slane %v3758_v22, %v3765_v18  ;;  %v3773_v62 = vrot.slane %v3759_v5, %v3765_v18 }
 0x33d   :  { %v3774_v24 = vcombine.low %v3766_v23, %v3773_v62 }
 0x33f   :  { %3776 = vst [vmem:[#allocation8] sm:$0xff] %v3774_v24 }
 0x340   :  { %5142 = shalt.err (!%p5139_p0)
}
 0x341   :  { %s5143_s29 = scalar_lea.hbm %s5361_s5, 128 }
 0x342   :  { %p5144_p1 = scmp.ne.s32.totalorder %s5361_s5, %s5143_s29  ;;  %p5147_p2 = scmp.lt.u32.totalorder %s5143_s29, %s5361_s5 }
 0x344   :  { %p5149_p3 = pnand %p5147_p2, %p5144_p1 }
 0x346   :  { %5152 = shalt.err (!%p5149_p3)
}
 0x347   :  { %3786 = dma.vmem_to_hbm [thread:$0]  %s3784_s25, 128, %s5361_s5, [#allocation4]  }
 0x348   :  { %5157 = dma.done.wait [#allocation4], 128  }
 0x349   :  { %5158 = vsyncadd [#allocation4], 4294967168 }
 0x34a   :  { %3790 = vsyncpa [#allocation3], 1 }
 0x34b   :  { %3791 = vsyncpa [#allocation6], 1 }
 0x34c   :  { %3792 = vsyncpa [#allocation4], 1 }

// kernel: mimic_forward.5
= control target key start
LH: loop header
LB: loop body
LE: loop exit
PB: predicated region body
PF: predicated region fallthrough
CT: control target
= control target key end

     0   :  { %10 = vsyncpa [#allocation3], 0  ;;  %s8329_s18 = smov [#allocation2]   ;;  %s10502_s0 = inlined_call_operand.vmem [shape: bf16[8,128], index: 0, kind: input, shape index: {}]   ;;  %s10503_s1 = inlined_call_operand.hbm [shape: bf16[128,2560], index: 1, kind: input, shape index: {}]   ;;  %s10504_s2 = inlined_call_operand.vmem [shape: f32[1,2560], index: 2, kind: input, shape index: {}]   ;;  %s10505_s3 = inlined_call_operand.vmem [shape: bf16[2560,512], index: 3, kind: input, shape index: {}]   ;;  %s10506_s4 = inlined_call_operand.vmem [shape: f32[1,512], index: 4, kind: input, shape index: {}]   ;;  %s10507_s5 = inlined_call_operand.vmem [shape: f32[8,512], index: 5, kind: output, shape index: {}]  }
   0x1   :  { %s18_s19 = sshll.u32 %s8329_s18, 4  ;;  %s8305_s22 = scalar_lea.hbm %s10503_s1, 20480  ;;  %s19_s19 = int_to_ptr.vmem [resolvable:$true] %s18_s19 }
   0x2   :  { %p8306_p0 = scmp.ne.s32.totalorder %s10503_s1, %s8305_s22  ;;  %p8309_p1 = scmp.lt.u32.totalorder %s8305_s22, %s10503_s1 }
   0x4   :  { %p8311_p2 = pnand %p8309_p1, %p8306_p0 }
   0x6   :  { %8314 = shalt.err (!%p8311_p2)
}
   0x7   :  { %s8315_s27 = scalar_lea.vmem %s19_s19, 20480  ;;  %p8320_p4 = scmp.lt.s32.totalorder %s19_s19, %s19_s19 }
   0x8   :  { %p8316_p3 = scmp.ne.s32.totalorder %s19_s19, %s8315_s27  ;;  %p8321_p5 = scmp.lt.s32.totalorder %s8315_s27, %s8315_s27 }
   0xa   :  { %p8322_p6 = por %p8321_p5, %p8320_p4 }
   0xc   :  { %p8323_p7 = pnand %p8322_p6, %p8316_p3 }
   0xe   :  { %8326 = shalt.err (!%p8323_p7)
}
   0xf   :  { %s8330_s28 = smov 1280   ;;  %s8331_s29 = smov 80  }
  0x10   :  { %24 = dma.hbm_to_vmem [thread:$0]  %s10503_s1, 20480, %s19_s19, [#allocation3], %s8330_s28, %s8330_s28, %s8331_s29  }
  0x11   :  { %8327 = dma.done.wait [#allocation3], 20480  }
  0x12   :  { %8328 = vsyncadd [#allocation3], 4294946816  ;;  %v8332_v0 = vmov 0   ;;  %v7103_v1 = vld [vmem:[#allocation2 + $0x4] ss:$80 sps:$4 sm:$0xff]  }
  0x13   :  { %1134 = vmatprep.mubr.bf16.mxu0 %v8332_v0  ;;  %1175 = vmatprep.mubr.bf16.mxu1 %v8332_v0  ;;  %v7105_v2 = vld [vmem:[#allocation2] ss:$80 sps:$4 sm:$0xff]   ;;  %v7106_v3 = vld [vmem:[#allocation2 + $0xa4] ss:$80 sps:$4 sm:$0xff]   ;;  %v7121_v8 = vld [vmem:[#allocation2 + $0xc] ss:$80 sps:$4 sm:$0xff]  }
  0x14   :  { %1102 = vmatprep.subr.bf16.mxu0 %v7103_v1  ;;  %v7108_v4 = vld [vmem:[#allocation2 + $0xa0] ss:$80 sps:$4 sm:$0xff]   ;;  %v7109_v5 = vld [vmem:[#allocation2 + $0x144] ss:$80 sps:$4 sm:$0xff]   ;;  %1143 = vmatprep.subr.bf16.mxu1 %v7121_v8  ;;  %v7125_v10 = vld [vmem:[#allocation2 + $0x8] ss:$80 sps:$4 sm:$0xff]  }
  0x15   :  { %1103 = vmatpush1.bf16.msra.mxu0 %v7105_v2  ;;  %v7111_v6 = vld [vmem:[#allocation2 + $0x140] ss:$80 sps:$4 sm:$0xff]   ;;  %v7112_v7 = vld [vmem:[#allocation2 + $0x1e4] ss:$80 sps:$4 sm:$0xff]   ;;  %v7127_v11 = vld [vmem:[#allocation2 + $0xac] ss:$80 sps:$4 sm:$0xff]   ;;  %1144 = vmatpush1.bf16.msra.mxu1 %v7125_v10 }
  0x16   :  { %1104 = vmatprep.subr.bf16.mxu0 %v7106_v3  ;;  %v7114_v9 = vld [vmem:[#allocation2 + $0x1e0] ss:$80 sps:$4 sm:$0xff]   ;;  %v7115_v12 = vld [vmem:[#allocation2 + $0x284] ss:$80 sps:$4 sm:$0xff]   ;;  %v7131_v13 = vld [vmem:[#allocation2 + $0xa8] ss:$80 sps:$4 sm:$0xff]   ;;  %1145 = vmatprep.subr.bf16.mxu1 %v7127_v11 }
  0x17   :  { %v7117_v14 = vld [vmem:[#allocation2 + $0x280] ss:$80 sps:$4 sm:$0xff]   ;;  %v7133_v15 = vld [vmem:[#allocation2 + $0x14c] ss:$80 sps:$4 sm:$0xff]   ;;  %v7118_v16 = vld [vmem:[#allocation2 + $0x324] ss:$80 sps:$4 sm:$0xff]  }
  0x18   :  { %v7135_v17 = vld [vmem:[#allocation2 + $0x148] ss:$80 sps:$4 sm:$0xff]   ;;  %v7136_v18 = vld [vmem:[#allocation2 + $0x1ec] ss:$80 sps:$4 sm:$0xff]   ;;  %v7120_v19 = vld [vmem:[#allocation2 + $0x320] ss:$80 sps:$4 sm:$0xff]  }
  0x19   :  { %1105 = vmatpush1.bf16.msra.mxu0 %v7108_v4  ;;  %1146 = vmatpush1.bf16.msra.mxu1 %v7131_v13  ;;  %v7123_v20 = vld [vmem:[#allocation2 + $0x3c4] ss:$80 sps:$4 sm:$0xff]   ;;  %v7138_v21 = vld [vmem:[#allocation2 + $0x1e8] ss:$80 sps:$4 sm:$0xff]   ;;  %v7139_v22 = vld [vmem:[#allocation2 + $0x28c] ss:$80 sps:$4 sm:$0xff]  }
  0x1a   :  { %1106 = vmatprep.subr.bf16.mxu0 %v7109_v5  ;;  %1147 = vmatprep.subr.bf16.mxu1 %v7133_v15  ;;  %v7126_v23 = vld [vmem:[#allocation2 + $0x3c0] ss:$80 sps:$4 sm:$0xff]   ;;  %v7129_v24 = vld [vmem:[#allocation2 + $0x464] ss:$80 sps:$4 sm:$0xff]   ;;  %v7141_v25 = vld [vmem:[#allocation2 + $0x288] ss:$80 sps:$4 sm:$0xff]  }
  0x1b   :  { %v7142_v26 = vld [vmem:[#allocation2 + $0x32c] ss:$80 sps:$4 sm:$0xff]   ;;  %v7132_v27 = vld [vmem:[#allocation2 + $0x460] ss:$80 sps:$4 sm:$0xff]   ;;  %v7144_v28 = vld [vmem:[#allocation2 + $0x328] ss:$80 sps:$4 sm:$0xff]  }
  0x1c   :  { %v7153_v29 = vld [vmem:[#allocation2 + $0x14] ss:$80 sps:$4 sm:$0xff]   ;;  %v7145_v30 = vld [vmem:[#allocation2 + $0x3cc] ss:$80 sps:$4 sm:$0xff]   ;;  %v8380_v31 = vld [vmem:[%s10502_s0] sm:$0xf] }
  0x1d   :  { %1107 = vmatpush1.bf16.msra.mxu0 %v7111_v6  ;;  %1148 = vmatpush1.bf16.msra.mxu1 %v7135_v17  ;;  %v7147_v32 = vld [vmem:[#allocation2 + $0x3c8] ss:$80 sps:$4 sm:$0xff]   ;;  %v7151_v33 = vld [vmem:[#allocation2 + $0x10] ss:$80 sps:$4 sm:$0xff]   ;;  %v7159_v34 = vld [vmem:[#allocation2 + $0xb4] ss:$80 sps:$4 sm:$0xff]  }
  0x1e   :  { %1108 = vmatprep.subr.bf16.mxu0 %v7112_v7  ;;  %1149 = vmatprep.subr.bf16.mxu1 %v7136_v18  ;;  %v7148_v35 = vld [vmem:[#allocation2 + $0x46c] ss:$80 sps:$4 sm:$0xff]   ;;  %v7150_v36 = vld [vmem:[#allocation2 + $0x468] ss:$80 sps:$4 sm:$0xff]   ;;  %v7157_v37 = vld [vmem:[#allocation2 + $0xb0] ss:$80 sps:$4 sm:$0xff]  }
  0x1f   :  { %v7165_v38 = vld [vmem:[#allocation2 + $0x154] ss:$80 sps:$4 sm:$0xff]   ;;  %v7156_v39 = vld [vmem:[#allocation2 + $0x1c] ss:$80 sps:$4 sm:$0xff]   ;;  %v7154_v40 = vld [vmem:[#allocation2 + $0x18] ss:$80 sps:$4 sm:$0xff]  }
  0x20   :  { %v7163_v41 = vld [vmem:[#allocation2 + $0x150] ss:$80 sps:$4 sm:$0xff]   ;;  %v7171_v42 = vld [vmem:[#allocation2 + $0x1f4] ss:$80 sps:$4 sm:$0xff]   ;;  %v7162_v43 = vld [vmem:[#allocation2 + $0xbc] ss:$80 sps:$4 sm:$0xff]  }
  0x21   :  { %1109 = vmatpush1.bf16.msra.mxu0 %v7114_v9  ;;  %1150 = vmatpush1.bf16.msra.mxu1 %v7138_v21  ;;  %v7160_v44 = vld [vmem:[#allocation2 + $0xb8] ss:$80 sps:$4 sm:$0xff]   ;;  %v7169_v45 = vld [vmem:[#allocation2 + $0x1f0] ss:$80 sps:$4 sm:$0xff]   ;;  %v7177_v46 = vld [vmem:[#allocation2 + $0x294] ss:$80 sps:$4 sm:$0xff]  }
  0x22   :  { %1110 = vmatprep.subr.bf16.mxu0 %v7115_v12  ;;  %1151 = vmatprep.subr.bf16.mxu1 %v7139_v22  ;;  %v7168_v47 = vld [vmem:[#allocation2 + $0x15c] ss:$80 sps:$4 sm:$0xff]   ;;  %v7166_v48 = vld [vmem:[#allocation2 + $0x158] ss:$80 sps:$4 sm:$0xff]   ;;  %v7175_v49 = vld [vmem:[#allocation2 + $0x290] ss:$80 sps:$4 sm:$0xff]  }
  0x23   :  { %v7183_v50 = vld [vmem:[#allocation2 + $0x334] ss:$80 sps:$4 sm:$0xff]   ;;  %v7174_v51 = vld [vmem:[#allocation2 + $0x1fc] ss:$80 sps:$4 sm:$0xff]   ;;  %v7172_v52 = vld [vmem:[#allocation2 + $0x1f8] ss:$80 sps:$4 sm:$0xff]  }
  0x24   :  { %v7181_v53 = vld [vmem:[#allocation2 + $0x330] ss:$80 sps:$4 sm:$0xff]   ;;  %v7189_v54 = vld [vmem:[#allocation2 + $0x3d4] ss:$80 sps:$4 sm:$0xff]   ;;  %v7180_v55 = vld [vmem:[#allocation2 + $0x29c] ss:$80 sps:$4 sm:$0xff]  }
  0x25   :  { %1111 = vmatpush1.bf16.msra.mxu0 %v7117_v14  ;;  %1152 = vmatpush1.bf16.msra.mxu1 %v7141_v25  ;;  %v7178_v56 = vld [vmem:[#allocation2 + $0x298] ss:$80 sps:$4 sm:$0xff]   ;;  %v7187_v57 = vld [vmem:[#allocation2 + $0x3d0] ss:$80 sps:$4 sm:$0xff]   ;;  %v7195_v58 = vld [vmem:[#allocation2 + $0x474] ss:$80 sps:$4 sm:$0xff]  }
  0x26   :  { %1112 = vmatprep.subr.bf16.mxu0 %v7118_v16  ;;  %1153 = vmatprep.subr.bf16.mxu1 %v7142_v26  ;;  %v7186_v59 = vld [vmem:[#allocation2 + $0x33c] ss:$80 sps:$4 sm:$0xff]   ;;  %v7184_v60 = vld [vmem:[#allocation2 + $0x338] ss:$80 sps:$4 sm:$0xff]   ;;  %v7193_v61 = vld [vmem:[#allocation2 + $0x470] ss:$80 sps:$4 sm:$0xff]  }
  0x27   :  { %v7201_v62 = vld [vmem:[#allocation2 + $0x24] ss:$80 sps:$4 sm:$0xff]   ;;  %v7192_v63 = vld [vmem:[#allocation2 + $0x3dc] ss:$80 sps:$4 sm:$0xff]   ;;  %v7190_v1 = vld [vmem:[#allocation2 + $0x3d8] ss:$80 sps:$4 sm:$0xff]  }
  0x28   :  { %v7199_v2 = vld [vmem:[#allocation2 + $0x20] ss:$80 sps:$4 sm:$0xff]   ;;  %v7207_v3 = vld [vmem:[#allocation2 + $0xc4] ss:$80 sps:$4 sm:$0xff]   ;;  %v7198_v4 = vld [vmem:[#allocation2 + $0x47c] ss:$80 sps:$4 sm:$0xff]  }
  0x29   :  { %1113 = vmatpush1.bf16.msra.mxu0 %v7120_v19  ;;  %1154 = vmatpush1.bf16.msra.mxu1 %v7144_v28  ;;  %v7196_v5 = vld [vmem:[#allocation2 + $0x478] ss:$80 sps:$4 sm:$0xff]   ;;  %v7205_v6 = vld [vmem:[#allocation2 + $0xc0] ss:$80 sps:$4 sm:$0xff]   ;;  %v7213_v7 = vld [vmem:[#allocation2 + $0x164] ss:$80 sps:$4 sm:$0xff]  }
  0x2a   :  { %1114 = vmatprep.subr.bf16.mxu0 %v7123_v20  ;;  %1155 = vmatprep.subr.bf16.mxu1 %v7145_v30  ;;  %v7204_v8 = vld [vmem:[#allocation2 + $0x2c] ss:$80 sps:$4 sm:$0xff]   ;;  %v7202_v9 = vld [vmem:[#allocation2 + $0x28] ss:$80 sps:$4 sm:$0xff]   ;;  %v7211_v10 = vld [vmem:[#allocation2 + $0x160] ss:$80 sps:$4 sm:$0xff]  }
  0x2b   :  { %v7219_v11 = vld [vmem:[#allocation2 + $0x204] ss:$80 sps:$4 sm:$0xff]   ;;  %v7210_v12 = vld [vmem:[#allocation2 + $0xcc] ss:$80 sps:$4 sm:$0xff]   ;;  %v7208_v13 = vld [vmem:[#allocation2 + $0xc8] ss:$80 sps:$4 sm:$0xff]  }
  0x2c   :  { %v7217_v14 = vld [vmem:[#allocation2 + $0x200] ss:$80 sps:$4 sm:$0xff]   ;;  %v7225_v15 = vld [vmem:[#allocation2 + $0x2a4] ss:$80 sps:$4 sm:$0xff]   ;;  %v7216_v16 = vld [vmem:[#allocation2 + $0x16c] ss:$80 sps:$4 sm:$0xff]  }
  0x2d   :  { %1115 = vmatpush1.bf16.msra.mxu0 %v7126_v23  ;;  %1156 = vmatpush1.bf16.msra.mxu1 %v7147_v32  ;;  %v7214_v17 = vld [vmem:[#allocation2 + $0x168] ss:$80 sps:$4 sm:$0xff]   ;;  %v7223_v18 = vld [vmem:[#allocation2 + $0x2a0] ss:$80 sps:$4 sm:$0xff]   ;;  %v7231_v19 = vld [vmem:[#allocation2 + $0x344] ss:$80 sps:$4 sm:$0xff]  }
  0x2e   :  { %1116 = vmatprep.subr.bf16.mxu0 %v7129_v24  ;;  %1157 = vmatprep.subr.bf16.mxu1 %v7148_v35  ;;  %v7222_v20 = vld [vmem:[#allocation2 + $0x20c] ss:$80 sps:$4 sm:$0xff]   ;;  %v7220_v21 = vld [vmem:[#allocation2 + $0x208] ss:$80 sps:$4 sm:$0xff]   ;;  %v7229_v22 = vld [vmem:[#allocation2 + $0x340] ss:$80 sps:$4 sm:$0xff]  }
  0x2f   :  { %v7237_v23 = vld [vmem:[#allocation2 + $0x3e4] ss:$80 sps:$4 sm:$0xff]   ;;  %v7228_v24 = vld [vmem:[#allocation2 + $0x2ac] ss:$80 sps:$4 sm:$0xff]   ;;  %v7226_v25 = vld [vmem:[#allocation2 + $0x2a8] ss:$80 sps:$4 sm:$0xff]  }
  0x30   :  { %v7235_v26 = vld [vmem:[#allocation2 + $0x3e0] ss:$80 sps:$4 sm:$0xff]   ;;  %v7234_v28 = vld [vmem:[#allocation2 + $0x34c] ss:$80 sps:$4 sm:$0xff]   ;;  %v7249_v32 = vld [vmem:[#allocation2 + $0x34] ss:$80 sps:$4 sm:$0xff]  }
  0x31   :  { %1117 = vmatpush1.bf16.msra.mxu0 %v7132_v27  ;;  %1158 = vmatpush1.bf16.msra.mxu1 %v7150_v36  ;;  %v7243_v27 = vld [vmem:[#allocation2 + $0x484] ss:$80 sps:$4 sm:$0xff]   ;;  %v7241_v30 = vld [vmem:[#allocation2 + $0x480] ss:$80 sps:$4 sm:$0xff]  }
  0x32   :  { %1184 = vmatprep.subr.bf16.mxu0 %v7153_v29  ;;  %1225 = vmatprep.subr.bf16.mxu1 %v7156_v39  ;;  %v7232_v29 = vld [vmem:[#allocation2 + $0x348] ss:$80 sps:$4 sm:$0xff]   ;;  %v7247_v35 = vld [vmem:[#allocation2 + $0x30] ss:$80 sps:$4 sm:$0xff]   ;;  %v7255_v36 = vld [vmem:[#allocation2 + $0xd4] ss:$80 sps:$4 sm:$0xff]  }
  0x33   :  { %v7253_v39 = vld [vmem:[#allocation2 + $0xd0] ss:$80 sps:$4 sm:$0xff]  }
  0x34   :  { %1135 = vmatmul.mubr.bf16.vlgmr.msra.gmra.mrb[0].mxu0 %v8380_v31  ;;  %1176 = vmatmul.mubr.bf16.vlgmr.msra.gmra.mrb[0].mxu1 %v8380_v31 }
  0x35   :  { %1185 = vmatpush1.bf16.msra.mxu0 %v7151_v33  ;;  %1216 = vmatprep.mubr.bf16.mxu0 %v8332_v0  ;;  %v7240_v33 = vld [vmem:[#allocation2 + $0x3ec] ss:$80 sps:$4 sm:$0xff]  }
  0x36   :  { %1186 = vmatprep.subr.bf16.mxu0 %v7159_v34  ;;  %1226 = vmatpush1.bf16.msra.mxu1 %v7154_v40  ;;  %v7238_v34 = vld [vmem:[#allocation2 + $0x3e8] ss:$80 sps:$4 sm:$0xff]   ;;  %v7261_v40 = vld [vmem:[#allocation2 + $0x174] ss:$80 sps:$4 sm:$0xff]  }
  0x37   :  { %1227 = vmatprep.subr.bf16.mxu1 %v7162_v43  ;;  %1257 = vmatprep.mubr.bf16.mxu1 %v8332_v0  ;;  %v7259_v43 = vld [vmem:[#allocation2 + $0x170] ss:$80 sps:$4 sm:$0xff]  }
  0x39   :  { %1187 = vmatpush1.bf16.msra.mxu0 %v7157_v37  ;;  %v7246_v37 = vld [vmem:[#allocation2 + $0x48c] ss:$80 sps:$4 sm:$0xff]  }
  0x3a   :  { %1188 = vmatprep.subr.bf16.mxu0 %v7165_v38  ;;  %1228 = vmatpush1.bf16.msra.mxu1 %v7160_v44  ;;  %v7244_v38 = vld [vmem:[#allocation2 + $0x488] ss:$80 sps:$4 sm:$0xff]   ;;  %v7267_v44 = vld [vmem:[#allocation2 + $0x214] ss:$80 sps:$4 sm:$0xff]  }
  0x3b   :  { %1229 = vmatprep.subr.bf16.mxu1 %v7168_v47  ;;  %v7265_v47 = vld [vmem:[#allocation2 + $0x210] ss:$80 sps:$4 sm:$0xff]  }
  0x3d   :  { %1189 = vmatpush1.bf16.msra.mxu0 %v7163_v41  ;;  %v7252_v41 = vld [vmem:[#allocation2 + $0x3c] ss:$80 sps:$4 sm:$0xff]  }
  0x3e   :  { %1190 = vmatprep.subr.bf16.mxu0 %v7171_v42  ;;  %1230 = vmatpush1.bf16.msra.mxu1 %v7166_v48  ;;  %v7250_v42 = vld [vmem:[#allocation2 + $0x38] ss:$80 sps:$4 sm:$0xff]   ;;  %v7273_v48 = vld [vmem:[#allocation2 + $0x2b4] ss:$80 sps:$4 sm:$0xff]  }
  0x3f   :  { %1231 = vmatprep.subr.bf16.mxu1 %v7174_v51  ;;  %v7271_v51 = vld [vmem:[#allocation2 + $0x2b0] ss:$80 sps:$4 sm:$0xff]  }
  0x41   :  { %1191 = vmatpush1.bf16.msra.mxu0 %v7169_v45  ;;  %v7258_v45 = vld [vmem:[#allocation2 + $0xdc] ss:$80 sps:$4 sm:$0xff]  }
  0x42   :  { %1192 = vmatprep.subr.bf16.mxu0 %v7177_v46  ;;  %1232 = vmatpush1.bf16.msra.mxu1 %v7172_v52  ;;  %v7256_v46 = vld [vmem:[#allocation2 + $0xd8] ss:$80 sps:$4 sm:$0xff]   ;;  %v7279_v52 = vld [vmem:[#allocation2 + $0x354] ss:$80 sps:$4 sm:$0xff]  }
  0x43   :  { %1233 = vmatprep.subr.bf16.mxu1 %v7180_v55  ;;  %v7277_v55 = vld [vmem:[#allocation2 + $0x350] ss:$80 sps:$4 sm:$0xff]  }
  0x45   :  { %1193 = vmatpush1.bf16.msra.mxu0 %v7175_v49  ;;  %v7264_v49 = vld [vmem:[#allocation2 + $0x17c] ss:$80 sps:$4 sm:$0xff]  }
  0x46   :  { %1194 = vmatprep.subr.bf16.mxu0 %v7183_v50  ;;  %1234 = vmatpush1.bf16.msra.mxu1 %v7178_v56  ;;  %v7262_v50 = vld [vmem:[#allocation2 + $0x178] ss:$80 sps:$4 sm:$0xff]   ;;  %v7285_v56 = vld [vmem:[#allocation2 + $0x3f4] ss:$80 sps:$4 sm:$0xff]  }
  0x47   :  { %1235 = vmatprep.subr.bf16.mxu1 %v7186_v59  ;;  %v7283_v59 = vld [vmem:[#allocation2 + $0x3f0] ss:$80 sps:$4 sm:$0xff]  }
  0x49   :  { %1195 = vmatpush1.bf16.msra.mxu0 %v7181_v53  ;;  %v7270_v53 = vld [vmem:[#allocation2 + $0x21c] ss:$80 sps:$4 sm:$0xff]  }
  0x4a   :  { %1196 = vmatprep.subr.bf16.mxu0 %v7189_v54  ;;  %1236 = vmatpush1.bf16.msra.mxu1 %v7184_v60  ;;  %v7268_v54 = vld [vmem:[#allocation2 + $0x218] ss:$80 sps:$4 sm:$0xff]   ;;  %v7291_v60 = vld [vmem:[#allocation2 + $0x494] ss:$80 sps:$4 sm:$0xff]  }
  0x4b   :  { %1237 = vmatprep.subr.bf16.mxu1 %v7192_v63  ;;  %v7289_v63 = vld [vmem:[#allocation2 + $0x490] ss:$80 sps:$4 sm:$0xff]  }
  0x4d   :  { %1197 = vmatpush1.bf16.msra.mxu0 %v7187_v57  ;;  %v7276_v57 = vld [vmem:[#allocation2 + $0x2bc] ss:$80 sps:$4 sm:$0xff]  }
  0x4e   :  { %1198 = vmatprep.subr.bf16.mxu0 %v7195_v58  ;;  %1238 = vmatpush1.bf16.msra.mxu1 %v7190_v1  ;;  %v7274_v58 = vld [vmem:[#allocation2 + $0x2b8] ss:$80 sps:$4 sm:$0xff]   ;;  %v7297_v1 = vld [vmem:[#allocation2 + $0x44] ss:$80 sps:$4 sm:$0xff]  }
  0x4f   :  { %1239 = vmatprep.subr.bf16.mxu1 %v7198_v4  ;;  %v7295_v4 = vld [vmem:[#allocation2 + $0x40] ss:$80 sps:$4 sm:$0xff]  }
  0x51   :  { %1199 = vmatpush1.bf16.msra.mxu0 %v7193_v61  ;;  %v7282_v61 = vld [vmem:[#allocation2 + $0x35c] ss:$80 sps:$4 sm:$0xff]  }
  0x52   :  { %1266 = vmatprep.subr.bf16.mxu0 %v7201_v62  ;;  %1240 = vmatpush1.bf16.msra.mxu1 %v7196_v5  ;;  %v7280_v62 = vld [vmem:[#allocation2 + $0x358] ss:$80 sps:$4 sm:$0xff]   ;;  %v7303_v5 = vld [vmem:[#allocation2 + $0xe4] ss:$80 sps:$4 sm:$0xff]  }
  0x53   :  { %1307 = vmatprep.subr.bf16.mxu1 %v7204_v8  ;;  %v7301_v8 = vld [vmem:[#allocation2 + $0xe0] ss:$80 sps:$4 sm:$0xff]  }
  0x54   :  { %1217 = vmatmul.mubr.bf16.vlgmr.msra.gmra.mrb[4].mxu0 %v8380_v31 }
  0x55   :  { %1267 = vmatpush1.bf16.msra.mxu0 %v7199_v2  ;;  %1298 = vmatprep.mubr.bf16.mxu0 %v8332_v0  ;;  %v7288_v2 = vld [vmem:[#allocation2 + $0x3fc] ss:$80 sps:$4 sm:$0xff]  }
  0x56   :  { %1268 = vmatprep.subr.bf16.mxu0 %v7207_v3  ;;  %1258 = vmatmul.mubr.bf16.vlgmr.msra.gmra.mrb[4].mxu1 %v8380_v31  ;;  %v7286_v3 = vld [vmem:[#allocation2 + $0x3f8] ss:$80 sps:$4 sm:$0xff]  }
  0x57   :  { %1308 = vmatpush1.bf16.msra.mxu1 %v7202_v9  ;;  %1339 = vmatprep.mubr.bf16.mxu1 %v8332_v0  ;;  %v7309_v9 = vld [vmem:[#allocation2 + $0x184] ss:$80 sps:$4 sm:$0xff]  }
  0x58   :  { %1309 = vmatprep.subr.bf16.mxu1 %v7210_v12  ;;  %v7307_v12 = vld [vmem:[#allocation2 + $0x180] ss:$80 sps:$4 sm:$0xff]  }
  0x59   :  { %1269 = vmatpush1.bf16.msra.mxu0 %v7205_v6  ;;  %v7294_v6 = vld [vmem:[#allocation2 + $0x49c] ss:$80 sps:$4 sm:$0xff]  }
  0x5a   :  { %1270 = vmatprep.subr.bf16.mxu0 %v7213_v7  ;;  %v7292_v7 = vld [vmem:[#allocation2 + $0x498] ss:$80 sps:$4 sm:$0xff]  }
  0x5b   :  { %1310 = vmatpush1.bf16.msra.mxu1 %v7208_v13  ;;  %v7315_v13 = vld [vmem:[#allocation2 + $0x224] ss:$80 sps:$4 sm:$0xff]  }
  0x5c   :  { %1311 = vmatprep.subr.bf16.mxu1 %v7216_v16  ;;  %v7313_v16 = vld [vmem:[#allocation2 + $0x220] ss:$80 sps:$4 sm:$0xff]  }
  0x5d   :  { %1271 = vmatpush1.bf16.msra.mxu0 %v7211_v10  ;;  %v7300_v10 = vld [vmem:[#allocation2 + $0x4c] ss:$80 sps:$4 sm:$0xff]  }
  0x5e   :  { %1272 = vmatprep.subr.bf16.mxu0 %v7219_v11  ;;  %v7298_v11 = vld [vmem:[#allocation2 + $0x48] ss:$80 sps:$4 sm:$0xff]  }
  0x5f   :  { %1312 = vmatpush1.bf16.msra.mxu1 %v7214_v17  ;;  %v7321_v17 = vld [vmem:[#allocation2 + $0x2c4] ss:$80 sps:$4 sm:$0xff]  }
  0x60   :  { %1313 = vmatprep.subr.bf16.mxu1 %v7222_v20  ;;  %v7319_v20 = vld [vmem:[#allocation2 + $0x2c0] ss:$80 sps:$4 sm:$0xff]  }
  0x61   :  { %1273 = vmatpush1.bf16.msra.mxu0 %v7217_v14  ;;  %v7306_v14 = vld [vmem:[#allocation2 + $0xec] ss:$80 sps:$4 sm:$0xff]  }
  0x62   :  { %1274 = vmatprep.subr.bf16.mxu0 %v7225_v15  ;;  %v7304_v15 = vld [vmem:[#allocation2 + $0xe8] ss:$80 sps:$4 sm:$0xff]  }
  0x63   :  { %1314 = vmatpush1.bf16.msra.mxu1 %v7220_v21  ;;  %v7327_v21 = vld [vmem:[#allocation2 + $0x364] ss:$80 sps:$4 sm:$0xff]  }
  0x64   :  { %1315 = vmatprep.subr.bf16.mxu1 %v7228_v24  ;;  %v7316_v24 = vld [vmem:[#allocation2 + $0x228] ss:$80 sps:$4 sm:$0xff]  }
  0x65   :  { %1275 = vmatpush1.bf16.msra.mxu0 %v7223_v18  ;;  %v7312_v18 = vld [vmem:[#allocation2 + $0x18c] ss:$80 sps:$4 sm:$0xff]  }
  0x66   :  { %1276 = vmatprep.subr.bf16.mxu0 %v7231_v19  ;;  %v7310_v19 = vld [vmem:[#allocation2 + $0x188] ss:$80 sps:$4 sm:$0xff]  }
  0x67   :  { %1316 = vmatpush1.bf16.msra.mxu1 %v7226_v25  ;;  %v7333_v25 = vld [vmem:[#allocation2 + $0x404] ss:$80 sps:$4 sm:$0xff]  }
  0x68   :  { %1317 = vmatprep.subr.bf16.mxu1 %v7234_v28  ;;  %v7339_v28 = vld [vmem:[#allocation2 + $0x4a4] ss:$80 sps:$4 sm:$0xff]  }
  0x69   :  { %1277 = vmatpush1.bf16.msra.mxu0 %v7229_v22  ;;  %v7318_v22 = vld [vmem:[#allocation2 + $0x22c] ss:$80 sps:$4 sm:$0xff]  }
  0x6a   :  { %1278 = vmatprep.subr.bf16.mxu0 %v7237_v23  ;;  %v7325_v23 = vld [vmem:[#allocation2 + $0x360] ss:$80 sps:$4 sm:$0xff]  }
  0x6b   :  { %1318 = vmatpush1.bf16.msra.mxu1 %v7232_v29  ;;  %v7330_v29 = vld [vmem:[#allocation2 + $0x36c] ss:$80 sps:$4 sm:$0xff]  }
  0x6c   :  { %1319 = vmatprep.subr.bf16.mxu1 %v7240_v33  ;;  %v7345_v33 = vld [vmem:[%s10505_s3 + $0x4] ss:$16 sps:$4 sm:$0xff]  }
  0x6d   :  { %1279 = vmatpush1.bf16.msra.mxu0 %v7235_v26  ;;  %v7324_v26 = vld [vmem:[#allocation2 + $0x2cc] ss:$80 sps:$4 sm:$0xff]  }
  0x6e   :  { %1280 = vmatprep.subr.bf16.mxu0 %v7243_v27  ;;  %v7331_v27 = vld [vmem:[#allocation2 + $0x400] ss:$80 sps:$4 sm:$0xff]  }
  0x6f   :  { %1320 = vmatpush1.bf16.msra.mxu1 %v7238_v34  ;;  %v7336_v34 = vld [vmem:[#allocation2 + $0x40c] ss:$80 sps:$4 sm:$0xff]  }
  0x70   :  { %1321 = vmatprep.subr.bf16.mxu1 %v7246_v37  ;;  %v7351_v37 = vld [vmem:[%s10505_s3 + $0x24] ss:$16 sps:$4 sm:$0xff]  }
  0x71   :  { %1281 = vmatpush1.bf16.msra.mxu0 %v7241_v30  ;;  %v7337_v30 = vld [vmem:[#allocation2 + $0x4a0] ss:$80 sps:$4 sm:$0xff]  }
  0x72   :  { %1348 = vmatprep.subr.bf16.mxu0 %v7249_v32  ;;  %v7328_v32 = vld [vmem:[#allocation2 + $0x368] ss:$80 sps:$4 sm:$0xff]  }
  0x73   :  { %1322 = vmatpush1.bf16.msra.mxu1 %v7244_v38  ;;  %v7342_v38 = vld [vmem:[#allocation2 + $0x4ac] ss:$80 sps:$4 sm:$0xff]  }
  0x74   :  { %1299 = vmatmul.mubr.bf16.vlgmr.msra.gmra.mrb[8].mxu0 %v8380_v31  ;;  %1389 = vmatprep.subr.bf16.mxu1 %v7252_v41  ;;  %v7357_v41 = vld [vmem:[%s10505_s3 + $0x44] ss:$16 sps:$4 sm:$0xff]  }
  0x75   :  { %1349 = vmatpush1.bf16.msra.mxu0 %v7247_v35  ;;  %1380 = vmatprep.mubr.bf16.mxu0 %v8332_v0  ;;  %v7343_v35 = vld [vmem:[%s10505_s3] ss:$16 sps:$4 sm:$0xff]  }
  0x76   :  { %1350 = vmatprep.subr.bf16.mxu0 %v7255_v36  ;;  %1340 = vmatmul.mubr.bf16.vlgmr.msra.gmra.mrb[8].mxu1 %v8380_v31  ;;  %v7334_v36 = vld [vmem:[#allocation2 + $0x408] ss:$80 sps:$4 sm:$0xff]  }
  0x77   :  { %1390 = vmatpush1.bf16.msra.mxu1 %v7250_v42  ;;  %1421 = vmatprep.mubr.bf16.mxu1 %v8332_v0  ;;  %v7348_v42 = vld [vmem:[%s10505_s3 + $0xc] ss:$16 sps:$4 sm:$0xff]  }
  0x78   :  { %1391 = vmatprep.subr.bf16.mxu1 %v7258_v45  ;;  %v7363_v45 = vld [vmem:[%s10505_s3 + $0x64] ss:$16 sps:$4 sm:$0xff]  }
  0x79   :  { %1351 = vmatpush1.bf16.msra.mxu0 %v7253_v39  ;;  %v7349_v39 = vld [vmem:[%s10505_s3 + $0x20] ss:$16 sps:$4 sm:$0xff]  }
  0x7a   :  { %1352 = vmatprep.subr.bf16.mxu0 %v7261_v40  ;;  %v7340_v40 = vld [vmem:[#allocation2 + $0x4a8] ss:$80 sps:$4 sm:$0xff]  }
  0x7b   :  { %1392 = vmatpush1.bf16.msra.mxu1 %v7256_v46  ;;  %v7354_v46 = vld [vmem:[%s10505_s3 + $0x2c] ss:$16 sps:$4 sm:$0xff]  }
  0x7c   :  { %1393 = vmatprep.subr.bf16.mxu1 %v7264_v49  ;;  %v7369_v49 = vld [vmem:[%s10505_s3 + $0x84] ss:$16 sps:$4 sm:$0xff]  }
  0x7d   :  { %1353 = vmatpush1.bf16.msra.mxu0 %v7259_v43  ;;  %v7355_v43 = vld [vmem:[%s10505_s3 + $0x40] ss:$16 sps:$4 sm:$0xff]  }
  0x7e   :  { %1354 = vmatprep.subr.bf16.mxu0 %v7267_v44  ;;  %v7346_v44 = vld [vmem:[%s10505_s3 + $0x8] ss:$16 sps:$4 sm:$0xff]  }
  0x7f   :  { %1394 = vmatpush1.bf16.msra.mxu1 %v7262_v50  ;;  %v7367_v50 = vld [vmem:[%s10505_s3 + $0x80] ss:$16 sps:$4 sm:$0xff]  }
  0x80   :  { %1395 = vmatprep.subr.bf16.mxu1 %v7270_v53  ;;  %v7366_v53 = vld [vmem:[%s10505_s3 + $0x6c] ss:$16 sps:$4 sm:$0xff]  }
  0x81   :  { %1355 = vmatpush1.bf16.msra.mxu0 %v7265_v47  ;;  %v7361_v47 = vld [vmem:[%s10505_s3 + $0x60] ss:$16 sps:$4 sm:$0xff]  }
  0x82   :  { %1356 = vmatprep.subr.bf16.mxu0 %v7273_v48  ;;  %v7352_v48 = vld [vmem:[%s10505_s3 + $0x28] ss:$16 sps:$4 sm:$0xff]  }
  0x83   :  { %1396 = vmatpush1.bf16.msra.mxu1 %v7268_v54  ;;  %v7373_v54 = vld [vmem:[%s10505_s3 + $0xa0] ss:$16 sps:$4 sm:$0xff]  }
  0x84   :  { %1397 = vmatprep.subr.bf16.mxu1 %v7276_v57  ;;  %v7372_v57 = vld [vmem:[%s10505_s3 + $0x8c] ss:$16 sps:$4 sm:$0xff]  }
  0x85   :  { %1357 = vmatpush1.bf16.msra.mxu0 %v7271_v51  ;;  %v7358_v51 = vld [vmem:[%s10505_s3 + $0x48] ss:$16 sps:$4 sm:$0xff]  }
  0x86   :  { %1358 = vmatprep.subr.bf16.mxu0 %v7279_v52  ;;  %v7375_v52 = vld [vmem:[%s10505_s3 + $0xa4] ss:$16 sps:$4 sm:$0xff]  }
  0x87   :  { %1398 = vmatpush1.bf16.msra.mxu1 %v7274_v58  ;;  %v7379_v58 = vld [vmem:[%s10505_s3 + $0xc0] ss:$16 sps:$4 sm:$0xff]  }
  0x88   :  { %1399 = vmatprep.subr.bf16.mxu1 %v7282_v61  ;;  %v7378_v61 = vld [vmem:[%s10505_s3 + $0xac] ss:$16 sps:$4 sm:$0xff]  }
  0x89   :  { %1359 = vmatpush1.bf16.msra.mxu0 %v7277_v55  ;;  %v7364_v55 = vld [vmem:[%s10505_s3 + $0x68] ss:$16 sps:$4 sm:$0xff]  }
  0x8a   :  { %1360 = vmatprep.subr.bf16.mxu0 %v7285_v56  ;;  %v7381_v56 = vld [vmem:[%s10505_s3 + $0xc4] ss:$16 sps:$4 sm:$0xff]  }
  0x8b   :  { %1400 = vmatpush1.bf16.msra.mxu1 %v7280_v62  ;;  %v7385_v62 = vld [vmem:[%s10505_s3 + $0xe0] ss:$16 sps:$4 sm:$0xff]  }
  0x8c   :  { %1401 = vmatprep.subr.bf16.mxu1 %v7288_v2  ;;  %v7384_v2 = vld [vmem:[%s10505_s3 + $0xcc] ss:$16 sps:$4 sm:$0xff]  }
  0x8d   :  { %1361 = vmatpush1.bf16.msra.mxu0 %v7283_v59  ;;  %v7370_v59 = vld [vmem:[%s10505_s3 + $0x88] ss:$16 sps:$4 sm:$0xff]  }
  0x8e   :  { %1362 = vmatprep.subr.bf16.mxu0 %v7291_v60  ;;  %v7387_v60 = vld [vmem:[%s10505_s3 + $0xe4] ss:$16 sps:$4 sm:$0xff]  }
  0x8f   :  { %1402 = vmatpush1.bf16.msra.mxu1 %v7286_v3  ;;  %v7391_v3 = vld [vmem:[%s10505_s3 + $0x100] ss:$16 sps:$4 sm:$0xff]  }
  0x90   :  { %1403 = vmatprep.subr.bf16.mxu1 %v7294_v6  ;;  %v7390_v6 = vld [vmem:[%s10505_s3 + $0xec] ss:$16 sps:$4 sm:$0xff]  }
  0x91   :  { %1363 = vmatpush1.bf16.msra.mxu0 %v7289_v63  ;;  %v7376_v63 = vld [vmem:[%s10505_s3 + $0xa8] ss:$16 sps:$4 sm:$0xff]  }
  0x92   :  { %1430 = vmatprep.subr.bf16.mxu0 %v7297_v1  ;;  %v7393_v1 = vld [vmem:[%s10505_s3 + $0x104] ss:$16 sps:$4 sm:$0xff]  }
  0x93   :  { %1404 = vmatpush1.bf16.msra.mxu1 %v7292_v7  ;;  %v7397_v7 = vld [vmem:[%s10505_s3 + $0x120] ss:$16 sps:$4 sm:$0xff]  }
  0x94   :  { %1381 = vmatmul.mubr.bf16.vlgmr.msra.gmra.mrb[12].mxu0 %v8380_v31  ;;  %1471 = vmatprep.subr.bf16.mxu1 %v7300_v10  ;;  %v7396_v10 = vld [vmem:[%s10505_s3 + $0x10c] ss:$16 sps:$4 sm:$0xff]  }
  0x95   :  { %1431 = vmatpush1.bf16.msra.mxu0 %v7295_v4  ;;  %1462 = vmatprep.mubr.bf16.mxu0 %v8332_v0  ;;  %v7382_v4 = vld [vmem:[%s10505_s3 + $0xc8] ss:$16 sps:$4 sm:$0xff]  }
  0x96   :  { %1432 = vmatprep.subr.bf16.mxu0 %v7303_v5  ;;  %1422 = vmatmul.mubr.bf16.vlgmr.msra.gmra.mrb[12].mxu1 %v8380_v31  ;;  %v7399_v5 = vld [vmem:[%s10505_s3 + $0x124] ss:$16 sps:$4 sm:$0xff]  }
  0x97   :  { %1472 = vmatpush1.bf16.msra.mxu1 %v7298_v11  ;;  %1503 = vmatprep.mubr.bf16.mxu1 %v8332_v0  ;;  %v7322_v0 = vld [vmem:[#allocation2 + $0x2c8] ss:$80 sps:$4 sm:$0xff]   ;;  %v7403_v11 = vld [vmem:[%s10505_s3 + $0x140] ss:$16 sps:$4 sm:$0xff]  }
  0x98   :  { %1473 = vmatprep.subr.bf16.mxu1 %v7306_v14  ;;  %v7402_v14 = vld [vmem:[%s10505_s3 + $0x12c] ss:$16 sps:$4 sm:$0xff]  }
  0x99   :  { %1433 = vmatpush1.bf16.msra.mxu0 %v7301_v8  ;;  %v7388_v8 = vld [vmem:[%s10505_s3 + $0xe8] ss:$16 sps:$4 sm:$0xff]  }
  0x9a   :  { %1434 = vmatprep.subr.bf16.mxu0 %v7309_v9  ;;  %v7405_v9 = vld [vmem:[%s10505_s3 + $0x144] ss:$16 sps:$4 sm:$0xff]  }
  0x9b   :  { %1474 = vmatpush1.bf16.msra.mxu1 %v7304_v15  ;;  %v7409_v15 = vld [vmem:[%s10505_s3 + $0x160] ss:$16 sps:$4 sm:$0xff]  }
  0x9c   :  { %1475 = vmatprep.subr.bf16.mxu1 %v7312_v18  ;;  %v7408_v18 = vld [vmem:[%s10505_s3 + $0x14c] ss:$16 sps:$4 sm:$0xff]  }
  0x9d   :  { %1435 = vmatpush1.bf16.msra.mxu0 %v7307_v12  ;;  %v7394_v12 = vld [vmem:[%s10505_s3 + $0x108] ss:$16 sps:$4 sm:$0xff]  }
  0x9e   :  { %1436 = vmatprep.subr.bf16.mxu0 %v7315_v13  ;;  %v7411_v13 = vld [vmem:[%s10505_s3 + $0x164] ss:$16 sps:$4 sm:$0xff]  }
  0x9f   :  { %1476 = vmatpush1.bf16.msra.mxu1 %v7310_v19  ;;  %v7406_v19 = vld [vmem:[%s10505_s3 + $0x148] ss:$16 sps:$4 sm:$0xff]  }
  0xa0   :  { %1477 = vmatprep.subr.bf16.mxu1 %v7318_v22  ;;  %v7423_v22 = vld [vmem:[%s10505_s3 + $0x1a4] ss:$16 sps:$4 sm:$0xff]  }
  0xa1   :  { %1437 = vmatpush1.bf16.msra.mxu0 %v7313_v16  ;;  %v7400_v16 = vld [vmem:[%s10505_s3 + $0x128] ss:$16 sps:$4 sm:$0xff]  }
  0xa2   :  { %1438 = vmatprep.subr.bf16.mxu0 %v7321_v17  ;;  %v7417_v17 = vld [vmem:[%s10505_s3 + $0x184] ss:$16 sps:$4 sm:$0xff]  }
  0xa3   :  { %1478 = vmatpush1.bf16.msra.mxu1 %v7316_v24  ;;  %v7420_v24 = vld [vmem:[%s10505_s3 + $0x18c] ss:$16 sps:$4 sm:$0xff]  }
  0xa4   :  { %1479 = vmatprep.subr.bf16.mxu1 %v7324_v26  ;;  %v7429_v26 = vld [vmem:[%s10505_s3 + $0x1c4] ss:$16 sps:$4 sm:$0xff]  }
  0xa5   :  { %1439 = vmatpush1.bf16.msra.mxu0 %v7319_v20  ;;  %v7415_v20 = vld [vmem:[%s10505_s3 + $0x180] ss:$16 sps:$4 sm:$0xff]  }
  0xa6   :  { %1440 = vmatprep.subr.bf16.mxu0 %v7327_v21  ;;  %v7414_v21 = vld [vmem:[%s10505_s3 + $0x16c] ss:$16 sps:$4 sm:$0xff]  }
  0xa7   :  { %1480 = vmatpush1.bf16.msra.mxu1 %v7322_v0  ;;  %v7427_v0 = vld [vmem:[%s10505_s3 + $0x1c0] ss:$16 sps:$4 sm:$0xff]  }
  0xa8   :  { %1481 = vmatprep.subr.bf16.mxu1 %v7330_v29  ;;  %v7435_v29 = vld [vmem:[%s10505_s3 + $0x1e4] ss:$16 sps:$4 sm:$0xff]  }
  0xa9   :  { %1441 = vmatpush1.bf16.msra.mxu0 %v7325_v23  ;;  %v7412_v23 = vld [vmem:[%s10505_s3 + $0x168] ss:$16 sps:$4 sm:$0xff]  }
  0xaa   :  { %1442 = vmatprep.subr.bf16.mxu0 %v7333_v25  ;;  %v7421_v25 = vld [vmem:[%s10505_s3 + $0x1a0] ss:$16 sps:$4 sm:$0xff]  }
  0xab   :  { %1482 = vmatpush1.bf16.msra.mxu1 %v7328_v32  ;;  %v7433_v32 = vld [vmem:[%s10505_s3 + $0x1e0] ss:$16 sps:$4 sm:$0xff]  }
  0xac   :  { %1483 = vmatprep.subr.bf16.mxu1 %v7336_v34  ;;  %v7441_v34 = vld [vmem:[%s10505_s3 + $0x204] ss:$16 sps:$4 sm:$0xff]  }
  0xad   :  { %1443 = vmatpush1.bf16.msra.mxu0 %v7331_v27  ;;  %v7418_v27 = vld [vmem:[%s10505_s3 + $0x188] ss:$16 sps:$4 sm:$0xff]  }
  0xae   :  { %1444 = vmatprep.subr.bf16.mxu0 %v7339_v28  ;;  %v7426_v28 = vld [vmem:[%s10505_s3 + $0x1ac] ss:$16 sps:$4 sm:$0xff]  }
  0xaf   :  { %1484 = vmatpush1.bf16.msra.mxu1 %v7334_v36  ;;  %v7438_v36 = vld [vmem:[%s10505_s3 + $0x1ec] ss:$16 sps:$4 sm:$0xff]  }
  0xb0   :  { %1485 = vmatprep.subr.bf16.mxu1 %v7342_v38  ;;  %v202_v38 = vlaneseq }
  0xb1   :  { %1445 = vmatpush1.bf16.msra.mxu0 %v7337_v30  ;;  %v7424_v30 = vld [vmem:[%s10505_s3 + $0x1a8] ss:$16 sps:$4 sm:$0xff]  }
  0xb2   :  { %5394 = vmatprep.subr.bf16.mxu0 %v7345_v33  ;;  %v7432_v33 = vld [vmem:[%s10505_s3 + $0x1cc] ss:$16 sps:$4 sm:$0xff]  }
  0xb3   :  { %1486 = vmatpush1.bf16.msra.mxu1 %v7340_v40  ;;  %v8598_v40 = vshrl.u32 %v202_v38, 7 }
  0xb4   :  { %1463 = vmatmul.mubr.bf16.vlgmr.msra.gmra.mrb[16].mxu0 %v8380_v31  ;;  %5804 = vmatprep.subr.bf16.mxu1 %v7348_v42 }
  0xb5   :  { %5395 = vmatpush1.bf16.msra.mxu0 %v7343_v35  ;;  %v7430_v35 = vld [vmem:[%s10505_s3 + $0x1c8] ss:$16 sps:$4 sm:$0xff]   ;;  %v228_v42 = vsub.s32 6, %v8598_v40 }
  0xb6   :  { %5396 = vmatprep.subr.bf16.mxu0 %v7351_v37  ;;  %1504 = vmatmul.mubr.bf16.vlgmr.msra.gmra.mrb[16].mxu1 %v8380_v31  ;;  %v7360_v31 = vld [vmem:[%s10505_s3 + $0x4c] ss:$16 sps:$4 sm:$0xff]   ;;  %v7436_v37 = vld [vmem:[%s10505_s3 + $0x1e8] ss:$16 sps:$4 sm:$0xff]  }
  0xb7   :  { %5805 = vmatpush1.bf16.msra.mxu1 %v7346_v44 }
  0xb8   :  { %5806 = vmatprep.subr.bf16.mxu1 %v7354_v46  ;;  %v224_v46 = vsub.s32 5, %v8598_v40 }
  0xb9   :  { %5397 = vmatpush1.bf16.msra.mxu0 %v7349_v39  ;;  %v7444_v39 = vld [vmem:[%s10505_s3 + $0x20c] ss:$16 sps:$4 sm:$0xff]  }
  0xba   :  { %5398 = vmatprep.subr.bf16.mxu0 %v7357_v41  ;;  %v220_v41 = vsub.s32 4, %v8598_v40 }
  0xbb   :  { %5807 = vmatpush1.bf16.msra.mxu1 %v7352_v48  ;;  %v8620_v48 = vsub.s32 0, %v8598_v40 }
  0xbc   :  { %5808 = vmatprep.subr.bf16.mxu1 %v7360_v31 }
  0xbd   :  { %5399 = vmatpush1.bf16.msra.mxu0 %v7355_v43  ;;  %v8605_v43 = vld [vmem:[%s10504_s2 + $0x8] sm:$0xff] }
  0xbe   :  { %5400 = vmatprep.subr.bf16.mxu0 %v7363_v45  ;;  %v8610_v44 = vrot.slane %v8605_v43, %v220_v41  ;;  %v8615_v45 = vrot.slane %v8605_v43, %v228_v42 }
  0xbf   :  { %5809 = vmatpush1.bf16.msra.mxu1 %v7358_v51  ;;  %v8638_v51 = vsub.s32 1, %v8598_v40 }
  0xc0   :  { %5810 = vmatprep.subr.bf16.mxu1 %v7366_v53 }
  0xc1   :  { %5401 = vmatpush1.bf16.msra.mxu0 %v7361_v47  ;;  %v232_v47 = vsub.s32 7, %v8598_v40 }
  0xc2   :  { %5402 = vmatprep.subr.bf16.mxu0 %v7369_v49  ;;  %v8625_v49 = vrot.slane %v8605_v43, %v224_v46 }
  0xc3   :  { %5811 = vmatpush1.bf16.msra.mxu1 %v7364_v55  ;;  %v8630_v31 = vrot.slane %v8605_v43, %v232_v47 }
  0xc4   :  { %5812 = vmatprep.subr.bf16.mxu1 %v7372_v57  ;;  %v8645_v57 = vsub.s32 2, %v8598_v40 }
  0xc5   :  { %5403 = vmatpush1.bf16.msra.mxu0 %v7367_v50  ;;  %v8635_v50 = vld [vmem:[%s10504_s2] sm:$0xff] }
  0xc6   :  { %5404 = vmatprep.subr.bf16.mxu0 %v7375_v52  ;;  %v205_v52 = vrot.slane %v8635_v50, %v8620_v48  ;;  %v209_v53 = vrot.slane %v8635_v50, %v8638_v51  ;;  %v221_v38 = vrot.slane %v8635_v50, %v220_v41  ;;  %v7489_v41 = vld [vmem:[%s10505_s3 + $0x304] ss:$16 sps:$4 sm:$0xff]  }
  0xc7   :  { %5813 = vmatpush1.bf16.msra.mxu1 %v7370_v59 }
  0xc8   :  { %5814 = vmatprep.subr.bf16.mxu1 %v7378_v61  ;;  %v7442_v61 = vld [vmem:[%s10505_s3 + $0x208] ss:$16 sps:$4 sm:$0xff]  }
  0xc9   :  { %5405 = vmatpush1.bf16.msra.mxu0 %v7373_v54 }
  0xca   :  { %5406 = vmatprep.subr.bf16.mxu0 %v7381_v56 }
  0xcb   :  { %5815 = vmatpush1.bf16.msra.mxu1 %v7376_v63  ;;  %v7447_v63 = vld [vmem:[%s10505_s3 + $0x224] ss:$16 sps:$4 sm:$0xff]  }
  0xcc   :  { %5816 = vmatprep.subr.bf16.mxu1 %v7384_v2  ;;  %v8660_v2 = vsub.s32 3, %v8598_v40  ;;  %v7502_v40 = vld [vmem:[%s10505_s3 + $0x348] ss:$16 sps:$4 sm:$0xff]  }
  0xcd   :  { %5407 = vmatpush1.bf16.msra.mxu0 %v7379_v58 }
  0xce   :  { %5408 = vmatprep.subr.bf16.mxu0 %v7387_v60  ;;  %v7439_v60 = vld [vmem:[%s10505_s3 + $0x200] ss:$16 sps:$4 sm:$0xff]  }
  0xcf   :  { %5817 = vmatpush1.bf16.msra.mxu1 %v7382_v4 }
  0xd0   :  { %5818 = vmatprep.subr.bf16.mxu1 %v7390_v6  ;;  %v7448_v6 = vld [vmem:[%s10505_s3 + $0x228] ss:$16 sps:$4 sm:$0xff]  }
  0xd1   :  { %5409 = vmatpush1.bf16.msra.mxu0 %v7385_v62 }
  0xd2   :  { %5410 = vmatprep.subr.bf16.mxu0 %v7393_v1  ;;  %v7450_v1 = vld [vmem:[%s10505_s3 + $0x22c] ss:$16 sps:$4 sm:$0xff]  }
  0xd3   :  { %5819 = vmatpush1.bf16.msra.mxu1 %v7388_v8  ;;  %v7453_v8 = vld [vmem:[%s10505_s3 + $0x244] ss:$16 sps:$4 sm:$0xff]  }
  0xd4   :  { %5820 = vmatprep.subr.bf16.mxu1 %v7396_v10  ;;  %v217_v10 = vrot.slane %v8635_v50, %v8660_v2 }
  0xd5   :  { %5411 = vmatpush1.bf16.msra.mxu0 %v7391_v3 }
  0xd6   :  { %5412 = vmatprep.subr.bf16.mxu0 %v7399_v5  ;;  %v7445_v5 = vld [vmem:[%s10505_s3 + $0x220] ss:$16 sps:$4 sm:$0xff]  }
  0xd7   :  { %5821 = vmatpush1.bf16.msra.mxu1 %v7394_v12 }
  0xd8   :  { %5822 = vmatprep.subr.bf16.mxu1 %v7402_v14  ;;  %v7451_v14 = vld [vmem:[%s10505_s3 + $0x240] ss:$16 sps:$4 sm:$0xff]  }
  0xd9   :  { %5413 = vmatpush1.bf16.msra.mxu0 %v7397_v7  ;;  %v213_v7 = vrot.slane %v8635_v50, %v8645_v57 }
  0xda   :  { %5414 = vmatprep.subr.bf16.mxu0 %v7405_v9  ;;  %v7456_v9 = vld [vmem:[%s10505_s3 + $0x24c] ss:$16 sps:$4 sm:$0xff]  }
  0xdb   :  { %5823 = vmatpush1.bf16.msra.mxu1 %v7400_v16 }
  0xdc   :  { %5824 = vmatprep.subr.bf16.mxu1 %v7408_v18 }
  0xdd   :  { %5415 = vmatpush1.bf16.msra.mxu0 %v7403_v11 }
  0xde   :  { %5416 = vmatprep.subr.bf16.mxu0 %v7411_v13 }
  0xdf   :  { %5825 = vmatpush1.bf16.msra.mxu1 %v7406_v19  ;;  %v7459_v19 = vld [vmem:[%s10505_s3 + $0x264] ss:$16 sps:$4 sm:$0xff]  }
  0xe0   :  { %5826 = vmatprep.subr.bf16.mxu1 %v7414_v21 }
  0xe1   :  { %5417 = vmatpush1.bf16.msra.mxu0 %v7409_v15  ;;  %v7454_v15 = vld [vmem:[%s10505_s3 + $0x248] ss:$16 sps:$4 sm:$0xff]  }
  0xe2   :  { %5418 = vmatprep.subr.bf16.mxu0 %v7417_v17 }
  0xe3   :  { %5827 = vmatpush1.bf16.msra.mxu1 %v7412_v23  ;;  %v7460_v23 = vld [vmem:[%s10505_s3 + $0x268] ss:$16 sps:$4 sm:$0xff]  }
  0xe4   :  { %5828 = vmatprep.subr.bf16.mxu1 %v7420_v24  ;;  %v7465_v24 = vld [vmem:[%s10505_s3 + $0x284] ss:$16 sps:$4 sm:$0xff]  }
  0xe5   :  { %5419 = vmatpush1.bf16.msra.mxu0 %v7415_v20  ;;  %v7462_v20 = vld [vmem:[%s10505_s3 + $0x26c] ss:$16 sps:$4 sm:$0xff]  }
  0xe6   :  { %5420 = vmatprep.subr.bf16.mxu0 %v7423_v22  ;;  %v7457_v22 = vld [vmem:[%s10505_s3 + $0x260] ss:$16 sps:$4 sm:$0xff]  }
  0xe7   :  { %5829 = vmatpush1.bf16.msra.mxu1 %v7418_v27  ;;  %v7466_v27 = vld [vmem:[%s10505_s3 + $0x288] ss:$16 sps:$4 sm:$0xff]  }
  0xe8   :  { %5830 = vmatprep.subr.bf16.mxu1 %v7426_v28  ;;  %v7474_v28 = vld [vmem:[%s10505_s3 + $0x2ac] ss:$16 sps:$4 sm:$0xff]  }
  0xe9   :  { %5421 = vmatpush1.bf16.msra.mxu0 %v7421_v25  ;;  %v7468_v25 = vld [vmem:[%s10505_s3 + $0x28c] ss:$16 sps:$4 sm:$0xff]  }
  0xea   :  { %5422 = vmatprep.subr.bf16.mxu0 %v7429_v26  ;;  %v7463_v26 = vld [vmem:[%s10505_s3 + $0x280] ss:$16 sps:$4 sm:$0xff]  }
  0xeb   :  { %5831 = vmatpush1.bf16.msra.mxu1 %v7424_v30  ;;  %v7472_v30 = vld [vmem:[%s10505_s3 + $0x2a8] ss:$16 sps:$4 sm:$0xff]  }
  0xec   :  { %5832 = vmatprep.subr.bf16.mxu1 %v7432_v33  ;;  %v7480_v33 = vld [vmem:[%s10505_s3 + $0x2cc] ss:$16 sps:$4 sm:$0xff]  }
  0xed   :  { %5423 = vmatpush1.bf16.msra.mxu0 %v7427_v0  ;;  %v7471_v0 = vld [vmem:[%s10505_s3 + $0x2a4] ss:$16 sps:$4 sm:$0xff]  }
  0xee   :  { %5424 = vmatprep.subr.bf16.mxu0 %v7435_v29  ;;  %v7469_v29 = vld [vmem:[%s10505_s3 + $0x2a0] ss:$16 sps:$4 sm:$0xff]  }
  0xef   :  { %5833 = vmatpush1.bf16.msra.mxu1 %v7430_v35  ;;  %v7478_v35 = vld [vmem:[%s10505_s3 + $0x2c8] ss:$16 sps:$4 sm:$0xff]  }
  0xf0   :  { %5834 = vmatprep.subr.bf16.mxu1 %v7438_v36  ;;  %v7483_v36 = vld [vmem:[%s10505_s3 + $0x2e4] ss:$16 sps:$4 sm:$0xff]  }
  0xf1   :  { %5425 = vmatpush1.bf16.msra.mxu0 %v7433_v32  ;;  %v7477_v32 = vld [vmem:[%s10505_s3 + $0x2c4] ss:$16 sps:$4 sm:$0xff]  }
  0xf2   :  { %5435 = vmatprep.subr.bf16.mxu0 %v7441_v34  ;;  %v7475_v34 = vld [vmem:[%s10505_s3 + $0x2c0] ss:$16 sps:$4 sm:$0xff]  }
  0xf3   :  { %5835 = vmatpush1.bf16.msra.mxu1 %v7436_v37  ;;  %v7486_v37 = vld [vmem:[%s10505_s3 + $0x2ec] ss:$16 sps:$4 sm:$0xff]  }
  0xf4   :  { %5845 = vmatprep.subr.bf16.mxu1 %v7444_v39  ;;  %v7481_v39 = vld [vmem:[%s10505_s3 + $0x2e0] ss:$16 sps:$4 sm:$0xff]  }
 0x107   :  { %v1136_v54 = vpop.f32.mrb[0].mxu0  ;;  %v1177_v11 = vpop.f32.mrb[0].mxu1 }
 0x108   :  { %v1137_v55 = vadd.f32 %v1136_v54, %v205_v52  ;;  %v1138_v56 = vpop.f32.mrb[1].mxu0  ;;  %v8678_v12 = vadd.f32 %v1177_v11, %v213_v7  ;;  %v1179_v13 = vpop.f32.mrb[1].mxu1  ;;  %v7484_v52 = vld [vmem:[%s10505_s3 + $0x2e8] ss:$16 sps:$4 sm:$0xff]   ;;  %v7501_v7 = vld [vmem:[%s10505_s3 + $0x344] ss:$16 sps:$4 sm:$0xff]  }
 0x109   :  { %v1139_v58 = vadd.f32 %v1138_v56, %v209_v53  ;;  %v1140_v59 = vpop.f32.mrb[2].mxu0  ;;  %v1180_v16 = vadd.f32 %v1179_v13, %v217_v10  ;;  %v1181_v17 = vpop.f32.mrb[2].mxu1  ;;  %v225_v53 = vrot.slane %v8635_v50, %v224_v46  ;;  %v7487_v46 = vld [vmem:[%s10505_s3 + $0x300] ss:$16 sps:$4 sm:$0xff]  }
 0x10a   :  { %v1141_v62 = vpop.f32.mrb[3].mxu0  ;;  %v1512_v4 = vpack.c.bf16 %v1137_v55, %v1137_v55  ;;  %v1182_v18 = vpop.f32.mrb[3].mxu1  ;;  %v7492_v55 = vld [vmem:[%s10505_s3 + $0x30c] ss:$16 sps:$4 sm:$0xff]   ;;  %v7490_v59 = vld [vmem:[%s10505_s3 + $0x308] ss:$16 sps:$4 sm:$0xff]  }
 0x10b   :  { %v1513_v3 = vpack.c.bf16 %v1139_v58, %v1139_v58  ;;  %v1515_v21 = vpack.c.bf16 %v1180_v16, %v1180_v16  ;;  %v7505_v16 = vld [vmem:[%s10505_s3 + $0x360] ss:$16 sps:$4 sm:$0xff]   ;;  %v7508_v17 = vld [vmem:[%s10505_s3 + $0x368] ss:$16 sps:$4 sm:$0xff]   ;;  %v7513_v18 = vld [vmem:[%s10505_s3 + $0x384] ss:$16 sps:$4 sm:$0xff]  }
 0x10d   :  { %5426 = vmatprep.mubr.bf16.mxu0 %v1513_v3  ;;  %5836 = vmatprep.mubr.bf16.mxu1 %v1513_v3  ;;  %v7493_v3 = vld [vmem:[%s10505_s3 + $0x320] ss:$16 sps:$4 sm:$0xff]  }
 0x10e   :  { %5427 = vmatmul.mubr.bf16.vlgmr.msra.gmra.mrb[20].mxu0 %v1512_v4  ;;  %5837 = vmatmul.mubr.bf16.vlgmr.msra.gmra.mrb[20].mxu1 %v1512_v4  ;;  %v7496_v4 = vld [vmem:[%s10505_s3 + $0x328] ss:$16 sps:$4 sm:$0xff]  }
 0x10f   :  { %5436 = vmatpush1.bf16.msra.mxu0 %v7439_v60  ;;  %5846 = vmatpush1.bf16.msra.mxu1 %v7442_v61 }
 0x110   :  { %5437 = vmatprep.subr.bf16.mxu0 %v7447_v63  ;;  %5847 = vmatprep.subr.bf16.mxu1 %v7450_v1  ;;  %v7495_v63 = vld [vmem:[%s10505_s3 + $0x324] ss:$16 sps:$4 sm:$0xff]   ;;  %v7498_v1 = vld [vmem:[%s10505_s3 + $0x32c] ss:$16 sps:$4 sm:$0xff]  }
 0x111   :  { %5467 = vmatprep.mubr.bf16.mxu0 %v1515_v21  ;;  %5877 = vmatprep.mubr.bf16.mxu1 %v1515_v21  ;;  %v7514_v21 = vld [vmem:[%s10505_s3 + $0x388] ss:$16 sps:$4 sm:$0xff]  }
 0x113   :  { %5438 = vmatpush1.bf16.msra.mxu0 %v7445_v5  ;;  %5848 = vmatpush1.bf16.msra.mxu1 %v7448_v6  ;;  %v229_v5 = vrot.slane %v8635_v50, %v228_v42  ;;  %v233_v6 = vrot.slane %v8635_v50, %v232_v47  ;;  %v7499_v42 = vld [vmem:[%s10505_s3 + $0x340] ss:$16 sps:$4 sm:$0xff]  }
 0x114   :  { %5439 = vmatprep.subr.bf16.mxu0 %v7453_v8  ;;  %5849 = vmatprep.subr.bf16.mxu1 %v7456_v9  ;;  %v7504_v8 = vld [vmem:[%s10505_s3 + $0x34c] ss:$16 sps:$4 sm:$0xff]  }
 0x117   :  { %5440 = vmatpush1.bf16.msra.mxu0 %v7451_v14  ;;  %5850 = vmatpush1.bf16.msra.mxu1 %v7454_v15  ;;  %v7507_v14 = vld [vmem:[%s10505_s3 + $0x364] ss:$16 sps:$4 sm:$0xff]   ;;  %v7510_v15 = vld [vmem:[%s10505_s3 + $0x36c] ss:$16 sps:$4 sm:$0xff]  }
 0x118   :  { %5441 = vmatprep.subr.bf16.mxu0 %v7459_v19  ;;  %5851 = vmatprep.subr.bf16.mxu1 %v7462_v20  ;;  %v7516_v19 = vld [vmem:[%s10505_s3 + $0x38c] ss:$16 sps:$4 sm:$0xff]   ;;  %v7511_v20 = vld [vmem:[%s10505_s3 + $0x380] ss:$16 sps:$4 sm:$0xff]  }
 0x11b   :  { %5442 = vmatpush1.bf16.msra.mxu0 %v7457_v22  ;;  %5852 = vmatpush1.bf16.msra.mxu1 %v7460_v23  ;;  %v7519_v22 = vld [vmem:[%s10505_s3 + $0x3a4] ss:$16 sps:$4 sm:$0xff]   ;;  %v7522_v23 = vld [vmem:[%s10505_s3 + $0x3ac] ss:$16 sps:$4 sm:$0xff]  }
 0x11c   :  { %5443 = vmatprep.subr.bf16.mxu0 %v7465_v24  ;;  %5853 = vmatprep.subr.bf16.mxu1 %v7468_v25  ;;  %v7517_v24 = vld [vmem:[%s10505_s3 + $0x3a0] ss:$16 sps:$4 sm:$0xff]   ;;  %v7520_v25 = vld [vmem:[%s10505_s3 + $0x3a8] ss:$16 sps:$4 sm:$0xff]  }
 0x11f   :  { %5444 = vmatpush1.bf16.msra.mxu0 %v7463_v26  ;;  %5854 = vmatpush1.bf16.msra.mxu1 %v7466_v27  ;;  %v7525_v26 = vld [vmem:[%s10505_s3 + $0x3c4] ss:$16 sps:$4 sm:$0xff]   ;;  %v7528_v27 = vld [vmem:[%s10505_s3 + $0x3cc] ss:$16 sps:$4 sm:$0xff]  }
 0x120   :  { %5445 = vmatprep.subr.bf16.mxu0 %v7471_v0  ;;  %5855 = vmatprep.subr.bf16.mxu1 %v7474_v28  ;;  %v7523_v0 = vld [vmem:[%s10505_s3 + $0x3c0] ss:$16 sps:$4 sm:$0xff]   ;;  %v7526_v28 = vld [vmem:[%s10505_s3 + $0x3c8] ss:$16 sps:$4 sm:$0xff]  }
 0x123   :  { %5446 = vmatpush1.bf16.msra.mxu0 %v7469_v29  ;;  %5856 = vmatpush1.bf16.msra.mxu1 %v7472_v30  ;;  %v7531_v29 = vld [vmem:[%s10505_s3 + $0x3e4] ss:$16 sps:$4 sm:$0xff]   ;;  %v7534_v30 = vld [vmem:[%s10505_s3 + $0x3ec] ss:$16 sps:$4 sm:$0xff]  }
 0x124   :  { %5447 = vmatprep.subr.bf16.mxu0 %v7477_v32  ;;  %5857 = vmatprep.subr.bf16.mxu1 %v7480_v33  ;;  %v7529_v32 = vld [vmem:[%s10505_s3 + $0x3e0] ss:$16 sps:$4 sm:$0xff]   ;;  %v7532_v33 = vld [vmem:[%s10505_s3 + $0x3e8] ss:$16 sps:$4 sm:$0xff]  }
 0x127   :  { %5448 = vmatpush1.bf16.msra.mxu0 %v7475_v34  ;;  %5858 = vmatpush1.bf16.msra.mxu1 %v7478_v35  ;;  %v1218_v54 = vpop.f32.mrb[4].mxu0  ;;  %v7537_v35 = vld [vmem:[%s10505_s3 + $0x404] ss:$16 sps:$4 sm:$0xff]  }
 0x128   :  { %5449 = vmatprep.subr.bf16.mxu0 %v7483_v36  ;;  %5859 = vmatprep.subr.bf16.mxu1 %v7486_v37  ;;  %v8758_v56 = vadd.f32 %v1218_v54, %v221_v38  ;;  %v1220_v58 = vpop.f32.mrb[5].mxu0  ;;  %v7540_v36 = vld [vmem:[%s10505_s3 + $0x40c] ss:$16 sps:$4 sm:$0xff]   ;;  %v7535_v38 = vld [vmem:[%s10505_s3 + $0x400] ss:$16 sps:$4 sm:$0xff]  }
 0x129   :  { %v8766_v60 = vadd.f32 %v1220_v58, %v225_v53  ;;  %v1222_v61 = vpop.f32.mrb[6].mxu0  ;;  %v1259_v9 = vpop.f32.mrb[4].mxu1  ;;  %v7543_v54 = vld [vmem:[%s10505_s3 + $0x424] ss:$16 sps:$4 sm:$0xff]  }
 0x12a   :  { %v1223_v62 = vpop.f32.mrb[7].mxu0  ;;  %v8798_v47 = vadd.f32 %v1259_v9, %v229_v5  ;;  %v1261_v50 = vpop.f32.mrb[5].mxu1  ;;  %v7544_v61 = vld [vmem:[%s10505_s3 + $0x428] ss:$16 sps:$4 sm:$0xff]   ;;  %v7553_v9 = vld [vmem:[%s10505_s3 + $0x460] ss:$16 sps:$4 sm:$0xff]  }
 0x12b   :  { %5450 = vmatpush1.bf16.msra.mxu0 %v7481_v39  ;;  %5860 = vmatpush1.bf16.msra.mxu1 %v7484_v52  ;;  %v8800_v10 = vadd.f32 %v1261_v50, %v233_v6  ;;  %v1263_v11 = vpop.f32.mrb[6].mxu1  ;;  %v7538_v52 = vld [vmem:[%s10505_s3 + $0x408] ss:$16 sps:$4 sm:$0xff]   ;;  %v1517_v58 = vpack.c.bf16 %v8766_v60, %v8766_v60  ;;  %v7549_v60 = vld [vmem:[%s10505_s3 + $0x444] ss:$16 sps:$4 sm:$0xff]  }
 0x12c   :  { %5451 = vmatprep.subr.bf16.mxu0 %v7489_v41  ;;  %5861 = vmatprep.subr.bf16.mxu1 %v7492_v55  ;;  %v1264_v13 = vpop.f32.mrb[7].mxu1  ;;  %v7546_v41 = vld [vmem:[%s10505_s3 + $0x42c] ss:$16 sps:$4 sm:$0xff]   ;;  %v1514_v55 = vpack.c.bf16 %v8678_v12, %v8678_v12  ;;  %v249_v12 = vrot.slane %v8605_v43, %v8660_v2  ;;  %v7561_v50 = vld [vmem:[%s10505_s3 + $0x484] ss:$16 sps:$4 sm:$0xff]  }
 0x12d   :  { %v7559_v11 = vld [vmem:[%s10505_s3 + $0x480] ss:$16 sps:$4 sm:$0xff]   ;;  %v7564_v13 = vld [vmem:[%s10505_s3 + $0x48c] ss:$16 sps:$4 sm:$0xff]  }
 0x12f   :  { %5452 = vmatpush1.bf16.msra.mxu0 %v7487_v46  ;;  %5862 = vmatpush1.bf16.msra.mxu1 %v7490_v59  ;;  %v245_v46 = vrot.slane %v8605_v43, %v8645_v57  ;;  %v7541_v59 = vld [vmem:[%s10505_s3 + $0x420] ss:$16 sps:$4 sm:$0xff]  }
 0x130   :  { %5453 = vmatprep.subr.bf16.mxu0 %v7495_v63  ;;  %5863 = vmatprep.subr.bf16.mxu1 %v7498_v1  ;;  %v7552_v63 = vld [vmem:[%s10505_s3 + $0x44c] ss:$16 sps:$4 sm:$0xff]   ;;  %v7547_v43 = vld [vmem:[%s10505_s3 + $0x440] ss:$16 sps:$4 sm:$0xff]  }
 0x133   :  { %5454 = vmatpush1.bf16.msra.mxu0 %v7493_v3  ;;  %5864 = vmatpush1.bf16.msra.mxu1 %v7496_v4 }
 0x134   :  { %5455 = vmatprep.subr.bf16.mxu0 %v7501_v7  ;;  %5865 = vmatprep.subr.bf16.mxu1 %v7504_v8  ;;  %v7550_v7 = vld [vmem:[%s10505_s3 + $0x448] ss:$16 sps:$4 sm:$0xff]   ;;  %v7555_v8 = vld [vmem:[%s10505_s3 + $0x464] ss:$16 sps:$4 sm:$0xff]  }
 0x137   :  { %5456 = vmatpush1.bf16.msra.mxu0 %v7499_v42  ;;  %5866 = vmatpush1.bf16.msra.mxu1 %v7502_v40  ;;  %v7558_v42 = vld [vmem:[%s10505_s3 + $0x46c] ss:$16 sps:$4 sm:$0xff]   ;;  %v7556_v40 = vld [vmem:[%s10505_s3 + $0x468] ss:$16 sps:$4 sm:$0xff]  }
 0x138   :  { %5457 = vmatprep.subr.bf16.mxu0 %v7507_v14  ;;  %5867 = vmatprep.subr.bf16.mxu1 %v7510_v15  ;;  %v7562_v14 = vld [vmem:[%s10505_s3 + $0x488] ss:$16 sps:$4 sm:$0xff]   ;;  %v7567_v15 = vld [vmem:[%s10505_s3 + $0x4a4] ss:$16 sps:$4 sm:$0xff]  }
 0x13b   :  { %5458 = vmatpush1.bf16.msra.mxu0 %v7505_v16  ;;  %5868 = vmatpush1.bf16.msra.mxu1 %v7508_v17  ;;  %v7565_v16 = vld [vmem:[%s10505_s3 + $0x4a0] ss:$16 sps:$4 sm:$0xff]   ;;  %v7570_v17 = vld [vmem:[%s10505_s3 + $0x4ac] ss:$16 sps:$4 sm:$0xff]  }
 0x13c   :  { %5459 = vmatprep.subr.bf16.mxu0 %v7513_v18  ;;  %5869 = vmatprep.subr.bf16.mxu1 %v7516_v19  ;;  %v7568_v18 = vld [vmem:[%s10505_s3 + $0x4a8] ss:$16 sps:$4 sm:$0xff]   ;;  %v7573_v19 = vld [vmem:[%s10505_s3 + $0x4c4] ss:$16 sps:$4 sm:$0xff]  }
 0x13f   :  { %5460 = vmatpush1.bf16.msra.mxu0 %v7511_v20  ;;  %5870 = vmatpush1.bf16.msra.mxu1 %v7514_v21  ;;  %v7571_v20 = vld [vmem:[%s10505_s3 + $0x4c0] ss:$16 sps:$4 sm:$0xff]   ;;  %v7576_v21 = vld [vmem:[%s10505_s3 + $0x4cc] ss:$16 sps:$4 sm:$0xff]  }
 0x140   :  { %5461 = vmatprep.subr.bf16.mxu0 %v7519_v22  ;;  %5871 = vmatprep.subr.bf16.mxu1 %v7522_v23  ;;  %v7574_v22 = vld [vmem:[%s10505_s3 + $0x4c8] ss:$16 sps:$4 sm:$0xff]   ;;  %v7579_v23 = vld [vmem:[%s10505_s3 + $0x4e4] ss:$16 sps:$4 sm:$0xff]  }
 0x143   :  { %5462 = vmatpush1.bf16.msra.mxu0 %v7517_v24  ;;  %5872 = vmatpush1.bf16.msra.mxu1 %v7520_v25  ;;  %v7577_v24 = vld [vmem:[%s10505_s3 + $0x4e0] ss:$16 sps:$4 sm:$0xff]   ;;  %v7582_v25 = vld [vmem:[%s10505_s3 + $0x4ec] ss:$16 sps:$4 sm:$0xff]  }
 0x144   :  { %5463 = vmatprep.subr.bf16.mxu0 %v7525_v26  ;;  %5873 = vmatprep.subr.bf16.mxu1 %v7528_v27  ;;  %v7580_v27 = vld [vmem:[%s10505_s3 + $0x4e8] ss:$16 sps:$4 sm:$0xff]  }
 0x147   :  { %5464 = vmatpush1.bf16.msra.mxu0 %v7523_v0  ;;  %5874 = vmatpush1.bf16.msra.mxu1 %v7526_v28  ;;  %v8862_v34 = vpop.f32.mrb[8].mxu0  ;;  %v7585_v0 = vld [vmem:[%s10505_s3 + $0x504] ss:$16 sps:$4 sm:$0xff]  }
 0x148   :  { %5465 = vmatprep.subr.bf16.mxu0 %v7531_v29  ;;  %5875 = vmatprep.subr.bf16.mxu1 %v7534_v30  ;;  %v8870_v37 = vpop.f32.mrb[9].mxu0  ;;  %v7583_v30 = vld [vmem:[%s10505_s3 + $0x500] ss:$16 sps:$4 sm:$0xff]  }
 0x149   :  { %v1304_v39 = vpop.f32.mrb[10].mxu0  ;;  %v1341_v62 = vpop.f32.mrb[8].mxu1 }
 0x14a   :  { %v1305_v53 = vpop.f32.mrb[11].mxu0  ;;  %v8904_v1 = vadd.f32 %v1341_v62, %v245_v46  ;;  %v1343_v3 = vpop.f32.mrb[9].mxu1  ;;  %v7589_v39 = vld [vmem:[%s10505_s3 + $0x520] ss:$16 sps:$4 sm:$0xff]   ;;  %v7603_v62 = vld [vmem:[%s10505_s3 + $0x564] ss:$16 sps:$4 sm:$0xff]  }
 0x14b   :  { %5466 = vmatpush1.bf16.msra.mxu0 %v7529_v32  ;;  %5876 = vmatpush1.bf16.msra.mxu1 %v7532_v33  ;;  %v8909_v4 = vadd.f32 %v1343_v3, %v249_v12  ;;  %v1345_v5 = vpop.f32.mrb[10].mxu1  ;;  %v7588_v32 = vld [vmem:[%s10505_s3 + $0x50c] ss:$16 sps:$4 sm:$0xff]   ;;  %v7597_v53 = vld [vmem:[%s10505_s3 + $0x544] ss:$16 sps:$4 sm:$0xff]  }
 0x14c   :  { %5476 = vmatprep.subr.bf16.mxu0 %v7537_v35  ;;  %5886 = vmatprep.subr.bf16.mxu1 %v7540_v36  ;;  %v1346_v6 = vpop.f32.mrb[11].mxu1  ;;  %v7609_v3 = vld [vmem:[%s10505_s3 + $0x584] ss:$16 sps:$4 sm:$0xff]   ;;  %v7612_v5 = vld [vmem:[%s10505_s3 + $0x58c] ss:$16 sps:$4 sm:$0xff]  }
 0x14d   :  { %v7610_v6 = vld [vmem:[%s10505_s3 + $0x588] ss:$16 sps:$4 sm:$0xff]  }
 0x14e   :  { %5468 = vmatmul.mubr.bf16.vlgmr.msra.gmra.mrb[20].mxu0 %v1514_v55  ;;  %5878 = vmatmul.mubr.bf16.vlgmr.msra.gmra.mrb[20].mxu1 %v1514_v55  ;;  %v7600_v55 = vld [vmem:[%s10505_s3 + $0x54c] ss:$16 sps:$4 sm:$0xff]  }
 0x14f   :  { %5477 = vmatpush1.bf16.msra.mxu0 %v7535_v38  ;;  %5508 = vmatprep.mubr.bf16.mxu0 %v1517_v58  ;;  %v7591_v38 = vld [vmem:[%s10505_s3 + $0x524] ss:$16 sps:$4 sm:$0xff]  }
 0x150   :  { %5887 = vmatpush1.bf16.msra.mxu1 %v7538_v52  ;;  %5918 = vmatprep.mubr.bf16.mxu1 %v1517_v58  ;;  %v7592_v52 = vld [vmem:[%s10505_s3 + $0x528] ss:$16 sps:$4 sm:$0xff]  }
 0x151   :  { %5478 = vmatprep.subr.bf16.mxu0 %v7543_v54  ;;  %5888 = vmatprep.subr.bf16.mxu1 %v7546_v41  ;;  %v7595_v41 = vld [vmem:[%s10505_s3 + $0x540] ss:$16 sps:$4 sm:$0xff]  }
 0x153   :  { %5479 = vmatpush1.bf16.msra.mxu0 %v7541_v59 }
 0x154   :  { %5889 = vmatpush1.bf16.msra.mxu1 %v7544_v61  ;;  %5480 = vmatprep.subr.bf16.mxu0 %v7549_v60  ;;  %v7598_v60 = vld [vmem:[%s10505_s3 + $0x548] ss:$16 sps:$4 sm:$0xff]  }
 0x155   :  { %5890 = vmatprep.subr.bf16.mxu1 %v7552_v63  ;;  %v7604_v63 = vld [vmem:[%s10505_s3 + $0x568] ss:$16 sps:$4 sm:$0xff]  }
 0x157   :  { %5481 = vmatpush1.bf16.msra.mxu0 %v7547_v43  ;;  %v7607_v43 = vld [vmem:[%s10505_s3 + $0x580] ss:$16 sps:$4 sm:$0xff]  }
 0x158   :  { %5891 = vmatpush1.bf16.msra.mxu1 %v7550_v7  ;;  %5482 = vmatprep.subr.bf16.mxu0 %v7555_v8  ;;  %v7615_v7 = vld [vmem:[%s10505_s3 + $0x5a4] ss:$16 sps:$4 sm:$0xff]   ;;  %v7613_v8 = vld [vmem:[%s10505_s3 + $0x5a0] ss:$16 sps:$4 sm:$0xff]  }
 0x159   :  { %5892 = vmatprep.subr.bf16.mxu1 %v7558_v42  ;;  %v7616_v42 = vld [vmem:[%s10505_s3 + $0x5a8] ss:$16 sps:$4 sm:$0xff]  }
 0x15b   :  { %5483 = vmatpush1.bf16.msra.mxu0 %v7553_v9  ;;  %v7618_v9 = vld [vmem:[%s10505_s3 + $0x5ac] ss:$16 sps:$4 sm:$0xff]  }
 0x15c   :  { %5893 = vmatpush1.bf16.msra.mxu1 %v7556_v40  ;;  %5484 = vmatprep.subr.bf16.mxu0 %v7561_v50  ;;  %v7621_v40 = vld [vmem:[%s10505_s3 + $0x5c4] ss:$16 sps:$4 sm:$0xff]   ;;  %v7619_v50 = vld [vmem:[%s10505_s3 + $0x5c0] ss:$16 sps:$4 sm:$0xff]  }
 0x15d   :  { %5894 = vmatprep.subr.bf16.mxu1 %v7564_v13  ;;  %v7622_v13 = vld [vmem:[%s10505_s3 + $0x5c8] ss:$16 sps:$4 sm:$0xff]  }
 0x15f   :  { %5485 = vmatpush1.bf16.msra.mxu0 %v7559_v11  ;;  %v7624_v11 = vld [vmem:[%s10505_s3 + $0x5cc] ss:$16 sps:$4 sm:$0xff]  }
 0x160   :  { %5895 = vmatpush1.bf16.msra.mxu1 %v7562_v14  ;;  %5486 = vmatprep.subr.bf16.mxu0 %v7567_v15  ;;  %v7627_v14 = vld [vmem:[%s10505_s3 + $0x5e4] ss:$16 sps:$4 sm:$0xff]   ;;  %v7625_v15 = vld [vmem:[%s10505_s3 + $0x5e0] ss:$16 sps:$4 sm:$0xff]  }
 0x161   :  { %5896 = vmatprep.subr.bf16.mxu1 %v7570_v17  ;;  %v7628_v17 = vld [vmem:[%s10505_s3 + $0x5e8] ss:$16 sps:$4 sm:$0xff]  }
 0x163   :  { %5487 = vmatpush1.bf16.msra.mxu0 %v7565_v16  ;;  %v7630_v16 = vld [vmem:[%s10505_s3 + $0x5ec] ss:$16 sps:$4 sm:$0xff]  }
 0x164   :  { %5897 = vmatpush1.bf16.msra.mxu1 %v7568_v18  ;;  %5488 = vmatprep.subr.bf16.mxu0 %v7573_v19  ;;  %v7633_v19 = vld [vmem:[%s10505_s3 + $0x604] ss:$16 sps:$4 sm:$0xff]  }
 0x165   :  { %5898 = vmatprep.subr.bf16.mxu1 %v7576_v21 }
 0x167   :  { %5489 = vmatpush1.bf16.msra.mxu0 %v7571_v20  ;;  %v1382_v26 = vpop.f32.mrb[12].mxu0  ;;  %v7636_v20 = vld [vmem:[%s10505_s3 + $0x60c] ss:$16 sps:$4 sm:$0xff]  }
 0x168   :  { %5899 = vmatpush1.bf16.msra.mxu1 %v7574_v22  ;;  %5490 = vmatprep.subr.bf16.mxu0 %v7579_v23  ;;  %v8978_v28 = vadd.f32 %v1382_v26, %v8610_v44  ;;  %v1384_v29 = vpop.f32.mrb[13].mxu0  ;;  %v7586_v44 = vld [vmem:[%s10505_s3 + $0x508] ss:$16 sps:$4 sm:$0xff]   ;;  %v7631_v22 = vld [vmem:[%s10505_s3 + $0x600] ss:$16 sps:$4 sm:$0xff]  }
 0x169   :  { %5900 = vmatprep.subr.bf16.mxu1 %v7582_v25  ;;  %v8987_v33 = vadd.f32 %v1384_v29, %v8625_v49  ;;  %v1386_v35 = vpop.f32.mrb[14].mxu0  ;;  %v7594_v49 = vld [vmem:[%s10505_s3 + $0x52c] ss:$16 sps:$4 sm:$0xff]   ;;  %v1423_v54 = vpop.f32.mrb[12].mxu1  ;;  %v198_v23 = vld [vmem:[%s10504_s2 + $0x10] sm:$0xf] }
 0x16a   :  { %v1387_v36 = vpop.f32.mrb[15].mxu0  ;;  %v9014_v58 = vadd.f32 %v1423_v54, %v8615_v45  ;;  %v1425_v46 = vpop.f32.mrb[13].mxu1  ;;  %v7601_v45 = vld [vmem:[%s10505_s3 + $0x560] ss:$16 sps:$4 sm:$0xff]   ;;  %v7634_v25 = vld [vmem:[%s10505_s3 + $0x608] ss:$16 sps:$4 sm:$0xff]   ;;  %v277_v29 = vrot.slane %v198_v23, %v8645_v57 }
 0x16b   :  { %5491 = vmatpush1.bf16.msra.mxu0 %v7577_v24  ;;  %v9017_v59 = vadd.f32 %v1425_v46, %v8630_v31  ;;  %v1427_v61 = vpop.f32.mrb[14].mxu1  ;;  %v7606_v31 = vld [vmem:[%s10505_s3 + $0x56c] ss:$16 sps:$4 sm:$0xff]   ;;  %v7640_v35 = vld [vmem:[%s10505_s3 + $0x628] ss:$16 sps:$4 sm:$0xff]   ;;  %v281_v36 = vrot.slane %v198_v23, %v8660_v2 }
 0x16c   :  { %5901 = vmatpush1.bf16.msra.mxu1 %v7580_v27  ;;  %5492 = vmatprep.subr.bf16.mxu0 %v7585_v0  ;;  %v1428_v12 = vpop.f32.mrb[15].mxu1  ;;  %v7639_v27 = vld [vmem:[%s10505_s3 + $0x624] ss:$16 sps:$4 sm:$0xff]   ;;  %v1516_v0 = vpack.c.bf16 %v8758_v56, %v8758_v56  ;;  %v7642_v56 = vld [vmem:[%s10505_s3 + $0x62c] ss:$16 sps:$4 sm:$0xff]  }
 0x16d   :  { %5902 = vmatprep.subr.bf16.mxu1 %v7588_v32  ;;  %v7637_v32 = vld [vmem:[%s10505_s3 + $0x620] ss:$16 sps:$4 sm:$0xff]   ;;  %v7651_v46 = vld [vmem:[%s10505_s3 + $0x664] ss:$16 sps:$4 sm:$0xff]   ;;  %v7654_v12 = vld [vmem:[%s10505_s3 + $0x66c] ss:$16 sps:$4 sm:$0xff]  }
 0x16e   :  { %v7649_v61 = vld [vmem:[%s10505_s3 + $0x660] ss:$16 sps:$4 sm:$0xff]   ;;  %v7688_v23 = vld [vmem:[%s10505_s3 + $0x728] ss:$16 sps:$4 sm:$0xff]  }
 0x16f   :  { %5493 = vmatpush1.bf16.msra.mxu0 %v7583_v30  ;;  %v1519_v30 = vpack.c.bf16 %v8800_v10, %v8800_v10  ;;  %v7645_v10 = vld [vmem:[%s10505_s3 + $0x644] ss:$16 sps:$4 sm:$0xff]  }
 0x170   :  { %5903 = vmatpush1.bf16.msra.mxu1 %v7586_v44  ;;  %5494 = vmatprep.subr.bf16.mxu0 %v7591_v38  ;;  %v7648_v38 = vld [vmem:[%s10505_s3 + $0x64c] ss:$16 sps:$4 sm:$0xff]  }
 0x171   :  { %5904 = vmatprep.subr.bf16.mxu1 %v7594_v49 }
 0x173   :  { %5495 = vmatpush1.bf16.msra.mxu0 %v7589_v39 }
 0x174   :  { %5905 = vmatpush1.bf16.msra.mxu1 %v7592_v52  ;;  %5496 = vmatprep.subr.bf16.mxu0 %v7597_v53  ;;  %v7643_v52 = vld [vmem:[%s10505_s3 + $0x640] ss:$16 sps:$4 sm:$0xff]  }
 0x175   :  { %5906 = vmatprep.subr.bf16.mxu1 %v7600_v55  ;;  %v7646_v55 = vld [vmem:[%s10505_s3 + $0x648] ss:$16 sps:$4 sm:$0xff]  }
 0x177   :  { %5497 = vmatpush1.bf16.msra.mxu0 %v7595_v41 }
 0x178   :  { %5907 = vmatpush1.bf16.msra.mxu1 %v7598_v60  ;;  %5498 = vmatprep.subr.bf16.mxu0 %v7603_v62  ;;  %v7652_v60 = vld [vmem:[%s10505_s3 + $0x668] ss:$16 sps:$4 sm:$0xff]   ;;  %v7657_v62 = vld [vmem:[%s10505_s3 + $0x684] ss:$16 sps:$4 sm:$0xff]  }
 0x179   :  { %5908 = vmatprep.subr.bf16.mxu1 %v7606_v31  ;;  %v7660_v31 = vld [vmem:[%s10505_s3 + $0x68c] ss:$16 sps:$4 sm:$0xff]  }
 0x17b   :  { %5499 = vmatpush1.bf16.msra.mxu0 %v7601_v45  ;;  %v7655_v45 = vld [vmem:[%s10505_s3 + $0x680] ss:$16 sps:$4 sm:$0xff]  }
 0x17c   :  { %5909 = vmatpush1.bf16.msra.mxu1 %v7604_v63  ;;  %5500 = vmatprep.subr.bf16.mxu0 %v7609_v3  ;;  %v7658_v63 = vld [vmem:[%s10505_s3 + $0x688] ss:$16 sps:$4 sm:$0xff]   ;;  %v7663_v3 = vld [vmem:[%s10505_s3 + $0x6a4] ss:$16 sps:$4 sm:$0xff]  }
 0x17d   :  { %5910 = vmatprep.subr.bf16.mxu1 %v7612_v5  ;;  %v7666_v5 = vld [vmem:[%s10505_s3 + $0x6ac] ss:$16 sps:$4 sm:$0xff]  }
 0x17f   :  { %5501 = vmatpush1.bf16.msra.mxu0 %v7607_v43  ;;  %v7661_v43 = vld [vmem:[%s10505_s3 + $0x6a0] ss:$16 sps:$4 sm:$0xff]  }
 0x180   :  { %5911 = vmatpush1.bf16.msra.mxu1 %v7610_v6  ;;  %5502 = vmatprep.subr.bf16.mxu0 %v7615_v7  ;;  %v7664_v6 = vld [vmem:[%s10505_s3 + $0x6a8] ss:$16 sps:$4 sm:$0xff]   ;;  %v7669_v7 = vld [vmem:[%s10505_s3 + $0x6c4] ss:$16 sps:$4 sm:$0xff]  }
 0x181   :  { %5912 = vmatprep.subr.bf16.mxu1 %v7618_v9  ;;  %v7672_v9 = vld [vmem:[%s10505_s3 + $0x6cc] ss:$16 sps:$4 sm:$0xff]  }
 0x183   :  { %5503 = vmatpush1.bf16.msra.mxu0 %v7613_v8  ;;  %v7667_v8 = vld [vmem:[%s10505_s3 + $0x6c0] ss:$16 sps:$4 sm:$0xff]  }
 0x184   :  { %5913 = vmatpush1.bf16.msra.mxu1 %v7616_v42  ;;  %5504 = vmatprep.subr.bf16.mxu0 %v7621_v40  ;;  %v7670_v42 = vld [vmem:[%s10505_s3 + $0x6c8] ss:$16 sps:$4 sm:$0xff]   ;;  %v7675_v40 = vld [vmem:[%s10505_s3 + $0x6e4] ss:$16 sps:$4 sm:$0xff]  }
 0x185   :  { %5914 = vmatprep.subr.bf16.mxu1 %v7624_v11  ;;  %v7678_v11 = vld [vmem:[%s10505_s3 + $0x6ec] ss:$16 sps:$4 sm:$0xff]  }
 0x187   :  { %5505 = vmatpush1.bf16.msra.mxu0 %v7619_v50  ;;  %v9082_v18 = vpop.f32.mrb[16].mxu0  ;;  %v7673_v50 = vld [vmem:[%s10505_s3 + $0x6e0] ss:$16 sps:$4 sm:$0xff]  }
 0x188   :  { %5915 = vmatpush1.bf16.msra.mxu1 %v7622_v13  ;;  %5506 = vmatprep.subr.bf16.mxu0 %v7627_v14  ;;  %v9090_v21 = vpop.f32.mrb[17].mxu0  ;;  %v7676_v13 = vld [vmem:[%s10505_s3 + $0x6e8] ss:$16 sps:$4 sm:$0xff]   ;;  %v7681_v14 = vld [vmem:[%s10505_s3 + $0x704] ss:$16 sps:$4 sm:$0xff]  }
 0x189   :  { %5916 = vmatprep.subr.bf16.mxu1 %v7630_v16  ;;  %v1468_v24 = vpop.f32.mrb[18].mxu0  ;;  %v1505_v44 = vpop.f32.mrb[16].mxu1  ;;  %v7684_v16 = vld [vmem:[%s10505_s3 + $0x70c] ss:$16 sps:$4 sm:$0xff]  }
 0x18a   :  { %v1469_v26 = vpop.f32.mrb[19].mxu0  ;;  %v9125_v39 = vadd.f32 %v1505_v44, %v277_v29  ;;  %v1507_v49 = vpop.f32.mrb[17].mxu1  ;;  %v7693_v24 = vld [vmem:[%s10505_s3 + $0x744] ss:$16 sps:$4 sm:$0xff]   ;;  %v7697_v29 = vld [vmem:[%s10505_s3 + $0x760] ss:$16 sps:$4 sm:$0xff]  }
 0x18b   :  { %5507 = vmatpush1.bf16.msra.mxu0 %v7625_v15  ;;  %v9130_v53 = vadd.f32 %v1507_v49, %v281_v36  ;;  %v1509_v54 = vpop.f32.mrb[18].mxu1  ;;  %v7679_v15 = vld [vmem:[%s10505_s3 + $0x700] ss:$16 sps:$4 sm:$0xff]   ;;  %v7696_v26 = vld [vmem:[%s10505_s3 + $0x74c] ss:$16 sps:$4 sm:$0xff]  }
 0x18c   :  { %5917 = vmatpush1.bf16.msra.mxu1 %v7628_v17  ;;  %5517 = vmatprep.subr.bf16.mxu0 %v7633_v19  ;;  %v1510_v41 = vpop.f32.mrb[19].mxu1  ;;  %v7682_v17 = vld [vmem:[%s10505_s3 + $0x708] ss:$16 sps:$4 sm:$0xff]   ;;  %v7687_v19 = vld [vmem:[%s10505_s3 + $0x724] ss:$16 sps:$4 sm:$0xff]  }
 0x18d   :  { %5927 = vmatprep.subr.bf16.mxu1 %v7636_v20  ;;  %v7685_v20 = vld [vmem:[%s10505_s3 + $0x720] ss:$16 sps:$4 sm:$0xff]   ;;  %v7708_v36 = vld [vmem:[%s10505_s3 + $0x78c] ss:$16 sps:$4 sm:$0xff]   ;;  %v7711_v44 = vld [vmem:[%s10505_s3 + $0x7a4] ss:$16 sps:$4 sm:$0xff]  }
 0x18e   :  { %5509 = vmatmul.mubr.bf16.vlgmr.msra.gmra.mrb[20].mxu0 %v1516_v0  ;;  %v7714_v49 = vld [vmem:[%s10505_s3 + $0x7ac] ss:$16 sps:$4 sm:$0xff]   ;;  %v7717_v54 = vld [vmem:[%s10505_s3 + $0x7c4] ss:$16 sps:$4 sm:$0xff]   ;;  %v7715_v41 = vld [vmem:[%s10505_s3 + $0x7c0] ss:$16 sps:$4 sm:$0xff]  }
 0x18f   :  { %5919 = vmatmul.mubr.bf16.vlgmr.msra.gmra.mrb[20].mxu1 %v1516_v0  ;;  %5518 = vmatpush1.bf16.msra.mxu0 %v7631_v22  ;;  %v7690_v22 = vld [vmem:[%s10505_s3 + $0x72c] ss:$16 sps:$4 sm:$0xff]   ;;  %v7699_v0 = vld [vmem:[%s10505_s3 + $0x764] ss:$16 sps:$4 sm:$0xff]  }
 0x190   :  { %5549 = vmatprep.mubr.bf16.mxu0 %v1519_v30  ;;  %5928 = vmatpush1.bf16.msra.mxu1 %v7634_v25  ;;  %v7691_v25 = vld [vmem:[%s10505_s3 + $0x740] ss:$16 sps:$4 sm:$0xff]  }
 0x191   :  { %5959 = vmatprep.mubr.bf16.mxu1 %v1519_v30  ;;  %5519 = vmatprep.subr.bf16.mxu0 %v7639_v27  ;;  %v7694_v27 = vld [vmem:[%s10505_s3 + $0x748] ss:$16 sps:$4 sm:$0xff]   ;;  %v7702_v30 = vld [vmem:[%s10505_s3 + $0x76c] ss:$16 sps:$4 sm:$0xff]  }
 0x192   :  { %5929 = vmatprep.subr.bf16.mxu1 %v7642_v56  ;;  %v7703_v56 = vld [vmem:[%s10505_s3 + $0x780] ss:$16 sps:$4 sm:$0xff]  }
 0x193   :  { %5520 = vmatpush1.bf16.msra.mxu0 %v7637_v32  ;;  %v7700_v32 = vld [vmem:[%s10505_s3 + $0x768] ss:$16 sps:$4 sm:$0xff]  }
 0x194   :  { %5930 = vmatpush1.bf16.msra.mxu1 %v7640_v35  ;;  %5521 = vmatprep.subr.bf16.mxu0 %v7645_v10  ;;  %v7705_v35 = vld [vmem:[%s10505_s3 + $0x784] ss:$16 sps:$4 sm:$0xff]   ;;  %v7706_v10 = vld [vmem:[%s10505_s3 + $0x788] ss:$16 sps:$4 sm:$0xff]  }
 0x195   :  { %5931 = vmatprep.subr.bf16.mxu1 %v7648_v38  ;;  %v7709_v38 = vld [vmem:[%s10505_s3 + $0x7a0] ss:$16 sps:$4 sm:$0xff]  }
 0x197   :  { %5522 = vmatpush1.bf16.msra.mxu0 %v7643_v52  ;;  %v7712_v52 = vld [vmem:[%s10505_s3 + $0x7a8] ss:$16 sps:$4 sm:$0xff]  }
 0x198   :  { %5932 = vmatpush1.bf16.msra.mxu1 %v7646_v55  ;;  %5523 = vmatprep.subr.bf16.mxu0 %v7651_v46  ;;  %v7720_v55 = vld [vmem:[%s10505_s3 + $0x7cc] ss:$16 sps:$4 sm:$0xff]   ;;  %v7718_v46 = vld [vmem:[%s10505_s3 + $0x7c8] ss:$16 sps:$4 sm:$0xff]  }
 0x199   :  { %5933 = vmatprep.subr.bf16.mxu1 %v7654_v12  ;;  %v7721_v12 = vld [vmem:[%s10505_s3 + $0x7e0] ss:$16 sps:$4 sm:$0xff]  }
 0x19b   :  { %5524 = vmatpush1.bf16.msra.mxu0 %v7649_v61  ;;  %v7723_v61 = vld [vmem:[%s10505_s3 + $0x7e4] ss:$16 sps:$4 sm:$0xff]  }
 0x19c   :  { %5934 = vmatpush1.bf16.msra.mxu1 %v7652_v60  ;;  %5525 = vmatprep.subr.bf16.mxu0 %v7657_v62  ;;  %v7726_v60 = vld [vmem:[%s10505_s3 + $0x7ec] ss:$16 sps:$4 sm:$0xff]  }
 0x19d   :  { %5935 = vmatprep.subr.bf16.mxu1 %v7660_v31  ;;  %v9291_v62 = vld [vmem:[%s10504_s2 + $0x8] sm:$0xff] }
 0x19e   :  { %v7724_v31 = vld [vmem:[%s10505_s3 + $0x7e8] ss:$16 sps:$4 sm:$0xff]  }
 0x19f   :  { %5526 = vmatpush1.bf16.msra.mxu0 %v7655_v45  ;;  %v241_v45 = vrot.slane %v9291_v62, %v8638_v51 }
 0x1a0   :  { %5936 = vmatpush1.bf16.msra.mxu1 %v7658_v63  ;;  %5527 = vmatprep.subr.bf16.mxu0 %v7663_v3  ;;  %v7729_v63 = vld [vmem:[%s10505_s3 + $0x804] ss:$16 sps:$4 sm:$0xff]   ;;  %v7727_v3 = vld [vmem:[%s10505_s3 + $0x800] ss:$16 sps:$4 sm:$0xff]  }
 0x1a1   :  { %5937 = vmatprep.subr.bf16.mxu1 %v7666_v5  ;;  %v1303_v5 = vadd.f32 %v8870_v37, %v241_v45  ;;  %v7733_v37 = vld [vmem:[%s10505_s3 + $0x820] ss:$16 sps:$4 sm:$0xff]   ;;  %v7790_v45 = vld [vmem:[%s10505_s3 + $0x948] ss:$16 sps:$4 sm:$0xff]  }
 0x1a3   :  { %5528 = vmatpush1.bf16.msra.mxu0 %v7661_v43  ;;  %v7732_v43 = vld [vmem:[%s10505_s3 + $0x80c] ss:$16 sps:$4 sm:$0xff]  }
 0x1a4   :  { %5938 = vmatpush1.bf16.msra.mxu1 %v7664_v6  ;;  %5529 = vmatprep.subr.bf16.mxu0 %v7669_v7  ;;  %v7730_v6 = vld [vmem:[%s10505_s3 + $0x808] ss:$16 sps:$4 sm:$0xff]   ;;  %v7735_v7 = vld [vmem:[%s10505_s3 + $0x824] ss:$16 sps:$4 sm:$0xff]  }
 0x1a5   :  { %5939 = vmatprep.subr.bf16.mxu1 %v7672_v9  ;;  %v1521_v9 = vpack.c.bf16 %v1303_v5, %v1303_v5  ;;  %v7801_v5 = vld [vmem:[%s10505_s3 + $0x984] ss:$16 sps:$4 sm:$0xff]  }
 0x1a7   :  { %5530 = vmatpush1.bf16.msra.mxu0 %v7667_v8  ;;  %v1518_v8 = vpack.c.bf16 %v8798_v47, %v8798_v47  ;;  %v7741_v47 = vld [vmem:[%s10505_s3 + $0x844] ss:$16 sps:$4 sm:$0xff]  }
 0x1a8   :  { %5940 = vmatpush1.bf16.msra.mxu1 %v7670_v42  ;;  %5531 = vmatprep.subr.bf16.mxu0 %v7675_v40  ;;  %v7736_v42 = vld [vmem:[%s10505_s3 + $0x828] ss:$16 sps:$4 sm:$0xff]   ;;  %v7738_v40 = vld [vmem:[%s10505_s3 + $0x82c] ss:$16 sps:$4 sm:$0xff]  }
 0x1a9   :  { %5941 = vmatprep.subr.bf16.mxu1 %v7678_v11  ;;  %v7739_v11 = vld [vmem:[%s10505_s3 + $0x840] ss:$16 sps:$4 sm:$0xff]  }
 0x1ab   :  { %5532 = vmatpush1.bf16.msra.mxu0 %v7673_v50  ;;  %v7744_v50 = vld [vmem:[%s10505_s3 + $0x84c] ss:$16 sps:$4 sm:$0xff]  }
 0x1ac   :  { %5942 = vmatpush1.bf16.msra.mxu1 %v7676_v13  ;;  %5533 = vmatprep.subr.bf16.mxu0 %v7681_v14  ;;  %v7742_v13 = vld [vmem:[%s10505_s3 + $0x848] ss:$16 sps:$4 sm:$0xff]   ;;  %v7747_v14 = vld [vmem:[%s10505_s3 + $0x864] ss:$16 sps:$4 sm:$0xff]  }
 0x1ad   :  { %5943 = vmatprep.subr.bf16.mxu1 %v7684_v16  ;;  %v7745_v16 = vld [vmem:[%s10505_s3 + $0x860] ss:$16 sps:$4 sm:$0xff]  }
 0x1af   :  { %5534 = vmatpush1.bf16.msra.mxu0 %v7679_v15  ;;  %v7750_v15 = vld [vmem:[%s10505_s3 + $0x86c] ss:$16 sps:$4 sm:$0xff]  }
 0x1b0   :  { %5944 = vmatpush1.bf16.msra.mxu1 %v7682_v17  ;;  %5535 = vmatprep.subr.bf16.mxu0 %v7687_v19  ;;  %v7748_v17 = vld [vmem:[%s10505_s3 + $0x868] ss:$16 sps:$4 sm:$0xff]   ;;  %v7753_v19 = vld [vmem:[%s10505_s3 + $0x884] ss:$16 sps:$4 sm:$0xff]  }
 0x1b1   :  { %5945 = vmatprep.subr.bf16.mxu1 %v7690_v22  ;;  %v7751_v22 = vld [vmem:[%s10505_s3 + $0x880] ss:$16 sps:$4 sm:$0xff]  }
 0x1b3   :  { %5536 = vmatpush1.bf16.msra.mxu0 %v7685_v20  ;;  %v7756_v20 = vld [vmem:[%s10505_s3 + $0x88c] ss:$16 sps:$4 sm:$0xff]  }
 0x1b4   :  { %5946 = vmatpush1.bf16.msra.mxu1 %v7688_v23  ;;  %5537 = vmatprep.subr.bf16.mxu0 %v7693_v24  ;;  %v7754_v23 = vld [vmem:[%s10505_s3 + $0x888] ss:$16 sps:$4 sm:$0xff]   ;;  %v7759_v24 = vld [vmem:[%s10505_s3 + $0x8a4] ss:$16 sps:$4 sm:$0xff]  }
 0x1b5   :  { %5947 = vmatprep.subr.bf16.mxu1 %v7696_v26  ;;  %v7757_v26 = vld [vmem:[%s10505_s3 + $0x8a0] ss:$16 sps:$4 sm:$0xff]  }
 0x1b7   :  { %5538 = vmatpush1.bf16.msra.mxu0 %v7691_v25  ;;  %v7762_v25 = vld [vmem:[%s10505_s3 + $0x8ac] ss:$16 sps:$4 sm:$0xff]  }
 0x1b8   :  { %5948 = vmatpush1.bf16.msra.mxu1 %v7694_v27  ;;  %5539 = vmatprep.subr.bf16.mxu0 %v7699_v0  ;;  %v7760_v27 = vld [vmem:[%s10505_s3 + $0x8a8] ss:$16 sps:$4 sm:$0xff]   ;;  %v7765_v0 = vld [vmem:[%s10505_s3 + $0x8c4] ss:$16 sps:$4 sm:$0xff]  }
 0x1b9   :  { %5949 = vmatprep.subr.bf16.mxu1 %v7702_v30  ;;  %v7763_v30 = vld [vmem:[%s10505_s3 + $0x8c0] ss:$16 sps:$4 sm:$0xff]  }
 0x1bb   :  { %5540 = vmatpush1.bf16.msra.mxu0 %v7697_v29  ;;  %v7768_v29 = vld [vmem:[%s10505_s3 + $0x8cc] ss:$16 sps:$4 sm:$0xff]  }
 0x1bc   :  { %5950 = vmatpush1.bf16.msra.mxu1 %v7700_v32  ;;  %5541 = vmatprep.subr.bf16.mxu0 %v7705_v35  ;;  %v7766_v32 = vld [vmem:[%s10505_s3 + $0x8c8] ss:$16 sps:$4 sm:$0xff]   ;;  %v7771_v35 = vld [vmem:[%s10505_s3 + $0x8e4] ss:$16 sps:$4 sm:$0xff]  }
 0x1bd   :  { %5951 = vmatprep.subr.bf16.mxu1 %v7708_v36  ;;  %v7769_v36 = vld [vmem:[%s10505_s3 + $0x8e0] ss:$16 sps:$4 sm:$0xff]  }
 0x1bf   :  { %5542 = vmatpush1.bf16.msra.mxu0 %v7703_v56  ;;  %v7774_v56 = vld [vmem:[%s10505_s3 + $0x8ec] ss:$16 sps:$4 sm:$0xff]  }
 0x1c0   :  { %5952 = vmatpush1.bf16.msra.mxu1 %v7706_v10  ;;  %5543 = vmatprep.subr.bf16.mxu0 %v7711_v44  ;;  %v7772_v10 = vld [vmem:[%s10505_s3 + $0x8e8] ss:$16 sps:$4 sm:$0xff]   ;;  %v7777_v44 = vld [vmem:[%s10505_s3 + $0x904] ss:$16 sps:$4 sm:$0xff]  }
 0x1c1   :  { %5953 = vmatprep.subr.bf16.mxu1 %v7714_v49  ;;  %v7775_v49 = vld [vmem:[%s10505_s3 + $0x900] ss:$16 sps:$4 sm:$0xff]  }
 0x1c3   :  { %5544 = vmatpush1.bf16.msra.mxu0 %v7709_v38  ;;  %v7780_v38 = vld [vmem:[%s10505_s3 + $0x90c] ss:$16 sps:$4 sm:$0xff]  }
 0x1c4   :  { %5954 = vmatpush1.bf16.msra.mxu1 %v7712_v52  ;;  %5545 = vmatprep.subr.bf16.mxu0 %v7717_v54  ;;  %v7778_v52 = vld [vmem:[%s10505_s3 + $0x908] ss:$16 sps:$4 sm:$0xff]   ;;  %v7783_v54 = vld [vmem:[%s10505_s3 + $0x924] ss:$16 sps:$4 sm:$0xff]  }
 0x1c5   :  { %5955 = vmatprep.subr.bf16.mxu1 %v7720_v55  ;;  %v7781_v55 = vld [vmem:[%s10505_s3 + $0x920] ss:$16 sps:$4 sm:$0xff]  }
 0x1c7   :  { %5546 = vmatpush1.bf16.msra.mxu0 %v7715_v41  ;;  %v7786_v41 = vld [vmem:[%s10505_s3 + $0x92c] ss:$16 sps:$4 sm:$0xff]  }
 0x1c8   :  { %5956 = vmatpush1.bf16.msra.mxu1 %v7718_v46  ;;  %5547 = vmatprep.subr.bf16.mxu0 %v7723_v61  ;;  %v7784_v46 = vld [vmem:[%s10505_s3 + $0x928] ss:$16 sps:$4 sm:$0xff]   ;;  %v7789_v61 = vld [vmem:[%s10505_s3 + $0x944] ss:$16 sps:$4 sm:$0xff]  }
 0x1c9   :  { %5957 = vmatprep.subr.bf16.mxu1 %v7726_v60  ;;  %v7787_v60 = vld [vmem:[%s10505_s3 + $0x940] ss:$16 sps:$4 sm:$0xff]  }
 0x1cb   :  { %5548 = vmatpush1.bf16.msra.mxu0 %v7721_v12  ;;  %v7792_v12 = vld [vmem:[%s10505_s3 + $0x94c] ss:$16 sps:$4 sm:$0xff]  }
 0x1cc   :  { %5958 = vmatpush1.bf16.msra.mxu1 %v7724_v31  ;;  %5558 = vmatprep.subr.bf16.mxu0 %v7729_v63  ;;  %v7795_v31 = vld [vmem:[%s10505_s3 + $0x964] ss:$16 sps:$4 sm:$0xff]   ;;  %v7798_v63 = vld [vmem:[%s10505_s3 + $0x96c] ss:$16 sps:$4 sm:$0xff]  }
 0x1cd   :  { %5968 = vmatprep.subr.bf16.mxu1 %v7732_v43  ;;  %v7796_v43 = vld [vmem:[%s10505_s3 + $0x968] ss:$16 sps:$4 sm:$0xff]  }
 0x1ce   :  { %5550 = vmatmul.mubr.bf16.vlgmr.msra.gmra.mrb[20].mxu0 %v1518_v8 }
 0x1cf   :  { %5960 = vmatmul.mubr.bf16.vlgmr.msra.gmra.mrb[20].mxu1 %v1518_v8  ;;  %5559 = vmatpush1.bf16.msra.mxu0 %v7727_v3  ;;  %v7793_v3 = vld [vmem:[%s10505_s3 + $0x960] ss:$16 sps:$4 sm:$0xff]   ;;  %v7802_v8 = vld [vmem:[%s10505_s3 + $0x988] ss:$16 sps:$4 sm:$0xff]  }
 0x1d0   :  { %5590 = vmatprep.mubr.bf16.mxu0 %v1521_v9  ;;  %5969 = vmatpush1.bf16.msra.mxu1 %v7730_v6  ;;  %v7804_v6 = vld [vmem:[%s10505_s3 + $0x98c] ss:$16 sps:$4 sm:$0xff]  }
 0x1d1   :  { %6000 = vmatprep.mubr.bf16.mxu1 %v1521_v9  ;;  %5560 = vmatprep.subr.bf16.mxu0 %v7735_v7  ;;  %v7799_v7 = vld [vmem:[%s10505_s3 + $0x980] ss:$16 sps:$4 sm:$0xff]   ;;  %v7807_v9 = vld [vmem:[%s10505_s3 + $0x9a4] ss:$16 sps:$4 sm:$0xff]  }
 0x1d2   :  { %5970 = vmatprep.subr.bf16.mxu1 %v7738_v40  ;;  %v7808_v40 = vld [vmem:[%s10505_s3 + $0x9a8] ss:$16 sps:$4 sm:$0xff]  }
 0x1d3   :  { %5561 = vmatpush1.bf16.msra.mxu0 %v7733_v37  ;;  %v7810_v37 = vld [vmem:[%s10505_s3 + $0x9ac] ss:$16 sps:$4 sm:$0xff]  }
 0x1d4   :  { %5971 = vmatpush1.bf16.msra.mxu1 %v7736_v42  ;;  %5562 = vmatprep.subr.bf16.mxu0 %v7741_v47  ;;  %v7805_v42 = vld [vmem:[%s10505_s3 + $0x9a0] ss:$16 sps:$4 sm:$0xff]   ;;  %v7813_v47 = vld [vmem:[%s10505_s3 + $0x9c4] ss:$16 sps:$4 sm:$0xff]  }
 0x1d5   :  { %5972 = vmatprep.subr.bf16.mxu1 %v7744_v50  ;;  %v7816_v50 = vld [vmem:[%s10505_s3 + $0x9cc] ss:$16 sps:$4 sm:$0xff]  }
 0x1d7   :  { %5563 = vmatpush1.bf16.msra.mxu0 %v7739_v11  ;;  %v7811_v11 = vld [vmem:[%s10505_s3 + $0x9c0] ss:$16 sps:$4 sm:$0xff]  }
 0x1d8   :  { %5973 = vmatpush1.bf16.msra.mxu1 %v7742_v13  ;;  %5564 = vmatprep.subr.bf16.mxu0 %v7747_v14  ;;  %v237_v13 = vrot.slane %v9291_v62, %v8620_v48  ;;  %v7814_v14 = vld [vmem:[%s10505_s3 + $0x9c8] ss:$16 sps:$4 sm:$0xff]   ;;  %v7817_v62 = vld [vmem:[%s10505_s3 + $0x9e0] ss:$16 sps:$4 sm:$0xff]  }
 0x1d9   :  { %5974 = vmatprep.subr.bf16.mxu1 %v7750_v15  ;;  %v7819_v15 = vld [vmem:[%s10505_s3 + $0x9e4] ss:$16 sps:$4 sm:$0xff]  }
 0x1db   :  { %5565 = vmatpush1.bf16.msra.mxu0 %v7745_v16  ;;  %v7822_v16 = vld [vmem:[%s10505_s3 + $0x9ec] ss:$16 sps:$4 sm:$0xff]  }
 0x1dc   :  { %5975 = vmatpush1.bf16.msra.mxu1 %v7748_v17  ;;  %5566 = vmatprep.subr.bf16.mxu0 %v7753_v19  ;;  %v1301_v17 = vadd.f32 %v8862_v34, %v237_v13  ;;  %v7820_v19 = vld [vmem:[%s10505_s3 + $0x9e8] ss:$16 sps:$4 sm:$0xff]   ;;  %v7823_v34 = vld [vmem:[%s10505_s3 + $0xa00] ss:$16 sps:$4 sm:$0xff]  }
 0x1dd   :  { %5976 = vmatprep.subr.bf16.mxu1 %v7756_v20  ;;  %v7825_v20 = vld [vmem:[%s10505_s3 + $0xa04] ss:$16 sps:$4 sm:$0xff]   ;;  %v7883_v13 = vld [vmem:[%s10505_s3 + $0xb40] ss:$16 sps:$4 sm:$0xff]  }
 0x1df   :  { %5567 = vmatpush1.bf16.msra.mxu0 %v7751_v22  ;;  %v7828_v22 = vld [vmem:[%s10505_s3 + $0xa0c] ss:$16 sps:$4 sm:$0xff]  }
 0x1e0   :  { %5977 = vmatpush1.bf16.msra.mxu1 %v7754_v23  ;;  %5568 = vmatprep.subr.bf16.mxu0 %v7759_v24  ;;  %v1520_v23 = vpack.c.bf16 %v1301_v17, %v1301_v17  ;;  %v7826_v24 = vld [vmem:[%s10505_s3 + $0xa08] ss:$16 sps:$4 sm:$0xff]  }
 0x1e1   :  { %5978 = vmatprep.subr.bf16.mxu1 %v7762_v25  ;;  %v7831_v25 = vld [vmem:[%s10505_s3 + $0xa24] ss:$16 sps:$4 sm:$0xff]   ;;  %v7892_v17 = vld [vmem:[%s10505_s3 + $0xb68] ss:$16 sps:$4 sm:$0xff]  }
 0x1e3   :  { %5569 = vmatpush1.bf16.msra.mxu0 %v7757_v26  ;;  %v1523_v26 = vpack.c.bf16 %v8909_v4, %v8909_v4  ;;  %v7837_v4 = vld [vmem:[%s10505_s3 + $0xa44] ss:$16 sps:$4 sm:$0xff]  }
 0x1e4   :  { %5979 = vmatpush1.bf16.msra.mxu1 %v7760_v27  ;;  %5570 = vmatprep.subr.bf16.mxu0 %v7765_v0  ;;  %v7834_v27 = vld [vmem:[%s10505_s3 + $0xa2c] ss:$16 sps:$4 sm:$0xff]   ;;  %v7829_v0 = vld [vmem:[%s10505_s3 + $0xa20] ss:$16 sps:$4 sm:$0xff]  }
 0x1e5   :  { %5980 = vmatprep.subr.bf16.mxu1 %v7768_v29  ;;  %v7832_v29 = vld [vmem:[%s10505_s3 + $0xa28] ss:$16 sps:$4 sm:$0xff]  }
 0x1e7   :  { %5571 = vmatpush1.bf16.msra.mxu0 %v7763_v30  ;;  %v7840_v30 = vld [vmem:[%s10505_s3 + $0xa4c] ss:$16 sps:$4 sm:$0xff]  }
 0x1e8   :  { %5981 = vmatpush1.bf16.msra.mxu1 %v7766_v32  ;;  %5572 = vmatprep.subr.bf16.mxu0 %v7771_v35  ;;  %v7835_v32 = vld [vmem:[%s10505_s3 + $0xa40] ss:$16 sps:$4 sm:$0xff]   ;;  %v7838_v35 = vld [vmem:[%s10505_s3 + $0xa48] ss:$16 sps:$4 sm:$0xff]  }
 0x1e9   :  { %5982 = vmatprep.subr.bf16.mxu1 %v7774_v56  ;;  %v7843_v56 = vld [vmem:[%s10505_s3 + $0xa64] ss:$16 sps:$4 sm:$0xff]  }
 0x1eb   :  { %5573 = vmatpush1.bf16.msra.mxu0 %v7769_v36  ;;  %v7846_v36 = vld [vmem:[%s10505_s3 + $0xa6c] ss:$16 sps:$4 sm:$0xff]  }
 0x1ec   :  { %5983 = vmatpush1.bf16.msra.mxu1 %v7772_v10  ;;  %5574 = vmatprep.subr.bf16.mxu0 %v7777_v44  ;;  %v7841_v10 = vld [vmem:[%s10505_s3 + $0xa60] ss:$16 sps:$4 sm:$0xff]   ;;  %v7844_v44 = vld [vmem:[%s10505_s3 + $0xa68] ss:$16 sps:$4 sm:$0xff]  }
 0x1ed   :  { %5984 = vmatprep.subr.bf16.mxu1 %v7780_v38  ;;  %v7849_v38 = vld [vmem:[%s10505_s3 + $0xa84] ss:$16 sps:$4 sm:$0xff]  }
 0x1ef   :  { %5575 = vmatpush1.bf16.msra.mxu0 %v7775_v49  ;;  %v7852_v49 = vld [vmem:[%s10505_s3 + $0xa8c] ss:$16 sps:$4 sm:$0xff]  }
 0x1f0   :  { %5985 = vmatpush1.bf16.msra.mxu1 %v7778_v52  ;;  %5576 = vmatprep.subr.bf16.mxu0 %v7783_v54  ;;  %v7847_v52 = vld [vmem:[%s10505_s3 + $0xa80] ss:$16 sps:$4 sm:$0xff]   ;;  %v7850_v54 = vld [vmem:[%s10505_s3 + $0xa88] ss:$16 sps:$4 sm:$0xff]  }
 0x1f1   :  { %5986 = vmatprep.subr.bf16.mxu1 %v7786_v41  ;;  %v7855_v41 = vld [vmem:[%s10505_s3 + $0xaa4] ss:$16 sps:$4 sm:$0xff]  }
 0x1f3   :  { %5577 = vmatpush1.bf16.msra.mxu0 %v7781_v55  ;;  %v7858_v55 = vld [vmem:[%s10505_s3 + $0xaac] ss:$16 sps:$4 sm:$0xff]  }
 0x1f4   :  { %5987 = vmatpush1.bf16.msra.mxu1 %v7784_v46  ;;  %5578 = vmatprep.subr.bf16.mxu0 %v7789_v61  ;;  %v7853_v46 = vld [vmem:[%s10505_s3 + $0xaa0] ss:$16 sps:$4 sm:$0xff]   ;;  %v7856_v61 = vld [vmem:[%s10505_s3 + $0xaa8] ss:$16 sps:$4 sm:$0xff]  }
 0x1f5   :  { %5988 = vmatprep.subr.bf16.mxu1 %v7792_v12  ;;  %v7861_v12 = vld [vmem:[%s10505_s3 + $0xac4] ss:$16 sps:$4 sm:$0xff]  }
 0x1f7   :  { %5579 = vmatpush1.bf16.msra.mxu0 %v7787_v60  ;;  %v7864_v60 = vld [vmem:[%s10505_s3 + $0xacc] ss:$16 sps:$4 sm:$0xff]  }
 0x1f8   :  { %5989 = vmatpush1.bf16.msra.mxu1 %v7790_v45  ;;  %5580 = vmatprep.subr.bf16.mxu0 %v7795_v31  ;;  %v7859_v45 = vld [vmem:[%s10505_s3 + $0xac0] ss:$16 sps:$4 sm:$0xff]   ;;  %v7862_v31 = vld [vmem:[%s10505_s3 + $0xac8] ss:$16 sps:$4 sm:$0xff]  }
 0x1f9   :  { %5990 = vmatprep.subr.bf16.mxu1 %v7798_v63  ;;  %v7867_v63 = vld [vmem:[%s10505_s3 + $0xae4] ss:$16 sps:$4 sm:$0xff]  }
 0x1fb   :  { %5581 = vmatpush1.bf16.msra.mxu0 %v7793_v3  ;;  %v7870_v3 = vld [vmem:[%s10505_s3 + $0xaec] ss:$16 sps:$4 sm:$0xff]  }
 0x1fc   :  { %5991 = vmatpush1.bf16.msra.mxu1 %v7796_v43  ;;  %5582 = vmatprep.subr.bf16.mxu0 %v7801_v5  ;;  %v7865_v43 = vld [vmem:[%s10505_s3 + $0xae0] ss:$16 sps:$4 sm:$0xff]   ;;  %v7868_v5 = vld [vmem:[%s10505_s3 + $0xae8] ss:$16 sps:$4 sm:$0xff]  }
 0x1fd   :  { %5992 = vmatprep.subr.bf16.mxu1 %v7804_v6  ;;  %v7873_v6 = vld [vmem:[%s10505_s3 + $0xb04] ss:$16 sps:$4 sm:$0xff]  }
 0x1ff   :  { %5583 = vmatpush1.bf16.msra.mxu0 %v7799_v7  ;;  %v7876_v7 = vld [vmem:[%s10505_s3 + $0xb0c] ss:$16 sps:$4 sm:$0xff]  }
 0x200   :  { %5993 = vmatpush1.bf16.msra.mxu1 %v7802_v8  ;;  %5584 = vmatprep.subr.bf16.mxu0 %v7807_v9  ;;  %v7871_v8 = vld [vmem:[%s10505_s3 + $0xb00] ss:$16 sps:$4 sm:$0xff]   ;;  %v7874_v9 = vld [vmem:[%s10505_s3 + $0xb08] ss:$16 sps:$4 sm:$0xff]  }
 0x201   :  { %5994 = vmatprep.subr.bf16.mxu1 %v7810_v37  ;;  %v7879_v37 = vld [vmem:[%s10505_s3 + $0xb24] ss:$16 sps:$4 sm:$0xff]  }
 0x203   :  { %5585 = vmatpush1.bf16.msra.mxu0 %v7805_v42  ;;  %v7882_v42 = vld [vmem:[%s10505_s3 + $0xb2c] ss:$16 sps:$4 sm:$0xff]  }
 0x204   :  { %5995 = vmatpush1.bf16.msra.mxu1 %v7808_v40  ;;  %5586 = vmatprep.subr.bf16.mxu0 %v7813_v47  ;;  %v7877_v40 = vld [vmem:[%s10505_s3 + $0xb20] ss:$16 sps:$4 sm:$0xff]   ;;  %v7880_v47 = vld [vmem:[%s10505_s3 + $0xb28] ss:$16 sps:$4 sm:$0xff]  }
 0x205   :  { %5996 = vmatprep.subr.bf16.mxu1 %v7816_v50  ;;  %v7885_v50 = vld [vmem:[%s10505_s3 + $0xb44] ss:$16 sps:$4 sm:$0xff]  }
 0x207   :  { %5587 = vmatpush1.bf16.msra.mxu0 %v7811_v11  ;;  %v7888_v11 = vld [vmem:[%s10505_s3 + $0xb4c] ss:$16 sps:$4 sm:$0xff]  }
 0x208   :  { %5997 = vmatpush1.bf16.msra.mxu1 %v7814_v14  ;;  %5588 = vmatprep.subr.bf16.mxu0 %v7819_v15  ;;  %v7886_v14 = vld [vmem:[%s10505_s3 + $0xb48] ss:$16 sps:$4 sm:$0xff]   ;;  %v7891_v15 = vld [vmem:[%s10505_s3 + $0xb64] ss:$16 sps:$4 sm:$0xff]  }
 0x209   :  { %5998 = vmatprep.subr.bf16.mxu1 %v7822_v16  ;;  %v7894_v16 = vld [vmem:[%s10505_s3 + $0xb6c] ss:$16 sps:$4 sm:$0xff]  }
 0x20b   :  { %5589 = vmatpush1.bf16.msra.mxu0 %v7817_v62  ;;  %v7889_v62 = vld [vmem:[%s10505_s3 + $0xb60] ss:$16 sps:$4 sm:$0xff]  }
 0x20c   :  { %5999 = vmatpush1.bf16.msra.mxu1 %v7820_v19  ;;  %5599 = vmatprep.subr.bf16.mxu0 %v7825_v20  ;;  %v7897_v19 = vld [vmem:[%s10505_s3 + $0xb84] ss:$16 sps:$4 sm:$0xff]   ;;  %v7900_v20 = vld [vmem:[%s10505_s3 + $0xb8c] ss:$16 sps:$4 sm:$0xff]  }
 0x20d   :  { %6009 = vmatprep.subr.bf16.mxu1 %v7828_v22  ;;  %v7895_v22 = vld [vmem:[%s10505_s3 + $0xb80] ss:$16 sps:$4 sm:$0xff]  }
 0x20e   :  { %5591 = vmatmul.mubr.bf16.vlgmr.msra.gmra.mrb[20].mxu0 %v1520_v23 }
 0x20f   :  { %6001 = vmatmul.mubr.bf16.vlgmr.msra.gmra.mrb[20].mxu1 %v1520_v23  ;;  %5600 = vmatpush1.bf16.msra.mxu0 %v7823_v34  ;;  %v7898_v34 = vld [vmem:[%s10505_s3 + $0xb88] ss:$16 sps:$4 sm:$0xff]   ;;  %v7903_v23 = vld [vmem:[%s10505_s3 + $0xba4] ss:$16 sps:$4 sm:$0xff]  }
 0x210   :  { %5631 = vmatprep.mubr.bf16.mxu0 %v1523_v26  ;;  %6010 = vmatpush1.bf16.msra.mxu1 %v7826_v24  ;;  %v7906_v24 = vld [vmem:[%s10505_s3 + $0xbac] ss:$16 sps:$4 sm:$0xff]  }
 0x211   :  { %6041 = vmatprep.mubr.bf16.mxu1 %v1523_v26  ;;  %5601 = vmatprep.subr.bf16.mxu0 %v7831_v25  ;;  %v7901_v25 = vld [vmem:[%s10505_s3 + $0xba0] ss:$16 sps:$4 sm:$0xff]   ;;  %v7904_v26 = vld [vmem:[%s10505_s3 + $0xba8] ss:$16 sps:$4 sm:$0xff]  }
 0x212   :  { %6011 = vmatprep.subr.bf16.mxu1 %v7834_v27  ;;  %v7909_v27 = vld [vmem:[%s10505_s3 + $0xbc4] ss:$16 sps:$4 sm:$0xff]  }
 0x213   :  { %5602 = vmatpush1.bf16.msra.mxu0 %v7829_v0  ;;  %v7912_v0 = vld [vmem:[%s10505_s3 + $0xbcc] ss:$16 sps:$4 sm:$0xff]  }
 0x214   :  { %6012 = vmatpush1.bf16.msra.mxu1 %v7832_v29  ;;  %5603 = vmatprep.subr.bf16.mxu0 %v7837_v4  ;;  %v7907_v29 = vld [vmem:[%s10505_s3 + $0xbc0] ss:$16 sps:$4 sm:$0xff]   ;;  %v7910_v4 = vld [vmem:[%s10505_s3 + $0xbc8] ss:$16 sps:$4 sm:$0xff]  }
 0x215   :  { %6013 = vmatprep.subr.bf16.mxu1 %v7840_v30  ;;  %v7915_v30 = vld [vmem:[%s10505_s3 + $0xbe4] ss:$16 sps:$4 sm:$0xff]  }
 0x217   :  { %5604 = vmatpush1.bf16.msra.mxu0 %v7835_v32  ;;  %v7918_v32 = vld [vmem:[%s10505_s3 + $0xbec] ss:$16 sps:$4 sm:$0xff]  }
 0x218   :  { %6014 = vmatpush1.bf16.msra.mxu1 %v7838_v35  ;;  %5605 = vmatprep.subr.bf16.mxu0 %v7843_v56  ;;  %v7913_v35 = vld [vmem:[%s10505_s3 + $0xbe0] ss:$16 sps:$4 sm:$0xff]   ;;  %v7916_v56 = vld [vmem:[%s10505_s3 + $0xbe8] ss:$16 sps:$4 sm:$0xff]  }
 0x219   :  { %6015 = vmatprep.subr.bf16.mxu1 %v7846_v36  ;;  %v7921_v36 = vld [vmem:[%s10505_s3 + $0xc04] ss:$16 sps:$4 sm:$0xff]  }
 0x21b   :  { %5606 = vmatpush1.bf16.msra.mxu0 %v7841_v10  ;;  %v7924_v10 = vld [vmem:[%s10505_s3 + $0xc0c] ss:$16 sps:$4 sm:$0xff]  }
 0x21c   :  { %6016 = vmatpush1.bf16.msra.mxu1 %v7844_v44  ;;  %5607 = vmatprep.subr.bf16.mxu0 %v7849_v38  ;;  %v7919_v44 = vld [vmem:[%s10505_s3 + $0xc00] ss:$16 sps:$4 sm:$0xff]   ;;  %v1522_v38 = vpack.c.bf16 %v8904_v1, %v8904_v1 }
 0x21d   :  { %6017 = vmatprep.subr.bf16.mxu1 %v7852_v49  ;;  %v7922_v49 = vld [vmem:[%s10505_s3 + $0xc08] ss:$16 sps:$4 sm:$0xff]   ;;  %v7925_v1 = vld [vmem:[%s10505_s3 + $0xc20] ss:$16 sps:$4 sm:$0xff]  }
 0x21f   :  { %5608 = vmatpush1.bf16.msra.mxu0 %v7847_v52  ;;  %v7927_v52 = vld [vmem:[%s10505_s3 + $0xc24] ss:$16 sps:$4 sm:$0xff]  }
 0x220   :  { %6018 = vmatpush1.bf16.msra.mxu1 %v7850_v54  ;;  %5609 = vmatprep.subr.bf16.mxu0 %v7855_v41  ;;  %v1525_v54 = vpack.c.bf16 %v8987_v33, %v8987_v33  ;;  %v7930_v41 = vld [vmem:[%s10505_s3 + $0xc2c] ss:$16 sps:$4 sm:$0xff]   ;;  %v7933_v33 = vld [vmem:[%s10505_s3 + $0xc44] ss:$16 sps:$4 sm:$0xff]  }
 0x221   :  { %6019 = vmatprep.subr.bf16.mxu1 %v7858_v55  ;;  %v7928_v55 = vld [vmem:[%s10505_s3 + $0xc28] ss:$16 sps:$4 sm:$0xff]  }
 0x223   :  { %5610 = vmatpush1.bf16.msra.mxu0 %v7853_v46  ;;  %v7936_v46 = vld [vmem:[%s10505_s3 + $0xc4c] ss:$16 sps:$4 sm:$0xff]  }
 0x224   :  { %6020 = vmatpush1.bf16.msra.mxu1 %v7856_v61  ;;  %5611 = vmatprep.subr.bf16.mxu0 %v7861_v12  ;;  %v7931_v61 = vld [vmem:[%s10505_s3 + $0xc40] ss:$16 sps:$4 sm:$0xff]   ;;  %v7934_v12 = vld [vmem:[%s10505_s3 + $0xc48] ss:$16 sps:$4 sm:$0xff]  }
 0x225   :  { %6021 = vmatprep.subr.bf16.mxu1 %v7864_v60  ;;  %v7939_v60 = vld [vmem:[%s10505_s3 + $0xc64] ss:$16 sps:$4 sm:$0xff]  }
 0x227   :  { %5612 = vmatpush1.bf16.msra.mxu0 %v7859_v45  ;;  %v7942_v45 = vld [vmem:[%s10505_s3 + $0xc6c] ss:$16 sps:$4 sm:$0xff]  }
 0x228   :  { %6022 = vmatpush1.bf16.msra.mxu1 %v7862_v31  ;;  %5613 = vmatprep.subr.bf16.mxu0 %v7867_v63  ;;  %v7937_v31 = vld [vmem:[%s10505_s3 + $0xc60] ss:$16 sps:$4 sm:$0xff]   ;;  %v7940_v63 = vld [vmem:[%s10505_s3 + $0xc68] ss:$16 sps:$4 sm:$0xff]  }
 0x229   :  { %6023 = vmatprep.subr.bf16.mxu1 %v7870_v3  ;;  %v7945_v3 = vld [vmem:[%s10505_s3 + $0xc84] ss:$16 sps:$4 sm:$0xff]  }
 0x22b   :  { %5614 = vmatpush1.bf16.msra.mxu0 %v7865_v43  ;;  %v7948_v43 = vld [vmem:[%s10505_s3 + $0xc8c] ss:$16 sps:$4 sm:$0xff]  }
 0x22c   :  { %6024 = vmatpush1.bf16.msra.mxu1 %v7868_v5  ;;  %5615 = vmatprep.subr.bf16.mxu0 %v7873_v6  ;;  %v7943_v5 = vld [vmem:[%s10505_s3 + $0xc80] ss:$16 sps:$4 sm:$0xff]   ;;  %v7946_v6 = vld [vmem:[%s10505_s3 + $0xc88] ss:$16 sps:$4 sm:$0xff]  }
 0x22d   :  { %6025 = vmatprep.subr.bf16.mxu1 %v7876_v7  ;;  %v7951_v7 = vld [vmem:[%s10505_s3 + $0xca4] ss:$16 sps:$4 sm:$0xff]  }
 0x22f   :  { %5616 = vmatpush1.bf16.msra.mxu0 %v7871_v8  ;;  %v7954_v8 = vld [vmem:[%s10505_s3 + $0xcac] ss:$16 sps:$4 sm:$0xff]  }
 0x230   :  { %6026 = vmatpush1.bf16.msra.mxu1 %v7874_v9  ;;  %5617 = vmatprep.subr.bf16.mxu0 %v7879_v37  ;;  %v7949_v9 = vld [vmem:[%s10505_s3 + $0xca0] ss:$16 sps:$4 sm:$0xff]   ;;  %v7952_v37 = vld [vmem:[%s10505_s3 + $0xca8] ss:$16 sps:$4 sm:$0xff]  }
 0x231   :  { %6027 = vmatprep.subr.bf16.mxu1 %v7882_v42  ;;  %v7957_v42 = vld [vmem:[%s10505_s3 + $0xcc4] ss:$16 sps:$4 sm:$0xff]  }
 0x233   :  { %5618 = vmatpush1.bf16.msra.mxu0 %v7877_v40  ;;  %v7960_v40 = vld [vmem:[%s10505_s3 + $0xccc] ss:$16 sps:$4 sm:$0xff]  }
 0x234   :  { %6028 = vmatpush1.bf16.msra.mxu1 %v7880_v47  ;;  %5619 = vmatprep.subr.bf16.mxu0 %v7885_v50  ;;  %v7955_v47 = vld [vmem:[%s10505_s3 + $0xcc0] ss:$16 sps:$4 sm:$0xff]   ;;  %v7958_v50 = vld [vmem:[%s10505_s3 + $0xcc8] ss:$16 sps:$4 sm:$0xff]  }
 0x235   :  { %6029 = vmatprep.subr.bf16.mxu1 %v7888_v11  ;;  %v7963_v11 = vld [vmem:[%s10505_s3 + $0xce4] ss:$16 sps:$4 sm:$0xff]  }
 0x237   :  { %5620 = vmatpush1.bf16.msra.mxu0 %v7883_v13  ;;  %v7966_v13 = vld [vmem:[%s10505_s3 + $0xcec] ss:$16 sps:$4 sm:$0xff]  }
 0x238   :  { %6030 = vmatpush1.bf16.msra.mxu1 %v7886_v14  ;;  %5621 = vmatprep.subr.bf16.mxu0 %v7891_v15  ;;  %v7961_v14 = vld [vmem:[%s10505_s3 + $0xce0] ss:$16 sps:$4 sm:$0xff]   ;;  %v7964_v15 = vld [vmem:[%s10505_s3 + $0xce8] ss:$16 sps:$4 sm:$0xff]  }
 0x239   :  { %6031 = vmatprep.subr.bf16.mxu1 %v7894_v16  ;;  %v7969_v16 = vld [vmem:[%s10505_s3 + $0xd04] ss:$16 sps:$4 sm:$0xff]  }
 0x23b   :  { %5622 = vmatpush1.bf16.msra.mxu0 %v7889_v62  ;;  %v7972_v62 = vld [vmem:[%s10505_s3 + $0xd0c] ss:$16 sps:$4 sm:$0xff]  }
 0x23c   :  { %6032 = vmatpush1.bf16.msra.mxu1 %v7892_v17  ;;  %5623 = vmatprep.subr.bf16.mxu0 %v7897_v19  ;;  %v7967_v17 = vld [vmem:[%s10505_s3 + $0xd00] ss:$16 sps:$4 sm:$0xff]   ;;  %v7970_v19 = vld [vmem:[%s10505_s3 + $0xd08] ss:$16 sps:$4 sm:$0xff]  }
 0x23d   :  { %6033 = vmatprep.subr.bf16.mxu1 %v7900_v20  ;;  %v7975_v20 = vld [vmem:[%s10505_s3 + $0xd24] ss:$16 sps:$4 sm:$0xff]  }
 0x23f   :  { %5624 = vmatpush1.bf16.msra.mxu0 %v7895_v22  ;;  %v7978_v22 = vld [vmem:[%s10505_s3 + $0xd2c] ss:$16 sps:$4 sm:$0xff]  }
 0x240   :  { %6034 = vmatpush1.bf16.msra.mxu1 %v7898_v34  ;;  %5625 = vmatprep.subr.bf16.mxu0 %v7903_v23  ;;  %v7973_v34 = vld [vmem:[%s10505_s3 + $0xd20] ss:$16 sps:$4 sm:$0xff]   ;;  %v7976_v23 = vld [vmem:[%s10505_s3 + $0xd28] ss:$16 sps:$4 sm:$0xff]  }
 0x241   :  { %6035 = vmatprep.subr.bf16.mxu1 %v7906_v24  ;;  %v7981_v24 = vld [vmem:[%s10505_s3 + $0xd44] ss:$16 sps:$4 sm:$0xff]  }
 0x243   :  { %5626 = vmatpush1.bf16.msra.mxu0 %v7901_v25  ;;  %v7984_v25 = vld [vmem:[%s10505_s3 + $0xd4c] ss:$16 sps:$4 sm:$0xff]  }
 0x244   :  { %6036 = vmatpush1.bf16.msra.mxu1 %v7904_v26  ;;  %5627 = vmatprep.subr.bf16.mxu0 %v7909_v27  ;;  %v7979_v26 = vld [vmem:[%s10505_s3 + $0xd40] ss:$16 sps:$4 sm:$0xff]   ;;  %v7982_v27 = vld [vmem:[%s10505_s3 + $0xd48] ss:$16 sps:$4 sm:$0xff]  }
 0x245   :  { %6037 = vmatprep.subr.bf16.mxu1 %v7912_v0  ;;  %v7987_v0 = vld [vmem:[%s10505_s3 + $0xd64] ss:$16 sps:$4 sm:$0xff]  }
 0x247   :  { %5628 = vmatpush1.bf16.msra.mxu0 %v7907_v29  ;;  %v7990_v29 = vld [vmem:[%s10505_s3 + $0xd6c] ss:$16 sps:$4 sm:$0xff]  }
 0x248   :  { %6038 = vmatpush1.bf16.msra.mxu1 %v7910_v4  ;;  %5629 = vmatprep.subr.bf16.mxu0 %v7915_v30  ;;  %v7985_v4 = vld [vmem:[%s10505_s3 + $0xd60] ss:$16 sps:$4 sm:$0xff]   ;;  %v7988_v30 = vld [vmem:[%s10505_s3 + $0xd68] ss:$16 sps:$4 sm:$0xff]  }
 0x249   :  { %6039 = vmatprep.subr.bf16.mxu1 %v7918_v32  ;;  %v7993_v32 = vld [vmem:[%s10505_s3 + $0xd84] ss:$16 sps:$4 sm:$0xff]  }
 0x24b   :  { %5630 = vmatpush1.bf16.msra.mxu0 %v7913_v35  ;;  %v7996_v35 = vld [vmem:[%s10505_s3 + $0xd8c] ss:$16 sps:$4 sm:$0xff]  }
 0x24c   :  { %6040 = vmatpush1.bf16.msra.mxu1 %v7916_v56  ;;  %5640 = vmatprep.subr.bf16.mxu0 %v7921_v36  ;;  %v7991_v56 = vld [vmem:[%s10505_s3 + $0xd80] ss:$16 sps:$4 sm:$0xff]   ;;  %v7994_v36 = vld [vmem:[%s10505_s3 + $0xd88] ss:$16 sps:$4 sm:$0xff]  }
 0x24d   :  { %6050 = vmatprep.subr.bf16.mxu1 %v7924_v10  ;;  %v7999_v10 = vld [vmem:[%s10505_s3 + $0xda4] ss:$16 sps:$4 sm:$0xff]  }
 0x24e   :  { %5632 = vmatmul.mubr.bf16.vlgmr.msra.gmra.mrb[20].mxu0 %v1522_v38 }
 0x24f   :  { %6042 = vmatmul.mubr.bf16.vlgmr.msra.gmra.mrb[20].mxu1 %v1522_v38  ;;  %5641 = vmatpush1.bf16.msra.mxu0 %v7919_v44  ;;  %v8002_v44 = vld [vmem:[%s10505_s3 + $0xdac] ss:$16 sps:$4 sm:$0xff]   ;;  %v7997_v38 = vld [vmem:[%s10505_s3 + $0xda0] ss:$16 sps:$4 sm:$0xff]  }
 0x250   :  { %5672 = vmatprep.mubr.bf16.mxu0 %v1525_v54  ;;  %6051 = vmatpush1.bf16.msra.mxu1 %v7922_v49  ;;  %v8000_v49 = vld [vmem:[%s10505_s3 + $0xda8] ss:$16 sps:$4 sm:$0xff]  }
 0x251   :  { %6082 = vmatprep.mubr.bf16.mxu1 %v1525_v54  ;;  %5642 = vmatprep.subr.bf16.mxu0 %v7927_v52  ;;  %v8005_v52 = vld [vmem:[%s10505_s3 + $0xdc4] ss:$16 sps:$4 sm:$0xff]   ;;  %v8008_v54 = vld [vmem:[%s10505_s3 + $0xdcc] ss:$16 sps:$4 sm:$0xff]  }
 0x252   :  { %6052 = vmatprep.subr.bf16.mxu1 %v7930_v41  ;;  %v8003_v41 = vld [vmem:[%s10505_s3 + $0xdc0] ss:$16 sps:$4 sm:$0xff]  }
 0x253   :  { %5643 = vmatpush1.bf16.msra.mxu0 %v7925_v1  ;;  %v8006_v1 = vld [vmem:[%s10505_s3 + $0xdc8] ss:$16 sps:$4 sm:$0xff]  }
 0x254   :  { %6053 = vmatpush1.bf16.msra.mxu1 %v7928_v55  ;;  %5644 = vmatprep.subr.bf16.mxu0 %v7933_v33  ;;  %v8011_v55 = vld [vmem:[%s10505_s3 + $0xde4] ss:$16 sps:$4 sm:$0xff]   ;;  %v8014_v33 = vld [vmem:[%s10505_s3 + $0xdec] ss:$16 sps:$4 sm:$0xff]  }
 0x255   :  { %6054 = vmatprep.subr.bf16.mxu1 %v7936_v46  ;;  %v8009_v46 = vld [vmem:[%s10505_s3 + $0xde0] ss:$16 sps:$4 sm:$0xff]  }
 0x257   :  { %5645 = vmatpush1.bf16.msra.mxu0 %v7931_v61  ;;  %v8012_v61 = vld [vmem:[%s10505_s3 + $0xde8] ss:$16 sps:$4 sm:$0xff]  }
 0x258   :  { %6055 = vmatpush1.bf16.msra.mxu1 %v7934_v12  ;;  %5646 = vmatprep.subr.bf16.mxu0 %v7939_v60  ;;  %v8017_v12 = vld [vmem:[%s10505_s3 + $0xe04] ss:$16 sps:$4 sm:$0xff]   ;;  %v8020_v60 = vld [vmem:[%s10505_s3 + $0xe0c] ss:$16 sps:$4 sm:$0xff]  }
 0x259   :  { %6056 = vmatprep.subr.bf16.mxu1 %v7942_v45  ;;  %v8015_v45 = vld [vmem:[%s10505_s3 + $0xe00] ss:$16 sps:$4 sm:$0xff]  }
 0x25b   :  { %5647 = vmatpush1.bf16.msra.mxu0 %v7937_v31  ;;  %v1524_v31 = vpack.c.bf16 %v8978_v28, %v8978_v28  ;;  %v8021_v28 = vld [vmem:[%s10505_s3 + $0xe20] ss:$16 sps:$4 sm:$0xff]  }
 0x25c   :  { %6057 = vmatpush1.bf16.msra.mxu1 %v7940_v63  ;;  %5648 = vmatprep.subr.bf16.mxu0 %v7945_v3  ;;  %v8018_v63 = vld [vmem:[%s10505_s3 + $0xe08] ss:$16 sps:$4 sm:$0xff]   ;;  %v8023_v3 = vld [vmem:[%s10505_s3 + $0xe24] ss:$16 sps:$4 sm:$0xff]  }
 0x25d   :  { %6058 = vmatprep.subr.bf16.mxu1 %v7948_v43  ;;  %v1527_v43 = vpack.c.bf16 %v9017_v59, %v9017_v59  ;;  %v8029_v59 = vld [vmem:[%s10505_s3 + $0xe44] ss:$16 sps:$4 sm:$0xff]  }
 0x25f   :  { %5649 = vmatpush1.bf16.msra.mxu0 %v7943_v5  ;;  %v8026_v5 = vld [vmem:[%s10505_s3 + $0xe2c] ss:$16 sps:$4 sm:$0xff]  }
 0x260   :  { %6059 = vmatpush1.bf16.msra.mxu1 %v7946_v6  ;;  %5650 = vmatprep.subr.bf16.mxu0 %v7951_v7  ;;  %v8024_v6 = vld [vmem:[%s10505_s3 + $0xe28] ss:$16 sps:$4 sm:$0xff]   ;;  %v8032_v7 = vld [vmem:[%s10505_s3 + $0xe4c] ss:$16 sps:$4 sm:$0xff]  }
 0x261   :  { %6060 = vmatprep.subr.bf16.mxu1 %v7954_v8  ;;  %v8027_v8 = vld [vmem:[%s10505_s3 + $0xe40] ss:$16 sps:$4 sm:$0xff]  }
 0x263   :  { %5651 = vmatpush1.bf16.msra.mxu0 %v7949_v9  ;;  %v8030_v9 = vld [vmem:[%s10505_s3 + $0xe48] ss:$16 sps:$4 sm:$0xff]  }
 0x264   :  { %6061 = vmatpush1.bf16.msra.mxu1 %v7952_v37  ;;  %5652 = vmatprep.subr.bf16.mxu0 %v7957_v42  ;;  %v8035_v37 = vld [vmem:[%s10505_s3 + $0xe64] ss:$16 sps:$4 sm:$0xff]   ;;  %v8038_v42 = vld [vmem:[%s10505_s3 + $0xe6c] ss:$16 sps:$4 sm:$0xff]  }
 0x265   :  { %6062 = vmatprep.subr.bf16.mxu1 %v7960_v40  ;;  %v8033_v40 = vld [vmem:[%s10505_s3 + $0xe60] ss:$16 sps:$4 sm:$0xff]  }
 0x267   :  { %5653 = vmatpush1.bf16.msra.mxu0 %v7955_v47  ;;  %v8036_v47 = vld [vmem:[%s10505_s3 + $0xe68] ss:$16 sps:$4 sm:$0xff]  }
 0x268   :  { %6063 = vmatpush1.bf16.msra.mxu1 %v7958_v50  ;;  %5654 = vmatprep.subr.bf16.mxu0 %v7963_v11  ;;  %v8041_v50 = vld [vmem:[%s10505_s3 + $0xe84] ss:$16 sps:$4 sm:$0xff]   ;;  %v8044_v11 = vld [vmem:[%s10505_s3 + $0xe8c] ss:$16 sps:$4 sm:$0xff]  }
 0x269   :  { %6064 = vmatprep.subr.bf16.mxu1 %v7966_v13  ;;  %v8039_v13 = vld [vmem:[%s10505_s3 + $0xe80] ss:$16 sps:$4 sm:$0xff]  }
 0x26b   :  { %5655 = vmatpush1.bf16.msra.mxu0 %v7961_v14  ;;  %v8042_v14 = vld [vmem:[%s10505_s3 + $0xe88] ss:$16 sps:$4 sm:$0xff]  }
 0x26c   :  { %6065 = vmatpush1.bf16.msra.mxu1 %v7964_v15  ;;  %5656 = vmatprep.subr.bf16.mxu0 %v7969_v16  ;;  %v8047_v15 = vld [vmem:[%s10505_s3 + $0xea4] ss:$16 sps:$4 sm:$0xff]   ;;  %v8050_v16 = vld [vmem:[%s10505_s3 + $0xeac] ss:$16 sps:$4 sm:$0xff]  }
 0x26d   :  { %6066 = vmatprep.subr.bf16.mxu1 %v7972_v62  ;;  %v8045_v62 = vld [vmem:[%s10505_s3 + $0xea0] ss:$16 sps:$4 sm:$0xff]  }
 0x26f   :  { %5657 = vmatpush1.bf16.msra.mxu0 %v7967_v17  ;;  %v8048_v17 = vld [vmem:[%s10505_s3 + $0xea8] ss:$16 sps:$4 sm:$0xff]  }
 0x270   :  { %6067 = vmatpush1.bf16.msra.mxu1 %v7970_v19  ;;  %5658 = vmatprep.subr.bf16.mxu0 %v7975_v20  ;;  %v8053_v19 = vld [vmem:[%s10505_s3 + $0xec4] ss:$16 sps:$4 sm:$0xff]   ;;  %v8056_v20 = vld [vmem:[%s10505_s3 + $0xecc] ss:$16 sps:$4 sm:$0xff]  }
 0x271   :  { %6068 = vmatprep.subr.bf16.mxu1 %v7978_v22  ;;  %v8051_v22 = vld [vmem:[%s10505_s3 + $0xec0] ss:$16 sps:$4 sm:$0xff]  }
 0x273   :  { %5659 = vmatpush1.bf16.msra.mxu0 %v7973_v34  ;;  %v8054_v34 = vld [vmem:[%s10505_s3 + $0xec8] ss:$16 sps:$4 sm:$0xff]  }
 0x274   :  { %6069 = vmatpush1.bf16.msra.mxu1 %v7976_v23  ;;  %5660 = vmatprep.subr.bf16.mxu0 %v7981_v24  ;;  %v8059_v23 = vld [vmem:[%s10505_s3 + $0xee4] ss:$16 sps:$4 sm:$0xff]   ;;  %v8062_v24 = vld [vmem:[%s10505_s3 + $0xeec] ss:$16 sps:$4 sm:$0xff]  }
 0x275   :  { %6070 = vmatprep.subr.bf16.mxu1 %v7984_v25  ;;  %v8057_v25 = vld [vmem:[%s10505_s3 + $0xee0] ss:$16 sps:$4 sm:$0xff]  }
 0x277   :  { %5661 = vmatpush1.bf16.msra.mxu0 %v7979_v26  ;;  %v8060_v26 = vld [vmem:[%s10505_s3 + $0xee8] ss:$16 sps:$4 sm:$0xff]  }
 0x278   :  { %6071 = vmatpush1.bf16.msra.mxu1 %v7982_v27  ;;  %5662 = vmatprep.subr.bf16.mxu0 %v7987_v0  ;;  %v8065_v27 = vld [vmem:[%s10505_s3 + $0xf04] ss:$16 sps:$4 sm:$0xff]   ;;  %v8068_v0 = vld [vmem:[%s10505_s3 + $0xf0c] ss:$16 sps:$4 sm:$0xff]  }
 0x279   :  { %6072 = vmatprep.subr.bf16.mxu1 %v7990_v29  ;;  %v8063_v29 = vld [vmem:[%s10505_s3 + $0xf00] ss:$16 sps:$4 sm:$0xff]  }
 0x27b   :  { %5663 = vmatpush1.bf16.msra.mxu0 %v7985_v4  ;;  %v8066_v4 = vld [vmem:[%s10505_s3 + $0xf08] ss:$16 sps:$4 sm:$0xff]  }
 0x27c   :  { %6073 = vmatpush1.bf16.msra.mxu1 %v7988_v30  ;;  %5664 = vmatprep.subr.bf16.mxu0 %v7993_v32  ;;  %v8071_v30 = vld [vmem:[%s10505_s3 + $0xf24] ss:$16 sps:$4 sm:$0xff]   ;;  %v8074_v32 = vld [vmem:[%s10505_s3 + $0xf2c] ss:$16 sps:$4 sm:$0xff]  }
 0x27d   :  { %6074 = vmatprep.subr.bf16.mxu1 %v7996_v35  ;;  %v8069_v35 = vld [vmem:[%s10505_s3 + $0xf20] ss:$16 sps:$4 sm:$0xff]  }
 0x27f   :  { %5665 = vmatpush1.bf16.msra.mxu0 %v7991_v56  ;;  %v8072_v56 = vld [vmem:[%s10505_s3 + $0xf28] ss:$16 sps:$4 sm:$0xff]  }
 0x280   :  { %6075 = vmatpush1.bf16.msra.mxu1 %v7994_v36  ;;  %5666 = vmatprep.subr.bf16.mxu0 %v7999_v10  ;;  %v8077_v36 = vld [vmem:[%s10505_s3 + $0xf44] ss:$16 sps:$4 sm:$0xff]   ;;  %v8080_v10 = vld [vmem:[%s10505_s3 + $0xf4c] ss:$16 sps:$4 sm:$0xff]  }
 0x281   :  { %6076 = vmatprep.subr.bf16.mxu1 %v8002_v44  ;;  %v8075_v44 = vld [vmem:[%s10505_s3 + $0xf40] ss:$16 sps:$4 sm:$0xff]  }
 0x283   :  { %5667 = vmatpush1.bf16.msra.mxu0 %v7997_v38  ;;  %v8078_v38 = vld [vmem:[%s10505_s3 + $0xf48] ss:$16 sps:$4 sm:$0xff]  }
 0x284   :  { %6077 = vmatpush1.bf16.msra.mxu1 %v8000_v49  ;;  %5668 = vmatprep.subr.bf16.mxu0 %v8005_v52  ;;  %v8083_v49 = vld [vmem:[%s10505_s3 + $0xf64] ss:$16 sps:$4 sm:$0xff]   ;;  %v8086_v52 = vld [vmem:[%s10505_s3 + $0xf6c] ss:$16 sps:$4 sm:$0xff]  }
 0x285   :  { %6078 = vmatprep.subr.bf16.mxu1 %v8008_v54  ;;  %v8081_v54 = vld [vmem:[%s10505_s3 + $0xf60] ss:$16 sps:$4 sm:$0xff]  }
 0x287   :  { %5669 = vmatpush1.bf16.msra.mxu0 %v8003_v41  ;;  %v8084_v41 = vld [vmem:[%s10505_s3 + $0xf68] ss:$16 sps:$4 sm:$0xff]  }
 0x288   :  { %6079 = vmatpush1.bf16.msra.mxu1 %v8006_v1  ;;  %5670 = vmatprep.subr.bf16.mxu0 %v8011_v55  ;;  %v8089_v1 = vld [vmem:[%s10505_s3 + $0xf84] ss:$16 sps:$4 sm:$0xff]   ;;  %v8092_v55 = vld [vmem:[%s10505_s3 + $0xf8c] ss:$16 sps:$4 sm:$0xff]  }
 0x289   :  { %6080 = vmatprep.subr.bf16.mxu1 %v8014_v33  ;;  %v8087_v33 = vld [vmem:[%s10505_s3 + $0xf80] ss:$16 sps:$4 sm:$0xff]  }
 0x28b   :  { %5671 = vmatpush1.bf16.msra.mxu0 %v8009_v46  ;;  %v8090_v46 = vld [vmem:[%s10505_s3 + $0xf88] ss:$16 sps:$4 sm:$0xff]  }
 0x28c   :  { %6081 = vmatpush1.bf16.msra.mxu1 %v8012_v61  ;;  %5681 = vmatprep.subr.bf16.mxu0 %v8017_v12  ;;  %v8095_v61 = vld [vmem:[%s10505_s3 + $0xfa4] ss:$16 sps:$4 sm:$0xff]   ;;  %v8098_v12 = vld [vmem:[%s10505_s3 + $0xfac] ss:$16 sps:$4 sm:$0xff]  }
 0x28d   :  { %6091 = vmatprep.subr.bf16.mxu1 %v8020_v60  ;;  %v8093_v60 = vld [vmem:[%s10505_s3 + $0xfa0] ss:$16 sps:$4 sm:$0xff]  }
 0x28e   :  { %5673 = vmatmul.mubr.bf16.vlgmr.msra.gmra.mrb[20].mxu0 %v1524_v31 }
 0x28f   :  { %6083 = vmatmul.mubr.bf16.vlgmr.msra.gmra.mrb[20].mxu1 %v1524_v31  ;;  %5682 = vmatpush1.bf16.msra.mxu0 %v8015_v45  ;;  %v8096_v45 = vld [vmem:[%s10505_s3 + $0xfa8] ss:$16 sps:$4 sm:$0xff]   ;;  %v8101_v31 = vld [vmem:[%s10505_s3 + $0xfc4] ss:$16 sps:$4 sm:$0xff]  }
 0x290   :  { %5713 = vmatprep.mubr.bf16.mxu0 %v1527_v43  ;;  %6092 = vmatpush1.bf16.msra.mxu1 %v8018_v63  ;;  %v8104_v63 = vld [vmem:[%s10505_s3 + $0xfcc] ss:$16 sps:$4 sm:$0xff]  }
 0x291   :  { %6123 = vmatprep.mubr.bf16.mxu1 %v1527_v43  ;;  %5683 = vmatprep.subr.bf16.mxu0 %v8023_v3  ;;  %v8099_v3 = vld [vmem:[%s10505_s3 + $0xfc0] ss:$16 sps:$4 sm:$0xff]   ;;  %v8102_v43 = vld [vmem:[%s10505_s3 + $0xfc8] ss:$16 sps:$4 sm:$0xff]  }
 0x292   :  { %6093 = vmatprep.subr.bf16.mxu1 %v8026_v5  ;;  %v8107_v5 = vld [vmem:[%s10505_s3 + $0xfe4] ss:$16 sps:$4 sm:$0xff]  }
 0x293   :  { %5684 = vmatpush1.bf16.msra.mxu0 %v8021_v28  ;;  %v8110_v28 = vld [vmem:[%s10505_s3 + $0xfec] ss:$16 sps:$4 sm:$0xff]  }
 0x294   :  { %6094 = vmatpush1.bf16.msra.mxu1 %v8024_v6  ;;  %5685 = vmatprep.subr.bf16.mxu0 %v8029_v59  ;;  %v10079_v6 = vld [vmem:[%s10504_s2 + $0x10] sm:$0xf] }
 0x295   :  { %6095 = vmatprep.subr.bf16.mxu1 %v8032_v7  ;;  %v273_v59 = vrot.slane %v10079_v6, %v8638_v51  ;;  %v8105_v7 = vld [vmem:[%s10505_s3 + $0xfe0] ss:$16 sps:$4 sm:$0xff]  }
 0x297   :  { %5686 = vmatpush1.bf16.msra.mxu0 %v8027_v8  ;;  %v8108_v8 = vld [vmem:[%s10505_s3 + $0xfe8] ss:$16 sps:$4 sm:$0xff]  }
 0x298   :  { %6096 = vmatpush1.bf16.msra.mxu1 %v8030_v9  ;;  %5687 = vmatprep.subr.bf16.mxu0 %v8035_v37  ;;  %v8113_v9 = vld [vmem:[%s10505_s3 + $0x1004] ss:$16 sps:$4 sm:$0xff]   ;;  %v8116_v37 = vld [vmem:[%s10505_s3 + $0x100c] ss:$16 sps:$4 sm:$0xff]  }
 0x299   :  { %6097 = vmatprep.subr.bf16.mxu1 %v8038_v42  ;;  %v1467_v42 = vadd.f32 %v9090_v21, %v273_v59  ;;  %v8183_v59 = vld [vmem:[%s10505_s3 + $0x1180] ss:$16 sps:$4 sm:$0xff]  }
 0x29b   :  { %5688 = vmatpush1.bf16.msra.mxu0 %v8033_v40  ;;  %v8111_v40 = vld [vmem:[%s10505_s3 + $0x1000] ss:$16 sps:$4 sm:$0xff]   ;;  %v1529_v21 = vpack.c.bf16 %v1467_v42, %v1467_v42  ;;  %v8192_v42 = vld [vmem:[%s10505_s3 + $0x11a8] ss:$16 sps:$4 sm:$0xff]  }
 0x29c   :  { %6098 = vmatpush1.bf16.msra.mxu1 %v8036_v47  ;;  %5689 = vmatprep.subr.bf16.mxu0 %v8041_v50  ;;  %v1526_v47 = vpack.c.bf16 %v9014_v58, %v9014_v58  ;;  %v8114_v50 = vld [vmem:[%s10505_s3 + $0x1008] ss:$16 sps:$4 sm:$0xff]   ;;  %v8117_v58 = vld [vmem:[%s10505_s3 + $0x1020] ss:$16 sps:$4 sm:$0xff]  }
 0x29d   :  { %6099 = vmatprep.subr.bf16.mxu1 %v8044_v11  ;;  %v8119_v11 = vld [vmem:[%s10505_s3 + $0x1024] ss:$16 sps:$4 sm:$0xff]  }
 0x29f   :  { %5690 = vmatpush1.bf16.msra.mxu0 %v8039_v13  ;;  %v8122_v13 = vld [vmem:[%s10505_s3 + $0x102c] ss:$16 sps:$4 sm:$0xff]  }
 0x2a0   :  { %6100 = vmatpush1.bf16.msra.mxu1 %v8042_v14  ;;  %5691 = vmatprep.subr.bf16.mxu0 %v8047_v15  ;;  %v8120_v14 = vld [vmem:[%s10505_s3 + $0x1028] ss:$16 sps:$4 sm:$0xff]   ;;  %v8125_v15 = vld [vmem:[%s10505_s3 + $0x1044] ss:$16 sps:$4 sm:$0xff]  }
 0x2a1   :  { %6101 = vmatprep.subr.bf16.mxu1 %v8050_v16  ;;  %v8128_v16 = vld [vmem:[%s10505_s3 + $0x104c] ss:$16 sps:$4 sm:$0xff]  }
 0x2a3   :  { %5692 = vmatpush1.bf16.msra.mxu0 %v8045_v62  ;;  %v8123_v62 = vld [vmem:[%s10505_s3 + $0x1040] ss:$16 sps:$4 sm:$0xff]  }
 0x2a4   :  { %6102 = vmatpush1.bf16.msra.mxu1 %v8048_v17  ;;  %5693 = vmatprep.subr.bf16.mxu0 %v8053_v19  ;;  %v8126_v17 = vld [vmem:[%s10505_s3 + $0x1048] ss:$16 sps:$4 sm:$0xff]   ;;  %v8131_v19 = vld [vmem:[%s10505_s3 + $0x1064] ss:$16 sps:$4 sm:$0xff]  }
 0x2a5   :  { %6103 = vmatprep.subr.bf16.mxu1 %v8056_v20  ;;  %v8134_v20 = vld [vmem:[%s10505_s3 + $0x106c] ss:$16 sps:$4 sm:$0xff]  }
 0x2a7   :  { %5694 = vmatpush1.bf16.msra.mxu0 %v8051_v22  ;;  %v8129_v22 = vld [vmem:[%s10505_s3 + $0x1060] ss:$16 sps:$4 sm:$0xff]  }
 0x2a8   :  { %6104 = vmatpush1.bf16.msra.mxu1 %v8054_v34  ;;  %5695 = vmatprep.subr.bf16.mxu0 %v8059_v23  ;;  %v8132_v34 = vld [vmem:[%s10505_s3 + $0x1068] ss:$16 sps:$4 sm:$0xff]   ;;  %v8137_v23 = vld [vmem:[%s10505_s3 + $0x1084] ss:$16 sps:$4 sm:$0xff]  }
 0x2a9   :  { %6105 = vmatprep.subr.bf16.mxu1 %v8062_v24  ;;  %v8140_v24 = vld [vmem:[%s10505_s3 + $0x108c] ss:$16 sps:$4 sm:$0xff]  }
 0x2ab   :  { %5696 = vmatpush1.bf16.msra.mxu0 %v8057_v25  ;;  %v8135_v25 = vld [vmem:[%s10505_s3 + $0x1080] ss:$16 sps:$4 sm:$0xff]  }
 0x2ac   :  { %6106 = vmatpush1.bf16.msra.mxu1 %v8060_v26  ;;  %5697 = vmatprep.subr.bf16.mxu0 %v8065_v27  ;;  %v8138_v26 = vld [vmem:[%s10505_s3 + $0x1088] ss:$16 sps:$4 sm:$0xff]   ;;  %v8143_v27 = vld [vmem:[%s10505_s3 + $0x10a4] ss:$16 sps:$4 sm:$0xff]  }
 0x2ad   :  { %6107 = vmatprep.subr.bf16.mxu1 %v8068_v0  ;;  %v8146_v0 = vld [vmem:[%s10505_s3 + $0x10ac] ss:$16 sps:$4 sm:$0xff]  }
 0x2af   :  { %5698 = vmatpush1.bf16.msra.mxu0 %v8063_v29  ;;  %v8141_v29 = vld [vmem:[%s10505_s3 + $0x10a0] ss:$16 sps:$4 sm:$0xff]  }
 0x2b0   :  { %6108 = vmatpush1.bf16.msra.mxu1 %v8066_v4  ;;  %5699 = vmatprep.subr.bf16.mxu0 %v8071_v30  ;;  %v8144_v4 = vld [vmem:[%s10505_s3 + $0x10a8] ss:$16 sps:$4 sm:$0xff]   ;;  %v8149_v30 = vld [vmem:[%s10505_s3 + $0x10c4] ss:$16 sps:$4 sm:$0xff]  }
 0x2b1   :  { %6109 = vmatprep.subr.bf16.mxu1 %v8074_v32  ;;  %v8152_v32 = vld [vmem:[%s10505_s3 + $0x10cc] ss:$16 sps:$4 sm:$0xff]  }
 0x2b3   :  { %5700 = vmatpush1.bf16.msra.mxu0 %v8069_v35  ;;  %v8147_v35 = vld [vmem:[%s10505_s3 + $0x10c0] ss:$16 sps:$4 sm:$0xff]  }
 0x2b4   :  { %6110 = vmatpush1.bf16.msra.mxu1 %v8072_v56  ;;  %5701 = vmatprep.subr.bf16.mxu0 %v8077_v36  ;;  %v8150_v56 = vld [vmem:[%s10505_s3 + $0x10c8] ss:$16 sps:$4 sm:$0xff]   ;;  %v8155_v36 = vld [vmem:[%s10505_s3 + $0x10e4] ss:$16 sps:$4 sm:$0xff]  }
 0x2b5   :  { %6111 = vmatprep.subr.bf16.mxu1 %v8080_v10  ;;  %v8158_v10 = vld [vmem:[%s10505_s3 + $0x10ec] ss:$16 sps:$4 sm:$0xff]  }
 0x2b7   :  { %5702 = vmatpush1.bf16.msra.mxu0 %v8075_v44  ;;  %v8153_v44 = vld [vmem:[%s10505_s3 + $0x10e0] ss:$16 sps:$4 sm:$0xff]  }
 0x2b8   :  { %6112 = vmatpush1.bf16.msra.mxu1 %v8078_v38  ;;  %5703 = vmatprep.subr.bf16.mxu0 %v8083_v49  ;;  %v8156_v38 = vld [vmem:[%s10505_s3 + $0x10e8] ss:$16 sps:$4 sm:$0xff]   ;;  %v8161_v49 = vld [vmem:[%s10505_s3 + $0x1104] ss:$16 sps:$4 sm:$0xff]  }
 0x2b9   :  { %6113 = vmatprep.subr.bf16.mxu1 %v8086_v52  ;;  %v8164_v52 = vld [vmem:[%s10505_s3 + $0x110c] ss:$16 sps:$4 sm:$0xff]  }
 0x2bb   :  { %5704 = vmatpush1.bf16.msra.mxu0 %v8081_v54  ;;  %v8159_v54 = vld [vmem:[%s10505_s3 + $0x1100] ss:$16 sps:$4 sm:$0xff]  }
 0x2bc   :  { %6114 = vmatpush1.bf16.msra.mxu1 %v8084_v41  ;;  %5705 = vmatprep.subr.bf16.mxu0 %v8089_v1  ;;  %v8162_v41 = vld [vmem:[%s10505_s3 + $0x1108] ss:$16 sps:$4 sm:$0xff]   ;;  %v8167_v1 = vld [vmem:[%s10505_s3 + $0x1124] ss:$16 sps:$4 sm:$0xff]  }
 0x2bd   :  { %6115 = vmatprep.subr.bf16.mxu1 %v8092_v55  ;;  %v8170_v55 = vld [vmem:[%s10505_s3 + $0x112c] ss:$16 sps:$4 sm:$0xff]  }
 0x2bf   :  { %5706 = vmatpush1.bf16.msra.mxu0 %v8087_v33  ;;  %v8165_v33 = vld [vmem:[%s10505_s3 + $0x1120] ss:$16 sps:$4 sm:$0xff]  }
 0x2c0   :  { %6116 = vmatpush1.bf16.msra.mxu1 %v8090_v46  ;;  %5707 = vmatprep.subr.bf16.mxu0 %v8095_v61  ;;  %v8168_v46 = vld [vmem:[%s10505_s3 + $0x1128] ss:$16 sps:$4 sm:$0xff]   ;;  %v8173_v61 = vld [vmem:[%s10505_s3 + $0x1144] ss:$16 sps:$4 sm:$0xff]  }
 0x2c1   :  { %6117 = vmatprep.subr.bf16.mxu1 %v8098_v12  ;;  %v8176_v12 = vld [vmem:[%s10505_s3 + $0x114c] ss:$16 sps:$4 sm:$0xff]  }
 0x2c3   :  { %5708 = vmatpush1.bf16.msra.mxu0 %v8093_v60  ;;  %v8171_v60 = vld [vmem:[%s10505_s3 + $0x1140] ss:$16 sps:$4 sm:$0xff]  }
 0x2c4   :  { %6118 = vmatpush1.bf16.msra.mxu1 %v8096_v45  ;;  %5709 = vmatprep.subr.bf16.mxu0 %v8101_v31  ;;  %v8174_v45 = vld [vmem:[%s10505_s3 + $0x1148] ss:$16 sps:$4 sm:$0xff]   ;;  %v8179_v31 = vld [vmem:[%s10505_s3 + $0x1164] ss:$16 sps:$4 sm:$0xff]  }
 0x2c5   :  { %6119 = vmatprep.subr.bf16.mxu1 %v8104_v63  ;;  %v8182_v63 = vld [vmem:[%s10505_s3 + $0x116c] ss:$16 sps:$4 sm:$0xff]  }
 0x2c7   :  { %5710 = vmatpush1.bf16.msra.mxu0 %v8099_v3  ;;  %v8177_v3 = vld [vmem:[%s10505_s3 + $0x1160] ss:$16 sps:$4 sm:$0xff]  }
 0x2c8   :  { %6120 = vmatpush1.bf16.msra.mxu1 %v8102_v43  ;;  %5711 = vmatprep.subr.bf16.mxu0 %v8107_v5  ;;  %v8180_v43 = vld [vmem:[%s10505_s3 + $0x1168] ss:$16 sps:$4 sm:$0xff]   ;;  %v8185_v5 = vld [vmem:[%s10505_s3 + $0x1184] ss:$16 sps:$4 sm:$0xff]  }
 0x2c9   :  { %6121 = vmatprep.subr.bf16.mxu1 %v8110_v28  ;;  %v8188_v28 = vld [vmem:[%s10505_s3 + $0x118c] ss:$16 sps:$4 sm:$0xff]  }
 0x2cb   :  { %5712 = vmatpush1.bf16.msra.mxu0 %v8105_v7  ;;  %v8186_v7 = vld [vmem:[%s10505_s3 + $0x1188] ss:$16 sps:$4 sm:$0xff]  }
 0x2cc   :  { %6122 = vmatpush1.bf16.msra.mxu1 %v8108_v8  ;;  %5722 = vmatprep.subr.bf16.mxu0 %v8113_v9  ;;  %v8191_v8 = vld [vmem:[%s10505_s3 + $0x11a4] ss:$16 sps:$4 sm:$0xff]   ;;  %v8194_v9 = vld [vmem:[%s10505_s3 + $0x11ac] ss:$16 sps:$4 sm:$0xff]  }
 0x2cd   :  { %6132 = vmatprep.subr.bf16.mxu1 %v8116_v37  ;;  %v8189_v37 = vld [vmem:[%s10505_s3 + $0x11a0] ss:$16 sps:$4 sm:$0xff]  }
 0x2ce   :  { %5714 = vmatmul.mubr.bf16.vlgmr.msra.gmra.mrb[20].mxu0 %v1526_v47 }
 0x2cf   :  { %6124 = vmatmul.mubr.bf16.vlgmr.msra.gmra.mrb[20].mxu1 %v1526_v47  ;;  %5723 = vmatpush1.bf16.msra.mxu0 %v8111_v40  ;;  %v8197_v40 = vld [vmem:[%s10505_s3 + $0x11c4] ss:$16 sps:$4 sm:$0xff]   ;;  %v8200_v47 = vld [vmem:[%s10505_s3 + $0x11cc] ss:$16 sps:$4 sm:$0xff]  }
 0x2d0   :  { %5754 = vmatprep.mubr.bf16.mxu0 %v1529_v21  ;;  %6133 = vmatpush1.bf16.msra.mxu1 %v8114_v50  ;;  %v8195_v50 = vld [vmem:[%s10505_s3 + $0x11c0] ss:$16 sps:$4 sm:$0xff]  }
 0x2d1   :  { %6164 = vmatprep.mubr.bf16.mxu1 %v1529_v21  ;;  %5724 = vmatprep.subr.bf16.mxu0 %v8119_v11  ;;  %v269_v11 = vrot.slane %v10079_v6, %v8620_v48  ;;  %v8198_v21 = vld [vmem:[%s10505_s3 + $0x11c8] ss:$16 sps:$4 sm:$0xff]   ;;  %v8201_v6 = vld [vmem:[%s10505_s3 + $0x11e0] ss:$16 sps:$4 sm:$0xff]  }
 0x2d2   :  { %6134 = vmatprep.subr.bf16.mxu1 %v8122_v13  ;;  %v8203_v13 = vld [vmem:[%s10505_s3 + $0x11e4] ss:$16 sps:$4 sm:$0xff]  }
 0x2d3   :  { %5725 = vmatpush1.bf16.msra.mxu0 %v8117_v58  ;;  %v8206_v58 = vld [vmem:[%s10505_s3 + $0x11ec] ss:$16 sps:$4 sm:$0xff]  }
 0x2d4   :  { %6135 = vmatpush1.bf16.msra.mxu1 %v8120_v14  ;;  %5726 = vmatprep.subr.bf16.mxu0 %v8125_v15  ;;  %v1465_v14 = vadd.f32 %v9082_v18, %v269_v11  ;;  %v8204_v15 = vld [vmem:[%s10505_s3 + $0x11e8] ss:$16 sps:$4 sm:$0xff]   ;;  %v8207_v18 = vld [vmem:[%s10505_s3 + $0x1200] ss:$16 sps:$4 sm:$0xff]  }
 0x2d5   :  { %6136 = vmatprep.subr.bf16.mxu1 %v8128_v16  ;;  %v8209_v16 = vld [vmem:[%s10505_s3 + $0x1204] ss:$16 sps:$4 sm:$0xff]   ;;  %v8279_v11 = vld [vmem:[%s10505_s3 + $0x1380] ss:$16 sps:$4 sm:$0xff]  }
 0x2d7   :  { %5727 = vmatpush1.bf16.msra.mxu0 %v8123_v62  ;;  %v8212_v62 = vld [vmem:[%s10505_s3 + $0x120c] ss:$16 sps:$4 sm:$0xff]  }
 0x2d8   :  { %6137 = vmatpush1.bf16.msra.mxu1 %v8126_v17  ;;  %5728 = vmatprep.subr.bf16.mxu0 %v8131_v19  ;;  %v1528_v17 = vpack.c.bf16 %v1465_v14, %v1465_v14  ;;  %v8210_v19 = vld [vmem:[%s10505_s3 + $0x1208] ss:$16 sps:$4 sm:$0xff]  }
 0x2d9   :  { %6138 = vmatprep.subr.bf16.mxu1 %v8134_v20  ;;  %v8215_v20 = vld [vmem:[%s10505_s3 + $0x1224] ss:$16 sps:$4 sm:$0xff]   ;;  %v8288_v14 = vld [vmem:[%s10505_s3 + $0x13a8] ss:$16 sps:$4 sm:$0xff]  }
 0x2db   :  { %5729 = vmatpush1.bf16.msra.mxu0 %v8129_v22  ;;  %v1531_v22 = vpack.c.bf16 %v9130_v53, %v9130_v53  ;;  %v8221_v53 = vld [vmem:[%s10505_s3 + $0x1244] ss:$16 sps:$4 sm:$0xff]  }
 0x2dc   :  { %6139 = vmatpush1.bf16.msra.mxu1 %v8132_v34  ;;  %5730 = vmatprep.subr.bf16.mxu0 %v8137_v23  ;;  %v8218_v34 = vld [vmem:[%s10505_s3 + $0x122c] ss:$16 sps:$4 sm:$0xff]   ;;  %v8213_v23 = vld [vmem:[%s10505_s3 + $0x1220] ss:$16 sps:$4 sm:$0xff]  }
 0x2dd   :  { %6140 = vmatprep.subr.bf16.mxu1 %v8140_v24  ;;  %v8216_v24 = vld [vmem:[%s10505_s3 + $0x1228] ss:$16 sps:$4 sm:$0xff]  }
 0x2df   :  { %5731 = vmatpush1.bf16.msra.mxu0 %v8135_v25  ;;  %v8224_v25 = vld [vmem:[%s10505_s3 + $0x124c] ss:$16 sps:$4 sm:$0xff]  }
 0x2e0   :  { %6141 = vmatpush1.bf16.msra.mxu1 %v8138_v26  ;;  %5732 = vmatprep.subr.bf16.mxu0 %v8143_v27  ;;  %v8219_v26 = vld [vmem:[%s10505_s3 + $0x1240] ss:$16 sps:$4 sm:$0xff]   ;;  %v8222_v27 = vld [vmem:[%s10505_s3 + $0x1248] ss:$16 sps:$4 sm:$0xff]  }
 0x2e1   :  { %6142 = vmatprep.subr.bf16.mxu1 %v8146_v0  ;;  %v8227_v0 = vld [vmem:[%s10505_s3 + $0x1264] ss:$16 sps:$4 sm:$0xff]  }
 0x2e3   :  { %5733 = vmatpush1.bf16.msra.mxu0 %v8141_v29  ;;  %v8230_v29 = vld [vmem:[%s10505_s3 + $0x126c] ss:$16 sps:$4 sm:$0xff]  }
 0x2e4   :  { %6143 = vmatpush1.bf16.msra.mxu1 %v8144_v4  ;;  %5734 = vmatprep.subr.bf16.mxu0 %v8149_v30  ;;  %v8225_v4 = vld [vmem:[%s10505_s3 + $0x1260] ss:$16 sps:$4 sm:$0xff]   ;;  %v8228_v30 = vld [vmem:[%s10505_s3 + $0x1268] ss:$16 sps:$4 sm:$0xff]  }
 0x2e5   :  { %6144 = vmatprep.subr.bf16.mxu1 %v8152_v32  ;;  %v8233_v32 = vld [vmem:[%s10505_s3 + $0x1284] ss:$16 sps:$4 sm:$0xff]  }
 0x2e7   :  { %5735 = vmatpush1.bf16.msra.mxu0 %v8147_v35  ;;  %v8236_v35 = vld [vmem:[%s10505_s3 + $0x128c] ss:$16 sps:$4 sm:$0xff]  }
 0x2e8   :  { %6145 = vmatpush1.bf16.msra.mxu1 %v8150_v56  ;;  %5736 = vmatprep.subr.bf16.mxu0 %v8155_v36  ;;  %v8231_v56 = vld [vmem:[%s10505_s3 + $0x1280] ss:$16 sps:$4 sm:$0xff]   ;;  %v8234_v36 = vld [vmem:[%s10505_s3 + $0x1288] ss:$16 sps:$4 sm:$0xff]  }
 0x2e9   :  { %6146 = vmatprep.subr.bf16.mxu1 %v8158_v10  ;;  %v8239_v10 = vld [vmem:[%s10505_s3 + $0x12a4] ss:$16 sps:$4 sm:$0xff]  }
 0x2eb   :  { %5737 = vmatpush1.bf16.msra.mxu0 %v8153_v44  ;;  %v8242_v44 = vld [vmem:[%s10505_s3 + $0x12ac] ss:$16 sps:$4 sm:$0xff]  }
 0x2ec   :  { %6147 = vmatpush1.bf16.msra.mxu1 %v8156_v38  ;;  %5738 = vmatprep.subr.bf16.mxu0 %v8161_v49  ;;  %v8237_v38 = vld [vmem:[%s10505_s3 + $0x12a0] ss:$16 sps:$4 sm:$0xff]   ;;  %v8240_v49 = vld [vmem:[%s10505_s3 + $0x12a8] ss:$16 sps:$4 sm:$0xff]  }
 0x2ed   :  { %6148 = vmatprep.subr.bf16.mxu1 %v8164_v52  ;;  %v8245_v52 = vld [vmem:[%s10505_s3 + $0x12c4] ss:$16 sps:$4 sm:$0xff]  }
 0x2ef   :  { %5739 = vmatpush1.bf16.msra.mxu0 %v8159_v54  ;;  %v8248_v54 = vld [vmem:[%s10505_s3 + $0x12cc] ss:$16 sps:$4 sm:$0xff]  }
 0x2f0   :  { %6149 = vmatpush1.bf16.msra.mxu1 %v8162_v41  ;;  %5740 = vmatprep.subr.bf16.mxu0 %v8167_v1  ;;  %v8243_v41 = vld [vmem:[%s10505_s3 + $0x12c0] ss:$16 sps:$4 sm:$0xff]   ;;  %v8246_v1 = vld [vmem:[%s10505_s3 + $0x12c8] ss:$16 sps:$4 sm:$0xff]  }
 0x2f1   :  { %6150 = vmatprep.subr.bf16.mxu1 %v8170_v55  ;;  %v8251_v55 = vld [vmem:[%s10505_s3 + $0x12e4] ss:$16 sps:$4 sm:$0xff]  }
 0x2f3   :  { %5741 = vmatpush1.bf16.msra.mxu0 %v8165_v33  ;;  %v8254_v33 = vld [vmem:[%s10505_s3 + $0x12ec] ss:$16 sps:$4 sm:$0xff]  }
 0x2f4   :  { %6151 = vmatpush1.bf16.msra.mxu1 %v8168_v46  ;;  %5742 = vmatprep.subr.bf16.mxu0 %v8173_v61  ;;  %v8249_v46 = vld [vmem:[%s10505_s3 + $0x12e0] ss:$16 sps:$4 sm:$0xff]   ;;  %v8252_v61 = vld [vmem:[%s10505_s3 + $0x12e8] ss:$16 sps:$4 sm:$0xff]  }
 0x2f5   :  { %6152 = vmatprep.subr.bf16.mxu1 %v8176_v12  ;;  %v8257_v12 = vld [vmem:[%s10505_s3 + $0x1304] ss:$16 sps:$4 sm:$0xff]  }
 0x2f7   :  { %5743 = vmatpush1.bf16.msra.mxu0 %v8171_v60  ;;  %v8260_v60 = vld [vmem:[%s10505_s3 + $0x130c] ss:$16 sps:$4 sm:$0xff]  }
 0x2f8   :  { %6153 = vmatpush1.bf16.msra.mxu1 %v8174_v45  ;;  %5744 = vmatprep.subr.bf16.mxu0 %v8179_v31  ;;  %v8255_v45 = vld [vmem:[%s10505_s3 + $0x1300] ss:$16 sps:$4 sm:$0xff]   ;;  %v8258_v31 = vld [vmem:[%s10505_s3 + $0x1308] ss:$16 sps:$4 sm:$0xff]  }
 0x2f9   :  { %6154 = vmatprep.subr.bf16.mxu1 %v8182_v63  ;;  %v8263_v63 = vld [vmem:[%s10505_s3 + $0x1324] ss:$16 sps:$4 sm:$0xff]  }
 0x2fb   :  { %5745 = vmatpush1.bf16.msra.mxu0 %v8177_v3  ;;  %v8266_v3 = vld [vmem:[%s10505_s3 + $0x132c] ss:$16 sps:$4 sm:$0xff]  }
 0x2fc   :  { %6155 = vmatpush1.bf16.msra.mxu1 %v8180_v43  ;;  %5746 = vmatprep.subr.bf16.mxu0 %v8185_v5  ;;  %v8261_v43 = vld [vmem:[%s10505_s3 + $0x1320] ss:$16 sps:$4 sm:$0xff]   ;;  %v8264_v5 = vld [vmem:[%s10505_s3 + $0x1328] ss:$16 sps:$4 sm:$0xff]  }
 0x2fd   :  { %6156 = vmatprep.subr.bf16.mxu1 %v8188_v28  ;;  %v8269_v28 = vld [vmem:[%s10505_s3 + $0x1344] ss:$16 sps:$4 sm:$0xff]  }
 0x2ff   :  { %5747 = vmatpush1.bf16.msra.mxu0 %v8183_v59  ;;  %v8272_v59 = vld [vmem:[%s10505_s3 + $0x134c] ss:$16 sps:$4 sm:$0xff]  }
 0x300   :  { %6157 = vmatpush1.bf16.msra.mxu1 %v8186_v7  ;;  %5748 = vmatprep.subr.bf16.mxu0 %v8191_v8  ;;  %v8267_v7 = vld [vmem:[%s10505_s3 + $0x1340] ss:$16 sps:$4 sm:$0xff]   ;;  %v8270_v8 = vld [vmem:[%s10505_s3 + $0x1348] ss:$16 sps:$4 sm:$0xff]  }
 0x301   :  { %6158 = vmatprep.subr.bf16.mxu1 %v8194_v9  ;;  %v8275_v9 = vld [vmem:[%s10505_s3 + $0x1364] ss:$16 sps:$4 sm:$0xff]  }
 0x303   :  { %5749 = vmatpush1.bf16.msra.mxu0 %v8189_v37  ;;  %v8278_v37 = vld [vmem:[%s10505_s3 + $0x136c] ss:$16 sps:$4 sm:$0xff]  }
 0x304   :  { %6159 = vmatpush1.bf16.msra.mxu1 %v8192_v42  ;;  %5750 = vmatprep.subr.bf16.mxu0 %v8197_v40  ;;  %v8273_v42 = vld [vmem:[%s10505_s3 + $0x1360] ss:$16 sps:$4 sm:$0xff]   ;;  %v8276_v40 = vld [vmem:[%s10505_s3 + $0x1368] ss:$16 sps:$4 sm:$0xff]  }
 0x305   :  { %6160 = vmatprep.subr.bf16.mxu1 %v8200_v47  ;;  %v8281_v47 = vld [vmem:[%s10505_s3 + $0x1384] ss:$16 sps:$4 sm:$0xff]  }
 0x307   :  { %5751 = vmatpush1.bf16.msra.mxu0 %v8195_v50  ;;  %v8284_v50 = vld [vmem:[%s10505_s3 + $0x138c] ss:$16 sps:$4 sm:$0xff]  }
 0x308   :  { %6161 = vmatpush1.bf16.msra.mxu1 %v8198_v21  ;;  %5752 = vmatprep.subr.bf16.mxu0 %v8203_v13  ;;  %v8282_v21 = vld [vmem:[%s10505_s3 + $0x1388] ss:$16 sps:$4 sm:$0xff]   ;;  %v8287_v13 = vld [vmem:[%s10505_s3 + $0x13a4] ss:$16 sps:$4 sm:$0xff]  }
 0x309   :  { %6162 = vmatprep.subr.bf16.mxu1 %v8206_v58  ;;  %v8290_v58 = vld [vmem:[%s10505_s3 + $0x13ac] ss:$16 sps:$4 sm:$0xff]  }
 0x30b   :  { %5753 = vmatpush1.bf16.msra.mxu0 %v8201_v6  ;;  %v8285_v6 = vld [vmem:[%s10505_s3 + $0x13a0] ss:$16 sps:$4 sm:$0xff]  }
 0x30c   :  { %6163 = vmatpush1.bf16.msra.mxu1 %v8204_v15  ;;  %5763 = vmatprep.subr.bf16.mxu0 %v8209_v16  ;;  %v8293_v15 = vld [vmem:[%s10505_s3 + $0x13c4] ss:$16 sps:$4 sm:$0xff]   ;;  %v8296_v16 = vld [vmem:[%s10505_s3 + $0x13cc] ss:$16 sps:$4 sm:$0xff]  }
 0x30d   :  { %6173 = vmatprep.subr.bf16.mxu1 %v8212_v62  ;;  %v8291_v62 = vld [vmem:[%s10505_s3 + $0x13c0] ss:$16 sps:$4 sm:$0xff]  }
 0x30e   :  { %5755 = vmatmul.mubr.bf16.vlgmr.msra.gmra.mrb[20].mxu0 %v1528_v17 }
 0x30f   :  { %6165 = vmatmul.mubr.bf16.vlgmr.msra.gmra.mrb[20].mxu1 %v1528_v17  ;;  %5764 = vmatpush1.bf16.msra.mxu0 %v8207_v18  ;;  %v8294_v18 = vld [vmem:[%s10505_s3 + $0x13c8] ss:$16 sps:$4 sm:$0xff]   ;;  %v8299_v17 = vld [vmem:[%s10505_s3 + $0x13e4] ss:$16 sps:$4 sm:$0xff]  }
 0x310   :  { %5795 = vmatprep.mubr.bf16.mxu0 %v1531_v22  ;;  %6174 = vmatpush1.bf16.msra.mxu1 %v8210_v19  ;;  %v8302_v19 = vld [vmem:[%s10505_s3 + $0x13ec] ss:$16 sps:$4 sm:$0xff]  }
 0x311   :  { %6205 = vmatprep.mubr.bf16.mxu1 %v1531_v22  ;;  %5765 = vmatprep.subr.bf16.mxu0 %v8215_v20  ;;  %v8297_v20 = vld [vmem:[%s10505_s3 + $0x13e0] ss:$16 sps:$4 sm:$0xff]   ;;  %v8300_v22 = vld [vmem:[%s10505_s3 + $0x13e8] ss:$16 sps:$4 sm:$0xff]  }
 0x312   :  { %6175 = vmatprep.subr.bf16.mxu1 %v8218_v34  ;;  %v1530_v34 = vpack.c.bf16 %v9125_v39, %v9125_v39 }
 0x313   :  { %5766 = vmatpush1.bf16.msra.mxu0 %v8213_v23  ;;  %v2172_v23 = vld [vmem:[%s10506_s4] sm:$0xf] }
 0x314   :  { %6176 = vmatpush1.bf16.msra.mxu1 %v8216_v24  ;;  %5767 = vmatprep.subr.bf16.mxu0 %v8221_v53  ;;  %v2177_v24 = vrot.slane %v2172_v23, %v8620_v48  ;;  %v2185_v53 = vrot.slane %v2172_v23, %v8645_v57 }
 0x315   :  { %6177 = vmatprep.subr.bf16.mxu1 %v8224_v25  ;;  %v2181_v25 = vrot.slane %v2172_v23, %v8638_v51 }
 0x317   :  { %5768 = vmatpush1.bf16.msra.mxu0 %v8219_v26  ;;  %v2189_v26 = vrot.slane %v2172_v23, %v8660_v2 }
 0x318   :  { %6178 = vmatpush1.bf16.msra.mxu1 %v8222_v27  ;;  %5769 = vmatprep.subr.bf16.mxu0 %v8227_v0 }
 0x319   :  { %6179 = vmatprep.subr.bf16.mxu1 %v8230_v29 }
 0x31b   :  { %5770 = vmatpush1.bf16.msra.mxu0 %v8225_v4 }
 0x31c   :  { %6180 = vmatpush1.bf16.msra.mxu1 %v8228_v30  ;;  %5771 = vmatprep.subr.bf16.mxu0 %v8233_v32 }
 0x31d   :  { %6181 = vmatprep.subr.bf16.mxu1 %v8236_v35 }
 0x31f   :  { %5772 = vmatpush1.bf16.msra.mxu0 %v8231_v56 }
 0x320   :  { %6182 = vmatpush1.bf16.msra.mxu1 %v8234_v36  ;;  %5773 = vmatprep.subr.bf16.mxu0 %v8239_v10 }
 0x321   :  { %6183 = vmatprep.subr.bf16.mxu1 %v8242_v44 }
 0x323   :  { %5774 = vmatpush1.bf16.msra.mxu0 %v8237_v38 }
 0x324   :  { %6184 = vmatpush1.bf16.msra.mxu1 %v8240_v49  ;;  %5775 = vmatprep.subr.bf16.mxu0 %v8245_v52 }
 0x325   :  { %6185 = vmatprep.subr.bf16.mxu1 %v8248_v54 }
 0x327   :  { %5776 = vmatpush1.bf16.msra.mxu0 %v8243_v41 }
 0x328   :  { %6186 = vmatpush1.bf16.msra.mxu1 %v8246_v1  ;;  %5777 = vmatprep.subr.bf16.mxu0 %v8251_v55 }
 0x329   :  { %6187 = vmatprep.subr.bf16.mxu1 %v8254_v33 }
 0x32b   :  { %5778 = vmatpush1.bf16.msra.mxu0 %v8249_v46 }
 0x32c   :  { %6188 = vmatpush1.bf16.msra.mxu1 %v8252_v61  ;;  %5779 = vmatprep.subr.bf16.mxu0 %v8257_v12 }
 0x32d   :  { %6189 = vmatprep.subr.bf16.mxu1 %v8260_v60 }
 0x32f   :  { %5780 = vmatpush1.bf16.msra.mxu0 %v8255_v45 }
 0x330   :  { %6190 = vmatpush1.bf16.msra.mxu1 %v8258_v31  ;;  %5781 = vmatprep.subr.bf16.mxu0 %v8263_v63 }
 0x331   :  { %6191 = vmatprep.subr.bf16.mxu1 %v8266_v3 }
 0x333   :  { %5782 = vmatpush1.bf16.msra.mxu0 %v8261_v43 }
 0x334   :  { %6192 = vmatpush1.bf16.msra.mxu1 %v8264_v5  ;;  %5783 = vmatprep.subr.bf16.mxu0 %v8269_v28 }
 0x335   :  { %6193 = vmatprep.subr.bf16.mxu1 %v8272_v59 }
 0x337   :  { %5784 = vmatpush1.bf16.msra.mxu0 %v8267_v7 }
 0x338   :  { %6194 = vmatpush1.bf16.msra.mxu1 %v8270_v8  ;;  %5785 = vmatprep.subr.bf16.mxu0 %v8275_v9 }
 0x339   :  { %6195 = vmatprep.subr.bf16.mxu1 %v8278_v37 }
 0x33b   :  { %5786 = vmatpush1.bf16.msra.mxu0 %v8273_v42 }
 0x33c   :  { %6196 = vmatpush1.bf16.msra.mxu1 %v8276_v40  ;;  %5787 = vmatprep.subr.bf16.mxu0 %v8281_v47 }
 0x33d   :  { %6197 = vmatprep.subr.bf16.mxu1 %v8284_v50 }
 0x33f   :  { %5788 = vmatpush1.bf16.msra.mxu0 %v8279_v11 }
 0x340   :  { %6198 = vmatpush1.bf16.msra.mxu1 %v8282_v21  ;;  %5789 = vmatprep.subr.bf16.mxu0 %v8287_v13 }
 0x341   :  { %6199 = vmatprep.subr.bf16.mxu1 %v8290_v58 }
 0x343   :  { %5790 = vmatpush1.bf16.msra.mxu0 %v8285_v6 }
 0x344   :  { %6200 = vmatpush1.bf16.msra.mxu1 %v8288_v14  ;;  %5791 = vmatprep.subr.bf16.mxu0 %v8293_v15 }
 0x345   :  { %6201 = vmatprep.subr.bf16.mxu1 %v8296_v16 }
 0x347   :  { %5792 = vmatpush1.bf16.msra.mxu0 %v8291_v62 }
 0x348   :  { %6202 = vmatpush1.bf16.msra.mxu1 %v8294_v18  ;;  %5793 = vmatprep.subr.bf16.mxu0 %v8299_v17 }
 0x349   :  { %6203 = vmatprep.subr.bf16.mxu1 %v8302_v19 }
 0x34b   :  { %5794 = vmatpush1.bf16.msra.mxu0 %v8297_v20 }
 0x34c   :  { %6204 = vmatpush1.bf16.msra.mxu1 %v8300_v22 }
 0x34e   :  { %5796 = vmatmul.mubr.bf16.vlgmr.msra.gmra.mrb[20].mxu0 %v1530_v34 }
 0x34f   :  { %6206 = vmatmul.mubr.bf16.vlgmr.msra.gmra.mrb[20].mxu1 %v1530_v34 }
 0x421   :  { %v5797_v27 = vpop.f32.mrb[20].mxu0 }
 0x422   :  { %v7023_v0 = vadd.f32 %v5797_v27, %v2177_v24  ;;  %v6207_v29 = vpop.f32.mrb[20].mxu1  ;;  %v5799_v4 = vpop.f32.mrb[21].mxu0 }
 0x423   :  { %v7025_v39 = vadd.f32 %v6207_v29, %v2185_v53  ;;  %v7024_v30 = vadd.f32 %v5799_v4, %v2181_v25  ;;  %v6209_v32 = vpop.f32.mrb[21].mxu1  ;;  %v5801_v35 = vpop.f32.mrb[22].mxu0 }
 0x424   :  { %6214 = vst [vmem:[%s10507_s5] sm:$0xff] %v7023_v0  ;;  %v7026_v56 = vadd.f32 %v6209_v32, %v2189_v26  ;;  %v6211_v48 = vpop.f32.mrb[22].mxu1  ;;  %v5802_v36 = vpop.f32.mrb[23].mxu0 }
 0x425   :  { %6216 = vst [vmem:[%s10507_s5 + $0x10] sm:$0xff] %v7025_v39  ;;  %6215 = vst [vmem:[%s10507_s5 + $0x8] sm:$0xff] %v7024_v30  ;;  %v6212_v51 = vpop.f32.mrb[23].mxu1 }
 0x426   :  { %6217 = vst [vmem:[%s10507_s5 + $0x18] sm:$0xff] %v7026_v56 }
 0x427   :  { %6222 = vsyncpa [#allocation3], 1 }

</bundles_post_ra>
